<compile_context>
chip_gen: v7x
topology: tpu7x:2x2x1
jax: 0.10.0
libtpu: 0.0.40
codegen_flags: <defaults>
</compile_context>

<pallas_src>
import functools

import jax
import jax.numpy as jnp
from jax.experimental import pallas as pl
from jax.experimental.pallas import tpu as pltpu


def _round_up(x, m):
    return ((x + m - 1) // m) * m


def _tpu_vmem_capacity():
    try:
        info = pltpu.get_tpu_info()
        cap = getattr(info, "vmem_capacity_bytes", None)
        if cap:
            return int(cap)
    except Exception:
        pass
    return 64 * 1024 * 1024  # conservative fallback (v7x per-TC VMEM)


_VMEM_CAP = _tpu_vmem_capacity()
_BIG_VMEM = _VMEM_CAP >= 128 * 1024 * 1024
# ~40 MiB scoped budget on 64-MiB chips (v7x), ~100 MiB on 128-MiB chips.
_VMEM_LIMIT = (100 * 1024 * 1024) if _BIG_VMEM else (40 * 1024 * 1024)
# Bigger M tiles amortize per-grid-step overhead on single-TC chips; smaller
# tiles keep more parallel grid steps available on dual-TC v7x.
_TM_DEFAULT = 1024 if _BIG_VMEM else 512


def _pick_tm(M, tm):
    # Largest tile <= tm with a sublane-aligned (multiple-of-8) row count.
    return max(8, min(tm, _round_up(M, 8)))


# ----------------------------------------------------------------------------
# Kernel 1: cv1 = 1x1 conv + folded BN + SiLU, fused channel split -> (a, b)
# ----------------------------------------------------------------------------
def _cv1_split_kernel(x_ref, w_ref, s_ref, b_ref, oa_ref, ob_ref, *, c):
    x = x_ref[...].astype(jnp.bfloat16)
    # Single full-width (Cin, 2c) bf16 matmul keeps the MXU N dim filled.
    y = jnp.dot(x, w_ref[...], preferred_element_type=jnp.float32)
    y = y * s_ref[...] + b_ref[...]
    y = y * jax.nn.sigmoid(y)                       # SiLU (f32)
    oa_ref[...] = y[:, :c].astype(oa_ref.dtype)
    ob_ref[...] = y[:, c:].astype(ob_ref.dtype)


def cv1_split(x2, w_bf16, scale, shift, c, *, tm=_TM_DEFAULT):
    """x2: (M, Cin) f32.  Returns (a, b), each (M, c) f32."""
    M, Cin = x2.shape
    c2 = 2 * c
    tm = _pick_tm(M, tm)
    grid = (pl.cdiv(M, tm),)
    a, b = pl.pallas_call(
        functools.partial(_cv1_split_kernel, c=c),
        out_shape=(jax.ShapeDtypeStruct((M, c), x2.dtype),
                   jax.ShapeDtypeStruct((M, c), x2.dtype)),
        grid_spec=pltpu.PrefetchScalarGridSpec(
            num_scalar_prefetch=0,
            grid=grid,
            in_specs=[
                pl.BlockSpec((tm, Cin), lambda i: (i, 0)),
                pl.BlockSpec((Cin, c2), lambda i: (0, 0)),
                pl.BlockSpec((1, c2), lambda i: (0, 0)),
                pl.BlockSpec((1, c2), lambda i: (0, 0)),
            ],
            out_specs=(pl.BlockSpec((tm, c), lambda i: (i, 0)),
                       pl.BlockSpec((tm, c), lambda i: (i, 0))),
        ),
        compiler_params=pltpu.CompilerParams(
            dimension_semantics=("parallel",),
            vmem_limit_bytes=_VMEM_LIMIT),
    )(x2, w_bf16, scale.reshape(1, c2), shift.reshape(1, c2))
    return a, b


# ----------------------------------------------------------------------------
# Kernel 2: fused PSABlock
#   xg = x + x * sigmoid(dwconv_h(pool_w(x))) * sigmoid(dwconv_w(pool_h(x)))
#   out = xg + BN(Conv2(SiLU(BN(Conv1(xg)))))
# ----------------------------------------------------------------------------
def _psablock_kernel(x_ref, wh_ref, bh_ref, ww_ref, bw_ref,
                     w1_ref, s1_ref, b1_ref, w2_ref, s2_ref, b2_ref, o_ref):
    x = x_ref[0]                                   # (H, W, c) f32
    H, W, c = x.shape
    # ---- LCA attention + residual ----
    x_h = jnp.mean(x, axis=1)                      # pool over W  -> (H, c)
    x_w = jnp.mean(x, axis=0)                      # pool over H  -> (W, c)
    # depthwise 1x1 conv (groups=c) == per-channel scale + bias, then sigmoid
    a_h = jax.nn.sigmoid(x_h * wh_ref[...] + bh_ref[...])   # (H, c)
    a_w = jax.nn.sigmoid(x_w * ww_ref[...] + bw_ref[...])   # (W, c)
    xg = x + x * (a_h[:, None, :] * a_w[None, :, :])        # residual folded
    # ---- FFN (Conv c->2c + BN + SiLU, Conv 2c->c + BN) + residual ----
    # TODO(synk): the (H,W,c)<->(H*W,c) reshapes are layout no-ops only when
    # W % 8 == 0; for other W (or huge H*W*c on v7x) split into a pooling
    # pass + row-tiled gate+FFN pass instead.
    xg2 = xg.reshape(H * W, c)
    h = jnp.dot(xg2.astype(jnp.bfloat16), w1_ref[...],
                preferred_element_type=jnp.float32)
    h = h * s1_ref[...] + b1_ref[...]
    h = h * jax.nn.sigmoid(h)                      # SiLU
    y = jnp.dot(h.astype(jnp.bfloat16), w2_ref[...],
                preferred_element_type=jnp.float32)
    y = y * s2_ref[...] + b2_ref[...]              # act=False
    o_ref[0] = (xg + y.reshape(H, W, c)).astype(o_ref.dtype)


def psablock(x_nhwc, blk):
    B, H, W, c = x_nhwc.shape
    c2 = 2 * c
    return pl.pallas_call(
        _psablock_kernel,
        out_shape=jax.ShapeDtypeStruct((B, H, W, c), x_nhwc.dtype),
        grid_spec=pltpu.PrefetchScalarGridSpec(
            num_scalar_prefetch=0,
            grid=(B,),
            in_specs=[
                pl.BlockSpec((1, H, W, c), lambda b: (b, 0, 0, 0)),
                pl.BlockSpec((1, c), lambda b: (0, 0)),
                pl.BlockSpec((1, c), lambda b: (0, 0)),
                pl.BlockSpec((1, c), lambda b: (0, 0)),
                pl.BlockSpec((1, c), lambda b: (0, 0)),
                pl.BlockSpec((c, c2), lambda b: (0, 0)),
                pl.BlockSpec((1, c2), lambda b: (0, 0)),
                pl.BlockSpec((1, c2), lambda b: (0, 0)),
                pl.BlockSpec((c2, c), lambda b: (0, 0)),
                pl.BlockSpec((1, c), lambda b: (0, 0)),
                pl.BlockSpec((1, c), lambda b: (0, 0)),
            ],
            out_specs=pl.BlockSpec((1, H, W, c), lambda b: (b, 0, 0, 0)),
        ),
        compiler_params=pltpu.CompilerParams(
            dimension_semantics=("parallel",),
            vmem_limit_bytes=_VMEM_LIMIT),
    )(x_nhwc,
      blk["lca_wh"].reshape(1, c), blk["lca_bh"].reshape(1, c),
      blk["lca_ww"].reshape(1, c), blk["lca_bw"].reshape(1, c),
      blk["ffn1"]["w"], blk["ffn1"]["scale"].reshape(1, c2),
      blk["ffn1"]["shift"].reshape(1, c2),
      blk["ffn2"]["w"], blk["ffn2"]["scale"].reshape(1, c),
      blk["ffn2"]["shift"].reshape(1, c))


# ----------------------------------------------------------------------------
# Kernel 3: cv2 on concat(a, b) without materializing the concat
# ----------------------------------------------------------------------------
def _cv2_concat_kernel(a_ref, b_ref, wa_ref, wb_ref, s_ref, sh_ref, o_ref):
    # cat(a, b) @ W  ==  a @ W_top + b @ W_bot
    y = jnp.dot(a_ref[...].astype(jnp.bfloat16), wa_ref[...],
                preferred_element_type=jnp.float32)
    y = y + jnp.dot(b_ref[...].astype(jnp.bfloat16), wb_ref[...],
                    preferred_element_type=jnp.float32)
    y = y * s_ref[...] + sh_ref[...]
    y = y * jax.nn.sigmoid(y)                      # SiLU
    o_ref[...] = y.astype(o_ref.dtype)


def cv2_concat(a2, b2, cv2p, c, *, tm=_TM_DEFAULT):
    M, _ = a2.shape
    Cout = cv2p["wa"].shape[1]
    tm = _pick_tm(M, tm)
    grid = (pl.cdiv(M, tm),)
    return pl.pallas_call(
        _cv2_concat_kernel,
        out_shape=jax.ShapeDtypeStruct((M, Cout), a2.dtype),
        grid_spec=pltpu.PrefetchScalarGridSpec(
            num_scalar_prefetch=0,
            grid=grid,
            in_specs=[
                pl.BlockSpec((tm, c), lambda i: (i, 0)),
                pl.BlockSpec((tm, c), lambda i: (i, 0)),
                pl.BlockSpec((c, Cout), lambda i: (0, 0)),
                pl.BlockSpec((c, Cout), lambda i: (0, 0)),
                pl.BlockSpec((1, Cout), lambda i: (0, 0)),
                pl.BlockSpec((1, Cout), lambda i: (0, 0)),
            ],
            out_specs=pl.BlockSpec((tm, Cout), lambda i: (i, 0)),
        ),
        compiler_params=pltpu.CompilerParams(
            dimension_semantics=("parallel",),
            vmem_limit_bytes=_VMEM_LIMIT),
    )(a2, b2, cv2p["wa"], cv2p["wb"],
      cv2p["scale"].reshape(1, Cout), cv2p["shift"].reshape(1, Cout))


# ----------------------------------------------------------------------------
# Parameter setup (synthetic, deterministic) + glue
# ----------------------------------------------------------------------------
def _fold_bn(gamma, beta, mean, var, eps=1e-5):
    scale = gamma / jnp.sqrt(var + eps)
    shift = beta - mean * scale
    return scale, shift


def _init_conv_bn(key, cin, cout):
    k1, k2, k3, k4, k5 = jax.random.split(key, 5)
    w = jax.random.normal(k1, (cin, cout), jnp.float32) * 0.1
    gamma = 1.0 + 0.1 * jax.random.normal(k2, (cout,), jnp.float32)
    beta = 0.1 * jax.random.normal(k3, (cout,), jnp.float32)
    mean = 0.1 * jax.random.normal(k4, (cout,), jnp.float32)
    var = jnp.abs(jax.random.normal(k5, (cout,), jnp.float32)) + 0.5
    scale, shift = _fold_bn(gamma, beta, mean, var)
    # bf16 conv weight for the MXU; BN epilogue stays f32.
    return {"w": w.astype(jnp.bfloat16), "scale": scale, "shift": shift}


def init_params(key, c1, e, n):
    c = int(c1 * e)
    keys = jax.random.split(key, 2 + n)
    cv2p = _init_conv_bn(keys[1], 2 * c, c1)
    cv2p["wa"], cv2p["wb"] = cv2p["w"][:c], cv2p["w"][c:]   # pre-split halves
    params = {"cv1": _init_conv_bn(keys[0], c1, 2 * c), "cv2": cv2p,
              "blocks": []}
    for i in range(n):
        kb = jax.random.split(keys[2 + i], 6)
        params["blocks"].append({
            # LCA depthwise 1x1 convs (groups=c), with bias (nn.Conv2d default)
            "lca_wh": 0.5 * jax.random.normal(kb[0], (c,), jnp.float32),
            "lca_bh": 0.1 * jax.random.normal(kb[1], (c,), jnp.float32),
            "lca_ww": 0.5 * jax.random.normal(kb[2], (c,), jnp.float32),
            "lca_bw": 0.1 * jax.random.normal(kb[3], (c,), jnp.float32),
            "ffn1": _init_conv_bn(kb[4], c, 2 * c),
            "ffn2": _init_conv_bn(kb[5], 2 * c, c),
        })
    return params


def c2psa_lca_forward(x_nchw, params, *, c, tm=_TM_DEFAULT):
    """Forward pass of C2PSA_LCA.  x_nchw: (B, C1, H, W) float32."""
    B, C1, H, W = x_nchw.shape
    M = B * H * W
    # NCHW -> NHWC once at entry (interface cost; drop if the network is NHWC)
    x2 = jnp.transpose(x_nchw, (0, 2, 3, 1)).reshape(M, C1)

    # cv1: Conv(c1, 2c, 1) + BN + SiLU, channel-split fused in-kernel.
    a2, b2 = cv1_split(x2, params["cv1"]["w"], params["cv1"]["scale"],
                       params["cv1"]["shift"], c, tm=tm)

    # m: sequence of PSABlock(c) with shortcut=True (LCA+FFN fully fused).
    b_nhwc = b2.reshape(B, H, W, c)
    for blk in params["blocks"]:
        b_nhwc = psablock(b_nhwc, blk)

    # cv2: Conv(2c, c1, 1) + BN + SiLU on concat(a, b) (concat fused in-kernel)
    out2 = cv2_concat(a2, b_nhwc.reshape(M, c), params["cv2"], c, tm=tm)
    out = out2.reshape(B, H, W, C1)
    return jnp.transpose(out, (0, 3, 1, 2))  # back to NCHW


if __name__ == "__main__":
    # Small but lane-dense shapes (c = 128 keeps every output lane-aligned).
    B, C1, H, W = 2, 256, 16, 16
    n, e = 2, 0.5
    c = int(C1 * e)

    key = jax.random.PRNGKey(0)
    kx, kp = jax.random.split(key)
    x = jax.random.normal(kx, (B, C1, H, W), jnp.float32)
    params = init_params(kp, C1, e, n)

    fwd = jax.jit(functools.partial(c2psa_lca_forward, c=c))
    out = fwd(x, params)
    jax.block_until_ready(out)
    assert out.shape == (B, C1, H, W), out.shape
    assert out.dtype == jnp.float32
    print("KERNEL_OK")
</pallas_src>

<mosaic_0001>
module attributes {stable_mosaic.version = 11 : i64} {
  func.func @_psablock_kernel(%arg0: i32, %arg1: memref<1x16x16x128xf32, #tpu.memory_space<vmem>>, %arg2: memref<1x128xf32, #tpu.memory_space<vmem>>, %arg3: memref<1x128xf32, #tpu.memory_space<vmem>>, %arg4: memref<1x128xf32, #tpu.memory_space<vmem>>, %arg5: memref<1x128xf32, #tpu.memory_space<vmem>>, %arg6: memref<128x256xbf16, #tpu.memory_space<vmem>>, %arg7: memref<1x256xf32, #tpu.memory_space<vmem>>, %arg8: memref<1x256xf32, #tpu.memory_space<vmem>>, %arg9: memref<256x128xbf16, #tpu.memory_space<vmem>>, %arg10: memref<1x128xf32, #tpu.memory_space<vmem>>, %arg11: memref<1x128xf32, #tpu.memory_space<vmem>>, %arg12: memref<1x16x16x128xf32, #tpu.memory_space<vmem>>) attributes {dimension_semantics = [#tpu.dimension_semantics<parallel>], iteration_bounds = array<i64: 2>, scalar_prefetch = 0 : i64, scratch_operands = 0 : i64, tpu.core_type = #tpu.core_type<tc>, window_params = [{transform_indices = @transform_0, window_bounds = array<i64: 1, 16, 16, 128>}, {pipeline_mode = #tpu.pipeline_mode<synchronous>, transform_indices = @transform_1, window_bounds = array<i64: 1, 128>}, {pipeline_mode = #tpu.pipeline_mode<synchronous>, transform_indices = @transform_2, window_bounds = array<i64: 1, 128>}, {pipeline_mode = #tpu.pipeline_mode<synchronous>, transform_indices = @transform_3, window_bounds = array<i64: 1, 128>}, {pipeline_mode = #tpu.pipeline_mode<synchronous>, transform_indices = @transform_4, window_bounds = array<i64: 1, 128>}, {pipeline_mode = #tpu.pipeline_mode<synchronous>, transform_indices = @transform_5, window_bounds = array<i64: 128, 256>}, {pipeline_mode = #tpu.pipeline_mode<synchronous>, transform_indices = @transform_6, window_bounds = array<i64: 1, 256>}, {pipeline_mode = #tpu.pipeline_mode<synchronous>, transform_indices = @transform_7, window_bounds = array<i64: 1, 256>}, {pipeline_mode = #tpu.pipeline_mode<synchronous>, transform_indices = @transform_8, window_bounds = array<i64: 256, 128>}, {pipeline_mode = #tpu.pipeline_mode<synchronous>, transform_indices = @transform_9, window_bounds = array<i64: 1, 128>}, {pipeline_mode = #tpu.pipeline_mode<synchronous>, transform_indices = @transform_10, window_bounds = array<i64: 1, 128>}, {transform_indices = @transform_11, window_bounds = array<i64: 1, 16, 16, 128>}]} {
    %c0 = arith.constant 0 : index
    %c0_0 = arith.constant 0 : index
    %c0_1 = arith.constant 0 : index
    %c0_2 = arith.constant 0 : index
    %0 = vector.load %arg1[%c0, %c0_0, %c0_1, %c0_2] : memref<1x16x16x128xf32, #tpu.memory_space<vmem>>, vector<1x16x16x128xf32>
    %1 = vector.shape_cast %0 : vector<1x16x16x128xf32> to vector<16x16x128xf32>
    %cst = arith.constant dense<0.000000e+00> : vector<16x128xf32>
    %2 = vector.multi_reduction <add>, %1, %cst [1] : vector<16x16x128xf32> to vector<16x128xf32>
    %cst_3 = arith.constant 1.600000e+01 : f32
    %3 = vector.broadcast %cst_3 : f32 to vector<16x128xf32>
    %4 = arith.divf %2, %3 : vector<16x128xf32>
    %cst_4 = arith.constant dense<0.000000e+00> : vector<16x128xf32>
    %5 = vector.multi_reduction <add>, %1, %cst_4 [0] : vector<16x16x128xf32> to vector<16x128xf32>
    %cst_5 = arith.constant 1.600000e+01 : f32
    %6 = vector.broadcast %cst_5 : f32 to vector<16x128xf32>
    %7 = arith.divf %5, %6 : vector<16x128xf32>
    %c0_6 = arith.constant 0 : index
    %c0_7 = arith.constant 0 : index
    %8 = vector.load %arg2[%c0_6, %c0_7] : memref<1x128xf32, #tpu.memory_space<vmem>>, vector<1x128xf32>
    %9 = vector.broadcast %8 : vector<1x128xf32> to vector<16x128xf32>
    %10 = arith.mulf %4, %9 : vector<16x128xf32>
    %c0_8 = arith.constant 0 : index
    %c0_9 = arith.constant 0 : index
    %11 = vector.load %arg3[%c0_8, %c0_9] : memref<1x128xf32, #tpu.memory_space<vmem>>, vector<1x128xf32>
    %12 = vector.broadcast %11 : vector<1x128xf32> to vector<16x128xf32>
    %13 = arith.addf %10, %12 : vector<16x128xf32>
    %14 = arith.negf %13 : vector<16x128xf32>
    %15 = math.exp %14 : vector<16x128xf32>
    %cst_10 = arith.constant 1.000000e+00 : f32
    %16 = vector.broadcast %cst_10 : f32 to vector<16x128xf32>
    %17 = arith.addf %16, %15 : vector<16x128xf32>
    %18 = arith.divf %16, %17 : vector<16x128xf32>
    %c0_11 = arith.constant 0 : index
    %c0_12 = arith.constant 0 : index
    %19 = vector.load %arg4[%c0_11, %c0_12] : memref<1x128xf32, #tpu.memory_space<vmem>>, vector<1x128xf32>
    %20 = vector.broadcast %19 : vector<1x128xf32> to vector<16x128xf32>
    %21 = arith.mulf %7, %20 : vector<16x128xf32>
    %c0_13 = arith.constant 0 : index
    %c0_14 = arith.constant 0 : index
    %22 = vector.load %arg5[%c0_13, %c0_14] : memref<1x128xf32, #tpu.memory_space<vmem>>, vector<1x128xf32>
    %23 = vector.broadcast %22 : vector<1x128xf32> to vector<16x128xf32>
    %24 = arith.addf %21, %23 : vector<16x128xf32>
    %25 = arith.negf %24 : vector<16x128xf32>
    %26 = math.exp %25 : vector<16x128xf32>
    %cst_15 = arith.constant 1.000000e+00 : f32
    %27 = vector.broadcast %cst_15 : f32 to vector<16x128xf32>
    %28 = arith.addf %27, %26 : vector<16x128xf32>
    %29 = arith.divf %27, %28 : vector<16x128xf32>
    %30 = vector.shape_cast %18 : vector<16x128xf32> to vector<16x1x128xf32>
    %31 = vector.shape_cast %29 : vector<16x128xf32> to vector<1x16x128xf32>
    %32 = vector.broadcast %30 : vector<16x1x128xf32> to vector<16x16x128xf32>
    %33 = vector.broadcast %31 : vector<1x16x128xf32> to vector<16x16x128xf32>
    %34 = arith.mulf %32, %33 : vector<16x16x128xf32>
    %35 = arith.mulf %1, %34 : vector<16x16x128xf32>
    %36 = arith.addf %1, %35 : vector<16x16x128xf32>
    %37 = vector.shape_cast %36 : vector<16x16x128xf32> to vector<256x128xf32>
    %38 = arith.truncf %37 : vector<256x128xf32> to vector<256x128xbf16>
    %c0_16 = arith.constant 0 : index
    %c0_17 = arith.constant 0 : index
    %39 = vector.load %arg6[%c0_16, %c0_17] : memref<128x256xbf16, #tpu.memory_space<vmem>>, vector<128x256xbf16>
    %cst_18 = arith.constant dense<0.000000e+00> : vector<256x256xf32>
    %40 = tpu.matmul %38, %39, %cst_18 {dimension_numbers = #tpu.dot_dimension_numbers<[1], [0], [0], [1], [0, 0, 1, 1], [], []>} : vector<256x128xbf16>, vector<128x256xbf16>, vector<256x256xf32> -> vector<256x256xf32>
    %c0_19 = arith.constant 0 : index
    %c0_20 = arith.constant 0 : index
    %41 = vector.load %arg7[%c0_19, %c0_20] : memref<1x256xf32, #tpu.memory_space<vmem>>, vector<1x256xf32>
    %42 = vector.broadcast %41 : vector<1x256xf32> to vector<256x256xf32>
    %43 = arith.mulf %40, %42 : vector<256x256xf32>
    %c0_21 = arith.constant 0 : index
    %c0_22 = arith.constant 0 : index
    %44 = vector.load %arg8[%c0_21, %c0_22] : memref<1x256xf32, #tpu.memory_space<vmem>>, vector<1x256xf32>
    %45 = vector.broadcast %44 : vector<1x256xf32> to vector<256x256xf32>
    %46 = arith.addf %43, %45 : vector<256x256xf32>
    %47 = arith.negf %46 : vector<256x256xf32>
    %48 = math.exp %47 : vector<256x256xf32>
    %cst_23 = arith.constant 1.000000e+00 : f32
    %49 = vector.broadcast %cst_23 : f32 to vector<256x256xf32>
    %50 = arith.addf %49, %48 : vector<256x256xf32>
    %51 = arith.divf %49, %50 : vector<256x256xf32>
    %52 = arith.mulf %46, %51 : vector<256x256xf32>
    %53 = arith.truncf %52 : vector<256x256xf32> to vector<256x256xbf16>
    %c0_24 = arith.constant 0 : index
    %c0_25 = arith.constant 0 : index
    %54 = vector.load %arg9[%c0_24, %c0_25] : memref<256x128xbf16, #tpu.memory_space<vmem>>, vector<256x128xbf16>
    %cst_26 = arith.constant dense<0.000000e+00> : vector<256x128xf32>
    %55 = tpu.matmul %53, %54, %cst_26 {dimension_numbers = #tpu.dot_dimension_numbers<[1], [0], [0], [1], [0, 0, 1, 1], [], []>} : vector<256x256xbf16>, vector<256x128xbf16>, vector<256x128xf32> -> vector<256x128xf32>
    %c0_27 = arith.constant 0 : index
    %c0_28 = arith.constant 0 : index
    %56 = vector.load %arg10[%c0_27, %c0_28] : memref<1x128xf32, #tpu.memory_space<vmem>>, vector<1x128xf32>
    %57 = vector.broadcast %56 : vector<1x128xf32> to vector<256x128xf32>
    %58 = arith.mulf %55, %57 : vector<256x128xf32>
    %c0_29 = arith.constant 0 : index
    %c0_30 = arith.constant 0 : index
    %59 = vector.load %arg11[%c0_29, %c0_30] : memref<1x128xf32, #tpu.memory_space<vmem>>, vector<1x128xf32>
    %60 = vector.broadcast %59 : vector<1x128xf32> to vector<256x128xf32>
    %61 = arith.addf %58, %60 : vector<256x128xf32>
    %62 = vector.shape_cast %61 : vector<256x128xf32> to vector<16x16x128xf32>
    %63 = arith.addf %36, %62 : vector<16x16x128xf32>
    %c0_31 = arith.constant 0 : index
    %c0_32 = arith.constant 0 : index
    %c0_33 = arith.constant 0 : index
    %c0_34 = arith.constant 0 : index
    %64 = vector.load %arg12[%c0_31, %c0_32, %c0_33, %c0_34] : memref<1x16x16x128xf32, #tpu.memory_space<vmem>>, vector<1x16x16x128xf32>
    %65 = vector.shape_cast %64 : vector<1x16x16x128xf32> to vector<16x16x128xf32>
    %66 = vector.shape_cast %63 : vector<16x16x128xf32> to vector<1x16x16x128xf32>
    tpu.vector_store %arg12[%c0_31, %c0_32, %c0_33, %c0_34], %66 {strides = array<i32>} : memref<1x16x16x128xf32, #tpu.memory_space<vmem>>, vector<1x16x16x128xf32>,
    return
  }
  func.func @transform_0(%arg0: i32) -> (i32, i32, i32, i32) {
    %c0_i32 = arith.constant 0 : i32
    %c0_i32_0 = arith.constant 0 : i32
    %c0_i32_1 = arith.constant 0 : i32
    %c0_i32_2 = arith.constant 0 : i32
    return %arg0, %c0_i32, %c0_i32_0, %c0_i32_1 : i32, i32, i32, i32
  }
  func.func @transform_1(%arg0: i32) -> (i32, i32) {
    %c0_i32 = arith.constant 0 : i32
    %c0_i32_0 = arith.constant 0 : i32
    %c0_i32_1 = arith.constant 0 : i32
    return %c0_i32, %c0_i32_0 : i32, i32
  }
  func.func @transform_2(%arg0: i32) -> (i32, i32) {
    %c0_i32 = arith.constant 0 : i32
    %c0_i32_0 = arith.constant 0 : i32
    %c0_i32_1 = arith.constant 0 : i32
    return %c0_i32, %c0_i32_0 : i32, i32
  }
  func.func @transform_3(%arg0: i32) -> (i32, i32) {
    %c0_i32 = arith.constant 0 : i32
    %c0_i32_0 = arith.constant 0 : i32
    %c0_i32_1 = arith.constant 0 : i32
    return %c0_i32, %c0_i32_0 : i32, i32
  }
  func.func @transform_4(%arg0: i32) -> (i32, i32) {
    %c0_i32 = arith.constant 0 : i32
    %c0_i32_0 = arith.constant 0 : i32
    %c0_i32_1 = arith.constant 0 : i32
    return %c0_i32, %c0_i32_0 : i32, i32
  }
  func.func @transform_5(%arg0: i32) -> (i32, i32) {
    %c0_i32 = arith.constant 0 : i32
    %c0_i32_0 = arith.constant 0 : i32
    %c0_i32_1 = arith.constant 0 : i32
    return %c0_i32, %c0_i32_0 : i32, i32
  }
  func.func @transform_6(%arg0: i32) -> (i32, i32) {
    %c0_i32 = arith.constant 0 : i32
    %c0_i32_0 = arith.constant 0 : i32
    %c0_i32_1 = arith.constant 0 : i32
    return %c0_i32, %c0_i32_0 : i32, i32
  }
  func.func @transform_7(%arg0: i32) -> (i32, i32) {
    %c0_i32 = arith.constant 0 : i32
    %c0_i32_0 = arith.constant 0 : i32
    %c0_i32_1 = arith.constant 0 : i32
    return %c0_i32, %c0_i32_0 : i32, i32
  }
  func.func @transform_8(%arg0: i32) -> (i32, i32) {
    %c0_i32 = arith.constant 0 : i32
    %c0_i32_0 = arith.constant 0 : i32
    %c0_i32_1 = arith.constant 0 : i32
    return %c0_i32, %c0_i32_0 : i32, i32
  }
  func.func @transform_9(%arg0: i32) -> (i32, i32) {
    %c0_i32 = arith.constant 0 : i32
    %c0_i32_0 = arith.constant 0 : i32
    %c0_i32_1 = arith.constant 0 : i32
    return %c0_i32, %c0_i32_0 : i32, i32
  }
  func.func @transform_10(%arg0: i32) -> (i32, i32) {
    %c0_i32 = arith.constant 0 : i32
    %c0_i32_0 = arith.constant 0 : i32
    %c0_i32_1 = arith.constant 0 : i32
    return %c0_i32, %c0_i32_0 : i32, i32
  }
  func.func @transform_11(%arg0: i32) -> (i32, i32, i32, i32) {
    %c0_i32 = arith.constant 0 : i32
    %c0_i32_0 = arith.constant 0 : i32
    %c0_i32_1 = arith.constant 0 : i32
    %c0_i32_2 = arith.constant 0 : i32
    return %arg0, %c0_i32, %c0_i32_0, %c0_i32_1 : i32, i32, i32, i32
  }
}

module attributes {stable_mosaic.version = 11 : i64} {
  func.func @_cv2_concat_kernel(%arg0: i32, %arg1: memref<512x128xf32, #tpu.memory_space<vmem>>, %arg2: memref<512x128xf32, #tpu.memory_space<vmem>>, %arg3: memref<128x256xbf16, #tpu.memory_space<vmem>>, %arg4: memref<128x256xbf16, #tpu.memory_space<vmem>>, %arg5: memref<1x256xf32, #tpu.memory_space<vmem>>, %arg6: memref<1x256xf32, #tpu.memory_space<vmem>>, %arg7: memref<512x256xf32, #tpu.memory_space<vmem>>) attributes {dimension_semantics = [#tpu.dimension_semantics<parallel>], iteration_bounds = array<i64: 1>, scalar_prefetch = 0 : i64, scratch_operands = 0 : i64, tpu.core_type = #tpu.core_type<tc>, window_params = [{transform_indices = @transform_0, window_bounds = array<i64: 512, 128>}, {transform_indices = @transform_1, window_bounds = array<i64: 512, 128>}, {pipeline_mode = #tpu.pipeline_mode<synchronous>, transform_indices = @transform_2, window_bounds = array<i64: 128, 256>}, {pipeline_mode = #tpu.pipeline_mode<synchronous>, transform_indices = @transform_3, window_bounds = array<i64: 128, 256>}, {pipeline_mode = #tpu.pipeline_mode<synchronous>, transform_indices = @transform_4, window_bounds = array<i64: 1, 256>}, {pipeline_mode = #tpu.pipeline_mode<synchronous>, transform_indices = @transform_5, window_bounds = array<i64: 1, 256>}, {transform_indices = @transform_6, window_bounds = array<i64: 512, 256>}]} {
    %c0 = arith.constant 0 : index
    %c0_0 = arith.constant 0 : index
    %0 = vector.load %arg1[%c0, %c0_0] : memref<512x128xf32, #tpu.memory_space<vmem>>, vector<512x128xf32>
    %1 = arith.truncf %0 : vector<512x128xf32> to vector<512x128xbf16>
    %c0_1 = arith.constant 0 : index
    %c0_2 = arith.constant 0 : index
    %2 = vector.load %arg3[%c0_1, %c0_2] : memref<128x256xbf16, #tpu.memory_space<vmem>>, vector<128x256xbf16>
    %cst = arith.constant dense<0.000000e+00> : vector<512x256xf32>
    %3 = tpu.matmul %1, %2, %cst {dimension_numbers = #tpu.dot_dimension_numbers<[1], [0], [0], [1], [0, 0, 1, 1], [], []>} : vector<512x128xbf16>, vector<128x256xbf16>, vector<512x256xf32> -> vector<512x256xf32>
    %c0_3 = arith.constant 0 : index
    %c0_4 = arith.constant 0 : index
    %4 = vector.load %arg2[%c0_3, %c0_4] : memref<512x128xf32, #tpu.memory_space<vmem>>, vector<512x128xf32>
    %5 = arith.truncf %4 : vector<512x128xf32> to vector<512x128xbf16>
    %c0_5 = arith.constant 0 : index
    %c0_6 = arith.constant 0 : index
    %6 = vector.load %arg4[%c0_5, %c0_6] : memref<128x256xbf16, #tpu.memory_space<vmem>>, vector<128x256xbf16>
    %cst_7 = arith.constant dense<0.000000e+00> : vector<512x256xf32>
    %7 = tpu.matmul %5, %6, %cst_7 {dimension_numbers = #tpu.dot_dimension_numbers<[1], [0], [0], [1], [0, 0, 1, 1], [], []>} : vector<512x128xbf16>, vector<128x256xbf16>, vector<512x256xf32> -> vector<512x256xf32>
    %8 = arith.addf %3, %7 : vector<512x256xf32>
    %c0_8 = arith.constant 0 : index
    %c0_9 = arith.constant 0 : index
    %9 = vector.load %arg5[%c0_8, %c0_9] : memref<1x256xf32, #tpu.memory_space<vmem>>, vector<1x256xf32>
    %10 = vector.broadcast %9 : vector<1x256xf32> to vector<512x256xf32>
    %11 = arith.mulf %8, %10 : vector<512x256xf32>
    %c0_10 = arith.constant 0 : index
    %c0_11 = arith.constant 0 : index
    %12 = vector.load %arg6[%c0_10, %c0_11] : memref<1x256xf32, #tpu.memory_space<vmem>>, vector<1x256xf32>
    %13 = vector.broadcast %12 : vector<1x256xf32> to vector<512x256xf32>
    %14 = arith.addf %11, %13 : vector<512x256xf32>
    %15 = arith.negf %14 : vector<512x256xf32>
    %16 = math.exp %15 : vector<512x256xf32>
    %cst_12 = arith.constant 1.000000e+00 : f32
    %17 = vector.broadcast %cst_12 : f32 to vector<512x256xf32>
    %18 = arith.addf %17, %16 : vector<512x256xf32>
    %19 = arith.divf %17, %18 : vector<512x256xf32>
    %20 = arith.mulf %14, %19 : vector<512x256xf32>
    %c0_13 = arith.constant 0 : index
    %c0_14 = arith.constant 0 : index
    %21 = vector.load %arg7[%c0_13, %c0_14] : memref<512x256xf32, #tpu.memory_space<vmem>>, vector<512x256xf32>
    tpu.vector_store %arg7[%c0_13, %c0_14], %20 {strides = array<i32>} : memref<512x256xf32, #tpu.memory_space<vmem>>, vector<512x256xf32>,
    return
  }
  func.func @transform_0(%arg0: i32) -> (i32, i32) {
    %c0_i32 = arith.constant 0 : i32
    %c0_i32_0 = arith.constant 0 : i32
    return %arg0, %c0_i32 : i32, i32
  }
  func.func @transform_1(%arg0: i32) -> (i32, i32) {
    %c0_i32 = arith.constant 0 : i32
    %c0_i32_0 = arith.constant 0 : i32
    return %arg0, %c0_i32 : i32, i32
  }
  func.func @transform_2(%arg0: i32) -> (i32, i32) {
    %c0_i32 = arith.constant 0 : i32
    %c0_i32_0 = arith.constant 0 : i32
    %c0_i32_1 = arith.constant 0 : i32
    return %c0_i32, %c0_i32_0 : i32, i32
  }
  func.func @transform_3(%arg0: i32) -> (i32, i32) {
    %c0_i32 = arith.constant 0 : i32
    %c0_i32_0 = arith.constant 0 : i32
    %c0_i32_1 = arith.constant 0 : i32
    return %c0_i32, %c0_i32_0 : i32, i32
  }
  func.func @transform_4(%arg0: i32) -> (i32, i32) {
    %c0_i32 = arith.constant 0 : i32
    %c0_i32_0 = arith.constant 0 : i32
    %c0_i32_1 = arith.constant 0 : i32
    return %c0_i32, %c0_i32_0 : i32, i32
  }
  func.func @transform_5(%arg0: i32) -> (i32, i32) {
    %c0_i32 = arith.constant 0 : i32
    %c0_i32_0 = arith.constant 0 : i32
    %c0_i32_1 = arith.constant 0 : i32
    return %c0_i32, %c0_i32_0 : i32, i32
  }
  func.func @transform_6(%arg0: i32) -> (i32, i32) {
    %c0_i32 = arith.constant 0 : i32
    %c0_i32_0 = arith.constant 0 : i32
    return %arg0, %c0_i32 : i32, i32
  }
}

module attributes {stable_mosaic.version = 11 : i64} {
  func.func @_cv1_split_kernel(%arg0: i32, %arg1: memref<512x256xf32, #tpu.memory_space<vmem>>, %arg2: memref<256x256xbf16, #tpu.memory_space<vmem>>, %arg3: memref<1x256xf32, #tpu.memory_space<vmem>>, %arg4: memref<1x256xf32, #tpu.memory_space<vmem>>, %arg5: memref<512x128xf32, #tpu.memory_space<vmem>>, %arg6: memref<512x128xf32, #tpu.memory_space<vmem>>) attributes {dimension_semantics = [#tpu.dimension_semantics<parallel>], iteration_bounds = array<i64: 1>, scalar_prefetch = 0 : i64, scratch_operands = 0 : i64, tpu.core_type = #tpu.core_type<tc>, window_params = [{transform_indices = @transform_0, window_bounds = array<i64: 512, 256>}, {pipeline_mode = #tpu.pipeline_mode<synchronous>, transform_indices = @transform_1, window_bounds = array<i64: 256, 256>}, {pipeline_mode = #tpu.pipeline_mode<synchronous>, transform_indices = @transform_2, window_bounds = array<i64: 1, 256>}, {pipeline_mode = #tpu.pipeline_mode<synchronous>, transform_indices = @transform_3, window_bounds = array<i64: 1, 256>}, {transform_indices = @transform_4, window_bounds = array<i64: 512, 128>}, {transform_indices = @transform_5, window_bounds = array<i64: 512, 128>}]} {
    %c0 = arith.constant 0 : index
    %c0_0 = arith.constant 0 : index
    %0 = vector.load %arg1[%c0, %c0_0] : memref<512x256xf32, #tpu.memory_space<vmem>>, vector<512x256xf32>
    %1 = arith.truncf %0 : vector<512x256xf32> to vector<512x256xbf16>
    %c0_1 = arith.constant 0 : index
    %c0_2 = arith.constant 0 : index
    %2 = vector.load %arg2[%c0_1, %c0_2] : memref<256x256xbf16, #tpu.memory_space<vmem>>, vector<256x256xbf16>
    %cst = arith.constant dense<0.000000e+00> : vector<512x256xf32>
    %3 = tpu.matmul %1, %2, %cst {dimension_numbers = #tpu.dot_dimension_numbers<[1], [0], [0], [1], [0, 0, 1, 1], [], []>} : vector<512x256xbf16>, vector<256x256xbf16>, vector<512x256xf32> -> vector<512x256xf32>
    %c0_3 = arith.constant 0 : index
    %c0_4 = arith.constant 0 : index
    %4 = vector.load %arg3[%c0_3, %c0_4] : memref<1x256xf32, #tpu.memory_space<vmem>>, vector<1x256xf32>
    %5 = vector.broadcast %4 : vector<1x256xf32> to vector<512x256xf32>
    %6 = arith.mulf %3, %5 : vector<512x256xf32>
    %c0_5 = arith.constant 0 : index
    %c0_6 = arith.constant 0 : index
    %7 = vector.load %arg4[%c0_5, %c0_6] : memref<1x256xf32, #tpu.memory_space<vmem>>, vector<1x256xf32>
    %8 = vector.broadcast %7 : vector<1x256xf32> to vector<512x256xf32>
    %9 = arith.addf %6, %8 : vector<512x256xf32>
    %10 = arith.negf %9 : vector<512x256xf32>
    %11 = math.exp %10 : vector<512x256xf32>
    %cst_7 = arith.constant 1.000000e+00 : f32
    %12 = vector.broadcast %cst_7 : f32 to vector<512x256xf32>
    %13 = arith.addf %12, %11 : vector<512x256xf32>
    %14 = arith.divf %12, %13 : vector<512x256xf32>
    %15 = arith.mulf %9, %14 : vector<512x256xf32>
    %16 = vector.extract_strided_slice %15 {offsets = [0, 0], sizes = [512, 128], strides = [1, 1]} : vector<512x256xf32> to vector<512x128xf32>
    %c0_8 = arith.constant 0 : index
    %c0_9 = arith.constant 0 : index
    %17 = vector.load %arg5[%c0_8, %c0_9] : memref<512x128xf32, #tpu.memory_space<vmem>>, vector<512x128xf32>
    tpu.vector_store %arg5[%c0_8, %c0_9], %16 {strides = array<i32>} : memref<512x128xf32, #tpu.memory_space<vmem>>, vector<512x128xf32>,
    %18 = vector.extract_strided_slice %15 {offsets = [0, 128], sizes = [512, 128], strides = [1, 1]} : vector<512x256xf32> to vector<512x128xf32>
    %c0_10 = arith.constant 0 : index
    %c0_11 = arith.constant 0 : index
    %19 = vector.load %arg6[%c0_10, %c0_11] : memref<512x128xf32, #tpu.memory_space<vmem>>, vector<512x128xf32>
    tpu.vector_store %arg6[%c0_10, %c0_11], %18 {strides = array<i32>} : memref<512x128xf32, #tpu.memory_space<vmem>>, vector<512x128xf32>,
    return
  }
  func.func @transform_0(%arg0: i32) -> (i32, i32) {
    %c0_i32 = arith.constant 0 : i32
    %c0_i32_0 = arith.constant 0 : i32
    return %arg0, %c0_i32 : i32, i32
  }
  func.func @transform_1(%arg0: i32) -> (i32, i32) {
    %c0_i32 = arith.constant 0 : i32
    %c0_i32_0 = arith.constant 0 : i32
    %c0_i32_1 = arith.constant 0 : i32
    return %c0_i32, %c0_i32_0 : i32, i32
  }
  func.func @transform_2(%arg0: i32) -> (i32, i32) {
    %c0_i32 = arith.constant 0 : i32
    %c0_i32_0 = arith.constant 0 : i32
    %c0_i32_1 = arith.constant 0 : i32
    return %c0_i32, %c0_i32_0 : i32, i32
  }
  func.func @transform_3(%arg0: i32) -> (i32, i32) {
    %c0_i32 = arith.constant 0 : i32
    %c0_i32_0 = arith.constant 0 : i32
    %c0_i32_1 = arith.constant 0 : i32
    return %c0_i32, %c0_i32_0 : i32, i32
  }
  func.func @transform_4(%arg0: i32) -> (i32, i32) {
    %c0_i32 = arith.constant 0 : i32
    %c0_i32_0 = arith.constant 0 : i32
    return %arg0, %c0_i32 : i32, i32
  }
  func.func @transform_5(%arg0: i32) -> (i32, i32) {
    %c0_i32 = arith.constant 0 : i32
    %c0_i32_0 = arith.constant 0 : i32
    return %arg0, %c0_i32 : i32, i32
  }
}

</mosaic_0001>

<bundles_post_ra>
// kernel: c2psa_lca_forward.5
= control target key start
LH: loop header
LB: loop body
LE: loop exit
PB: predicated region body
PF: predicated region fallthrough
CT: control target
= control target key end

     0   :  { %s3027_s17 = smov 0   ;;  %s4134_s0 = inlined_call_operand.vmem [shape: f32[2,16,16,128], index: 0, kind: input, shape index: {}]   ;;  %s4135_s1 = inlined_call_operand.vmem [shape: f32[1,128], index: 1, kind: input, shape index: {}]   ;;  %s4136_s2 = inlined_call_operand.vmem [shape: f32[1,128], index: 2, kind: input, shape index: {}]   ;;  %s4137_s3 = inlined_call_operand.vmem [shape: f32[1,128], index: 3, kind: input, shape index: {}]   ;;  %s4138_s4 = inlined_call_operand.vmem [shape: f32[1,128], index: 4, kind: input, shape index: {}]   ;;  %s4139_s5 = inlined_call_operand.vmem [shape: bf16[128,256], index: 5, kind: input, shape index: {}]   ;;  %s4140_s6 = inlined_call_operand.vmem [shape: f32[1,256], index: 6, kind: input, shape index: {}]   ;;  %s4141_s7 = inlined_call_operand.vmem [shape: f32[1,256], index: 7, kind: input, shape index: {}]   ;;  %s4142_s8 = inlined_call_operand.vmem [shape: bf16[256,128], index: 8, kind: input, shape index: {}]   ;;  %s4143_s9 = inlined_call_operand.vmem [shape: f32[1,128], index: 9, kind: input, shape index: {}]   ;;  %s4144_s10 = inlined_call_operand.vmem [shape: f32[1,128], index: 10, kind: input, shape index: {}]   ;;  %s4145_s11 = inlined_call_operand.vmem [shape: f32[2,16,16,128], index: 11, kind: output, shape index: {}]  }
   0x1 LB: > { %s2336_s18 = sadd.s32 4294967295, %s2964_s17   ;;  %p2340_p0 = scmp.ge.s32.totalorder %s2964_s17, 1  ;;  %s2964_s17 = sphi %s3027_s17, %s21_s17  }
   0x2   : > { %p337_p1 = scmp.lt.s32.totalorder %s2964_s17, 3 }
   0x4   : > { %p338_p2 = pnand %p2340_p0, %p337_p1 }
   0x6   : > { %341 = sbr.rel (%p338_p2) target bundleno = 691 (0x2b3), region = 64 }
   0xd   : > { %v2590_v0 = vld [vmem:[%s4139_s5 + $0x4] ss:$8 sps:$4 sm:$0xff]   ;;  %p377_p3 = scmp.lt.s32.totalorder %s2336_s18, 1  ;;  %v2592_v1 = vld [vmem:[%s4139_s5] ss:$8 sps:$4 sm:$0xff]   ;;  %v4146_v2 = vmov 0  }
   0xe   : > { %1057 = vmatprep.mubr.bf16.mxu0 %v4146_v2  ;;  %1025 = vmatprep.subr.bf16.mxu0 %v2590_v0  ;;  %v2593_v3 = vld [vmem:[%s4139_s5 + $0x14] ss:$8 sps:$4 sm:$0xff]   ;;  %v2595_v4 = vld [vmem:[%s4139_s5 + $0x10] ss:$8 sps:$4 sm:$0xff]   ;;  %v2596_v5 = vld [vmem:[%s4139_s5 + $0x24] ss:$8 sps:$4 sm:$0xff]  }
   0xf   : > { %s4184_s18 = smov (!%p377_p3, %s2336_s18), 1  ;;  %1026 = vmatpush1.bf16.msra.mxu0 %v2592_v1  ;;  %v2598_v6 = vld [vmem:[%s4139_s5 + $0x20] ss:$8 sps:$4 sm:$0xff]   ;;  %v2599_v7 = vld [vmem:[%s4139_s5 + $0x34] ss:$8 sps:$4 sm:$0xff]  }
  0x10   : > { %1027 = vmatprep.subr.bf16.mxu0 %v2593_v3  ;;  %s2467_s29 = sshll.u32 %s4184_s18, 8  ;;  %v2601_v8 = vld [vmem:[%s4139_s5 + $0x30] ss:$8 sps:$4 sm:$0xff]   ;;  %v2602_v13 = vld [vmem:[%s4139_s5 + $0x44] ss:$8 sps:$4 sm:$0xff]  }
  0x11   : > { %s3062_s15 = scalar_lea.vmem %s4134_s0, %s2467_s29  ;;  %v2604_v21 = vld [vmem:[%s4139_s5 + $0x40] ss:$8 sps:$4 sm:$0xff]   ;;  %v2605_v26 = vld [vmem:[%s4139_s5 + $0x54] ss:$8 sps:$4 sm:$0xff]   ;;  %v2607_v33 = vld [vmem:[%s4139_s5 + $0x50] ss:$8 sps:$4 sm:$0xff]   ;;  %s4004_s25 = scalar_lea.vmem %s4145_s11, %s2467_s29 }
  0x12   : > { %v3071_v9 = vld [vmem:[%s3062_s15] sm:$0xff]  ;;  %v3074_v10 = vld [vmem:[%s3062_s15 + $0x8] sm:$0xff]  ;;  %v3077_v11 = vld [vmem:[%s3062_s15 + $0x10] sm:$0xff] }
  0x13   : > { %1028 = vmatpush1.bf16.msra.mxu0 %v2595_v4  ;;  %v3080_v12 = vld [vmem:[%s3062_s15 + $0x18] sm:$0xff]  ;;  %v3086_v14 = vld [vmem:[%s3062_s15 + $0x20] sm:$0xff]  ;;  %v3089_v15 = vld [vmem:[%s3062_s15 + $0x28] sm:$0xff]  ;;  %v420_v16 = vadd.f32 %v3074_v10, %v3071_v9  ;;  %v549_v24 = vadd.f32 %v3077_v11, %v3071_v9 }
  0x14   : > { %1029 = vmatprep.subr.bf16.mxu0 %v2596_v5  ;;  %v427_v17 = vadd.f32 %v3080_v12, %v3077_v11  ;;  %v434_v18 = vadd.f32 %v3089_v15, %v3086_v14  ;;  %v3101_v22 = vld [vmem:[%s3062_s15 + $0x30] sm:$0xff]  ;;  %v3104_v23 = vld [vmem:[%s3062_s15 + $0x38] sm:$0xff]  ;;  %v564_v25 = vadd.f32 %v3080_v12, %v3074_v10  ;;  %v2608_v36 = vld [vmem:[%s4139_s5 + $0x64] ss:$8 sps:$4 sm:$0xff]  }
  0x15   : > { %v421_v19 = vrot.slane %v420_v16, 4  ;;  %v441_v30 = vadd.f32 %v3104_v23, %v3101_v22  ;;  %v550_v34 = vadd.f32 %v549_v24, %v3086_v14  ;;  %v2610_v41 = vld [vmem:[%s4139_s5 + $0x60] ss:$8 sps:$4 sm:$0xff]   ;;  %v2611_v46 = vld [vmem:[%s4139_s5 + $0x74] ss:$8 sps:$4 sm:$0xff]  }
  0x16   : > { %v428_v20 = vrot.slane %v427_v17, 4  ;;  %v435_v29 = vrot.slane %v434_v18, 4  ;;  %v565_v35 = vadd.f32 %v564_v25, %v3089_v15  ;;  %v3127_v42 = vld [vmem:[%s3062_s15 + $0x40] sm:$0xff]  ;;  %v3130_v43 = vld [vmem:[%s3062_s15 + $0x48] sm:$0xff]  ;;  %v3136_v47 = vld [vmem:[%s3062_s15 + $0x50] sm:$0xff] }
  0x17   : > { %1030 = vmatpush1.bf16.msra.mxu0 %v2598_v6  ;;  %v422_v27 = vadd.f32 %v421_v19, %v420_v16  ;;  %v442_v40 = vrot.slane %v441_v30, 4  ;;  %v3139_v48 = vld [vmem:[%s3062_s15 + $0x58] sm:$0xff]  ;;  %v551_v49 = vadd.f32 %v550_v34, %v3101_v22  ;;  %v3144_v51 = vld [vmem:[%s3062_s15 + $0x60] sm:$0xff]  ;;  %v3147_v52 = vld [vmem:[%s3062_s15 + $0x68] sm:$0xff]  ;;  %v448_v5 = vadd.f32 %v3130_v43, %v3127_v42 }
  0x18   : > { %1031 = vmatprep.subr.bf16.mxu0 %v2599_v7  ;;  %v429_v28 = vadd.f32 %v428_v20, %v427_v17  ;;  %v436_v39 = vadd.f32 %v435_v29, %v434_v18  ;;  %v566_v50 = vadd.f32 %v565_v35, %v3104_v23  ;;  %4160 = vst [vmem:[#allocation2_spill] sm:$0xff] %v3147_v52  ;;  %v2613_v55 = vld [vmem:[%s4139_s5 + $0x70] ss:$8 sps:$4 sm:$0xff]   ;;  %v3163_v0 = vld [vmem:[%s3062_s15 + $0x80] sm:$0xff]  ;;  %v3166_v1 = vld [vmem:[%s3062_s15 + $0x88] sm:$0xff] }
  0x19   : > { %v423_v31 = vrot.slane %v422_v27, 2  ;;  %v443_v54 = vadd.f32 %v442_v40, %v441_v30  ;;  %v552_v58 = vadd.f32 %v551_v49, %v3127_v42  ;;  %v3155_v60 = vld [vmem:[%s3062_s15 + $0x70] sm:$0xff]  ;;  %v3158_v61 = vld [vmem:[%s3062_s15 + $0x78] sm:$0xff]  ;;  %v3175_v16 = vld [vmem:[%s4135_s1] ss:$0 sm:$0xff]  ;;  %v449_v25 = vrot.slane %v448_v5, 4 }
  0x1a   : > { %v430_v32 = vrot.slane %v429_v28, 2  ;;  %v437_v53 = vrot.slane %v436_v39, 2  ;;  %v567_v59 = vadd.f32 %v566_v50, %v3130_v43  ;;  %v3180_v19 = vld [vmem:[%s3062_s15 + $0x90] sm:$0xff]  ;;  %v3183_v20 = vld [vmem:[%s3062_s15 + $0x98] sm:$0xff] }
  0x1b   : > { %1032 = vmatpush1.bf16.msra.mxu0 %v2601_v8  ;;  %v424_v37 = vadd.f32 %v423_v31, %v422_v27  ;;  %v553_v62 = vadd.f32 %v552_v58, %v3136_v47  ;;  %v444_v4 = vrot.slane %v443_v54, 2  ;;  %v3194_v29 = vld [vmem:[%s3062_s15 + $0xb0] sm:$0xff]  ;;  %v3197_v30 = vld [vmem:[%s3062_s15 + $0xb8] sm:$0xff] }
  0x1c   : > { %1033 = vmatprep.subr.bf16.mxu0 %v2602_v13  ;;  %v431_v38 = vadd.f32 %v430_v32, %v429_v28  ;;  %v568_v63 = vadd.f32 %v567_v59, %v3139_v48  ;;  %v438_v3 = vadd.f32 %v437_v53, %v436_v39  ;;  %v455_v32 = vadd.f32 %v3139_v48, %v3136_v47  ;;  %v3228_v58 = vld [vmem:[%s3062_s15 + $0xd8] sm:$0xff] }
  0x1d   : > { %v425_v44 = vrot.slane %v424_v37, 1  ;;  %v554_v8 = vadd.f32 %v553_v62, %v3144_v51  ;;  %v445_v31 = vadd.f32 %v444_v4, %v443_v54  ;;  %v450_v39 = vadd.f32 %v449_v25, %v448_v5  ;;  %v3233_v4 = vld [vmem:[%s3062_s15 + $0xe0] sm:$0xff]  ;;  %v3236_v5 = vld [vmem:[%s3062_s15 + $0xe8] sm:$0xff] }
  0x1e   : > { %v432_v45 = vrot.slane %v431_v38, 1  ;;  %v569_v13 = vadd.f32 %v568_v63, %v3147_v52  ;;  %v439_v24 = vrot.slane %v438_v3, 1  ;;  %v456_v49 = vrot.slane %v455_v32, 4 }
  0x1f   : > { %1034 = vmatpush1.bf16.msra.mxu0 %v2604_v21  ;;  %v426_v56 = vadd.f32 %v425_v44, %v424_v37  ;;  %v555_v17 = vadd.f32 %v554_v8, %v3155_v60  ;;  %v3186_v21 = vld [vmem:[%s3062_s15 + $0xa0] sm:$0xff]  ;;  %v451_v59 = vrot.slane %v450_v39, 2 }
  0x20   : > { %1035 = vmatprep.subr.bf16.mxu0 %v2605_v26  ;;  %v433_v57 = vadd.f32 %v432_v45, %v431_v38  ;;  %v570_v18 = vadd.f32 %v569_v13, %v3158_v61  ;;  %v3189_v26 = vld [vmem:[%s3062_s15 + $0xa8] sm:$0xff]  ;;  %v440_v38 = vadd.f32 %v439_v24, %v438_v3  ;;  %v3213_v44 = vld [vmem:[%s3062_s15 + $0xc0] sm:$0xff] }
  0x21   : > { %v533_v6 = vmul.f32 0.0625, %v426_v56  ;;  %v556_v27 = vadd.f32 %v555_v17, %v3163_v0  ;;  %v3216_v45 = vld [vmem:[%s3062_s15 + $0xc8] sm:$0xff]  ;;  %v483_v56 = vadd.f32 %v3183_v20, %v3180_v19  ;;  %v457_v17 = vadd.f32 %v456_v49, %v455_v32 }
  0x22   : > { %v534_v7 = vmul.f32 0.0625, %v433_v57  ;;  %v571_v28 = vadd.f32 %v570_v18, %v3166_v1  ;;  %v3225_v57 = vld [vmem:[%s3062_s15 + $0xd0] sm:$0xff]  ;;  %v535_v62 = vmul.f32 0.0625, %v440_v38 }
  0x23   : > { %1036 = vmatpush1.bf16.msra.mxu0 %v2607_v33  ;;  %v588_v33 = vmul.f32 %v3175_v16, %v533_v6  ;;  %v557_v34 = vadd.f32 %v556_v27, %v3180_v19  ;;  %v462_v6 = vadd.f32 %v3147_v52, %v3144_v51  ;;  %v484_v13 = vrot.slane %v483_v56, 4  ;;  %v3243_v27 = vld [vmem:[%s3062_s15 + $0xf0] sm:$0xff] }
  0x24   : > { %1037 = vmatprep.subr.bf16.mxu0 %v2608_v36  ;;  %v572_v35 = vadd.f32 %v571_v28, %v3183_v20  ;;  %v3207_v36 = vld [vmem:[%s4136_s2] ss:$0 sm:$0xff]  ;;  %v589_v37 = vmul.f32 %v3175_v16, %v534_v7  ;;  %v3246_v28 = vld [vmem:[%s3062_s15 + $0xf8] sm:$0xff] }
  0x25   : > { %v558_v40 = vadd.f32 %v557_v34, %v3186_v21  ;;  %v611_v50 = vadd.f32 %v3207_v36, %v588_v33  ;;  %v452_v33 = vadd.f32 %v451_v59, %v450_v39  ;;  %v590_v34 = vmul.f32 %v3175_v16, %v535_v62  ;;  %v2363_v39 = vld [vmem:[%s4137_s3] ss:$0 sm:$0xff] }
  0x27   : > { %1038 = vmatpush1.bf16.msra.mxu0 %v2610_v41  ;;  %v573_v41 = vadd.f32 %v572_v35, %v3189_v26  ;;  %v559_v53 = vadd.f32 %v558_v40, %v3194_v29  ;;  %v2347_v7 = vmul.f32 -1.442695, %v611_v50  ;;  %v485_v35 = vadd.f32 %v484_v13, %v483_v56  ;;  %v2364_v56 = vld [vmem:[%s4138_s4] ss:$0 sm:$0xff] }
  0x28   : > { %1039 = vmatprep.subr.bf16.mxu0 %v2611_v46  ;;  %v446_v46 = vrot.slane %v445_v31, 1  ;;  %v613_v50 = vadd.f32 %v3207_v36, %v590_v34  ;;  %v469_v13 = vadd.f32 %v3158_v61, %v3155_v60 }
  0x29   : > { %v574_v54 = vadd.f32 %v573_v41, %v3197_v30  ;;  %v560_v63 = vadd.f32 %v559_v53, %v3213_v44  ;;  %2630 = vpow2.f32 %v2347_v7  ;;  %v486_v40 = vrot.slane %v485_v35, 2 }
  0x2a   : > { %v447_v8 = vadd.f32 %v446_v46, %v445_v31  ;;  %v463_v31 = vrot.slane %v462_v6, 4  ;;  %v458_v41 = vrot.slane %v457_v17, 2  ;;  %v453_v53 = vrot.slane %v452_v33, 1 }
  0x2b   : > { %1040 = vmatpush1.bf16.msra.mxu0 %v2613_v55  ;;  %v612_v55 = vadd.f32 %v3207_v36, %v589_v37  ;;  %v575_v3 = vadd.f32 %v574_v54, %v3216_v45  ;;  %v561_v18 = vadd.f32 %v560_v63, %v3225_v57  ;;  %v487_v62 = vadd.f32 %v486_v40, %v485_v35 }
  0x2c   : > { %v536_v32 = vmul.f32 0.0625, %v447_v8  ;;  %v464_v63 = vadd.f32 %v463_v31, %v462_v6  ;;  %v459_v8 = vadd.f32 %v458_v41, %v457_v17  ;;  %v470_v6 = vrot.slane %v469_v13, 4 }
  0x2d   : > { %v576_v24 = vadd.f32 %v575_v3, %v3228_v58  ;;  %v2348_v25 = vmul.f32 -1.442695, %v612_v55  ;;  %v562_v37 = vadd.f32 %v561_v18, %v3233_v4  ;;  %v2349_v18 = vmul.f32 -1.442695, %v613_v50 }
  0x2e   : > { %v591_v59 = vmul.f32 %v3175_v16, %v536_v32  ;;  %v460_v52 = vrot.slane %v459_v8, 1  ;;  %v465_v32 = vrot.slane %v464_v63, 2 }
  0x2f   : > { %v577_v38 = vadd.f32 %v576_v24, %v3236_v5  ;;  %v563_v46 = vadd.f32 %v562_v37, %v3243_v27  ;;  %2632 = vpow2.f32 %v2348_v25  ;;  %v454_v24 = vadd.f32 %v453_v53, %v452_v33 }
  0x30   : > { %v488_v25 = vrot.slane %v487_v62, 1  ;;  %2634 = vpow2.f32 %v2349_v18  ;;  %v461_v53 = vadd.f32 %v460_v52, %v459_v8 }
  0x31   : > { %v578_v49 = vadd.f32 %v577_v38, %v3246_v28  ;;  %v579_v54 = vmul.f32 0.0625, %v563_v46  ;;  %v614_v38 = vadd.f32 %v3207_v36, %v591_v59  ;;  %v537_v31 = vmul.f32 0.0625, %v454_v24 }
  0x32   : > { %v489_v46 = vadd.f32 %v488_v25, %v487_v62  ;;  %v471_v59 = vadd.f32 %v470_v6, %v469_v13 }
  0x33   : > { %v580_v55 = vmul.f32 0.0625, %v578_v49  ;;  %v730_v3 = vmul.f32 %v2363_v39, %v579_v54  ;;  %v2631_v35 = vpop.eup %2630  ;;  %v2350_v41 = vmul.f32 -1.442695, %v614_v38  ;;  %v466_v54 = vadd.f32 %v465_v32, %v464_v63 }
  0x34   : > { %v542_v17 = vmul.f32 0.0625, %v489_v46  ;;  %v675_v50 = vadd.f32 1.0, %v2631_v35  ;;  %v472_v24 = vrot.slane %v471_v59, 2 }
  0x35   : > { %v731_v7 = vmul.f32 %v2363_v39, %v580_v55  ;;  %v739_v34 = vadd.f32 %v2364_v56, %v730_v3  ;;  %v476_v39 = vadd.f32 %v3166_v1, %v3163_v0 }
  0x36   : > { %v597_v33 = vmul.f32 %v3175_v16, %v542_v17 }
  0x37   : > { %v740_v37 = vadd.f32 %v2364_v56, %v731_v7  ;;  %v2365_v49 = vmul.f32 -1.442695, %v739_v34  ;;  %v592_v56 = vmul.f32 %v3175_v16, %v537_v31  ;;  %v538_v7 = vmul.f32 0.0625, %v461_v53 }
  0x38   : > { %v620_v62 = vadd.f32 %v3207_v36, %v597_v33  ;;  %v477_v25 = vrot.slane %v476_v39, 4  ;;  %v753_v34 = vlaneseq }
  0x39   : > { %v2366_v2 = vmul.f32 -1.442695, %v740_v37  ;;  %v2633_v40 = vpop.eup %2632  ;;  %2636 = vpow2.f32 %v2365_v49  ;;  %v615_v18 = vadd.f32 %v3207_v36, %v592_v56  ;;  %v593_v8 = vmul.f32 %v3175_v16, %v538_v7 }
  0x3a   : > { %v676_v55 = vadd.f32 1.0, %v2633_v40  ;;  %v2356_v3 = vmul.f32 -1.442695, %v620_v62  ;;  %v2635_v52 = vpop.eup %2634  ;;  %v473_v49 = vadd.f32 %v472_v24, %v471_v59  ;;  %v478_v32 = vadd.f32 %v477_v25, %v476_v39 }
  0x3b   : > { %2638 = vpow2.f32 %v2366_v2  ;;  %v467_v2 = vrot.slane %v466_v54, 1  ;;  %v2351_v46 = vmul.f32 -1.442695, %v615_v18  ;;  %v3271_v6 = vshrl.u32 %v753_v34, 7 }
  0x3c   : > { %2640 = vpow2.f32 %v2350_v41  ;;  %v677_v31 = vadd.f32 1.0, %v2635_v52  ;;  %v616_v17 = vadd.f32 %v3207_v36, %v593_v8  ;;  %v474_v33 = vrot.slane %v473_v49, 1 }
  0x3d   : > { %2642 = vrcp.f32 %v675_v50  ;;  %v468_v37 = vadd.f32 %v467_v2, %v466_v54  ;;  %v479_v50 = vrot.slane %v478_v32, 2  ;;  %v3275_v54 = vsub.s32 0, %v3271_v6 }
  0x3e   : > { %2644 = vrcp.f32 %v676_v55  ;;  %v2352_v56 = vmul.f32 -1.442695, %v616_v17  ;;  %v490_v62 = vadd.f32 %v3189_v26, %v3186_v21 }
  0x3f   : > { %2646 = vpow2.f32 %v2356_v3  ;;  %v539_v40 = vmul.f32 0.0625, %v468_v37  ;;  %v475_v3 = vadd.f32 %v474_v33, %v473_v49  ;;  %v480_v7 = vadd.f32 %v479_v50, %v478_v32 }
  0x40   : > { %v491_v52 = vrot.slane %v490_v62, 4 }
  0x41   : > { %v594_v59 = vmul.f32 %v3175_v16, %v539_v40  ;;  %v540_v8 = vmul.f32 0.0625, %v475_v3  ;;  %v481_v37 = vrot.slane %v480_v7, 1 }
  0x43   : > { %v2637_v63 = vpop.eup %2636  ;;  %v617_v34 = vadd.f32 %v3207_v36, %v594_v59  ;;  %v595_v50 = vmul.f32 %v3175_v16, %v540_v8 }
  0x44   : > { %v747_v38 = vadd.f32 1.0, %v2637_v63 }
  0x45   : > { %v2639_v13 = vpop.eup %2638  ;;  %v2353_v40 = vmul.f32 -1.442695, %v617_v34 }
  0x46   : > { %v748_v35 = vadd.f32 1.0, %v2639_v13  ;;  %2648 = vrcp.f32 %v747_v38  ;;  %v2641_v41 = vpop.eup %2640 }
  0x47   : > { %v2643_v53 = vpop.eup %2642  ;;  %v678_v24 = vadd.f32 1.0, %v2641_v41  ;;  %v492_v41 = vadd.f32 %v491_v52, %v490_v62 }
  0x48   : > { %2650 = vrcp.f32 %v748_v35  ;;  %v2645_v55 = vpop.eup %2644  ;;  %v756_v18 = vrot.slane %v2643_v53, %v3275_v54  ;;  %v482_v53 = vadd.f32 %v481_v37, %v480_v7 }
  0x49   : > { %2652 = vpow2.f32 %v2351_v46  ;;  %v2647_v39 = vpop.eup %2646  ;;  %v760_v25 = vrot.slane %v2645_v55, %v3275_v54  ;;  %v497_v55 = vadd.f32 %v3197_v30, %v3194_v29 }
  0x4a   : > { %2654 = vrcp.f32 %v677_v31  ;;  %v684_v2 = vadd.f32 1.0, %v2647_v39 }
  0x4b   : > { %2656 = vpow2.f32 %v2352_v56 }
  0x4c   : > { %2658 = vrcp.f32 %v684_v2 }
  0x4d   : > { %2660 = vrcp.f32 %v678_v24  ;;  %v618_v24 = vadd.f32 %v3207_v36, %v595_v50 }
  0x4e   : > { %2662 = vpow2.f32 %v2353_v40  ;;  %v504_v40 = vadd.f32 %v3216_v45, %v3213_v44 }
  0x50   : > { %v3283_v63 = vpop.eup %2648 }
  0x51   : > { %v817_v38 = vmul.f32 %v3283_v63, %v756_v18  ;;  %v819_v32 = vmul.f32 %v3283_v63, %v760_v25 }
  0x52   : > { %v3285_v13 = vpop.eup %2650 }
  0x53   : > { %v2653_v46 = vpop.eup %2652  ;;  %v818_v49 = vmul.f32 %v3285_v13, %v756_v18  ;;  %v820_v35 = vmul.f32 %v3285_v13, %v760_v25  ;;  %v849_v17 = vmul.f32 %v817_v38, %v3071_v9  ;;  %v851_v3 = vmul.f32 %v819_v32, %v3077_v11 }
  0x54   : > { %v2655_v31 = vpop.eup %2654  ;;  %v679_v56 = vadd.f32 1.0, %v2653_v46  ;;  %v493_v18 = vrot.slane %v492_v41, 2  ;;  %v541_v25 = vmul.f32 0.0625, %v482_v53 }
  0x55   : > { %v850_v33 = vmul.f32 %v818_v49, %v3074_v10  ;;  %v3297_v39 = vadd.f32 %v849_v17, %v3071_v9  ;;  %v852_v2 = vmul.f32 %v820_v35, %v3080_v12  ;;  %v764_v62 = vrot.slane %v2655_v31, %v3275_v54  ;;  %v2657_v34 = vpop.eup %2656 }
  0x56   : > { %v498_v9 = vrot.slane %v497_v55, 4  ;;  %2664 = vrcp.f32 %v679_v56  ;;  %v2659_v52 = vpop.eup %2658  ;;  %v4161_v49 = vmov 0   ;;  %v494_v32 = vadd.f32 %v493_v18, %v492_v41 }
  0x57   : > { %v3300_v59 = vadd.f32 %v850_v33, %v3074_v10  ;;  %v3309_v10 = vadd.f32 %v851_v3, %v3077_v11  ;;  %v3312_v8 = vadd.f32 %v852_v2, %v3080_v12  ;;  %v821_v37 = vmul.f32 %v3283_v63, %v764_v62  ;;  %v2661_v46 = vpop.eup %2660 }
  0x58   : > { %v822_v38 = vmul.f32 %v3285_v13, %v764_v62  ;;  %v2354_v35 = vmul.f32 -1.442695, %v618_v24  ;;  %v596_v31 = vmul.f32 %v3175_v16, %v541_v25  ;;  %v499_v17 = vadd.f32 %v498_v9, %v497_v55 }
  0x59   : > { %v913_v7 = vpack.c.bf16 %v3300_v59, %v3297_v39  ;;  %v680_v11 = vadd.f32 1.0, %v2657_v34  ;;  %v792_v33 = vrot.slane %v2659_v52, %v3275_v54  ;;  %v914_v12 = vpack.c.bf16 %v3312_v8, %v3309_v10 }
  0x5a   : > { %v853_v50 = vmul.f32 %v821_v37, %v3086_v14  ;;  %v854_v53 = vmul.f32 %v822_v38, %v3089_v15  ;;  %v768_v56 = vrot.slane %v2661_v46, %v3275_v54  ;;  %v495_v55 = vrot.slane %v494_v32, 1 }
  0x5b   : > { %1058 = vmatmul.mubr.bf16.vlgmr.msra.gmra.mrb[0].mxu0 %v913_v7  ;;  %v835_v41 = vmul.f32 %v3283_v63, %v792_v33  ;;  %v836_v3 = vmul.f32 %v3285_v13, %v792_v33  ;;  %2666 = vpow2.f32 %v2354_v35  ;;  %v619_v2 = vadd.f32 %v3207_v36, %v596_v31  ;;  %v2663_v7 = vpop.eup %2662 }
  0x5c   : > { %1067 = vmatprep.mubr.bf16.mxu0 %v4161_v49  ;;  %v500_v62 = vrot.slane %v499_v17, 2  ;;  %v505_v18 = vrot.slane %v504_v40, 4  ;;  %2668 = vrcp.f32 %v680_v11  ;;  %v3332_v9 = vadd.f32 %v853_v50, %v3086_v14 }
  0x5d   : > { %v867_v24 = vmul.f32 %v835_v41, %v3180_v19  ;;  %v868_v25 = vmul.f32 %v836_v3, %v3183_v20  ;;  %v3335_v34 = vadd.f32 %v854_v53, %v3089_v15  ;;  %v823_v52 = vmul.f32 %v3283_v63, %v768_v56 }
  0x5e   : > { %v824_v37 = vmul.f32 %v3285_v13, %v768_v56  ;;  %v496_v31 = vadd.f32 %v495_v55, %v494_v32  ;;  %v2355_v11 = vmul.f32 -1.442695, %v619_v2  ;;  %v501_v14 = vadd.f32 %v500_v62, %v499_v17 }
  0x5f   : > { %v3341_v46 = vadd.f32 %v867_v24, %v3180_v19  ;;  %v3344_v35 = vadd.f32 %v868_v25, %v3183_v20  ;;  %v506_v33 = vadd.f32 %v505_v18, %v504_v40  ;;  %v511_v15 = vadd.f32 %v3228_v58, %v3225_v57 }
  0x60   : > { %v2665_v38 = vpop.eup %2664  ;;  %v915_v50 = vpack.c.bf16 %v3335_v34, %v3332_v9  ;;  %v855_v53 = vmul.f32 %v823_v52, %v3101_v22  ;;  %v856_v56 = vmul.f32 %v824_v37, %v3104_v23  ;;  %v543_v41 = vmul.f32 0.0625, %v496_v31 }
  0x61   : > { %v772_v19 = vrot.slane %v2665_v38, %v3275_v54  ;;  %2670 = vpow2.f32 %v2355_v11  ;;  %v502_v20 = vrot.slane %v501_v14, 1  ;;  %v507_v32 = vrot.slane %v506_v33, 2 }
  0x62   : > { %v512_v3 = vrot.slane %v511_v15, 4  ;;  %v3354_v40 = vadd.f32 %v855_v53, %v3101_v22  ;;  %v3357_v55 = vadd.f32 %v856_v56, %v3104_v23  ;;  %v598_v24 = vmul.f32 %v3175_v16, %v543_v41 }
  0x63   : > { %1068 = vmatmul.mubr.bf16.gmra.mrb[4].mxu0 %v914_v12  ;;  %v681_v12 = vadd.f32 1.0, %v2663_v7  ;;  %v825_v2 = vmul.f32 %v3283_v63, %v772_v19  ;;  %v826_v62 = vmul.f32 %v3285_v13, %v772_v19  ;;  %v518_v7 = vadd.f32 %v3236_v5, %v3233_v4 }
  0x64   : > { %1077 = vmatprep.mubr.bf16.mxu0 %v4161_v49  ;;  %v503_v25 = vadd.f32 %v502_v20, %v501_v14  ;;  %v508_v52 = vadd.f32 %v507_v32, %v506_v33  ;;  %v513_v37 = vadd.f32 %v512_v3, %v511_v15  ;;  %v916_v23 = vpack.c.bf16 %v3357_v55, %v3354_v40 }
  0x65   : > { %2672 = vrcp.f32 %v681_v12  ;;  %v2667_v17 = vpop.eup %2666  ;;  %v857_v38 = vmul.f32 %v825_v2, %v3127_v42  ;;  %v858_v31 = vmul.f32 %v826_v62, %v3130_v43  ;;  %v519_v12 = vrot.slane %v518_v7, 4 }
  0x66   : > { %v2669_v18 = vpop.eup %2668  ;;  %v682_v22 = vadd.f32 1.0, %v2667_v17  ;;  %v544_v53 = vmul.f32 0.0625, %v503_v25  ;;  %v509_v56 = vrot.slane %v508_v52, 1  ;;  %v514_v19 = vrot.slane %v513_v37, 2 }
  0x67   : > { %v776_v11 = vrot.slane %v2669_v18, %v3275_v54  ;;  %v3372_v33 = vadd.f32 %v857_v38, %v3127_v42  ;;  %v3375_v15 = vadd.f32 %v858_v31, %v3130_v43  ;;  %v520_v3 = vadd.f32 %v519_v12, %v518_v7 }
  0x68   : > { %2674 = vrcp.f32 %v682_v22  ;;  %v525_v17 = vadd.f32 %v3246_v28, %v3243_v27  ;;  %v599_v62 = vmul.f32 %v3175_v16, %v544_v53  ;;  %v510_v18 = vadd.f32 %v509_v56, %v508_v52 }
  0x69   : > { %v827_v41 = vmul.f32 %v3283_v63, %v776_v11  ;;  %v828_v20 = vmul.f32 %v3285_v13, %v776_v11  ;;  %v515_v42 = vadd.f32 %v514_v19, %v513_v37  ;;  %v917_v43 = vpack.c.bf16 %v3375_v15, %v3372_v33 }
  0x6a   : > { %v521_v38 = vrot.slane %v520_v3, 2  ;;  %v526_v7 = vrot.slane %v525_v17, 4  ;;  %v622_v31 = vadd.f32 %v3207_v36, %v599_v62  ;;  %v545_v11 = vmul.f32 0.0625, %v510_v18 }
  0x6b   : > { %1078 = vmatmul.mubr.bf16.gmra.mrb[8].mxu0 %v915_v50  ;;  %v621_v50 = vadd.f32 %v3207_v36, %v598_v24  ;;  %v2671_v14 = vpop.eup %2670  ;;  %v859_v25 = vmul.f32 %v827_v41, %v3136_v47  ;;  %v860_v22 = vmul.f32 %v828_v20, %v3139_v48  ;;  %v516_v12 = vrot.slane %v515_v42, 1 }
  0x6c   : > { %1087 = vmatprep.mubr.bf16.mxu0 %v4161_v49  ;;  %v683_v24 = vadd.f32 1.0, %v2671_v14  ;;  %v522_v19 = vadd.f32 %v521_v38, %v520_v3  ;;  %v2358_v14 = vmul.f32 -1.442695, %v622_v31  ;;  %v600_v41 = vmul.f32 %v3175_v16, %v545_v11 }
  0x6d   : > { %v2357_v2 = vmul.f32 -1.442695, %v621_v50  ;;  %v3390_v52 = vadd.f32 %v859_v25, %v3136_v47  ;;  %v3393_v37 = vadd.f32 %v860_v22, %v3139_v48  ;;  %v517_v20 = vadd.f32 %v516_v12, %v515_v42  ;;  %v4162_v48 = vld [vmem:[#allocation2_spill] sm:$0xff] }
  0x6f   : > { %v2673_v32 = vpop.eup %2672  ;;  %2676 = vpow2.f32 %v2357_v2  ;;  %v918_v47 = vpack.c.bf16 %v3393_v37, %v3390_v52  ;;  %v546_v25 = vmul.f32 0.0625, %v517_v20 }
  0x70   : > { %2678 = vrcp.f32 %v683_v24  ;;  %v523_v24 = vrot.slane %v522_v19, 1 }
  0x71   : > { %2680 = vpow2.f32 %v2358_v14  ;;  %v601_v12 = vmul.f32 %v3175_v16, %v546_v25 }
  0x72   : > { %v2675_v56 = vpop.eup %2674  ;;  %v524_v31 = vadd.f32 %v523_v24, %v522_v19 }
  0x73   : > { %1088 = vmatmul.mubr.bf16.gmra.mrb[12].mxu0 %v916_v23  ;;  %v780_v23 = vrot.slane %v2673_v32, %v3275_v54  ;;  %v527_v32 = vadd.f32 %v526_v7, %v525_v17  ;;  %v784_v18 = vrot.slane %v2675_v56, %v3275_v54 }
  0x74   : > { %1097 = vmatprep.mubr.bf16.mxu0 %v4161_v49  ;;  %v547_v20 = vmul.f32 0.0625, %v524_v31 }
  0x75   : > { %v829_v50 = vmul.f32 %v3283_v63, %v780_v23  ;;  %v830_v53 = vmul.f32 %v3285_v13, %v780_v23  ;;  %v528_v3 = vrot.slane %v527_v32, 2  ;;  %v831_v23 = vmul.f32 %v3283_v63, %v784_v18 }
  0x76   : > { %v832_v38 = vmul.f32 %v3285_v13, %v784_v18  ;;  %v602_v24 = vmul.f32 %v3175_v16, %v547_v20 }
  0x77   : > { %v861_v2 = vmul.f32 %v829_v50, %v3144_v51  ;;  %v862_v62 = vmul.f32 %v830_v53, %v4162_v48  ;;  %v529_v50 = vadd.f32 %v528_v3, %v527_v32  ;;  %v863_v56 = vmul.f32 %v831_v23, %v3155_v60 }
  0x78   : > { %v864_v14 = vmul.f32 %v832_v38, %v3158_v61 }
  0x79   : > { %v2677_v22 = vpop.eup %2676  ;;  %v3406_v42 = vadd.f32 %v861_v2, %v3144_v51  ;;  %v3409_v17 = vadd.f32 %v862_v62, %v4162_v48  ;;  %v530_v2 = vrot.slane %v529_v50, 1  ;;  %v3422_v32 = vadd.f32 %v863_v56, %v3155_v60 }
  0x7a   : > { %v2679_v7 = vpop.eup %2678  ;;  %v685_v53 = vadd.f32 1.0, %v2677_v22  ;;  %v3425_v48 = vadd.f32 %v864_v14, %v3158_v61  ;;  %v625_v61 = vadd.f32 %v3207_v36, %v602_v24 }
  0x7b   : > { %1098 = vmatmul.mubr.bf16.gmra.mrb[16].mxu0 %v917_v43  ;;  %v623_v43 = vadd.f32 %v3207_v36, %v600_v41  ;;  %v919_v51 = vpack.c.bf16 %v3409_v17, %v3406_v42  ;;  %v788_v41 = vrot.slane %v2679_v7, %v3275_v54  ;;  %v2681_v19 = vpop.eup %2680  ;;  %v531_v25 = vadd.f32 %v530_v2, %v529_v50 }
  0x7c   : > { %1107 = vmatprep.mubr.bf16.mxu0 %v4161_v49  ;;  %v686_v3 = vadd.f32 1.0, %v2681_v19  ;;  %v920_v22 = vpack.c.bf16 %v3425_v48, %v3422_v32  ;;  %v2361_v50 = vmul.f32 -1.442695, %v625_v61  ;;  %v922_v19 = vpack.c.bf16 %v3344_v35, %v3341_v46 }
  0x7d   : > { %v2359_v11 = vmul.f32 -1.442695, %v623_v43  ;;  %v833_v62 = vmul.f32 %v3283_v63, %v788_v41  ;;  %v834_v18 = vmul.f32 %v3285_v13, %v788_v41  ;;  %v548_v38 = vmul.f32 0.0625, %v531_v25 }
  0x7f   : > { %2682 = vpow2.f32 %v2359_v11  ;;  %v865_v60 = vmul.f32 %v833_v62, %v3163_v0  ;;  %v866_v23 = vmul.f32 %v834_v18, %v3166_v1 }
  0x80   : > { %2684 = vrcp.f32 %v685_v53  ;;  %v603_v53 = vmul.f32 %v3175_v16, %v548_v38 }
  0x81   : > { %v3437_v31 = vadd.f32 %v865_v60, %v3163_v0  ;;  %v3440_v11 = vadd.f32 %v866_v23, %v3166_v1 }
  0x82   : > { %v626_v41 = vadd.f32 %v3207_v36, %v603_v53 }
  0x83   : > { %1108 = vmatmul.mubr.bf16.gmra.mrb[20].mxu0 %v918_v47  ;;  %v624_v47 = vadd.f32 %v3207_v36, %v601_v12  ;;  %v921_v56 = vpack.c.bf16 %v3440_v11, %v3437_v31 }
  0x84   : > { %1117 = vmatprep.mubr.bf16.mxu0 %v4161_v49  ;;  %v2362_v16 = vmul.f32 -1.442695, %v626_v41 }
  0x85   : > { %v2360_v43 = vmul.f32 -1.442695, %v624_v47 }
  0x87   : > { %2686 = vpow2.f32 %v2360_v43 }
  0x88   : > { %2688 = vrcp.f32 %v686_v3 }
  0x89   : > { %v2683_v7 = vpop.eup %2682  ;;  %2690 = vpow2.f32 %v2361_v50 }
  0x8a   : > { %v2685_v12 = vpop.eup %2684 }
  0x8b   : > { %1118 = vmatmul.mubr.bf16.gmra.mrb[24].mxu0 %v919_v51  ;;  %v687_v51 = vadd.f32 1.0, %v2683_v7  ;;  %v796_v14 = vrot.slane %v2685_v12, %v3275_v54 }
  0x8c   : > { %1127 = vmatprep.mubr.bf16.mxu0 %v4161_v49 }
  0x8d   : > { %2692 = vrcp.f32 %v687_v51  ;;  %v837_v1 = vmul.f32 %v3283_v63, %v796_v14  ;;  %v838_v20 = vmul.f32 %v3285_v13, %v796_v14 }
  0x8e   : > { %2694 = vpow2.f32 %v2362_v16 }
  0x8f   : > { %v869_v62 = vmul.f32 %v837_v1, %v3186_v21  ;;  %v870_v18 = vmul.f32 %v838_v20, %v3189_v26 }
  0x91   : > { %v2687_v0 = vpop.eup %2686  ;;  %v3457_v43 = vadd.f32 %v869_v62, %v3186_v21  ;;  %v3460_v25 = vadd.f32 %v870_v18, %v3189_v26  ;;  %v2615_v62 = vld [vmem:[%s4142_s8] sm:$0xff]  }
  0x92   : > { %v2689_v47 = vpop.eup %2688  ;;  %v688_v2 = vadd.f32 1.0, %v2687_v0 }
  0x93   : > { %1128 = vmatmul.mubr.bf16.gmra.mrb[28].mxu0 %v920_v22  ;;  %v800_v36 = vrot.slane %v2689_v47, %v3275_v54  ;;  %v2691_v24 = vpop.eup %2690  ;;  %v923_v61 = vpack.c.bf16 %v3460_v25, %v3457_v43 }
  0x94   : > { %1137 = vmatprep.mubr.bf16.mxu0 %v4161_v49  ;;  %2696 = vrcp.f32 %v688_v2  ;;  %v689_v23 = vadd.f32 1.0, %v2691_v24  ;;  %v2616_v24 = vld [vmem:[%s4142_s8 + $0x48] sm:$0xff]  }
  0x95   : > { %v839_v3 = vmul.f32 %v3283_v63, %v800_v36  ;;  %v840_v22 = vmul.f32 %v3285_v13, %v800_v36 }
  0x96   : > { %2698 = vrcp.f32 %v689_v23 }
  0x97   : > { %v2693_v60 = vpop.eup %2692  ;;  %v871_v38 = vmul.f32 %v839_v3, %v3194_v29  ;;  %v872_v7 = vmul.f32 %v840_v22, %v3197_v30  ;;  %v2617_v3 = vld [vmem:[%s4142_s8 + $0x8] sm:$0xff]  }
  0x98   : > { %v804_v21 = vrot.slane %v2693_v60, %v3275_v54  ;;  %v2695_v26 = vpop.eup %2694 }
  0x99   : > { %v3471_v12 = vadd.f32 %v871_v38, %v3194_v29  ;;  %v3474_v50 = vadd.f32 %v872_v7, %v3197_v30  ;;  %v690_v14 = vadd.f32 1.0, %v2695_v26  ;;  %v2618_v38 = vld [vmem:[%s4142_s8 + $0x50] sm:$0xff]  }
  0x9a   : > { %v841_v53 = vmul.f32 %v3283_v63, %v804_v21  ;;  %v842_v51 = vmul.f32 %v3285_v13, %v804_v21  ;;  %v2619_v21 = vld [vmem:[%s4142_s8 + $0x10] sm:$0xff]  }
  0x9b   : > { %1138 = vmatmul.mubr.bf16.gmra.mrb[32].mxu0 %v921_v56  ;;  %4163 = vst [vmem:[#allocation2_spill] sm:$0xff] %v3471_v12  ;;  %4164 = vst [vmem:[#allocation3_spill] sm:$0xff] %v3474_v50  ;;  %v924_v41 = vpack.c.bf16 %v3474_v50, %v3471_v12  ;;  %2700 = vrcp.f32 %v690_v14 }
  0x9c   : > { %1147 = vmatprep.mubr.bf16.mxu0 %v4161_v49  ;;  %v873_v0 = vmul.f32 %v841_v53, %v3213_v44  ;;  %v874_v1 = vmul.f32 %v842_v51, %v3216_v45  ;;  %v2620_v51 = vld [vmem:[%s4142_s8 + $0x58] sm:$0xff]  }
  0x9e   : > { %v2697_v56 = vpop.eup %2696  ;;  %v3485_v20 = vadd.f32 %v873_v0, %v3213_v44  ;;  %v3488_v47 = vadd.f32 %v874_v1, %v3216_v45 }
  0x9f   : > { %v808_v29 = vrot.slane %v2697_v56, %v3275_v54  ;;  %v2621_v56 = vld [vmem:[%s4142_s8 + $0x18] sm:$0xff]  }
  0xa0   : > { %v2699_v30 = vpop.eup %2698  ;;  %4165 = vst [vmem:[#allocation4_spill] sm:$0xff] %v3485_v20  ;;  %4166 = vst [vmem:[#allocation5_spill] sm:$0xff] %v3488_v47  ;;  %v925_v45 = vpack.c.bf16 %v3488_v47, %v3485_v20 }
  0xa1   : > { %v843_v16 = vmul.f32 %v3283_v63, %v808_v29  ;;  %v844_v2 = vmul.f32 %v3285_v13, %v808_v29  ;;  %v812_v44 = vrot.slane %v2699_v30, %v3275_v54  ;;  %v2622_v29 = vld [vmem:[%s4142_s8 + $0x60] sm:$0xff]  }
  0xa3   : > { %1148 = vmatmul.mubr.bf16.gmra.mrb[36].mxu0 %v922_v19  ;;  %v2614_v19 = vld [vmem:[%s4142_s8 + $0x40] sm:$0xff]   ;;  %v875_v18 = vmul.f32 %v843_v16, %v3225_v57  ;;  %v876_v36 = vmul.f32 %v844_v2, %v3228_v58  ;;  %v845_v22 = vmul.f32 %v3283_v63, %v812_v44  ;;  %v2625_v16 = vld [vmem:[%s4142_s8 + $0x28] sm:$0xff]  }
  0xa4   : > { %1157 = vmatprep.mubr.bf16.mxu0 %v4161_v49  ;;  %2469 = vmatprep.subr.bf16.mxu1 %v2614_v19 }
  0xa5   : > { %2470 = vmatpush3.bf16.msra.mxu1 %v2615_v62  ;;  %v3512_v60 = vadd.f32 %v875_v18, %v3225_v57  ;;  %v3515_v23 = vadd.f32 %v876_v36, %v3228_v58  ;;  %v2701_v7 = vpop.eup %2700  ;;  %v877_v57 = vmul.f32 %v845_v22, %v3233_v4  ;;  %v2626_v62 = vld [vmem:[%s4142_s8 + $0x70] sm:$0xff]   ;;  %v1226_v18 = vsub.s32 1, %v3271_v6  ;;  %v1294_v36 = vld [vmem:[%s4141_s7] sm:$0x3] }
  0xa6   : > { %2471 = vmatprep.subr.bf16.mxu1 %v2616_v24  ;;  %v816_v53 = vrot.slane %v2701_v7, %v3275_v54  ;;  %v3595_v22 = vrot.slane %v1294_v36, %v3275_v54 }
  0xa7   : > { %4167 = vst [vmem:[#allocation6_spill] sm:$0xff] %v3512_v60  ;;  %4168 = vst [vmem:[#allocation7_spill] sm:$0xff] %v3515_v23  ;;  %v926_v58 = vpack.c.bf16 %v3515_v23, %v3512_v60  ;;  %v3537_v14 = vadd.f32 %v877_v57, %v3233_v4  ;;  %v2623_v4 = vld [vmem:[%s4142_s8 + $0x20] sm:$0xff]  }
  0xa8   : > { %v847_v0 = vmul.f32 %v3283_v63, %v816_v53  ;;  %v848_v1 = vmul.f32 %v3285_v13, %v816_v53 }
  0xa9   : > { %2472 = vmatpush3.bf16.msra.mxu1 %v2617_v3  ;;  %4169 = vst [vmem:[#allocation8_spill] sm:$0xff] %v3537_v14 }
  0xaa   : > { %2473 = vmatprep.subr.bf16.mxu1 %v2618_v38  ;;  %v879_v30 = vmul.f32 %v847_v0, %v3243_v27  ;;  %v880_v63 = vmul.f32 %v848_v1, %v3246_v28 }
  0xab   : > { %1158 = vmatmul.mubr.bf16.gmra.mrb[40].mxu0 %v923_v61  ;;  %v846_v61 = vmul.f32 %v3285_v13, %v812_v44  ;;  %v2624_v13 = vld [vmem:[%s4142_s8 + $0x68] sm:$0xff]   ;;  %v2627_v44 = vld [vmem:[%s4142_s8 + $0x30] sm:$0xff]  }
  0xac   : > { %1167 = vmatprep.mubr.bf16.mxu0 %v4161_v49  ;;  %v3562_v2 = vadd.f32 %v879_v30, %v3243_v27  ;;  %v3565_v19 = vadd.f32 %v880_v63, %v3246_v28  ;;  %v2628_v27 = vld [vmem:[%s4142_s8 + $0x78] sm:$0xff]  }
  0xad   : > { %v878_v26 = vmul.f32 %v846_v61, %v3236_v5  ;;  %2474 = vmatpush3.bf16.msra.mxu1 %v2619_v21  ;;  %v2629_v28 = vld [vmem:[%s4142_s8 + $0x38] sm:$0xff]   ;;  %v3597_v61 = vrot.slane %v1294_v36, %v1226_v18 }
  0xae   : > { %2475 = vmatprep.subr.bf16.mxu1 %v2620_v51  ;;  %4171 = vst [vmem:[#allocation10_spill] sm:$0xff] %v3562_v2  ;;  %4172 = vst [vmem:[#allocation11_spill] sm:$0xff] %v3565_v19 }
  0xb1   : > { %2476 = vmatpush3.bf16.msra.mxu1 %v2621_v56 }
  0xb2   : > { %2477 = vmatprep.subr.bf16.mxu1 %v2622_v29 }
  0xb3   : > { %1168 = vmatmul.mubr.bf16.gmra.mrb[44].mxu0 %v924_v41  ;;  %v3540_v41 = vadd.f32 %v878_v26, %v3236_v5 }
  0xb4   : > { %1177 = vmatprep.mubr.bf16.mxu0 %v4161_v49 }
  0xb5   : > { %4170 = vst [vmem:[#allocation9_spill] sm:$0xff] %v3540_v41  ;;  %v927_v5 = vpack.c.bf16 %v3540_v41, %v3537_v14  ;;  %2478 = vmatpush3.bf16.msra.mxu1 %v2623_v4 }
  0xb6   : > { %2479 = vmatprep.subr.bf16.mxu1 %v2624_v13 }
  0xb9   : > { %2480 = vmatpush3.bf16.msra.mxu1 %v2625_v16 }
  0xba   : > { %2481 = vmatprep.subr.bf16.mxu1 %v2626_v62 }
  0xbb   : > { %1178 = vmatmul.mubr.bf16.gmra.mrb[48].mxu0 %v925_v45  ;;  %v928_v45 = vpack.c.bf16 %v3565_v19, %v3562_v2 }
  0xbc   : > { %1187 = vmatprep.mubr.bf16.mxu0 %v4161_v49 }
  0xbd   : > { %2482 = vmatpush3.bf16.msra.mxu1 %v2627_v44 }
  0xbe   : > { %2483 = vmatprep.subr.bf16.mxu1 %v2628_v27 }
  0xc1   : > { %2484 = vmatpush3.bf16.msra.mxu1 %v2629_v28 }
  0xc3   : > { %1188 = vmatmul.mubr.bf16.gmra.mrb[52].mxu0 %v926_v58 }
  0xc4   : > { %1197 = vmatprep.mubr.bf16.mxu0 %v4161_v49 }
  0xcb   : > { %1198 = vmatmul.mubr.bf16.gmra.mrb[56].mxu0 %v927_v5 }
  0xcc   : > { %1207 = vmatprep.mubr.bf16.mxu0 %v4161_v49  ;;  %v1218_v49 = vld [vmem:[%s4140_s6] sm:$0x3] }
  0xcd   : > { %v3590_v24 = vrot.slane %v1218_v49, %v3275_v54  ;;  %v3592_v3 = vrot.slane %v1218_v49, %v1226_v18 }
  0xd3   : > { %1208 = vmatmul.mubr.bf16.gmra.mrb[60].mxu0 %v928_v45 }
 0x12e   : > { %v1059_v38 = vpop.f32.mrb[0].mxu0 }
 0x12f   : > { %v1230_v7 = vmul.f32 %v3590_v24, %v1059_v38  ;;  %v1061_v21 = vpop.f32.mrb[1].mxu0 }
 0x130   : > { %v1231_v6 = vmul.f32 %v3592_v3, %v1061_v21  ;;  %v1063_v57 = vpop.f32.mrb[2].mxu0 }
 0x131   : > { %v3602_v58 = vadd.f32 %v3595_v22, %v1230_v7  ;;  %v1232_v26 = vmul.f32 %v3590_v24, %v1063_v57  ;;  %v1065_v53 = vpop.f32.mrb[3].mxu0 }
 0x132   : > { %v3606_v51 = vadd.f32 %v3597_v61, %v1231_v6  ;;  %v1233_v54 = vmul.f32 %v3592_v3, %v1065_v53 }
 0x133   : > { %v2383_v56 = vmul.f32 -1.442695, %v3602_v58  ;;  %v3611_v0 = vadd.f32 %v3595_v22, %v1232_v26 }
 0x134   : > { %v2384_v1 = vmul.f32 -1.442695, %v3606_v51  ;;  %v3615_v29 = vadd.f32 %v3597_v61, %v1233_v54 }
 0x135   : > { %2702 = vpow2.f32 %v2383_v56  ;;  %v2385_v4 = vmul.f32 -1.442695, %v3611_v0 }
 0x136   : > { %2704 = vpow2.f32 %v2384_v1  ;;  %v2386_v5 = vmul.f32 -1.442695, %v3615_v29  ;;  %v1069_v30 = vpop.f32.mrb[4].mxu0 }
 0x137   : > { %2706 = vpow2.f32 %v2385_v4  ;;  %v1234_v63 = vmul.f32 %v3590_v24, %v1069_v30  ;;  %v1071_v13 = vpop.f32.mrb[5].mxu0 }
 0x138   : > { %2708 = vpow2.f32 %v2386_v5  ;;  %v1235_v16 = vmul.f32 %v3592_v3, %v1071_v13  ;;  %v1073_v62 = vpop.f32.mrb[6].mxu0 }
 0x139   : > { %v3622_v44 = vadd.f32 %v3595_v22, %v1234_v63  ;;  %v1236_v45 = vmul.f32 %v3590_v24, %v1073_v62  ;;  %v1075_v27 = vpop.f32.mrb[7].mxu0 }
 0x13a   : > { %v3626_v28 = vadd.f32 %v3597_v61, %v1235_v16  ;;  %v1237_v49 = vmul.f32 %v3592_v3, %v1075_v27 }
 0x13b   : > { %v2387_v18 = vmul.f32 -1.442695, %v3622_v44  ;;  %v3631_v36 = vadd.f32 %v3595_v22, %v1236_v45 }
 0x13c   : > { %v2388_v38 = vmul.f32 -1.442695, %v3626_v28  ;;  %v3635_v7 = vadd.f32 %v3597_v61, %v1237_v49 }
 0x13d   : > { %2710 = vpow2.f32 %v2387_v18  ;;  %v2389_v21 = vmul.f32 -1.442695, %v3631_v36 }
 0x13e   : > { %2712 = vpow2.f32 %v2388_v38  ;;  %v2390_v6 = vmul.f32 -1.442695, %v3635_v7  ;;  %v1079_v57 = vpop.f32.mrb[8].mxu0 }
 0x13f   : > { %v2703_v26 = vpop.eup %2702  ;;  %2714 = vpow2.f32 %v2389_v21  ;;  %v1238_v53 = vmul.f32 %v3590_v24, %v1079_v57  ;;  %v1081_v54 = vpop.f32.mrb[9].mxu0 }
 0x140   : > { %v2705_v56 = vpop.eup %2704  ;;  %v1562_v1 = vadd.f32 1.0, %v2703_v26  ;;  %2716 = vpow2.f32 %v2390_v6  ;;  %v1239_v4 = vmul.f32 %v3592_v3, %v1081_v54  ;;  %v1083_v5 = vpop.f32.mrb[10].mxu0 }
 0x141   : > { %v2707_v30 = vpop.eup %2706  ;;  %v1563_v63 = vadd.f32 1.0, %v2705_v56  ;;  %v3642_v13 = vadd.f32 %v3595_v22, %v1238_v53  ;;  %v1240_v16 = vmul.f32 %v3590_v24, %v1083_v5  ;;  %v1085_v62 = vpop.f32.mrb[11].mxu0 }
 0x142   : > { %v2709_v45 = vpop.eup %2708  ;;  %2718 = vrcp.f32 %v1562_v1  ;;  %v1564_v27 = vadd.f32 1.0, %v2707_v30  ;;  %v3646_v49 = vadd.f32 %v3597_v61, %v1239_v4  ;;  %v1241_v18 = vmul.f32 %v3592_v3, %v1085_v62 }
 0x143   : > { %2720 = vrcp.f32 %v1563_v63  ;;  %v1565_v38 = vadd.f32 1.0, %v2709_v45  ;;  %v2391_v21 = vmul.f32 -1.442695, %v3642_v13  ;;  %v3651_v6 = vadd.f32 %v3595_v22, %v1240_v16 }
 0x144   : > { %2722 = vrcp.f32 %v1564_v27  ;;  %v2392_v57 = vmul.f32 -1.442695, %v3646_v49  ;;  %v3655_v26 = vadd.f32 %v3597_v61, %v1241_v18 }
 0x145   : > { %2724 = vrcp.f32 %v1565_v38  ;;  %v2393_v53 = vmul.f32 -1.442695, %v3651_v6 }
 0x146   : > { %2726 = vpow2.f32 %v2391_v21  ;;  %v2394_v54 = vmul.f32 -1.442695, %v3655_v26  ;;  %v1089_v56 = vpop.f32.mrb[12].mxu0 }
 0x147   : > { %v2711_v1 = vpop.eup %2710  ;;  %2728 = vpow2.f32 %v2392_v57  ;;  %v1242_v4 = vmul.f32 %v3590_v24, %v1089_v56  ;;  %v1091_v5 = vpop.f32.mrb[13].mxu0 }
 0x148   : > { %v2713_v30 = vpop.eup %2712  ;;  %v1566_v63 = vadd.f32 1.0, %v2711_v1  ;;  %2730 = vpow2.f32 %v2393_v53  ;;  %v1243_v16 = vmul.f32 %v3592_v3, %v1091_v5  ;;  %v1093_v62 = vpop.f32.mrb[14].mxu0 }
 0x149   : > { %v2715_v45 = vpop.eup %2714  ;;  %v1567_v27 = vadd.f32 1.0, %v2713_v30  ;;  %2732 = vpow2.f32 %v2394_v54  ;;  %v3662_v18 = vadd.f32 %v3595_v22, %v1242_v4  ;;  %v1244_v38 = vmul.f32 %v3590_v24, %v1093_v62  ;;  %v1095_v21 = vpop.f32.mrb[15].mxu0 }
 0x14a   : > { %v2717_v19 = vpop.eup %2716  ;;  %2734 = vrcp.f32 %v1566_v63  ;;  %v1568_v57 = vadd.f32 1.0, %v2715_v45  ;;  %v3666_v56 = vadd.f32 %v3597_v61, %v1243_v16  ;;  %v1245_v53 = vmul.f32 %v3592_v3, %v1095_v21 }
 0x14b   : > { %2736 = vrcp.f32 %v1567_v27  ;;  %v1569_v1 = vadd.f32 1.0, %v2717_v19  ;;  %v2395_v5 = vmul.f32 -1.442695, %v3662_v18  ;;  %v3671_v54 = vadd.f32 %v3595_v22, %v1244_v38 }
 0x14c   : > { %v2719_v4 = vpop.eup %2718  ;;  %2738 = vrcp.f32 %v1568_v57  ;;  %v2396_v30 = vmul.f32 -1.442695, %v3666_v56  ;;  %v3675_v62 = vadd.f32 %v3597_v61, %v1245_v53 }
 0x14d   : > { %v2721_v63 = vpop.eup %2720  ;;  %2740 = vrcp.f32 %v1569_v1  ;;  %v2397_v16 = vmul.f32 -1.442695, %v3671_v54  ;;  %v1754_v38 = vmul.f32 %v2719_v4, %v3602_v58 }
 0x14e   : > { %v2723_v45 = vpop.eup %2722  ;;  %2742 = vpow2.f32 %v2395_v5  ;;  %v2398_v19 = vmul.f32 -1.442695, %v3675_v62  ;;  %v1099_v27 = vpop.f32.mrb[16].mxu0  ;;  %v1755_v41 = vmul.f32 %v2721_v63, %v3606_v51 }
 0x14f   : > { %v2725_v21 = vpop.eup %2724  ;;  %2744 = vpow2.f32 %v2396_v30  ;;  %v1246_v57 = vmul.f32 %v3590_v24, %v1099_v27  ;;  %v1101_v2 = vpop.f32.mrb[17].mxu0  ;;  %v1756_v14 = vmul.f32 %v2723_v45, %v3611_v0 }
 0x150   : > { %v2727_v53 = vpop.eup %2726  ;;  %2746 = vpow2.f32 %v2397_v16  ;;  %v1247_v1 = vmul.f32 %v3592_v3, %v1101_v2  ;;  %v1103_v23 = vpop.f32.mrb[18].mxu0  ;;  %v1757_v5 = vmul.f32 %v2725_v21, %v3615_v29 }
 0x151   : > { %v2729_v60 = vpop.eup %2728  ;;  %v1570_v47 = vadd.f32 1.0, %v2727_v53  ;;  %2748 = vpow2.f32 %v2398_v19  ;;  %v3686_v58 = vadd.f32 %v3595_v22, %v1246_v57  ;;  %v1248_v4 = vmul.f32 %v3590_v24, %v1103_v23  ;;  %v1105_v30 = vpop.f32.mrb[19].mxu0 }
 0x152   : > { %v2731_v27 = vpop.eup %2730  ;;  %v1571_v51 = vadd.f32 1.0, %v2729_v60  ;;  %v3690_v63 = vadd.f32 %v3597_v61, %v1247_v1  ;;  %v1249_v0 = vmul.f32 %v3592_v3, %v1105_v30  ;;  %v1819_v2 = vpack.c.bf16 %v1757_v5, %v1755_v41 }
 0x153   : > { %v2733_v16 = vpop.eup %2732  ;;  %2750 = vrcp.f32 %v1570_v47  ;;  %v1572_v29 = vadd.f32 1.0, %v2731_v27  ;;  %v2399_v45 = vmul.f32 -1.442695, %v3686_v58  ;;  %v3695_v19 = vadd.f32 %v3595_v22, %v1248_v4 }
 0x154   : > { %v2735_v21 = vpop.eup %2734  ;;  %2752 = vrcp.f32 %v1571_v51  ;;  %v1573_v23 = vadd.f32 1.0, %v2733_v16  ;;  %v2400_v57 = vmul.f32 -1.442695, %v3690_v63  ;;  %v3699_v60 = vadd.f32 %v3597_v61, %v1249_v0  ;;  %2010 = vmatprep.mubr.bf16.mxu1 %v1819_v2 }
 0x155   : > { %v2737_v53 = vpop.eup %2736  ;;  %2754 = vrcp.f32 %v1572_v29  ;;  %v2401_v41 = vmul.f32 -1.442695, %v3695_v19  ;;  %v1818_v47 = vpack.c.bf16 %v1756_v14, %v1754_v38  ;;  %v1758_v27 = vmul.f32 %v2735_v21, %v3622_v44 }
 0x156   : > { %v2739_v1 = vpop.eup %2738  ;;  %2756 = vrcp.f32 %v1573_v23  ;;  %v2402_v5 = vmul.f32 -1.442695, %v3699_v60  ;;  %v1109_v4 = vpop.f32.mrb[20].mxu0  ;;  %v1759_v51 = vmul.f32 %v2737_v53, %v3626_v28 }
 0x157   : > { %v2741_v30 = vpop.eup %2740  ;;  %2758 = vpow2.f32 %v2399_v45  ;;  %2011 = vmatmul.mubr.bf16.vlgmr.msra.gmra.mrb[0].mxu1 %v1818_v47  ;;  %v1250_v0 = vmul.f32 %v3590_v24, %v1109_v4  ;;  %v1111_v2 = vpop.f32.mrb[21].mxu0  ;;  %v1760_v29 = vmul.f32 %v2739_v1, %v3631_v36 }
 0x158   : > { %v2743_v16 = vpop.eup %2742  ;;  %v1761_v14 = vmul.f32 %v2741_v30, %v3635_v7  ;;  %2760 = vpow2.f32 %v2400_v57  ;;  %v1251_v38 = vmul.f32 %v3592_v3, %v1111_v2  ;;  %v1113_v23 = vpop.f32.mrb[22].mxu0 }
 0x159   : > { %v2745_v20 = vpop.eup %2744  ;;  %v1574_v50 = vadd.f32 1.0, %v2743_v16  ;;  %2762 = vpow2.f32 %v2401_v41  ;;  %v3710_v44 = vadd.f32 %v3595_v22, %v1250_v0  ;;  %v1252_v28 = vmul.f32 %v3590_v24, %v1113_v23  ;;  %v1115_v45 = vpop.f32.mrb[23].mxu0 }
 0x15a   : > { %v2747_v21 = vpop.eup %2746  ;;  %v1575_v53 = vadd.f32 1.0, %v2745_v20  ;;  %2764 = vpow2.f32 %v2402_v5  ;;  %v3714_v36 = vadd.f32 %v3597_v61, %v1251_v38  ;;  %v1253_v7 = vmul.f32 %v3592_v3, %v1115_v45 }
 0x15b   : > { %v2749_v57 = vpop.eup %2748  ;;  %2766 = vrcp.f32 %v1574_v50  ;;  %v1576_v47 = vadd.f32 1.0, %v2747_v21  ;;  %v2403_v1 = vmul.f32 -1.442695, %v3710_v44  ;;  %v3719_v41 = vadd.f32 %v3595_v22, %v1252_v28 }
 0x15c   : > { %2768 = vrcp.f32 %v1575_v53  ;;  %v1577_v4 = vadd.f32 1.0, %v2749_v57  ;;  %v2404_v30 = vmul.f32 -1.442695, %v3714_v36  ;;  %v3723_v20 = vadd.f32 %v3597_v61, %v1253_v7 }
 0x15d   : > { %v2751_v5 = vpop.eup %2750  ;;  %2770 = vrcp.f32 %v1576_v47  ;;  %v2405_v0 = vmul.f32 -1.442695, %v3719_v41  ;;  %v1821_v2 = vpack.c.bf16 %v1761_v14, %v1759_v51  ;;  %v1820_v16 = vpack.c.bf16 %v1760_v29, %v1758_v27 }
 0x15e   : > { %v2753_v50 = vpop.eup %2752  ;;  %2772 = vrcp.f32 %v1577_v4  ;;  %v2406_v38 = vmul.f32 -1.442695, %v3723_v20  ;;  %v1119_v23 = vpop.f32.mrb[24].mxu0 }
 0x15f   : > { %v2755_v28 = vpop.eup %2754  ;;  %2774 = vpow2.f32 %v2403_v1  ;;  %2018 = vmatprep.mubr.bf16.mxu1 %v1821_v2  ;;  %v1254_v45 = vmul.f32 %v3590_v24, %v1119_v23  ;;  %v1121_v21 = vpop.f32.mrb[25].mxu0  ;;  %v1763_v7 = vmul.f32 %v2753_v50, %v3646_v49 }
 0x160   : > { %v2757_v53 = vpop.eup %2756  ;;  %v1764_v57 = vmul.f32 %v2755_v28, %v3651_v6  ;;  %2776 = vpow2.f32 %v2404_v30  ;;  %2019 = vmatmul.mubr.bf16.gmra.mrb[4].mxu1 %v1820_v16  ;;  %v1255_v27 = vmul.f32 %v3592_v3, %v1121_v21  ;;  %v1123_v51 = vpop.f32.mrb[26].mxu0  ;;  %v1762_v16 = vmul.f32 %v2751_v5, %v3642_v13 }
 0x161   : > { %v2759_v29 = vpop.eup %2758  ;;  %v1765_v14 = vmul.f32 %v2757_v53, %v3655_v26  ;;  %2778 = vpow2.f32 %v2405_v0  ;;  %v3733_v47 = vadd.f32 %v3595_v22, %v1254_v45  ;;  %v1256_v1 = vmul.f32 %v3590_v24, %v1123_v51  ;;  %v1125_v4 = vpop.f32.mrb[27].mxu0 }
 0x162   : > { %v2761_v2 = vpop.eup %2760  ;;  %v1578_v23 = vadd.f32 1.0, %v2759_v29  ;;  %2780 = vpow2.f32 %v2406_v38  ;;  %v3737_v49 = vadd.f32 %v3597_v61, %v1255_v27  ;;  %v1257_v6 = vmul.f32 %v3592_v3, %v1125_v4 }
 0x163   : > { %v2763_v30 = vpop.eup %2762  ;;  %v1579_v50 = vadd.f32 1.0, %v2761_v2  ;;  %v3742_v26 = vadd.f32 %v3595_v22, %v1256_v1  ;;  %v1823_v0 = vpack.c.bf16 %v1765_v14, %v1763_v7  ;;  %v2407_v21 = vmul.f32 -1.442695, %v3733_v47 }
 0x164   : > { %v2765_v28 = vpop.eup %2764  ;;  %2782 = vrcp.f32 %v1578_v23  ;;  %v1580_v45 = vadd.f32 1.0, %v2763_v30  ;;  %v3746_v38 = vadd.f32 %v3597_v61, %v1257_v6  ;;  %v2408_v51 = vmul.f32 -1.442695, %v3737_v49 }
 0x165   : > { %v2767_v53 = vpop.eup %2766  ;;  %2784 = vrcp.f32 %v1579_v50  ;;  %v1581_v27 = vadd.f32 1.0, %v2765_v28  ;;  %2026 = vmatprep.mubr.bf16.mxu1 %v1823_v0  ;;  %v1822_v13 = vpack.c.bf16 %v1764_v57, %v1762_v16  ;;  %v2409_v29 = vmul.f32 -1.442695, %v3742_v26 }
 0x166   : > { %v2769_v5 = vpop.eup %2768  ;;  %2786 = vrcp.f32 %v1580_v45  ;;  %v1129_v7 = vpop.f32.mrb[28].mxu0  ;;  %v2410_v1 = vmul.f32 -1.442695, %v3746_v38  ;;  %v1766_v6 = vmul.f32 %v2767_v53, %v3662_v18 }
 0x167   : > { %v2771_v14 = vpop.eup %2770  ;;  %2788 = vrcp.f32 %v1581_v27  ;;  %v1258_v4 = vmul.f32 %v3590_v24, %v1129_v7  ;;  %v1131_v2 = vpop.f32.mrb[29].mxu0  ;;  %v1767_v53 = vmul.f32 %v2769_v5, %v3666_v56 }
 0x168   : > { %v2773_v23 = vpop.eup %2772  ;;  %v1768_v30 = vmul.f32 %v2771_v14, %v3671_v54  ;;  %2790 = vpow2.f32 %v2407_v21  ;;  %2027 = vmatmul.mubr.bf16.gmra.mrb[8].mxu1 %v1822_v13  ;;  %v1259_v57 = vmul.f32 %v3592_v3, %v1131_v2  ;;  %v1133_v16 = vpop.f32.mrb[30].mxu0 }
 0x169   : > { %v2775_v50 = vpop.eup %2774  ;;  %v1769_v0 = vmul.f32 %v2773_v23, %v3675_v62  ;;  %2792 = vpow2.f32 %v2408_v51  ;;  %v3757_v28 = vadd.f32 %v3595_v22, %v1258_v4  ;;  %v1260_v45 = vmul.f32 %v3590_v24, %v1133_v16  ;;  %v1135_v27 = vpop.f32.mrb[31].mxu0 }
 0x16a   : > { %v2777_v7 = vpop.eup %2776  ;;  %v1582_v12 = vadd.f32 1.0, %v2775_v50  ;;  %2794 = vpow2.f32 %v2409_v29  ;;  %v3761_v18 = vadd.f32 %v3597_v61, %v1259_v57  ;;  %v1261_v54 = vmul.f32 %v3592_v3, %v1135_v27 }
 0x16b   : > { %v2779_v21 = vpop.eup %2778  ;;  %v1583_v13 = vadd.f32 1.0, %v2777_v7  ;;  %2796 = vpow2.f32 %v2410_v1  ;;  %v3766_v62 = vadd.f32 %v3595_v22, %v1260_v45  ;;  %v2411_v4 = vmul.f32 -1.442695, %v3757_v28 }
 0x16c   : > { %v2781_v51 = vpop.eup %2780  ;;  %2798 = vrcp.f32 %v1582_v12  ;;  %v1584_v14 = vadd.f32 1.0, %v2779_v21  ;;  %v3770_v29 = vadd.f32 %v3597_v61, %v1261_v54  ;;  %v2412_v23 = vmul.f32 -1.442695, %v3761_v18 }
 0x16d   : > { %2800 = vrcp.f32 %v1583_v13  ;;  %v1585_v2 = vadd.f32 1.0, %v2781_v51  ;;  %v1825_v57 = vpack.c.bf16 %v1769_v0, %v1767_v53  ;;  %v2413_v56 = vmul.f32 -1.442695, %v3766_v62 }
 0x16e   : > { %v2783_v16 = vpop.eup %2782  ;;  %2802 = vrcp.f32 %v1584_v14  ;;  %v1824_v5 = vpack.c.bf16 %v1768_v30, %v1766_v6  ;;  %v1139_v1 = vpop.f32.mrb[32].mxu0  ;;  %v2414_v12 = vmul.f32 -1.442695, %v3770_v29 }
 0x16f   : > { %v2785_v50 = vpop.eup %2784  ;;  %2804 = vrcp.f32 %v1585_v2  ;;  %2034 = vmatprep.mubr.bf16.mxu1 %v1825_v57  ;;  %v1262_v45 = vmul.f32 %v3590_v24, %v1139_v1  ;;  %v1141_v27 = vpop.f32.mrb[33].mxu0 }
 0x170   : > { %v2787_v7 = vpop.eup %2786  ;;  %v1771_v54 = vmul.f32 %v2785_v50, %v3690_v63  ;;  %2806 = vpow2.f32 %v2411_v4  ;;  %2035 = vmatmul.mubr.bf16.gmra.mrb[12].mxu1 %v1824_v5  ;;  %v1263_v0 = vmul.f32 %v3592_v3, %v1141_v27  ;;  %v1143_v21 = vpop.f32.mrb[34].mxu0  ;;  %v1770_v5 = vmul.f32 %v2783_v16, %v3686_v58 }
 0x171   : > { %v2789_v53 = vpop.eup %2788  ;;  %v1772_v6 = vmul.f32 %v2787_v7, %v3695_v19  ;;  %2808 = vpow2.f32 %v2412_v23  ;;  %v3780_v30 = vadd.f32 %v3595_v22, %v1262_v45  ;;  %v1264_v13 = vmul.f32 %v3590_v24, %v1143_v21  ;;  %v1145_v51 = vpop.f32.mrb[35].mxu0 }
 0x172   : > { %v2791_v14 = vpop.eup %2790  ;;  %v1773_v2 = vmul.f32 %v2789_v53, %v3699_v60  ;;  %2810 = vpow2.f32 %v2413_v56  ;;  %v3785_v63 = vadd.f32 %v3597_v61, %v1263_v0  ;;  %v1265_v4 = vmul.f32 %v3592_v3, %v1145_v51 }
 0x173   : > { %v2793_v57 = vpop.eup %2792  ;;  %v1586_v19 = vadd.f32 1.0, %v2791_v14  ;;  %2812 = vpow2.f32 %v2414_v12  ;;  %v3790_v23 = vadd.f32 %v3595_v22, %v1264_v13  ;;  %v2415_v7 = vmul.f32 -1.442695, %v3780_v30 }
 0x174   : > { %v2795_v1 = vpop.eup %2794  ;;  %v1587_v50 = vadd.f32 1.0, %v2793_v57  ;;  %v3793_v45 = vadd.f32 %v3597_v61, %v1265_v4  ;;  %v1827_v60 = vpack.c.bf16 %v1773_v2, %v1771_v54  ;;  %v1826_v0 = vpack.c.bf16 %v1772_v6, %v1770_v5 }
 0x175   : > { %v2797_v56 = vpop.eup %2796  ;;  %2814 = vrcp.f32 %v1586_v19  ;;  %v1588_v27 = vadd.f32 1.0, %v2795_v1  ;;  %v2416_v16 = vmul.f32 -1.442695, %v3785_v63  ;;  %v2417_v13 = vmul.f32 -1.442695, %v3790_v23 }
 0x176   : > { %v2799_v21 = vpop.eup %2798  ;;  %2816 = vrcp.f32 %v1587_v50  ;;  %v1589_v58 = vadd.f32 1.0, %v2797_v56  ;;  %2042 = vmatprep.mubr.bf16.mxu1 %v1827_v60  ;;  %v1149_v12 = vpop.f32.mrb[36].mxu0  ;;  %v2418_v2 = vmul.f32 -1.442695, %v3793_v45 }
 0x177   : > { %v2801_v53 = vpop.eup %2800  ;;  %2818 = vrcp.f32 %v1588_v27  ;;  %v1266_v51 = vmul.f32 %v3590_v24, %v1149_v12  ;;  %v1151_v54 = vpop.f32.mrb[37].mxu0 }
 0x178   : > { %v2803_v14 = vpop.eup %2802  ;;  %2820 = vrcp.f32 %v1589_v58  ;;  %2043 = vmatmul.mubr.bf16.gmra.mrb[16].mxu1 %v1826_v0  ;;  %v1267_v6 = vmul.f32 %v3592_v3, %v1151_v54  ;;  %v1153_v4 = vpop.f32.mrb[38].mxu0  ;;  %v1775_v12 = vmul.f32 %v2801_v53, %v3714_v36  ;;  %v1774_v54 = vmul.f32 %v2799_v21, %v3710_v44 }
 0x179   : > { %v2805_v57 = vpop.eup %2804  ;;  %v1776_v5 = vmul.f32 %v2803_v14, %v3719_v41  ;;  %2822 = vpow2.f32 %v2415_v7  ;;  %v3803_v19 = vadd.f32 %v3595_v22, %v1266_v51  ;;  %v1268_v1 = vmul.f32 %v3590_v24, %v1153_v4  ;;  %v1155_v50 = vpop.f32.mrb[39].mxu0 }
 0x17a   : > { %v2807_v60 = vpop.eup %2806  ;;  %v1777_v56 = vmul.f32 %v2805_v57, %v3723_v20  ;;  %2824 = vpow2.f32 %v2416_v16  ;;  %v3808_v27 = vadd.f32 %v3597_v61, %v1267_v6  ;;  %v1269_v0 = vmul.f32 %v3592_v3, %v1155_v50 }
 0x17b   : > { %v2809_v58 = vpop.eup %2808  ;;  %v1590_v41 = vadd.f32 1.0, %v2807_v60  ;;  %2826 = vpow2.f32 %v2417_v13  ;;  %v3813_v7 = vadd.f32 %v3595_v22, %v1268_v1  ;;  %v2419_v4 = vmul.f32 -1.442695, %v3803_v19 }
 0x17c   : > { %v2811_v51 = vpop.eup %2810  ;;  %v1591_v14 = vadd.f32 1.0, %v2809_v58  ;;  %2828 = vpow2.f32 %v2418_v2  ;;  %v3817_v20 = vadd.f32 %v3597_v61, %v1269_v0  ;;  %v1829_v57 = vpack.c.bf16 %v1777_v56, %v1775_v12 }
 0x17d   : > { %v2813_v16 = vpop.eup %2812  ;;  %2830 = vrcp.f32 %v1590_v41  ;;  %v1592_v6 = vadd.f32 1.0, %v2811_v51  ;;  %v2420_v53 = vmul.f32 -1.442695, %v3808_v27  ;;  %v1828_v13 = vpack.c.bf16 %v1776_v5, %v1774_v54 }
 0x17e   : > { %2832 = vrcp.f32 %v1591_v14  ;;  %v1593_v36 = vadd.f32 1.0, %v2813_v16  ;;  %v1159_v1 = vpop.f32.mrb[40].mxu0  ;;  %v2421_v44 = vmul.f32 -1.442695, %v3813_v7  ;;  %2050 = vmatprep.mubr.bf16.mxu1 %v1829_v57  ;;  %v2422_v0 = vmul.f32 -1.442695, %v3817_v20 }
 0x17f   : > { %v2815_v50 = vpop.eup %2814  ;;  %2834 = vrcp.f32 %v1592_v6  ;;  %v1270_v21 = vmul.f32 %v3590_v24, %v1159_v1  ;;  %v1161_v2 = vpop.f32.mrb[41].mxu0 }
 0x180   : > { %v2817_v60 = vpop.eup %2816  ;;  %2836 = vrcp.f32 %v1593_v36  ;;  %2051 = vmatmul.mubr.bf16.gmra.mrb[20].mxu1 %v1828_v13  ;;  %v1271_v56 = vmul.f32 %v3592_v3, %v1161_v2  ;;  %v1163_v58 = vpop.f32.mrb[42].mxu0 }
 0x181   : > { %v2819_v12 = vpop.eup %2818  ;;  %v1779_v5 = vmul.f32 %v2817_v60, %v3737_v49  ;;  %2838 = vpow2.f32 %v2419_v4  ;;  %v3827_v41 = vadd.f32 %v3595_v22, %v1270_v21  ;;  %v1272_v51 = vmul.f32 %v3590_v24, %v1163_v58  ;;  %v1165_v54 = vpop.f32.mrb[43].mxu0 }
 0x182   : > { %v2821_v14 = vpop.eup %2820  ;;  %v1780_v16 = vmul.f32 %v2819_v12, %v3742_v26  ;;  %2840 = vpow2.f32 %v2420_v53  ;;  %v3832_v6 = vadd.f32 %v3597_v61, %v1271_v56  ;;  %v1273_v57 = vmul.f32 %v3592_v3, %v1165_v54 }
 0x183   : > { %v2823_v36 = vpop.eup %2822  ;;  %v1781_v13 = vmul.f32 %v2821_v14, %v3746_v38  ;;  %2842 = vpow2.f32 %v2421_v44  ;;  %v2423_v49 = vmul.f32 -1.442695, %v3827_v41  ;;  %v3838_v4 = vadd.f32 %v3595_v22, %v1272_v51 }
 0x184   : > { %v2825_v1 = vpop.eup %2824  ;;  %v1778_v21 = vmul.f32 %v2815_v50, %v3733_v47  ;;  %v1594_v2 = vadd.f32 1.0, %v2823_v36  ;;  %2844 = vpow2.f32 %v2422_v0  ;;  %v3842_v26 = vadd.f32 %v3597_v61, %v1273_v57 }
 0x185   : > { %v2827_v53 = vpop.eup %2826  ;;  %v1595_v60 = vadd.f32 1.0, %v2825_v1  ;;  %2846 = vpow2.f32 %v2423_v49  ;;  %v1831_v56 = vpack.c.bf16 %v1781_v13, %v1779_v5  ;;  %v2424_v44 = vmul.f32 -1.442695, %v3832_v6 }
 0x186   : > { %v2829_v58 = vpop.eup %2828  ;;  %2848 = vrcp.f32 %v1594_v2  ;;  %v1596_v38 = vadd.f32 1.0, %v2827_v53  ;;  %v1830_v12 = vpack.c.bf16 %v1780_v16, %v1778_v21  ;;  %v1169_v51 = vpop.f32.mrb[44].mxu0  ;;  %v2425_v47 = vmul.f32 -1.442695, %v3838_v4 }
 0x187   : > { %v2831_v54 = vpop.eup %2830  ;;  %2850 = vrcp.f32 %v1595_v60  ;;  %v1597_v14 = vadd.f32 1.0, %v2829_v58  ;;  %2058 = vmatprep.mubr.bf16.mxu1 %v1831_v56  ;;  %v1274_v50 = vmul.f32 %v3590_v24, %v1169_v51  ;;  %v1171_v0 = vpop.f32.mrb[45].mxu0  ;;  %v2426_v5 = vmul.f32 -1.442695, %v3842_v26 }
 0x188   : > { %v2833_v57 = vpop.eup %2832  ;;  %2852 = vrcp.f32 %v1596_v38  ;;  %2059 = vmatmul.mubr.bf16.gmra.mrb[24].mxu1 %v1830_v12  ;;  %v1275_v36 = vmul.f32 %v3592_v3, %v1171_v0  ;;  %v1173_v13 = vpop.f32.mrb[46].mxu0 }
 0x189   : > { %v2835_v49 = vpop.eup %2834  ;;  %2854 = vrcp.f32 %v1597_v14  ;;  %v3850_v16 = vadd.f32 %v3595_v22, %v1274_v50  ;;  %v1276_v1 = vmul.f32 %v3590_v24, %v1173_v13  ;;  %v1175_v21 = vpop.f32.mrb[47].mxu0  ;;  %v1783_v53 = vmul.f32 %v2833_v57, %v3761_v18 }
 0x18a   : > { %v2837_v2 = vpop.eup %2836  ;;  %v1784_v60 = vmul.f32 %v2835_v49, %v3766_v62  ;;  %2856 = vpow2.f32 %v2424_v44  ;;  %v1277_v56 = vmul.f32 %v3592_v3, %v1175_v21  ;;  %v3859_v51 = vadd.f32 %v3597_v61, %v1275_v36 }
 0x18b   : > { %v2839_v58 = vpop.eup %2838  ;;  %v1785_v38 = vmul.f32 %v2837_v2, %v3770_v29  ;;  %2858 = vpow2.f32 %v2425_v47  ;;  %v2427_v12 = vmul.f32 -1.442695, %v3850_v16  ;;  %v1782_v50 = vmul.f32 %v2831_v54, %v3757_v28 }
 0x18c   : > { %v2841_v14 = vpop.eup %2840  ;;  %v1598_v0 = vadd.f32 1.0, %v2839_v58  ;;  %2860 = vpow2.f32 %v2426_v5  ;;  %v3863_v18 = vadd.f32 %v3595_v22, %v1276_v1  ;;  %v3866_v57 = vadd.f32 %v3597_v61, %v1277_v56 }
 0x18d   : > { %v2843_v62 = vpop.eup %2842  ;;  %v1599_v44 = vadd.f32 1.0, %v2841_v14  ;;  %2862 = vpow2.f32 %v2427_v12  ;;  %v1833_v29 = vpack.c.bf16 %v1785_v38, %v1783_v53  ;;  %v1832_v36 = vpack.c.bf16 %v1784_v60, %v1782_v50 }
 0x18e   : > { %v2845_v47 = vpop.eup %2844  ;;  %2864 = vrcp.f32 %v1598_v0  ;;  %v1600_v13 = vadd.f32 1.0, %v2843_v62  ;;  %v1179_v49 = vpop.f32.mrb[48].mxu0  ;;  %v2428_v54 = vmul.f32 -1.442695, %v3859_v51  ;;  %v2429_v56 = vmul.f32 -1.442695, %v3863_v18 }
 0x18f   : > { %v2847_v21 = vpop.eup %2846  ;;  %2866 = vrcp.f32 %v1599_v44  ;;  %v1601_v28 = vadd.f32 1.0, %v2845_v47  ;;  %2066 = vmatprep.mubr.bf16.mxu1 %v1833_v29  ;;  %v1278_v5 = vmul.f32 %v3590_v24, %v1179_v49  ;;  %v1181_v1 = vpop.f32.mrb[49].mxu0  ;;  %v2430_v12 = vmul.f32 -1.442695, %v3866_v57 }
 0x190   : > { %v2849_v2 = vpop.eup %2848  ;;  %2868 = vrcp.f32 %v1600_v13  ;;  %v1602_v58 = vadd.f32 1.0, %v2847_v21  ;;  %2067 = vmatmul.mubr.bf16.gmra.mrb[28].mxu1 %v1832_v36  ;;  %v1279_v53 = vmul.f32 %v3592_v3, %v1181_v1  ;;  %v1183_v38 = vpop.f32.mrb[50].mxu0 }
 0x191   : > { %v2851_v60 = vpop.eup %2850  ;;  %2870 = vrcp.f32 %v1601_v28  ;;  %v3874_v14 = vadd.f32 %v3595_v22, %v1278_v5  ;;  %v1280_v50 = vmul.f32 %v3590_v24, %v1183_v38  ;;  %v1185_v0 = vpop.f32.mrb[51].mxu0  ;;  %v1786_v44 = vmul.f32 %v2849_v2, %v3780_v30 }
 0x192   : > { %v2853_v62 = vpop.eup %2852  ;;  %2872 = vrcp.f32 %v1602_v58  ;;  %v3879_v29 = vadd.f32 %v3597_v61, %v1279_v53  ;;  %v1281_v47 = vmul.f32 %v3592_v3, %v1185_v0  ;;  %v1787_v5 = vmul.f32 %v2851_v60, %v3785_v63 }
 0x193   : > { %v2855_v13 = vpop.eup %2854  ;;  %v1788_v36 = vmul.f32 %v2853_v62, %v3790_v23  ;;  %2874 = vpow2.f32 %v2428_v54  ;;  %v2431_v49 = vmul.f32 -1.442695, %v3874_v14  ;;  %v3885_v21 = vadd.f32 %v3595_v22, %v1280_v50 }
 0x194   : > { %v2857_v28 = vpop.eup %2856  ;;  %v1789_v30 = vmul.f32 %v2855_v13, %v3793_v45  ;;  %2876 = vpow2.f32 %v2429_v56  ;;  %v3890_v1 = vadd.f32 %v3597_v61, %v1281_v47  ;;  %v2432_v38 = vmul.f32 -1.442695, %v3879_v29 }
 0x195   : > { %v2859_v2 = vpop.eup %2858  ;;  %v1603_v58 = vadd.f32 1.0, %v2857_v28  ;;  %2878 = vpow2.f32 %v2430_v12  ;;  %v1834_v53 = vpack.c.bf16 %v1788_v36, %v1786_v44  ;;  %v2433_v45 = vmul.f32 -1.442695, %v3885_v21 }
 0x196   : > { %v2861_v23 = vpop.eup %2860  ;;  %v1604_v54 = vadd.f32 1.0, %v2859_v2  ;;  %2880 = vpow2.f32 %v2431_v49  ;;  %v1835_v50 = vpack.c.bf16 %v1789_v30, %v1787_v5  ;;  %v1189_v0 = vpop.f32.mrb[52].mxu0  ;;  %v2434_v12 = vmul.f32 -1.442695, %v3890_v1 }
 0x197   : > { %v2863_v62 = vpop.eup %2862  ;;  %2882 = vrcp.f32 %v1603_v58  ;;  %v1605_v63 = vadd.f32 1.0, %v2861_v23  ;;  %v1282_v56 = vmul.f32 %v3590_v24, %v1189_v0  ;;  %v1191_v60 = vpop.f32.mrb[53].mxu0 }
 0x198   : > { %v2865_v47 = vpop.eup %2864  ;;  %2884 = vrcp.f32 %v1604_v54  ;;  %v1606_v13 = vadd.f32 1.0, %v2863_v62  ;;  %2074 = vmatprep.mubr.bf16.mxu1 %v1835_v50  ;;  %v1283_v44 = vmul.f32 %v3592_v3, %v1191_v60  ;;  %v1193_v36 = vpop.f32.mrb[54].mxu0 }
 0x199   : > { %v2867_v49 = vpop.eup %2866  ;;  %v1790_v28 = vmul.f32 %v2865_v47, %v3803_v19  ;;  %2886 = vrcp.f32 %v1605_v63  ;;  %2075 = vmatmul.mubr.bf16.gmra.mrb[32].mxu1 %v1834_v53  ;;  %v3899_v5 = vadd.f32 %v3595_v22, %v1282_v56  ;;  %v1284_v30 = vmul.f32 %v3590_v24, %v1193_v36  ;;  %v1195_v2 = vpop.f32.mrb[55].mxu0 }
 0x19a   : > { %v2869_v58 = vpop.eup %2868  ;;  %v1791_v23 = vmul.f32 %v2867_v49, %v3808_v27  ;;  %2888 = vrcp.f32 %v1606_v13  ;;  %v3904_v54 = vadd.f32 %v3597_v61, %v1283_v44  ;;  %v1285_v50 = vmul.f32 %v3592_v3, %v1195_v2 }
 0x19b   : > { %v2871_v0 = vpop.eup %2870  ;;  %v1792_v19 = vmul.f32 %v2869_v58, %v3813_v7  ;;  %2890 = vpow2.f32 %v2432_v38  ;;  %v2435_v53 = vmul.f32 -1.442695, %v3899_v5  ;;  %v3910_v62 = vadd.f32 %v3595_v22, %v1284_v30 }
 0x19c   : > { %v2873_v63 = vpop.eup %2872  ;;  %v1793_v56 = vmul.f32 %v2871_v0, %v3817_v20  ;;  %2892 = vpow2.f32 %v2433_v45  ;;  %v2436_v27 = vmul.f32 -1.442695, %v3904_v54  ;;  %v3915_v60 = vadd.f32 %v3597_v61, %v1285_v50 }
 0x19d   : > { %v2875_v47 = vpop.eup %2874  ;;  %2894 = vpow2.f32 %v2434_v12  ;;  %v1836_v13 = vpack.c.bf16 %v1792_v19, %v1790_v28  ;;  %v3918_v7 = vmul.f32 %v2873_v63, %v3827_v41  ;;  %v2437_v20 = vmul.f32 -1.442695, %v3910_v62 }
 0x19e   : > { %v2877_v44 = vpop.eup %2876  ;;  %v1607_v38 = vadd.f32 1.0, %v2875_v47  ;;  %2896 = vpow2.f32 %v2435_v53  ;;  %v1837_v36 = vpack.c.bf16 %v1793_v56, %v1791_v23  ;;  %v1199_v49 = vpop.f32.mrb[56].mxu0  ;;  %v2438_v28 = vmul.f32 -1.442695, %v3915_v60 }
 0x19f   : > { %v2879_v30 = vpop.eup %2878  ;;  %v1608_v2 = vadd.f32 1.0, %v2877_v44  ;;  %2898 = vpow2.f32 %v2436_v27  ;;  %v1286_v45 = vmul.f32 %v3590_v24, %v1199_v49  ;;  %v1201_v58 = vpop.f32.mrb[57].mxu0 }
 0x1a0   : > { %v2881_v50 = vpop.eup %2880  ;;  %2900 = vrcp.f32 %v1607_v38  ;;  %v1609_v12 = vadd.f32 1.0, %v2879_v30  ;;  %2082 = vmatprep.mubr.bf16.mxu1 %v1837_v36  ;;  %v1287_v41 = vmul.f32 %v3592_v3, %v1201_v58  ;;  %v1203_v0 = vpop.f32.mrb[58].mxu0 }
 0x1a1   : > { %v2883_v19 = vpop.eup %2882  ;;  %2902 = vrcp.f32 %v1608_v2  ;;  %v1610_v23 = vadd.f32 1.0, %v2881_v50  ;;  %2083 = vmatmul.mubr.bf16.gmra.mrb[36].mxu1 %v1836_v13  ;;  %v3925_v53 = vadd.f32 %v3595_v22, %v1286_v45  ;;  %v1288_v63 = vmul.f32 %v3590_v24, %v1203_v0  ;;  %v1205_v56 = vpop.f32.mrb[59].mxu0 }
 0x1a2   : > { %v2885_v27 = vpop.eup %2884  ;;  %v1795_v47 = vmul.f32 %v2883_v19, %v3832_v6  ;;  %2904 = vrcp.f32 %v1609_v12  ;;  %v3930_v44 = vadd.f32 %v3597_v61, %v1287_v41  ;;  %v1289_v38 = vmul.f32 %v3592_v3, %v1205_v56 }
 0x1a3   : > { %v2887_v36 = vpop.eup %2886  ;;  %v1796_v49 = vmul.f32 %v2885_v27, %v3838_v4  ;;  %2906 = vrcp.f32 %v1610_v23  ;;  %v2439_v13 = vmul.f32 -1.442695, %v3925_v53  ;;  %v3936_v30 = vadd.f32 %v3595_v22, %v1288_v63 }
 0x1a4   : > { %v2889_v2 = vpop.eup %2888  ;;  %v1797_v45 = vmul.f32 %v2887_v36, %v3842_v26  ;;  %2908 = vpow2.f32 %v2437_v20  ;;  %v2440_v6 = vmul.f32 -1.442695, %v3930_v44  ;;  %v3941_v58 = vadd.f32 %v3597_v61, %v1289_v38 }
 0x1a5   : > { %v2891_v50 = vpop.eup %2890  ;;  %2910 = vpow2.f32 %v2438_v28  ;;  %v1838_v12 = vpack.c.bf16 %v1796_v49, %v3918_v7  ;;  %v2441_v26 = vmul.f32 -1.442695, %v3936_v30 }
 0x1a6   : > { %v2893_v4 = vpop.eup %2892  ;;  %v1611_v41 = vadd.f32 1.0, %v2891_v50  ;;  %2912 = vpow2.f32 %v2439_v13  ;;  %v1839_v0 = vpack.c.bf16 %v1797_v45, %v1795_v47  ;;  %v1209_v19 = vpop.f32.mrb[60].mxu0  ;;  %v2442_v28 = vmul.f32 -1.442695, %v3941_v58 }
 0x1a7   : > { %v2895_v23 = vpop.eup %2894  ;;  %v1612_v63 = vadd.f32 1.0, %v2893_v4  ;;  %2914 = vpow2.f32 %v2440_v6  ;;  %v1290_v20 = vmul.f32 %v3590_v24, %v1209_v19  ;;  %v1211_v56 = vpop.f32.mrb[61].mxu0 }
 0x1a8   : > { %v2897_v27 = vpop.eup %2896  ;;  %2916 = vrcp.f32 %v1611_v41  ;;  %v1613_v38 = vadd.f32 1.0, %v2895_v23  ;;  %2090 = vmatprep.mubr.bf16.mxu1 %v1839_v0  ;;  %v1291_v7 = vmul.f32 %v3592_v3, %v1211_v56  ;;  %v1213_v36 = vpop.f32.mrb[62].mxu0 }
 0x1a9   : > { %v2899_v49 = vpop.eup %2898  ;;  %2918 = vrcp.f32 %v1612_v63  ;;  %v1614_v47 = vadd.f32 1.0, %v2897_v27  ;;  %2091 = vmatmul.mubr.bf16.gmra.mrb[40].mxu1 %v1838_v12  ;;  %v3949_v13 = vadd.f32 %v3595_v22, %v1290_v20  ;;  %v1292_v45 = vmul.f32 %v3590_v24, %v1213_v36  ;;  %v1215_v6 = vpop.f32.mrb[63].mxu0 }
 0x1aa   : > { %v2901_v50 = vpop.eup %2900  ;;  %2920 = vrcp.f32 %v1613_v38  ;;  %v1615_v4 = vadd.f32 1.0, %v2899_v49  ;;  %v3953_v41 = vadd.f32 %v3597_v61, %v1291_v7  ;;  %v1293_v0 = vmul.f32 %v3592_v3, %v1215_v6 }
 0x1ab   : > { %v2903_v19 = vpop.eup %2902  ;;  %2922 = vrcp.f32 %v1614_v47  ;;  %v2443_v23 = vmul.f32 -1.442695, %v3949_v13  ;;  %v1798_v12 = vmul.f32 %v2889_v2, %v3850_v16  ;;  %v1799_v27 = vmul.f32 %v2901_v50, %v3859_v51 }
 0x1ac   : > { %v2905_v63 = vpop.eup %2904  ;;  %v1800_v20 = vmul.f32 %v2903_v19, %v3863_v18  ;;  %2924 = vrcp.f32 %v1615_v4  ;;  %v2444_v24 = vmul.f32 -1.442695, %v3953_v41  ;;  %v3963_v3 = vadd.f32 %v3595_v22, %v1292_v45 }
 0x1ad   : > { %v2907_v56 = vpop.eup %2906  ;;  %v1801_v38 = vmul.f32 %v2905_v63, %v3866_v57  ;;  %2926 = vpow2.f32 %v2441_v26  ;;  %v3966_v36 = vadd.f32 %v3597_v61, %v1293_v0 }
 0x1ae   : > { %v2909_v7 = vpop.eup %2908  ;;  %2928 = vpow2.f32 %v2442_v28  ;;  %v1840_v16 = vpack.c.bf16 %v1800_v20, %v1798_v12  ;;  %v2445_v57 = vmul.f32 -1.442695, %v3963_v3  ;;  %v1802_v45 = vmul.f32 %v2907_v56, %v3874_v14 }
 0x1af   : > { %v2911_v2 = vpop.eup %2910  ;;  %v1616_v18 = vadd.f32 1.0, %v2909_v7  ;;  %2930 = vpow2.f32 %v2443_v23  ;;  %v1841_v49 = vpack.c.bf16 %v1801_v38, %v1799_v27  ;;  %v2446_v26 = vmul.f32 -1.442695, %v3966_v36 }
 0x1b0   : > { %v2913_v47 = vpop.eup %2912  ;;  %v1617_v6 = vadd.f32 1.0, %v2911_v2  ;;  %2932 = vpow2.f32 %v2444_v24 }
 0x1b1   : > { %v2915_v51 = vpop.eup %2914  ;;  %2934 = vrcp.f32 %v1616_v18  ;;  %2098 = vmatprep.mubr.bf16.mxu1 %v1841_v49  ;;  %v1618_v4 = vadd.f32 1.0, %v2913_v47 }
 0x1b2   : > { %v2917_v22 = vpop.eup %2916  ;;  %2936 = vrcp.f32 %v1617_v6  ;;  %2099 = vmatmul.mubr.bf16.gmra.mrb[44].mxu1 %v1840_v16  ;;  %v1619_v63 = vadd.f32 1.0, %v2915_v51 }
 0x1b3   : > { %v2919_v61 = vpop.eup %2918  ;;  %v1803_v19 = vmul.f32 %v2917_v22, %v3879_v29  ;;  %2938 = vpow2.f32 %v2445_v57 }
 0x1b4   : > { %v2921_v28 = vpop.eup %2920  ;;  %v1804_v50 = vmul.f32 %v2919_v61, %v3885_v21  ;;  %2940 = vpow2.f32 %v2446_v26 }
 0x1b5   : > { %v2923_v0 = vpop.eup %2922  ;;  %v1805_v23 = vmul.f32 %v2921_v28, %v3890_v1  ;;  %2942 = vrcp.f32 %v1618_v4 }
 0x1b6   : > { %v2925_v12 = vpop.eup %2924  ;;  %v1842_v20 = vpack.c.bf16 %v1804_v50, %v1802_v45  ;;  %2944 = vrcp.f32 %v1619_v63  ;;  %v1806_v56 = vmul.f32 %v2923_v0, %v3899_v5 }
 0x1b7   : > { %v2927_v24 = vpop.eup %2926  ;;  %v1843_v27 = vpack.c.bf16 %v1805_v23, %v1803_v19  ;;  %v1807_v49 = vmul.f32 %v2925_v12, %v3904_v54 }
 0x1b8   : > { %v2929_v38 = vpop.eup %2928  ;;  %v1620_v7 = vadd.f32 1.0, %v2927_v24 }
 0x1b9   : > { %v2931_v16 = vpop.eup %2930  ;;  %v1621_v14 = vadd.f32 1.0, %v2929_v38  ;;  %2106 = vmatprep.mubr.bf16.mxu1 %v1843_v27 }
 0x1ba   : > { %v2933_v21 = vpop.eup %2932  ;;  %2946 = vrcp.f32 %v1620_v7  ;;  %2107 = vmatmul.mubr.bf16.gmra.mrb[48].mxu1 %v1842_v20  ;;  %v1622_v18 = vadd.f32 1.0, %v2931_v16 }
 0x1bb   : > { %v2935_v29 = vpop.eup %2934  ;;  %2948 = vrcp.f32 %v1621_v14  ;;  %v1623_v6 = vadd.f32 1.0, %v2933_v21  ;;  %v3989_v14 = vld [vmem:[%s4143_s9] ss:$0 sm:$0xff] }
 0x1bc   : > { %v2937_v1 = vpop.eup %2936  ;;  %v1808_v2 = vmul.f32 %v2935_v29, %v3910_v62  ;;  %2950 = vrcp.f32 %v1622_v18 }
 0x1bd   : > { %v1809_v47 = vmul.f32 %v2937_v1, %v3915_v60  ;;  %v2939_v57 = vpop.eup %2938  ;;  %2952 = vrcp.f32 %v1623_v6 }
 0x1be   : > { %v1844_v51 = vpack.c.bf16 %v1808_v2, %v1806_v56  ;;  %v2941_v26 = vpop.eup %2940  ;;  %v1624_v61 = vadd.f32 1.0, %v2939_v57 }
 0x1bf   : > { %v1845_v22 = vpack.c.bf16 %v1809_v47, %v1807_v49  ;;  %v1625_v28 = vadd.f32 1.0, %v2941_v26  ;;  %v2943_v45 = vpop.eup %2942 }
 0x1c0   : > { %2954 = vrcp.f32 %v1624_v61  ;;  %v2945_v5 = vpop.eup %2944  ;;  %v1810_v54 = vmul.f32 %v2943_v45, %v3925_v53 }
 0x1c1   : > { %2114 = vmatprep.mubr.bf16.mxu1 %v1845_v22  ;;  %2956 = vrcp.f32 %v1625_v28  ;;  %v1811_v4 = vmul.f32 %v2945_v5, %v3930_v44 }
 0x1c2   : > { %2115 = vmatmul.mubr.bf16.gmra.mrb[52].mxu1 %v1844_v51 }
 0x1c4   : > { %v2947_v62 = vpop.eup %2946 }
 0x1c5   : > { %v2949_v50 = vpop.eup %2948  ;;  %v1812_v60 = vmul.f32 %v2947_v62, %v3936_v30 }
 0x1c6   : > { %v1813_v0 = vmul.f32 %v2949_v50, %v3941_v58  ;;  %v2951_v63 = vpop.eup %2950 }
 0x1c7   : > { %v1846_v19 = vpack.c.bf16 %v1812_v60, %v1810_v54  ;;  %v2953_v12 = vpop.eup %2952  ;;  %v1814_v27 = vmul.f32 %v2951_v63, %v3949_v13 }
 0x1c8   : > { %v1847_v23 = vpack.c.bf16 %v1813_v0, %v1811_v4  ;;  %v1815_v53 = vmul.f32 %v2953_v12, %v3953_v41  ;;  %v3994_v41 = vld [vmem:[%s4144_s10] ss:$0 sm:$0xff] }
 0x1ca   : > { %2122 = vmatprep.mubr.bf16.mxu1 %v1847_v23  ;;  %v2955_v20 = vpop.eup %2954 }
 0x1cb   : > { %2123 = vmatmul.mubr.bf16.gmra.mrb[56].mxu1 %v1846_v19  ;;  %v2957_v24 = vpop.eup %2956  ;;  %v1816_v38 = vmul.f32 %v2955_v20, %v3963_v3 }
 0x1cc   : > { %v1817_v30 = vmul.f32 %v2957_v24, %v3966_v36 }
 0x1cd   : > { %v1848_v44 = vpack.c.bf16 %v1816_v38, %v1814_v27 }
 0x1ce   : > { %v1849_v7 = vpack.c.bf16 %v1817_v30, %v1815_v53 }
 0x1d0   : > { %2130 = vmatprep.mubr.bf16.mxu1 %v1849_v7 }
 0x1d3   : > { %2131 = vmatmul.mubr.bf16.gmra.mrb[60].mxu1 %v1848_v44 }
 0x22a   : > { %v2485_v58 = vpop.f32.mrb[0].mxu1 }
 0x22b   : > { %v2486_v16 = vpop.f32.mrb[1].mxu1 }
 0x22c   : > { %v2487_v21 = vadd.f32 %v2486_v16, %v2485_v58  ;;  %v2488_v13 = vpop.f32.mrb[2].mxu1 }
 0x22d   : > { %v2489_v3 = vpop.f32.mrb[3].mxu1 }
 0x22e   : > { %v2146_v36 = vmul.f32 %v2487_v21, %v3989_v14  ;;  %v2490_v29 = vadd.f32 %v2489_v3, %v2488_v13 }
 0x230   : > { %v2185_v1 = vadd.f32 %v3994_v41, %v2146_v36  ;;  %v2147_v56 = vmul.f32 %v2490_v29, %v3989_v14 }
 0x232   : > { %v2217_v2 = vadd.f32 %v2185_v1, %v3297_v39  ;;  %v2186_v18 = vadd.f32 %v3994_v41, %v2147_v56 }
 0x233   : > { %v2491_v49 = vpop.f32.mrb[4].mxu1 }
 0x234   : > { %2249 = vst [vmem:[%s4004_s25] sm:$0xff] %v2217_v2  ;;  %v2218_v47 = vadd.f32 %v2186_v18, %v3300_v59  ;;  %v2492_v6 = vpop.f32.mrb[5].mxu1 }
 0x235   : > { %v2493_v51 = vadd.f32 %v2492_v6, %v2491_v49  ;;  %v2494_v57 = vpop.f32.mrb[6].mxu1 }
 0x236   : > { %2250 = vst [vmem:[%s4004_s25 + $0x8] sm:$0xff] %v2218_v47  ;;  %v2495_v22 = vpop.f32.mrb[7].mxu1 }
 0x237   : > { %v2148_v26 = vmul.f32 %v2493_v51, %v3989_v14  ;;  %v2496_v61 = vadd.f32 %v2495_v22, %v2494_v57 }
 0x239   : > { %v2187_v28 = vadd.f32 %v3994_v41, %v2148_v26  ;;  %v2149_v39 = vmul.f32 %v2496_v61, %v3989_v14 }
 0x23b   : > { %v2219_v45 = vadd.f32 %v2187_v28, %v3309_v10  ;;  %v2188_v5 = vadd.f32 %v3994_v41, %v2149_v39  ;;  %v2497_v62 = vpop.f32.mrb[8].mxu1 }
 0x23c   : > { %v2498_v59 = vpop.f32.mrb[9].mxu1 }
 0x23d   : > { %2251 = vst [vmem:[%s4004_s25 + $0x10] sm:$0xff] %v2219_v45  ;;  %v2220_v50 = vadd.f32 %v2188_v5, %v3312_v8  ;;  %v2499_v54 = vadd.f32 %v2498_v59, %v2497_v62  ;;  %v2500_v60 = vpop.f32.mrb[10].mxu1 }
 0x23e   : > { %v2501_v4 = vpop.f32.mrb[11].mxu1 }
 0x23f   : > { %2252 = vst [vmem:[%s4004_s25 + $0x18] sm:$0xff] %v2220_v50  ;;  %v2150_v0 = vmul.f32 %v2499_v54, %v3989_v14  ;;  %v2502_v19 = vadd.f32 %v2501_v4, %v2500_v60 }
 0x241   : > { %v2189_v23 = vadd.f32 %v3994_v41, %v2150_v0  ;;  %v2151_v10 = vmul.f32 %v2502_v19, %v3989_v14 }
 0x243   : > { %v2221_v63 = vadd.f32 %v2189_v23, %v3332_v9  ;;  %v2190_v12 = vadd.f32 %v3994_v41, %v2151_v10  ;;  %v2503_v20 = vpop.f32.mrb[12].mxu1 }
 0x244   : > { %v2504_v24 = vpop.f32.mrb[13].mxu1 }
 0x245   : > { %2253 = vst [vmem:[%s4004_s25 + $0x20] sm:$0xff] %v2221_v63  ;;  %v2222_v8 = vadd.f32 %v2190_v12, %v3335_v34  ;;  %v2505_v27 = vadd.f32 %v2504_v24, %v2503_v20  ;;  %v2506_v38 = vpop.f32.mrb[14].mxu1 }
 0x246   : > { %v2507_v53 = vpop.f32.mrb[15].mxu1 }
 0x247   : > { %2254 = vst [vmem:[%s4004_s25 + $0x28] sm:$0xff] %v2222_v8  ;;  %v2152_v30 = vmul.f32 %v2505_v27, %v3989_v14  ;;  %v2508_v44 = vadd.f32 %v2507_v53, %v2506_v38 }
 0x249   : > { %v2191_v7 = vadd.f32 %v3994_v41, %v2152_v30  ;;  %v2153_v9 = vmul.f32 %v2508_v44, %v3989_v14 }
 0x24b   : > { %v2223_v58 = vadd.f32 %v2191_v7, %v3354_v40  ;;  %v2192_v16 = vadd.f32 %v3994_v41, %v2153_v9  ;;  %v2509_v21 = vpop.f32.mrb[16].mxu1 }
 0x24c   : > { %v2510_v13 = vpop.f32.mrb[17].mxu1 }
 0x24d   : > { %2255 = vst [vmem:[%s4004_s25 + $0x30] sm:$0xff] %v2223_v58  ;;  %v2224_v34 = vadd.f32 %v2192_v16, %v3357_v55  ;;  %v2511_v3 = vadd.f32 %v2510_v13, %v2509_v21  ;;  %v2512_v36 = vpop.f32.mrb[18].mxu1 }
 0x24e   : > { %v2513_v29 = vpop.f32.mrb[19].mxu1 }
 0x24f   : > { %2256 = vst [vmem:[%s4004_s25 + $0x38] sm:$0xff] %v2224_v34  ;;  %v2154_v1 = vmul.f32 %v2511_v3, %v3989_v14  ;;  %v2514_v56 = vadd.f32 %v2513_v29, %v2512_v36 }
 0x251   : > { %v2193_v2 = vadd.f32 %v3994_v41, %v2154_v1  ;;  %v2155_v40 = vmul.f32 %v2514_v56, %v3989_v14 }
 0x253   : > { %v2225_v18 = vadd.f32 %v2193_v2, %v3372_v33  ;;  %v2194_v49 = vadd.f32 %v3994_v41, %v2155_v40  ;;  %v2515_v47 = vpop.f32.mrb[20].mxu1 }
 0x254   : > { %v2516_v6 = vpop.f32.mrb[21].mxu1 }
 0x255   : > { %2257 = vst [vmem:[%s4004_s25 + $0x40] sm:$0xff] %v2225_v18  ;;  %v2226_v55 = vadd.f32 %v2194_v49, %v3375_v15  ;;  %v2517_v51 = vadd.f32 %v2516_v6, %v2515_v47  ;;  %v2518_v57 = vpop.f32.mrb[22].mxu1 }
 0x256   : > { %v2519_v22 = vpop.f32.mrb[23].mxu1 }
 0x257   : > { %2258 = vst [vmem:[%s4004_s25 + $0x48] sm:$0xff] %v2226_v55  ;;  %v2156_v26 = vmul.f32 %v2517_v51, %v3989_v14  ;;  %v2520_v61 = vadd.f32 %v2519_v22, %v2518_v57 }
 0x259   : > { %v2195_v28 = vadd.f32 %v3994_v41, %v2156_v26  ;;  %v2157_v33 = vmul.f32 %v2520_v61, %v3989_v14 }
 0x25b   : > { %v2227_v39 = vadd.f32 %v2195_v28, %v3390_v52  ;;  %v2196_v45 = vadd.f32 %v3994_v41, %v2157_v33  ;;  %v2521_v5 = vpop.f32.mrb[24].mxu1 }
 0x25c   : > { %v2522_v62 = vpop.f32.mrb[25].mxu1 }
 0x25d   : > { %2259 = vst [vmem:[%s4004_s25 + $0x50] sm:$0xff] %v2227_v39  ;;  %v2228_v15 = vadd.f32 %v2196_v45, %v3393_v37  ;;  %v2523_v59 = vadd.f32 %v2522_v62, %v2521_v5  ;;  %v2524_v50 = vpop.f32.mrb[26].mxu1 }
 0x25e   : > { %v2525_v54 = vpop.f32.mrb[27].mxu1 }
 0x25f   : > { %2260 = vst [vmem:[%s4004_s25 + $0x58] sm:$0xff] %v2228_v15  ;;  %v2158_v60 = vmul.f32 %v2523_v59, %v3989_v14  ;;  %v2526_v4 = vadd.f32 %v2525_v54, %v2524_v50 }
 0x261   : > { %v2197_v0 = vadd.f32 %v3994_v41, %v2158_v60  ;;  %v2159_v52 = vmul.f32 %v2526_v4, %v3989_v14 }
 0x263   : > { %v2229_v19 = vadd.f32 %v2197_v0, %v3406_v42  ;;  %v2198_v23 = vadd.f32 %v3994_v41, %v2159_v52  ;;  %v2527_v10 = vpop.f32.mrb[28].mxu1  ;;  %v4173_v52 = vld [vmem:[#allocation2_spill] sm:$0xff] }
 0x264   : > { %v2528_v63 = vpop.f32.mrb[29].mxu1 }
 0x265   : > { %2261 = vst [vmem:[%s4004_s25 + $0x60] sm:$0xff] %v2229_v19  ;;  %v2230_v37 = vadd.f32 %v2198_v23, %v3409_v17  ;;  %v2529_v12 = vadd.f32 %v2528_v63, %v2527_v10  ;;  %v2530_v20 = vpop.f32.mrb[30].mxu1  ;;  %v4174_v63 = vld [vmem:[#allocation3_spill] sm:$0xff] }
 0x266   : > { %v2531_v24 = vpop.f32.mrb[31].mxu1 }
 0x267   : > { %2262 = vst [vmem:[%s4004_s25 + $0x68] sm:$0xff] %v2230_v37  ;;  %v2160_v8 = vmul.f32 %v2529_v12, %v3989_v14  ;;  %v2532_v27 = vadd.f32 %v2531_v24, %v2530_v20 }
 0x269   : > { %v2199_v38 = vadd.f32 %v3994_v41, %v2160_v8  ;;  %v2161_v42 = vmul.f32 %v2532_v27, %v3989_v14 }
 0x26b   : > { %v2231_v53 = vadd.f32 %v2199_v38, %v3422_v32  ;;  %v2200_v30 = vadd.f32 %v3994_v41, %v2161_v42 }
 0x26c   : > { %v2533_v44 = vpop.f32.mrb[32].mxu1 }
 0x26d   : > { %2263 = vst [vmem:[%s4004_s25 + $0x70] sm:$0xff] %v2231_v53  ;;  %v2232_v17 = vadd.f32 %v2200_v30, %v3425_v48  ;;  %v2534_v7 = vpop.f32.mrb[33].mxu1  ;;  %v4175_v53 = vld [vmem:[#allocation4_spill] sm:$0xff] }
 0x26e   : > { %v2535_v9 = vadd.f32 %v2534_v7, %v2533_v44  ;;  %v2536_v58 = vpop.f32.mrb[34].mxu1 }
 0x26f   : > { %2264 = vst [vmem:[%s4004_s25 + $0x78] sm:$0xff] %v2232_v17  ;;  %v2537_v16 = vpop.f32.mrb[35].mxu1 }
 0x270   : > { %v2162_v21 = vmul.f32 %v2535_v9, %v3989_v14  ;;  %v2538_v13 = vadd.f32 %v2537_v16, %v2536_v58  ;;  %v4176_v9 = vld [vmem:[#allocation5_spill] sm:$0xff] }
 0x272   : > { %v2201_v34 = vadd.f32 %v3994_v41, %v2162_v21  ;;  %v2163_v32 = vmul.f32 %v2538_v13, %v3989_v14 }
 0x274   : > { %v2233_v3 = vadd.f32 %v2201_v34, %v3437_v31  ;;  %v2202_v36 = vadd.f32 %v3994_v41, %v2163_v32  ;;  %v2539_v29 = vpop.f32.mrb[36].mxu1 }
 0x275   : > { %v2540_v48 = vpop.f32.mrb[37].mxu1 }
 0x276   : > { %2265 = vst [vmem:[%s4004_s25 + $0x80] sm:$0xff] %v2233_v3  ;;  %v2234_v1 = vadd.f32 %v2202_v36, %v3440_v11  ;;  %v2541_v56 = vadd.f32 %v2540_v48, %v2539_v29  ;;  %v2542_v2 = vpop.f32.mrb[38].mxu1  ;;  %v4177_v29 = vld [vmem:[#allocation6_spill] sm:$0xff] }
 0x277   : > { %v2543_v40 = vpop.f32.mrb[39].mxu1 }
 0x278   : > { %2266 = vst [vmem:[%s4004_s25 + $0x88] sm:$0xff] %v2234_v1  ;;  %v2164_v18 = vmul.f32 %v2541_v56, %v3989_v14  ;;  %v2544_v49 = vadd.f32 %v2543_v40, %v2542_v2  ;;  %v4178_v2 = vld [vmem:[#allocation7_spill] sm:$0xff] }
 0x27a   : > { %v2203_v47 = vadd.f32 %v3994_v41, %v2164_v18  ;;  %v2165_v31 = vmul.f32 %v2544_v49, %v3989_v14 }
 0x27c   : > { %v2235_v6 = vadd.f32 %v2203_v47, %v3341_v46  ;;  %v2204_v55 = vadd.f32 %v3994_v41, %v2165_v31  ;;  %v2545_v51 = vpop.f32.mrb[40].mxu1 }
 0x27d   : > { %v2546_v57 = vpop.f32.mrb[41].mxu1 }
 0x27e   : > { %2267 = vst [vmem:[%s4004_s25 + $0x90] sm:$0xff] %v2235_v6  ;;  %v2236_v11 = vadd.f32 %v2204_v55, %v3344_v35  ;;  %v2547_v22 = vadd.f32 %v2546_v57, %v2545_v51  ;;  %v2548_v26 = vpop.f32.mrb[42].mxu1 }
 0x27f   : > { %v2549_v61 = vpop.f32.mrb[43].mxu1 }
 0x280   : > { %2268 = vst [vmem:[%s4004_s25 + $0x98] sm:$0xff] %v2236_v11  ;;  %v2166_v28 = vmul.f32 %v2547_v22, %v3989_v14  ;;  %v2550_v33 = vadd.f32 %v2549_v61, %v2548_v26  ;;  %v4179_v11 = vld [vmem:[#allocation8_spill] sm:$0xff] }
 0x282   : > { %v2205_v39 = vadd.f32 %v3994_v41, %v2166_v28  ;;  %v2167_v46 = vmul.f32 %v2550_v33, %v3989_v14  ;;  %v4180_v33 = vld [vmem:[#allocation9_spill] sm:$0xff] }
 0x284   : > { %v2237_v45 = vadd.f32 %v2205_v39, %v3457_v43  ;;  %v2206_v5 = vadd.f32 %v3994_v41, %v2167_v46 }
 0x285   : > { %v2551_v62 = vpop.f32.mrb[44].mxu1 }
 0x286   : > { %2269 = vst [vmem:[%s4004_s25 + $0xa0] sm:$0xff] %v2237_v45  ;;  %v2238_v35 = vadd.f32 %v2206_v5, %v3460_v25  ;;  %v2552_v15 = vpop.f32.mrb[45].mxu1 }
 0x287   : > { %v2553_v59 = vadd.f32 %v2552_v15, %v2551_v62  ;;  %v2554_v50 = vpop.f32.mrb[46].mxu1 }
 0x288   : > { %2270 = vst [vmem:[%s4004_s25 + $0xa8] sm:$0xff] %v2238_v35  ;;  %v2555_v54 = vpop.f32.mrb[47].mxu1 }
 0x289   : > { %v2168_v60 = vmul.f32 %v2553_v59, %v3989_v14  ;;  %v2556_v4 = vadd.f32 %v2555_v54, %v2554_v50  ;;  %v4181_v50 = vld [vmem:[#allocation10_spill] sm:$0xff] }
 0x28b   : > { %v2207_v0 = vadd.f32 %v3994_v41, %v2168_v60  ;;  %v2169_v43 = vmul.f32 %v2556_v4, %v3989_v14  ;;  %v4182_v4 = vld [vmem:[#allocation11_spill] sm:$0xff] }
 0x28d   : > { %v2239_v19 = vadd.f32 %v2207_v0, %v4173_v52  ;;  %v2208_v23 = vadd.f32 %v3994_v41, %v2169_v43  ;;  %v2557_v10 = vpop.f32.mrb[48].mxu1 }
 0x28e   : > { %v2558_v25 = vpop.f32.mrb[49].mxu1 }
 0x28f   : > { %2271 = vst [vmem:[%s4004_s25 + $0xb0] sm:$0xff] %v2239_v19  ;;  %v2240_v37 = vadd.f32 %v2208_v23, %v4174_v63  ;;  %v2559_v12 = vadd.f32 %v2558_v25, %v2557_v10  ;;  %v2560_v20 = vpop.f32.mrb[50].mxu1 }
 0x290   : > { %v2561_v24 = vpop.f32.mrb[51].mxu1 }
 0x291   : > { %2272 = vst [vmem:[%s4004_s25 + $0xb8] sm:$0xff] %v2240_v37  ;;  %v2170_v8 = vmul.f32 %v2559_v12, %v3989_v14  ;;  %v2562_v27 = vadd.f32 %v2561_v24, %v2560_v20 }
 0x293   : > { %v2209_v38 = vadd.f32 %v3994_v41, %v2170_v8  ;;  %v2171_v42 = vmul.f32 %v2562_v27, %v3989_v14 }
 0x295   : > { %v2241_v30 = vadd.f32 %v2209_v38, %v4175_v53  ;;  %v2210_v44 = vadd.f32 %v3994_v41, %v2171_v42  ;;  %v2563_v17 = vpop.f32.mrb[52].mxu1 }
 0x296   : > { %v2564_v7 = vpop.f32.mrb[53].mxu1 }
 0x297   : > { %2273 = vst [vmem:[%s4004_s25 + $0xc0] sm:$0xff] %v2241_v30  ;;  %v2242_v58 = vadd.f32 %v2210_v44, %v4176_v9  ;;  %v2565_v16 = vadd.f32 %v2564_v7, %v2563_v17  ;;  %v2566_v21 = vpop.f32.mrb[54].mxu1 }
 0x298   : > { %v2567_v13 = vpop.f32.mrb[55].mxu1 }
 0x299   : > { %2274 = vst [vmem:[%s4004_s25 + $0xc8] sm:$0xff] %v2242_v58  ;;  %v2172_v34 = vmul.f32 %v2565_v16, %v3989_v14  ;;  %v2568_v32 = vadd.f32 %v2567_v13, %v2566_v21 }
 0x29b   : > { %v2211_v3 = vadd.f32 %v3994_v41, %v2172_v34  ;;  %v2173_v36 = vmul.f32 %v2568_v32, %v3989_v14 }
 0x29d   : > { %v2243_v48 = vadd.f32 %v2211_v3, %v4177_v29  ;;  %v2212_v1 = vadd.f32 %v3994_v41, %v2173_v36 }
 0x29e   : > { %v2569_v56 = vpop.f32.mrb[56].mxu1 }
 0x29f   : > { %2275 = vst [vmem:[%s4004_s25 + $0xd0] sm:$0xff] %v2243_v48  ;;  %v2244_v40 = vadd.f32 %v2212_v1, %v4178_v2  ;;  %v2570_v18 = vpop.f32.mrb[57].mxu1 }
 0x2a0   : > { %v2571_v49 = vadd.f32 %v2570_v18, %v2569_v56  ;;  %v2572_v47 = vpop.f32.mrb[58].mxu1 }
 0x2a1   : > { %2276 = vst [vmem:[%s4004_s25 + $0xd8] sm:$0xff] %v2244_v40  ;;  %v2573_v31 = vpop.f32.mrb[59].mxu1 }
 0x2a2   : > { %v2174_v6 = vmul.f32 %v2571_v49, %v3989_v14  ;;  %v2574_v55 = vadd.f32 %v2573_v31, %v2572_v47 }
 0x2a4   : > { %v2213_v51 = vadd.f32 %v3994_v41, %v2174_v6  ;;  %v2175_v57 = vmul.f32 %v2574_v55, %v3989_v14 }
 0x2a6   : > { %v2245_v22 = vadd.f32 %v2213_v51, %v4179_v11  ;;  %v2214_v26 = vadd.f32 %v3994_v41, %v2175_v57  ;;  %v2575_v61 = vpop.f32.mrb[60].mxu1 }
 0x2a7   : > { %v2576_v28 = vpop.f32.mrb[61].mxu1 }
 0x2a8   : > { %2277 = vst [vmem:[%s4004_s25 + $0xe0] sm:$0xff] %v2245_v22  ;;  %v2246_v39 = vadd.f32 %v2214_v26, %v4180_v33  ;;  %v2577_v46 = vadd.f32 %v2576_v28, %v2575_v61  ;;  %v2578_v45 = vpop.f32.mrb[62].mxu1 }
 0x2a9   : > { %v2579_v5 = vpop.f32.mrb[63].mxu1 }
 0x2aa   : > { %2278 = vst [vmem:[%s4004_s25 + $0xe8] sm:$0xff] %v2246_v39  ;;  %v2176_v62 = vmul.f32 %v2577_v46, %v3989_v14  ;;  %v2580_v35 = vadd.f32 %v2579_v5, %v2578_v45 }
 0x2ac   : > { %v2215_v15 = vadd.f32 %v3994_v41, %v2176_v62  ;;  %v2177_v59 = vmul.f32 %v2580_v35, %v3989_v14 }
 0x2ae   : > { %v2247_v54 = vadd.f32 %v2215_v15, %v4181_v50  ;;  %v2216_v60 = vadd.f32 %v3994_v41, %v2177_v59 }
 0x2b0   : > { %2279 = vst [vmem:[%s4004_s25 + $0xf0] sm:$0xff] %v2247_v54  ;;  %v2248_v0 = vadd.f32 %v2216_v60, %v4182_v4 }
 0x2b2   : > { %2280 = vst [vmem:[%s4004_s25 + $0xf8] sm:$0xff] %v2248_v0 }
 0x2b3 PF: > { %s21_s17 = sadd.s32 1, %s2964_s17  }
 0x2b4   : > { %p18_p4 = scmp.ge.s32.totalorder %s21_s17, 4  }
 0x2b6   :  { %20 = sbr.rel (!%p18_p4) target bundleno = 1 (0x1), region = 94 }

// kernel: c2psa_lca_forward.4
= control target key start
LH: loop header
LB: loop body
LE: loop exit
PB: predicated region body
PF: predicated region fallthrough
CT: control target
= control target key end

     0   :  { %11 = vsyncpa [#allocation3], 0  ;;  %s4436_s0 = inlined_call_operand.hbm [shape: f32[512,256], index: 0, kind: input, shape index: {}]   ;;  %s4437_s1 = inlined_call_operand.hbm [shape: bf16[256,256], index: 1, kind: input, shape index: {}]   ;;  %s4438_s2 = inlined_call_operand.vmem [shape: f32[1,256], index: 2, kind: input, shape index: {}]   ;;  %s4439_s3 = inlined_call_operand.vmem [shape: f32[1,256], index: 3, kind: input, shape index: {}]   ;;  %s4440_s4 = inlined_call_operand.vmem [shape: f32[512,128], index: 4, kind: output, shape index: {0}]   ;;  %s4441_s5 = inlined_call_operand.vmem [shape: f32[512,128], index: 5, kind: output, shape index: {1}]  }
   0x1   :  { %12 = vsyncpa [#allocation5], 0  ;;  %s2904_s18 = smov [#allocation2]   ;;  %s2856_s22 = scalar_lea.hbm %s4436_s0, 16384 }
   0x2   :  { %s18_s19 = sshll.u32 %s2904_s18, 4  ;;  %p2857_p0 = scmp.ne.s32.totalorder %s4436_s0, %s2856_s22  ;;  %s19_s19 = int_to_ptr.vmem [resolvable:$true] %s18_s19 }
   0x3   :  { %p2860_p1 = scmp.lt.u32.totalorder %s2856_s22, %s4436_s0 }
   0x5   :  { %p2862_p2 = pnand %p2860_p1, %p2857_p0 }
   0x7   :  { %2865 = shalt.err (!%p2862_p2)
}
   0x8   :  { %s2866_s27 = scalar_lea.vmem %s19_s19, 16384  ;;  %p2871_p4 = scmp.lt.s32.totalorder %s19_s19, %s19_s19 }
   0x9   :  { %p2867_p3 = scmp.ne.s32.totalorder %s19_s19, %s2866_s27  ;;  %p2872_p5 = scmp.lt.s32.totalorder %s2866_s27, %s2866_s27 }
   0xb   :  { %p2873_p6 = por %p2872_p5, %p2871_p4 }
   0xd   :  { %p2874_p7 = pnand %p2873_p6, %p2867_p3 }
   0xf   :  { %2877 = shalt.err (!%p2874_p7)
}
  0x10   :  { %s2905_s28 = smov 256   ;;  %s2906_s29 = smov 16  }
  0x11   :  { %24 = dma.hbm_to_vmem [thread:$0]  %s4436_s0, 16384, %s19_s19, [#allocation3], %s2905_s28, %s2905_s28, %s2906_s29  }
  0x12   :  { %s2907_s7 = smov [#allocation4]   ;;  %s2878_s11 = scalar_lea.hbm %s4437_s1, 4096 }
  0x13   :  { %s30_s8 = sshll.u32 %s2907_s7, 4  ;;  %p2879_p8 = scmp.ne.s32.totalorder %s4437_s1, %s2878_s11  ;;  %s31_s8 = int_to_ptr.vmem [resolvable:$true] %s30_s8 }
  0x14   :  { %p2882_p9 = scmp.lt.u32.totalorder %s2878_s11, %s4437_s1 }
  0x16   :  { %p2884_p10 = pnand %p2882_p9, %p2879_p8 }
  0x18   :  { %2887 = shalt.err (!%p2884_p10)
}
  0x19   :  { %s2888_s16 = scalar_lea.vmem %s31_s8, 4096  ;;  %p2893_p12 = scmp.lt.s32.totalorder %s31_s8, %s31_s8 }
  0x1a   :  { %p2889_p11 = scmp.ne.s32.totalorder %s31_s8, %s2888_s16  ;;  %p2894_p13 = scmp.lt.s32.totalorder %s2888_s16, %s2888_s16 }
  0x1c   :  { %p2895_p0 = por %p2894_p13, %p2893_p12 }
  0x1e   :  { %p2896_p1 = pnand %p2895_p0, %p2889_p11 }
  0x20   :  { %2899 = shalt.err (!%p2896_p1)
}
  0x21   :  { %s2908_s0 = smov 128   ;;  %s2909_s17 = smov 8  }
  0x22   :  { %36 = dma.hbm_to_vmem [thread:$0]  %s4437_s1, 4096, %s31_s8, [#allocation5], %s2908_s0, %s2908_s0, %s2909_s17  }
  0x23   :  { %2900 = dma.done.wait [#allocation3], 16384  }
  0x24   :  { %2901 = vsyncadd [#allocation3], 4294950912 }
  0x25   :  { %2902 = dma.done.wait [#allocation5], 4096  }
  0x26   :  { %2903 = vsyncadd [#allocation5], 4294963200  ;;  %v2296_v0 = vld [vmem:[#allocation4 + $0x4] ss:$8 sps:$4 sm:$0xff]   ;;  %v2298_v1 = vld [vmem:[#allocation4] ss:$8 sps:$4 sm:$0xff]  }
  0x27   :  { %431 = vmatprep.subr.bf16.mxu0 %v2296_v0  ;;  %2258 = vmatprep.subr.bf16.mxu1 %v2296_v0  ;;  %v2299_v2 = vld [vmem:[#allocation4 + $0x14] ss:$8 sps:$4 sm:$0xff]   ;;  %v2301_v3 = vld [vmem:[#allocation4 + $0x10] ss:$8 sps:$4 sm:$0xff]   ;;  %v2302_v4 = vld [vmem:[#allocation4 + $0x24] ss:$8 sps:$4 sm:$0xff]  }
  0x28   :  { %432 = vmatpush1.bf16.msra.mxu0 %v2298_v1  ;;  %2274 = vmatpush1.bf16.msra.mxu1 %v2298_v1  ;;  %v2304_v5 = vld [vmem:[#allocation4 + $0x20] ss:$8 sps:$4 sm:$0xff]   ;;  %v2305_v6 = vld [vmem:[#allocation4 + $0x34] ss:$8 sps:$4 sm:$0xff]   ;;  %v2307_v7 = vld [vmem:[#allocation4 + $0x30] ss:$8 sps:$4 sm:$0xff]  }
  0x29   :  { %433 = vmatprep.subr.bf16.mxu0 %v2299_v2  ;;  %2259 = vmatprep.subr.bf16.mxu1 %v2299_v2  ;;  %v2308_v8 = vld [vmem:[#allocation4 + $0x44] ss:$8 sps:$4 sm:$0xff]   ;;  %v2310_v9 = vld [vmem:[#allocation4 + $0x40] ss:$8 sps:$4 sm:$0xff]   ;;  %v2311_v10 = vld [vmem:[#allocation4 + $0x54] ss:$8 sps:$4 sm:$0xff]  }
  0x2a   :  { %v2313_v11 = vld [vmem:[#allocation4 + $0x50] ss:$8 sps:$4 sm:$0xff]   ;;  %v2314_v12 = vld [vmem:[#allocation4 + $0x64] ss:$8 sps:$4 sm:$0xff]   ;;  %v2316_v18 = vld [vmem:[#allocation4 + $0x60] ss:$8 sps:$4 sm:$0xff]  }
  0x2b   :  { %v48_v13 = vld [vmem:[#allocation2 + $0x8] sm:$0xff]  ;;  %v50_v14 = vld [vmem:[#allocation2 + $0x18] sm:$0xff]  ;;  %v47_v38 = vld [vmem:[#allocation2] sm:$0xff] }
  0x2c   :  { %434 = vmatpush1.bf16.msra.mxu0 %v2301_v3  ;;  %2275 = vmatpush1.bf16.msra.mxu1 %v2301_v3  ;;  %v176_v15 = vpack.c.bf16 %v50_v14, %v48_v13  ;;  %v112_v16 = vld [vmem:[#allocation2 + $0x208] sm:$0xff]  ;;  %v114_v17 = vld [vmem:[#allocation2 + $0x218] sm:$0xff]  ;;  %v49_v39 = vld [vmem:[#allocation2 + $0x10] sm:$0xff] }
  0x2d   :  { %435 = vmatprep.subr.bf16.mxu0 %v2302_v4  ;;  %2260 = vmatprep.subr.bf16.mxu1 %v2302_v4  ;;  %v208_v19 = vpack.c.bf16 %v114_v17, %v112_v16  ;;  %v2317_v20 = vld [vmem:[#allocation4 + $0x74] ss:$8 sps:$4 sm:$0xff]   ;;  %v2319_v21 = vld [vmem:[#allocation4 + $0x70] ss:$8 sps:$4 sm:$0xff]   ;;  %v2320_v22 = vld [vmem:[#allocation4 + $0x84] ss:$8 sps:$4 sm:$0xff]   ;;  %v175_v46 = vpack.c.bf16 %v49_v39, %v47_v38 }
  0x2e   :  { %463 = vmatprep.mubr.bf16.mxu0 %v176_v15  ;;  %v2322_v23 = vld [vmem:[#allocation4 + $0x80] ss:$8 sps:$4 sm:$0xff]   ;;  %v2323_v24 = vld [vmem:[#allocation4 + $0x94] ss:$8 sps:$4 sm:$0xff]   ;;  %v2325_v25 = vld [vmem:[#allocation4 + $0x90] ss:$8 sps:$4 sm:$0xff]  }
  0x2f   :  { %623 = vmatprep.mubr.bf16.mxu1 %v208_v19  ;;  %v2326_v26 = vld [vmem:[#allocation4 + $0xa4] ss:$8 sps:$4 sm:$0xff]   ;;  %v2328_v27 = vld [vmem:[#allocation4 + $0xa0] ss:$8 sps:$4 sm:$0xff]   ;;  %v2329_v28 = vld [vmem:[#allocation4 + $0xb4] ss:$8 sps:$4 sm:$0xff]  }
  0x30   :  { %436 = vmatpush1.bf16.msra.mxu0 %v2304_v5  ;;  %2276 = vmatpush1.bf16.msra.mxu1 %v2304_v5  ;;  %v2331_v29 = vld [vmem:[#allocation4 + $0xb0] ss:$8 sps:$4 sm:$0xff]   ;;  %v2332_v30 = vld [vmem:[#allocation4 + $0xc4] ss:$8 sps:$4 sm:$0xff]   ;;  %v2334_v31 = vld [vmem:[#allocation4 + $0xc0] ss:$8 sps:$4 sm:$0xff]  }
  0x31   :  { %437 = vmatprep.subr.bf16.mxu0 %v2305_v6  ;;  %2261 = vmatprep.subr.bf16.mxu1 %v2305_v6  ;;  %v2335_v32 = vld [vmem:[#allocation4 + $0xd4] ss:$8 sps:$4 sm:$0xff]   ;;  %v2337_v33 = vld [vmem:[#allocation4 + $0xd0] ss:$8 sps:$4 sm:$0xff]   ;;  %v2338_v34 = vld [vmem:[#allocation4 + $0xe4] ss:$8 sps:$4 sm:$0xff]  }
  0x32   :  { %v2340_v35 = vld [vmem:[#allocation4 + $0xe0] ss:$8 sps:$4 sm:$0xff]   ;;  %v2341_v36 = vld [vmem:[#allocation4 + $0xf4] ss:$8 sps:$4 sm:$0xff]   ;;  %v2343_v37 = vld [vmem:[#allocation4 + $0xf0] ss:$8 sps:$4 sm:$0xff]  }
  0x33   :  { %v111_v40 = vld [vmem:[#allocation2 + $0x200] sm:$0xff]  ;;  %v113_v41 = vld [vmem:[#allocation2 + $0x210] sm:$0xff]  ;;  %v52_v42 = vld [vmem:[#allocation2 + $0x28] sm:$0xff] }
  0x34   :  { %438 = vmatpush1.bf16.msra.mxu0 %v2307_v7  ;;  %2277 = vmatpush1.bf16.msra.mxu1 %v2307_v7  ;;  %v54_v43 = vld [vmem:[#allocation2 + $0x38] sm:$0xff]  ;;  %v116_v44 = vld [vmem:[#allocation2 + $0x228] sm:$0xff]  ;;  %v207_v47 = vpack.c.bf16 %v113_v41, %v111_v40  ;;  %v51_v50 = vld [vmem:[#allocation2 + $0x20] sm:$0xff] }
  0x35   :  { %439 = vmatprep.subr.bf16.mxu0 %v2308_v8  ;;  %2262 = vmatprep.subr.bf16.mxu1 %v2308_v8  ;;  %v118_v45 = vld [vmem:[#allocation2 + $0x238] sm:$0xff]  ;;  %v178_v48 = vpack.c.bf16 %v54_v43, %v52_v42  ;;  %v53_v51 = vld [vmem:[#allocation2 + $0x30] sm:$0xff]  ;;  %v115_v52 = vld [vmem:[#allocation2 + $0x220] sm:$0xff] }
  0x36   :  { %v210_v49 = vpack.c.bf16 %v118_v45, %v116_v44  ;;  %v117_v53 = vld [vmem:[#allocation2 + $0x230] sm:$0xff]  ;;  %v56_v54 = vld [vmem:[#allocation2 + $0x48] sm:$0xff]  ;;  %v58_v55 = vld [vmem:[#allocation2 + $0x58] sm:$0xff]  ;;  %v177_v58 = vpack.c.bf16 %v53_v51, %v51_v50 }
  0x37   :  { %v120_v56 = vld [vmem:[#allocation2 + $0x248] sm:$0xff]  ;;  %v122_v57 = vld [vmem:[#allocation2 + $0x258] sm:$0xff]  ;;  %v209_v59 = vpack.c.bf16 %v117_v53, %v115_v52  ;;  %v180_v60 = vpack.c.bf16 %v58_v55, %v56_v54  ;;  %v55_v62 = vld [vmem:[#allocation2 + $0x40] sm:$0xff] }
  0x38   :  { %440 = vmatpush1.bf16.msra.mxu0 %v2310_v9  ;;  %2278 = vmatpush1.bf16.msra.mxu1 %v2310_v9  ;;  %v212_v61 = vpack.c.bf16 %v122_v57, %v120_v56  ;;  %v57_v63 = vld [vmem:[#allocation2 + $0x50] sm:$0xff]  ;;  %v119_v0 = vld [vmem:[#allocation2 + $0x240] sm:$0xff]  ;;  %v60_v2 = vld [vmem:[#allocation2 + $0x68] sm:$0xff] }
  0x39   :  { %441 = vmatprep.subr.bf16.mxu0 %v2311_v10  ;;  %2263 = vmatprep.subr.bf16.mxu1 %v2311_v10  ;;  %v121_v1 = vld [vmem:[#allocation2 + $0x250] sm:$0xff]  ;;  %v62_v3 = vld [vmem:[#allocation2 + $0x78] sm:$0xff]  ;;  %v124_v4 = vld [vmem:[#allocation2 + $0x268] sm:$0xff]  ;;  %v179_v6 = vpack.c.bf16 %v57_v63, %v55_v62 }
  0x3a   :  { %v126_v5 = vld [vmem:[#allocation2 + $0x278] sm:$0xff]  ;;  %v211_v7 = vpack.c.bf16 %v121_v1, %v119_v0  ;;  %v182_v8 = vpack.c.bf16 %v62_v3, %v60_v2  ;;  %v59_v10 = vld [vmem:[#allocation2 + $0x60] sm:$0xff]  ;;  %v125_v13 = vld [vmem:[#allocation2 + $0x270] sm:$0xff] }
  0x3b   :  { %v214_v9 = vpack.c.bf16 %v126_v5, %v124_v4  ;;  %v64_v14 = vld [vmem:[#allocation2 + $0x88] sm:$0xff]  ;;  %v66_v15 = vld [vmem:[#allocation2 + $0x98] sm:$0xff] }
  0x3c   :  { %442 = vmatpush1.bf16.msra.mxu0 %v2313_v11  ;;  %2279 = vmatpush1.bf16.msra.mxu1 %v2313_v11  ;;  %v61_v11 = vld [vmem:[#allocation2 + $0x70] sm:$0xff]  ;;  %v128_v16 = vld [vmem:[#allocation2 + $0x288] sm:$0xff]  ;;  %v130_v17 = vld [vmem:[#allocation2 + $0x298] sm:$0xff] }
  0x3d   :  { %443 = vmatprep.subr.bf16.mxu0 %v2314_v12  ;;  %2264 = vmatprep.subr.bf16.mxu1 %v2314_v12  ;;  %v123_v12 = vld [vmem:[#allocation2 + $0x260] sm:$0xff]  ;;  %v72_v38 = vld [vmem:[#allocation2 + $0xc8] sm:$0xff]  ;;  %v74_v39 = vld [vmem:[#allocation2 + $0xd8] sm:$0xff] }
  0x3e   :  { %v213_v19 = vpack.c.bf16 %v125_v13, %v123_v12  ;;  %v136_v40 = vld [vmem:[#allocation2 + $0x2c8] sm:$0xff]  ;;  %v138_v41 = vld [vmem:[#allocation2 + $0x2d8] sm:$0xff]  ;;  %v188_v44 = vpack.c.bf16 %v74_v39, %v72_v38 }
  0x3f   :  { %v220_v45 = vpack.c.bf16 %v138_v41, %v136_v40  ;;  %v76_v50 = vld [vmem:[#allocation2 + $0xe8] sm:$0xff]  ;;  %v78_v51 = vld [vmem:[#allocation2 + $0xf8] sm:$0xff] }
  0x40   :  { %444 = vmatpush1.bf16.msra.mxu0 %v2316_v18  ;;  %2280 = vmatpush1.bf16.msra.mxu1 %v2316_v18  ;;  %v181_v18 = vpack.c.bf16 %v61_v11, %v59_v10  ;;  %v140_v52 = vld [vmem:[#allocation2 + $0x2e8] sm:$0xff]  ;;  %v142_v53 = vld [vmem:[#allocation2 + $0x2f8] sm:$0xff]  ;;  %v190_v56 = vpack.c.bf16 %v78_v51, %v76_v50 }
  0x41   :  { %445 = vmatprep.subr.bf16.mxu0 %v2317_v20  ;;  %2265 = vmatprep.subr.bf16.mxu1 %v2317_v20  ;;  %v184_v20 = vpack.c.bf16 %v66_v15, %v64_v14  ;;  %v222_v57 = vpack.c.bf16 %v142_v53, %v140_v52  ;;  %v80_v62 = vld [vmem:[#allocation2 + $0x108] sm:$0xff]  ;;  %v82_v63 = vld [vmem:[#allocation2 + $0x118] sm:$0xff] }
  0x42   :  { %v144_v0 = vld [vmem:[#allocation2 + $0x308] sm:$0xff]  ;;  %v146_v1 = vld [vmem:[#allocation2 + $0x318] sm:$0xff]  ;;  %v192_v4 = vpack.c.bf16 %v82_v63, %v80_v62 }
  0x43   :  { %v224_v5 = vpack.c.bf16 %v146_v1, %v144_v0  ;;  %v84_v10 = vld [vmem:[#allocation2 + $0x128] sm:$0xff]  ;;  %v86_v11 = vld [vmem:[#allocation2 + $0x138] sm:$0xff] }
  0x44   :  { %446 = vmatpush1.bf16.msra.mxu0 %v2319_v21  ;;  %2281 = vmatpush1.bf16.msra.mxu1 %v2319_v21  ;;  %v216_v21 = vpack.c.bf16 %v130_v17, %v128_v16  ;;  %v148_v12 = vld [vmem:[#allocation2 + $0x328] sm:$0xff]  ;;  %v150_v13 = vld [vmem:[#allocation2 + $0x338] sm:$0xff]  ;;  %v194_v16 = vpack.c.bf16 %v86_v11, %v84_v10 }
  0x45   :  { %447 = vmatprep.subr.bf16.mxu0 %v2320_v22  ;;  %2266 = vmatprep.subr.bf16.mxu1 %v2320_v22  ;;  %v63_v22 = vld [vmem:[#allocation2 + $0x80] sm:$0xff]  ;;  %v226_v17 = vpack.c.bf16 %v150_v13, %v148_v12 }
  0x48   :  { %448 = vmatpush1.bf16.msra.mxu0 %v2322_v23  ;;  %2282 = vmatpush1.bf16.msra.mxu1 %v2322_v23  ;;  %v65_v23 = vld [vmem:[#allocation2 + $0x90] sm:$0xff] }
  0x49   :  { %449 = vmatprep.subr.bf16.mxu0 %v2323_v24  ;;  %2267 = vmatprep.subr.bf16.mxu1 %v2323_v24  ;;  %v127_v24 = vld [vmem:[#allocation2 + $0x280] sm:$0xff] }
  0x4c   :  { %450 = vmatpush1.bf16.msra.mxu0 %v2325_v25  ;;  %2283 = vmatpush1.bf16.msra.mxu1 %v2325_v25  ;;  %v129_v25 = vld [vmem:[#allocation2 + $0x290] sm:$0xff] }
  0x4d   :  { %451 = vmatprep.subr.bf16.mxu0 %v2326_v26  ;;  %2268 = vmatprep.subr.bf16.mxu1 %v2326_v26  ;;  %v68_v26 = vld [vmem:[#allocation2 + $0xa8] sm:$0xff] }
  0x50   :  { %452 = vmatpush1.bf16.msra.mxu0 %v2328_v27  ;;  %2284 = vmatpush1.bf16.msra.mxu1 %v2328_v27  ;;  %v70_v27 = vld [vmem:[#allocation2 + $0xb8] sm:$0xff] }
  0x51   :  { %453 = vmatprep.subr.bf16.mxu0 %v2329_v28  ;;  %2269 = vmatprep.subr.bf16.mxu1 %v2329_v28  ;;  %v132_v28 = vld [vmem:[#allocation2 + $0x2a8] sm:$0xff] }
  0x54   :  { %454 = vmatpush1.bf16.msra.mxu0 %v2331_v29  ;;  %2285 = vmatpush1.bf16.msra.mxu1 %v2331_v29  ;;  %v134_v29 = vld [vmem:[#allocation2 + $0x2b8] sm:$0xff] }
  0x55   :  { %455 = vmatprep.subr.bf16.mxu0 %v2332_v30  ;;  %2270 = vmatprep.subr.bf16.mxu1 %v2332_v30  ;;  %v183_v30 = vpack.c.bf16 %v65_v23, %v63_v22  ;;  %v88_v22 = vld [vmem:[#allocation2 + $0x148] sm:$0xff]  ;;  %v90_v23 = vld [vmem:[#allocation2 + $0x158] sm:$0xff] }
  0x58   :  { %456 = vmatpush1.bf16.msra.mxu0 %v2334_v31  ;;  %2286 = vmatpush1.bf16.msra.mxu1 %v2334_v31  ;;  %v215_v31 = vpack.c.bf16 %v129_v25, %v127_v24  ;;  %v152_v24 = vld [vmem:[#allocation2 + $0x348] sm:$0xff]  ;;  %v154_v25 = vld [vmem:[#allocation2 + $0x358] sm:$0xff] }
  0x59   :  { %457 = vmatprep.subr.bf16.mxu0 %v2335_v32  ;;  %2271 = vmatprep.subr.bf16.mxu1 %v2335_v32  ;;  %v186_v32 = vpack.c.bf16 %v70_v27, %v68_v26 }
  0x5c   :  { %458 = vmatpush1.bf16.msra.mxu0 %v2337_v33  ;;  %2287 = vmatpush1.bf16.msra.mxu1 %v2337_v33  ;;  %v218_v33 = vpack.c.bf16 %v134_v29, %v132_v28  ;;  %v196_v28 = vpack.c.bf16 %v90_v23, %v88_v22  ;;  %v228_v29 = vpack.c.bf16 %v154_v25, %v152_v24 }
  0x5d   :  { %459 = vmatprep.subr.bf16.mxu0 %v2338_v34  ;;  %2272 = vmatprep.subr.bf16.mxu1 %v2338_v34  ;;  %v67_v34 = vld [vmem:[#allocation2 + $0xa0] sm:$0xff] }
  0x60   :  { %460 = vmatpush1.bf16.msra.mxu0 %v2340_v35  ;;  %2288 = vmatpush1.bf16.msra.mxu1 %v2340_v35  ;;  %v69_v35 = vld [vmem:[#allocation2 + $0xb0] sm:$0xff] }
  0x61   :  { %461 = vmatprep.subr.bf16.mxu0 %v2341_v36  ;;  %2273 = vmatprep.subr.bf16.mxu1 %v2341_v36  ;;  %v131_v36 = vld [vmem:[#allocation2 + $0x2a0] sm:$0xff]  ;;  %v185_v42 = vpack.c.bf16 %v69_v35, %v67_v34  ;;  %v92_v34 = vld [vmem:[#allocation2 + $0x168] sm:$0xff]  ;;  %v94_v35 = vld [vmem:[#allocation2 + $0x178] sm:$0xff] }
  0x62   :  { %v198_v40 = vpack.c.bf16 %v94_v35, %v92_v34  ;;  %v784_v35 = vld [vmem:[%s4438_s2] sm:$0x3] }
  0x64   :  { %462 = vmatpush1.bf16.msra.mxu0 %v2343_v37  ;;  %2289 = vmatpush1.bf16.msra.mxu1 %v2343_v37  ;;  %v133_v37 = vld [vmem:[#allocation2 + $0x2b0] sm:$0xff] }
  0x65   :  { %v217_v43 = vpack.c.bf16 %v133_v37, %v131_v36  ;;  %v156_v36 = vld [vmem:[#allocation2 + $0x368] sm:$0xff]  ;;  %v158_v37 = vld [vmem:[#allocation2 + $0x378] sm:$0xff] }
  0x66   :  { %v230_v41 = vpack.c.bf16 %v158_v37, %v156_v36  ;;  %v924_v37 = vld [vmem:[%s4439_s3] sm:$0x3] }
  0x67   :  { %464 = vmatmul.mubr.bf16.vlgmr.msra.gmra.mrb[0].mxu0 %v175_v46  ;;  %624 = vmatmul.mubr.bf16.vlgmr.msra.gmra.mrb[0].mxu1 %v207_v47  ;;  %v71_v46 = vld [vmem:[#allocation2 + $0xc0] sm:$0xff]  ;;  %v73_v47 = vld [vmem:[#allocation2 + $0xd0] sm:$0xff] }
  0x68   :  { %473 = vmatprep.mubr.bf16.mxu0 %v178_v48  ;;  %633 = vmatprep.mubr.bf16.mxu1 %v210_v49  ;;  %v135_v48 = vld [vmem:[#allocation2 + $0x2c0] sm:$0xff]  ;;  %v137_v49 = vld [vmem:[#allocation2 + $0x2d0] sm:$0xff]  ;;  %v187_v54 = vpack.c.bf16 %v73_v47, %v71_v46  ;;  %v96_v46 = vld [vmem:[#allocation2 + $0x188] sm:$0xff] }
  0x69   :  { %v219_v55 = vpack.c.bf16 %v137_v49, %v135_v48  ;;  %v98_v47 = vld [vmem:[#allocation2 + $0x198] sm:$0xff]  ;;  %v160_v48 = vld [vmem:[#allocation2 + $0x388] sm:$0xff] }
  0x6a   :  { %v162_v49 = vld [vmem:[#allocation2 + $0x398] sm:$0xff]  ;;  %v200_v52 = vpack.c.bf16 %v98_v47, %v96_v46 }
  0x6b   :  { %v232_v53 = vpack.c.bf16 %v162_v49, %v160_v48 }
  0x6f   :  { %474 = vmatmul.mubr.bf16.gmra.mrb[4].mxu0 %v177_v58  ;;  %634 = vmatmul.mubr.bf16.gmra.mrb[4].mxu1 %v209_v59  ;;  %v75_v58 = vld [vmem:[#allocation2 + $0xe0] sm:$0xff]  ;;  %v77_v59 = vld [vmem:[#allocation2 + $0xf0] sm:$0xff] }
  0x70   :  { %483 = vmatprep.mubr.bf16.mxu0 %v180_v60  ;;  %643 = vmatprep.mubr.bf16.mxu1 %v212_v61  ;;  %v139_v60 = vld [vmem:[#allocation2 + $0x2e0] sm:$0xff]  ;;  %v141_v61 = vld [vmem:[#allocation2 + $0x2f0] sm:$0xff]  ;;  %v189_v2 = vpack.c.bf16 %v77_v59, %v75_v58  ;;  %v100_v58 = vld [vmem:[#allocation2 + $0x1a8] sm:$0xff] }
  0x71   :  { %v221_v3 = vpack.c.bf16 %v141_v61, %v139_v60  ;;  %v102_v59 = vld [vmem:[#allocation2 + $0x1b8] sm:$0xff]  ;;  %v164_v60 = vld [vmem:[#allocation2 + $0x3a8] sm:$0xff] }
  0x72   :  { %v166_v61 = vld [vmem:[#allocation2 + $0x3b8] sm:$0xff]  ;;  %v202_v0 = vpack.c.bf16 %v102_v59, %v100_v58 }
  0x73   :  { %v234_v1 = vpack.c.bf16 %v166_v61, %v164_v60 }
  0x77   :  { %484 = vmatmul.mubr.bf16.gmra.mrb[8].mxu0 %v179_v6  ;;  %644 = vmatmul.mubr.bf16.gmra.mrb[8].mxu1 %v211_v7  ;;  %v79_v6 = vld [vmem:[#allocation2 + $0x100] sm:$0xff]  ;;  %v81_v7 = vld [vmem:[#allocation2 + $0x110] sm:$0xff] }
  0x78   :  { %493 = vmatprep.mubr.bf16.mxu0 %v182_v8  ;;  %653 = vmatprep.mubr.bf16.mxu1 %v214_v9  ;;  %v143_v8 = vld [vmem:[#allocation2 + $0x300] sm:$0xff]  ;;  %v145_v9 = vld [vmem:[#allocation2 + $0x310] sm:$0xff]  ;;  %v191_v14 = vpack.c.bf16 %v81_v7, %v79_v6  ;;  %v104_v6 = vld [vmem:[#allocation2 + $0x1c8] sm:$0xff] }
  0x79   :  { %v223_v15 = vpack.c.bf16 %v145_v9, %v143_v8  ;;  %v106_v7 = vld [vmem:[#allocation2 + $0x1d8] sm:$0xff]  ;;  %v168_v8 = vld [vmem:[#allocation2 + $0x3c8] sm:$0xff] }
  0x7a   :  { %v170_v9 = vld [vmem:[#allocation2 + $0x3d8] sm:$0xff]  ;;  %v204_v12 = vpack.c.bf16 %v106_v7, %v104_v6 }
  0x7b   :  { %v236_v13 = vpack.c.bf16 %v170_v9, %v168_v8 }
  0x7f   :  { %494 = vmatmul.mubr.bf16.gmra.mrb[12].mxu0 %v181_v18  ;;  %654 = vmatmul.mubr.bf16.gmra.mrb[12].mxu1 %v213_v19  ;;  %v83_v18 = vld [vmem:[#allocation2 + $0x120] sm:$0xff]  ;;  %v85_v19 = vld [vmem:[#allocation2 + $0x130] sm:$0xff] }
  0x80   :  { %503 = vmatprep.mubr.bf16.mxu0 %v184_v20  ;;  %663 = vmatprep.mubr.bf16.mxu1 %v216_v21  ;;  %v147_v20 = vld [vmem:[#allocation2 + $0x320] sm:$0xff]  ;;  %v149_v21 = vld [vmem:[#allocation2 + $0x330] sm:$0xff]  ;;  %v193_v26 = vpack.c.bf16 %v85_v19, %v83_v18  ;;  %v108_v18 = vld [vmem:[#allocation2 + $0x1e8] sm:$0xff] }
  0x81   :  { %v225_v27 = vpack.c.bf16 %v149_v21, %v147_v20  ;;  %v110_v19 = vld [vmem:[#allocation2 + $0x1f8] sm:$0xff]  ;;  %v172_v20 = vld [vmem:[#allocation2 + $0x3e8] sm:$0xff] }
  0x82   :  { %v174_v21 = vld [vmem:[#allocation2 + $0x3f8] sm:$0xff]  ;;  %v206_v24 = vpack.c.bf16 %v110_v19, %v108_v18 }
  0x83   :  { %v238_v25 = vpack.c.bf16 %v174_v21, %v172_v20 }
  0x87   :  { %504 = vmatmul.mubr.bf16.gmra.mrb[16].mxu0 %v183_v30  ;;  %664 = vmatmul.mubr.bf16.gmra.mrb[16].mxu1 %v215_v31  ;;  %v87_v30 = vld [vmem:[#allocation2 + $0x140] sm:$0xff]  ;;  %v89_v31 = vld [vmem:[#allocation2 + $0x150] sm:$0xff] }
  0x88   :  { %513 = vmatprep.mubr.bf16.mxu0 %v186_v32  ;;  %673 = vmatprep.mubr.bf16.mxu1 %v218_v33  ;;  %v151_v32 = vld [vmem:[#allocation2 + $0x340] sm:$0xff]  ;;  %v153_v33 = vld [vmem:[#allocation2 + $0x350] sm:$0xff]  ;;  %v195_v38 = vpack.c.bf16 %v89_v31, %v87_v30 }
  0x89   :  { %v227_v39 = vpack.c.bf16 %v153_v33, %v151_v32  ;;  %v786_v32 = vlaneseq }
  0x8b   :  { %v787_v33 = vshrl.u32 %v786_v32, 7 }
  0x8d   :  { %v788_v34 = vsub.s32 0, %v787_v33  ;;  %v792_v36 = vsub.s32 1, %v787_v33 }
  0x8f   :  { %514 = vmatmul.mubr.bf16.gmra.mrb[20].mxu0 %v185_v42  ;;  %674 = vmatmul.mubr.bf16.gmra.mrb[20].mxu1 %v217_v43  ;;  %v91_v42 = vld [vmem:[#allocation2 + $0x160] sm:$0xff]  ;;  %v93_v43 = vld [vmem:[#allocation2 + $0x170] sm:$0xff] }
  0x90   :  { %523 = vmatprep.mubr.bf16.mxu0 %v188_v44  ;;  %683 = vmatprep.mubr.bf16.mxu1 %v220_v45  ;;  %v155_v44 = vld [vmem:[#allocation2 + $0x360] sm:$0xff]  ;;  %v157_v45 = vld [vmem:[#allocation2 + $0x370] sm:$0xff]  ;;  %v197_v50 = vpack.c.bf16 %v93_v43, %v91_v42  ;;  %v2976_v43 = vrot.slane %v924_v37, %v792_v36 }
  0x91   :  { %v229_v51 = vpack.c.bf16 %v157_v45, %v155_v44 }
  0x97   :  { %524 = vmatmul.mubr.bf16.gmra.mrb[24].mxu0 %v187_v54  ;;  %684 = vmatmul.mubr.bf16.gmra.mrb[24].mxu1 %v219_v55  ;;  %v95_v54 = vld [vmem:[#allocation2 + $0x180] sm:$0xff]  ;;  %v97_v55 = vld [vmem:[#allocation2 + $0x190] sm:$0xff] }
  0x98   :  { %533 = vmatprep.mubr.bf16.mxu0 %v190_v56  ;;  %693 = vmatprep.mubr.bf16.mxu1 %v222_v57  ;;  %v159_v56 = vld [vmem:[#allocation2 + $0x380] sm:$0xff]  ;;  %v161_v57 = vld [vmem:[#allocation2 + $0x390] sm:$0xff]  ;;  %v199_v62 = vpack.c.bf16 %v97_v55, %v95_v54 }
  0x99   :  { %v231_v63 = vpack.c.bf16 %v161_v57, %v159_v56 }
  0x9f   :  { %534 = vmatmul.mubr.bf16.gmra.mrb[28].mxu0 %v189_v2  ;;  %694 = vmatmul.mubr.bf16.gmra.mrb[28].mxu1 %v221_v3  ;;  %v99_v2 = vld [vmem:[#allocation2 + $0x1a0] sm:$0xff]  ;;  %v101_v3 = vld [vmem:[#allocation2 + $0x1b0] sm:$0xff] }
  0xa0   :  { %543 = vmatprep.mubr.bf16.mxu0 %v192_v4  ;;  %703 = vmatprep.mubr.bf16.mxu1 %v224_v5  ;;  %v163_v4 = vld [vmem:[#allocation2 + $0x3a0] sm:$0xff]  ;;  %v165_v5 = vld [vmem:[#allocation2 + $0x3b0] sm:$0xff]  ;;  %v201_v10 = vpack.c.bf16 %v101_v3, %v99_v2 }
  0xa1   :  { %v233_v11 = vpack.c.bf16 %v165_v5, %v163_v4 }
  0xa7   :  { %544 = vmatmul.mubr.bf16.gmra.mrb[32].mxu0 %v191_v14  ;;  %704 = vmatmul.mubr.bf16.gmra.mrb[32].mxu1 %v223_v15  ;;  %v103_v14 = vld [vmem:[#allocation2 + $0x1c0] sm:$0xff]  ;;  %v105_v15 = vld [vmem:[#allocation2 + $0x1d0] sm:$0xff] }
  0xa8   :  { %553 = vmatprep.mubr.bf16.mxu0 %v194_v16  ;;  %713 = vmatprep.mubr.bf16.mxu1 %v226_v17  ;;  %v167_v16 = vld [vmem:[#allocation2 + $0x3c0] sm:$0xff]  ;;  %v169_v17 = vld [vmem:[#allocation2 + $0x3d0] sm:$0xff]  ;;  %v203_v22 = vpack.c.bf16 %v105_v15, %v103_v14 }
  0xa9   :  { %v235_v23 = vpack.c.bf16 %v169_v17, %v167_v16 }
  0xaf   :  { %554 = vmatmul.mubr.bf16.gmra.mrb[36].mxu0 %v193_v26  ;;  %714 = vmatmul.mubr.bf16.gmra.mrb[36].mxu1 %v225_v27  ;;  %v107_v26 = vld [vmem:[#allocation2 + $0x1e0] sm:$0xff]  ;;  %v109_v27 = vld [vmem:[#allocation2 + $0x1f0] sm:$0xff] }
  0xb0   :  { %563 = vmatprep.mubr.bf16.mxu0 %v196_v28  ;;  %723 = vmatprep.mubr.bf16.mxu1 %v228_v29  ;;  %v171_v28 = vld [vmem:[#allocation2 + $0x3e0] sm:$0xff]  ;;  %v173_v29 = vld [vmem:[#allocation2 + $0x3f0] sm:$0xff]  ;;  %v205_v30 = vpack.c.bf16 %v109_v27, %v107_v26 }
  0xb1   :  { %v237_v31 = vpack.c.bf16 %v173_v29, %v171_v28 }
  0xb7   :  { %564 = vmatmul.mubr.bf16.gmra.mrb[40].mxu0 %v195_v38  ;;  %724 = vmatmul.mubr.bf16.gmra.mrb[40].mxu1 %v227_v39  ;;  %v2970_v38 = vrot.slane %v784_v35, %v788_v34  ;;  %v2972_v39 = vrot.slane %v784_v35, %v792_v36 }
  0xb8   :  { %573 = vmatprep.mubr.bf16.mxu0 %v198_v40  ;;  %733 = vmatprep.mubr.bf16.mxu1 %v230_v41  ;;  %v2974_v40 = vrot.slane %v924_v37, %v788_v34 }
  0xbf   :  { %574 = vmatmul.mubr.bf16.gmra.mrb[44].mxu0 %v197_v50  ;;  %734 = vmatmul.mubr.bf16.gmra.mrb[44].mxu1 %v229_v51 }
  0xc0   :  { %583 = vmatprep.mubr.bf16.mxu0 %v200_v52  ;;  %743 = vmatprep.mubr.bf16.mxu1 %v232_v53 }
  0xc7   :  { %584 = vmatmul.mubr.bf16.gmra.mrb[48].mxu0 %v199_v62  ;;  %744 = vmatmul.mubr.bf16.gmra.mrb[48].mxu1 %v231_v63 }
  0xc8   :  { %593 = vmatprep.mubr.bf16.mxu0 %v202_v0  ;;  %753 = vmatprep.mubr.bf16.mxu1 %v234_v1 }
  0xcf   :  { %594 = vmatmul.mubr.bf16.gmra.mrb[52].mxu0 %v201_v10  ;;  %754 = vmatmul.mubr.bf16.gmra.mrb[52].mxu1 %v233_v11 }
  0xd0   :  { %603 = vmatprep.mubr.bf16.mxu0 %v204_v12  ;;  %763 = vmatprep.mubr.bf16.mxu1 %v236_v13 }
  0xd7   :  { %604 = vmatmul.mubr.bf16.gmra.mrb[56].mxu0 %v203_v22  ;;  %764 = vmatmul.mubr.bf16.gmra.mrb[56].mxu1 %v235_v23 }
  0xd8   :  { %613 = vmatprep.mubr.bf16.mxu0 %v206_v24  ;;  %773 = vmatprep.mubr.bf16.mxu1 %v238_v25 }
  0xdf   :  { %614 = vmatmul.mubr.bf16.gmra.mrb[60].mxu0 %v205_v30  ;;  %774 = vmatmul.mubr.bf16.gmra.mrb[60].mxu1 %v237_v31 }
 0x13a   :  { %v465_v41 = vpop.f32.mrb[0].mxu0  ;;  %v625_v42 = vpop.f32.mrb[0].mxu1 }
 0x13b   :  { %v796_v44 = vmul.f32 %v2970_v38, %v465_v41  ;;  %v860_v45 = vmul.f32 %v2970_v38, %v625_v42  ;;  %v467_v46 = vpop.f32.mrb[1].mxu0  ;;  %v627_v47 = vpop.f32.mrb[1].mxu1 }
 0x13c   :  { %v797_v48 = vmul.f32 %v2972_v39, %v467_v46  ;;  %v861_v49 = vmul.f32 %v2972_v39, %v627_v47  ;;  %v469_v50 = vpop.f32.mrb[2].mxu0  ;;  %v629_v51 = vpop.f32.mrb[2].mxu1 }
 0x13d   :  { %v2983_v52 = vadd.f32 %v2974_v40, %v796_v44  ;;  %v2986_v53 = vadd.f32 %v2974_v40, %v860_v45  ;;  %v798_v54 = vmul.f32 %v2970_v38, %v469_v50  ;;  %v862_v55 = vmul.f32 %v2970_v38, %v629_v51  ;;  %v471_v56 = vpop.f32.mrb[3].mxu0  ;;  %v631_v57 = vpop.f32.mrb[3].mxu1 }
 0x13e   :  { %v2991_v58 = vadd.f32 %v2976_v43, %v797_v48  ;;  %v2994_v59 = vadd.f32 %v2976_v43, %v861_v49  ;;  %v799_v60 = vmul.f32 %v2972_v39, %v471_v56  ;;  %v863_v61 = vmul.f32 %v2972_v39, %v631_v57 }
 0x13f   :  { %v2130_v62 = vmul.f32 -1.442695, %v2983_v52  ;;  %v2194_v63 = vmul.f32 -1.442695, %v2986_v53  ;;  %v3001_v0 = vadd.f32 %v2974_v40, %v798_v54  ;;  %v3004_v1 = vadd.f32 %v2974_v40, %v862_v55 }
 0x140   :  { %v2131_v2 = vmul.f32 -1.442695, %v2991_v58  ;;  %v2195_v3 = vmul.f32 -1.442695, %v2994_v59  ;;  %v3009_v4 = vadd.f32 %v2976_v43, %v799_v60  ;;  %v3012_v5 = vadd.f32 %v2976_v43, %v863_v61 }
 0x141   :  { %2344 = vpow2.f32 %v2130_v62  ;;  %v2132_v6 = vmul.f32 -1.442695, %v3001_v0  ;;  %v2196_v7 = vmul.f32 -1.442695, %v3004_v1 }
 0x142   :  { %2346 = vpow2.f32 %v2194_v63  ;;  %v475_v8 = vpop.f32.mrb[4].mxu0  ;;  %v635_v9 = vpop.f32.mrb[4].mxu1  ;;  %v2133_v10 = vmul.f32 -1.442695, %v3009_v4  ;;  %v2197_v15 = vmul.f32 -1.442695, %v3012_v5 }
 0x143   :  { %2348 = vpow2.f32 %v2131_v2  ;;  %v800_v11 = vmul.f32 %v2970_v38, %v475_v8  ;;  %v864_v12 = vmul.f32 %v2970_v38, %v635_v9  ;;  %v477_v13 = vpop.f32.mrb[5].mxu0  ;;  %v637_v14 = vpop.f32.mrb[5].mxu1 }
 0x144   :  { %2350 = vpow2.f32 %v2195_v3  ;;  %v801_v16 = vmul.f32 %v2972_v39, %v477_v13  ;;  %v865_v17 = vmul.f32 %v2972_v39, %v637_v14  ;;  %v479_v18 = vpop.f32.mrb[6].mxu0  ;;  %v639_v19 = vpop.f32.mrb[6].mxu1 }
 0x145   :  { %2352 = vpow2.f32 %v2132_v6  ;;  %v3023_v20 = vadd.f32 %v2974_v40, %v800_v11  ;;  %v3026_v21 = vadd.f32 %v2974_v40, %v864_v12  ;;  %v802_v22 = vmul.f32 %v2970_v38, %v479_v18  ;;  %v481_v23 = vpop.f32.mrb[7].mxu0  ;;  %v641_v24 = vpop.f32.mrb[7].mxu1 }
 0x146   :  { %2354 = vpow2.f32 %v2196_v7  ;;  %v3030_v25 = vadd.f32 %v2976_v43, %v801_v16  ;;  %v3033_v26 = vadd.f32 %v2976_v43, %v865_v17  ;;  %v866_v36 = vmul.f32 %v2970_v38, %v639_v19 }
 0x147   :  { %2356 = vpow2.f32 %v2133_v10  ;;  %v2134_v27 = vmul.f32 -1.442695, %v3023_v20  ;;  %v2198_v28 = vmul.f32 -1.442695, %v3026_v21  ;;  %v3038_v29 = vadd.f32 %v2974_v40, %v802_v22 }
 0x148   :  { %2358 = vpow2.f32 %v2197_v15  ;;  %v2135_v30 = vmul.f32 -1.442695, %v3030_v25  ;;  %v2199_v31 = vmul.f32 -1.442695, %v3033_v26  ;;  %v803_v45 = vmul.f32 %v2972_v39, %v481_v23 }
 0x149   :  { %2360 = vpow2.f32 %v2134_v27  ;;  %v2136_v32 = vmul.f32 -1.442695, %v3038_v29  ;;  %v867_v50 = vmul.f32 %v2972_v39, %v641_v24  ;;  %v3047_v61 = vadd.f32 %v2974_v40, %v866_v36 }
 0x14a   :  { %2362 = vpow2.f32 %v2198_v28  ;;  %v485_v33 = vpop.f32.mrb[8].mxu0  ;;  %v645_v34 = vpop.f32.mrb[8].mxu1  ;;  %v3051_v3 = vadd.f32 %v2976_v43, %v803_v45 }
 0x14b   :  { %v2345_v35 = vpop.eup %2344  ;;  %2364 = vpow2.f32 %v2135_v30  ;;  %v487_v37 = vpop.f32.mrb[9].mxu0  ;;  %v804_v62 = vmul.f32 %v2970_v38, %v485_v33  ;;  %v868_v6 = vmul.f32 %v2970_v38, %v645_v34  ;;  %v3055_v9 = vadd.f32 %v2976_v43, %v867_v50 }
 0x14c   :  { %v647_v41 = vpop.f32.mrb[9].mxu1  ;;  %v2347_v42 = vpop.eup %2346  ;;  %v1448_v44 = vadd.f32 1.0, %v2345_v35  ;;  %2366 = vpow2.f32 %v2199_v31  ;;  %v805_v12 = vmul.f32 %v2972_v39, %v487_v37  ;;  %v2200_v17 = vmul.f32 -1.442695, %v3047_v61 }
 0x14d   :  { %v489_v46 = vpop.f32.mrb[10].mxu0  ;;  %v649_v47 = vpop.f32.mrb[10].mxu1  ;;  %v1512_v49 = vadd.f32 1.0, %v2347_v42  ;;  %2368 = vpow2.f32 %v2136_v32  ;;  %v3060_v18 = vadd.f32 %v2974_v40, %v804_v62  ;;  %v2137_v27 = vmul.f32 -1.442695, %v3051_v3 }
 0x14e   :  { %v2349_v48 = vpop.eup %2348  ;;  %v491_v51 = vpop.f32.mrb[11].mxu0  ;;  %2370 = vrcp.f32 %v1448_v44  ;;  %v3068_v28 = vadd.f32 %v2974_v40, %v868_v6  ;;  %v2201_v34 = vmul.f32 -1.442695, %v3055_v9  ;;  %v869_v35 = vmul.f32 %v2972_v39, %v647_v41 }
 0x14f   :  { %v2351_v54 = vpop.eup %2350  ;;  %v1449_v55 = vadd.f32 1.0, %v2349_v48  ;;  %v651_v56 = vpop.f32.mrb[11].mxu1  ;;  %2372 = vrcp.f32 %v1512_v49  ;;  %v3081_v45 = vadd.f32 %v2976_v43, %v805_v12  ;;  %v806_v48 = vmul.f32 %v2970_v38, %v489_v46 }
 0x150   :  { %v2353_v57 = vpop.eup %2352  ;;  %v1513_v60 = vadd.f32 1.0, %v2351_v54  ;;  %v2138_v54 = vmul.f32 -1.442695, %v3060_v18  ;;  %v807_v62 = vmul.f32 %v2972_v39, %v491_v51  ;;  %v3090_v46 = vadd.f32 %v2976_v43, %v869_v35 }
 0x151   :  { %v2355_v63 = vpop.eup %2354  ;;  %2374 = vrcp.f32 %v1449_v55  ;;  %v1450_v2 = vadd.f32 1.0, %v2353_v57  ;;  %v870_v55 = vmul.f32 %v2970_v38, %v649_v47  ;;  %v871_v6 = vmul.f32 %v2972_v39, %v651_v56 }
 0x152   :  { %v2357_v7 = vpop.eup %2356  ;;  %2376 = vrcp.f32 %v1513_v60  ;;  %v1514_v8 = vadd.f32 1.0, %v2355_v63  ;;  %v495_v13 = vpop.f32.mrb[12].mxu0  ;;  %v2202_v60 = vmul.f32 -1.442695, %v3068_v28  ;;  %v3095_v47 = vadd.f32 %v2974_v40, %v806_v48 }
 0x153   :  { %v2359_v10 = vpop.eup %2358  ;;  %2378 = vrcp.f32 %v1450_v2  ;;  %v1451_v11 = vadd.f32 1.0, %v2357_v7  ;;  %v655_v14 = vpop.f32.mrb[12].mxu1 }
 0x154   :  { %v2361_v15 = vpop.eup %2360  ;;  %2380 = vrcp.f32 %v1514_v8  ;;  %v1515_v16 = vadd.f32 1.0, %v2359_v10  ;;  %v3062_v19 = vpop.f32.mrb[13].mxu0  ;;  %v808_v10 = vmul.f32 %v2970_v38, %v495_v13  ;;  %v872_v12 = vmul.f32 %v2970_v38, %v655_v14 }
 0x155   :  { %v3064_v22 = vpop.f32.mrb[13].mxu1  ;;  %v2363_v23 = vpop.eup %2362  ;;  %2382 = vrcp.f32 %v1451_v11  ;;  %v1452_v24 = vadd.f32 1.0, %v2361_v15 }
 0x156   :  { %v3070_v30 = vpop.f32.mrb[14].mxu0  ;;  %v3072_v31 = vpop.f32.mrb[14].mxu1  ;;  %2384 = vrcp.f32 %v1515_v16  ;;  %v1516_v33 = vadd.f32 1.0, %v2363_v23 }
 0x157   :  { %v2365_v32 = vpop.eup %2364  ;;  %v3076_v36 = vpop.f32.mrb[15].mxu0  ;;  %2386 = vrcp.f32 %v1452_v24 }
 0x158   :  { %v3078_v37 = vpop.f32.mrb[15].mxu1  ;;  %v2367_v42 = vpop.eup %2366  ;;  %v1453_v44 = vadd.f32 1.0, %v2365_v32  ;;  %2388 = vrcp.f32 %v1516_v33 }
 0x159   :  { %v2369_v49 = vpop.eup %2368  ;;  %v1517_v50 = vadd.f32 1.0, %v2367_v42 }
 0x15a   :  { %v2371_v41 = vpop.eup %2370  ;;  %2390 = vrcp.f32 %v1453_v44  ;;  %v1454_v57 = vadd.f32 1.0, %v2369_v49  ;;  %v3098_v11 = vpop.f32.mrb[16].mxu0 }
 0x15b   :  { %v2373_v63 = vpop.eup %2372  ;;  %v1832_v2 = vmul.f32 %v2371_v41, %v2983_v52  ;;  %2392 = vrcp.f32 %v1517_v50  ;;  %v3100_v51 = vpop.f32.mrb[16].mxu1  ;;  %v3152_v41 = vadd.f32 %v2974_v40, %v872_v12 }
 0x15c   :  { %v2375_v7 = vpop.eup %2374  ;;  %v1896_v8 = vmul.f32 %v2373_v63, %v2986_v53  ;;  %2394 = vrcp.f32 %v1454_v57  ;;  %v3107_v53 = vadd.f32 %v2974_v40, %v870_v55  ;;  %v3110_v15 = vpop.f32.mrb[17].mxu0 }
 0x15d   :  { %v2377_v52 = vpop.eup %2376  ;;  %1960 = vst [vmem:[%s4440_s4] sm:$0xff] %v1832_v2  ;;  %v1833_v56 = vmul.f32 %v2375_v7, %v2991_v58  ;;  %2396 = vpow2.f32 %v2200_v17  ;;  %v3112_v13 = vpop.f32.mrb[17].mxu1  ;;  %v2139_v58 = vmul.f32 -1.442695, %v3081_v45  ;;  %v3120_v17 = vadd.f32 %v2976_v43, %v807_v62 }
 0x15e   :  { %v2379_v16 = vpop.eup %2378  ;;  %1992 = vst [vmem:[%s4440_s4 + $0x100] sm:$0xff] %v1896_v8  ;;  %v1897_v23 = vmul.f32 %v2377_v52, %v2994_v59  ;;  %2398 = vpow2.f32 %v2137_v27  ;;  %v3122_v24 = vpop.f32.mrb[18].mxu0  ;;  %v2203_v59 = vmul.f32 -1.442695, %v3090_v46  ;;  %v3132_v27 = vadd.f32 %v2976_v43, %v871_v6 }
 0x15f   :  { %v3124_v14 = vpop.f32.mrb[18].mxu1  ;;  %v2381_v32 = vpop.eup %2380  ;;  %2024 = vst [vmem:[%s4441_s5] sm:$0xff] %v1833_v56  ;;  %v1834_v33 = vmul.f32 %v2379_v16, %v3001_v0  ;;  %2400 = vpow2.f32 %v2201_v34  ;;  %v2140_v0 = vmul.f32 -1.442695, %v3095_v47  ;;  %v3144_v34 = vadd.f32 %v2974_v40, %v808_v10 }
 0x160   :  { %v3134_v35 = vpop.f32.mrb[19].mxu0  ;;  %v3136_v42 = vpop.f32.mrb[19].mxu1  ;;  %2056 = vst [vmem:[%s4441_s5 + $0x100] sm:$0xff] %v1897_v23  ;;  %v1898_v48 = vmul.f32 %v2381_v32, %v3004_v1  ;;  %2402 = vpow2.f32 %v2138_v54  ;;  %v2204_v55 = vmul.f32 -1.442695, %v3107_v53  ;;  %v809_v32 = vmul.f32 %v2972_v39, %v3062_v19 }
 0x161   :  { %v2383_v44 = vpop.eup %2382  ;;  %1961 = vst [vmem:[%s4440_s4 + $0x8] sm:$0xff] %v1834_v33  ;;  %2404 = vpow2.f32 %v2202_v60  ;;  %v2141_v57 = vmul.f32 -1.442695, %v3120_v17  ;;  %v2205_v60 = vmul.f32 -1.442695, %v3132_v27  ;;  %v810_v19 = vmul.f32 %v2970_v38, %v3070_v30 }
 0x162   :  { %v2385_v49 = vpop.eup %2384  ;;  %v1835_v50 = vmul.f32 %v2383_v44, %v3009_v4  ;;  %1993 = vst [vmem:[%s4440_s4 + $0x108] sm:$0xff] %v1898_v48  ;;  %2406 = vpow2.f32 %v2139_v58  ;;  %v2142_v2 = vmul.f32 -1.442695, %v3144_v34  ;;  %v3169_v6 = vpop.f32.mrb[20].mxu0  ;;  %v2206_v10 = vmul.f32 -1.442695, %v3152_v41 }
 0x163   :  { %v2387_v1 = vpop.eup %2386  ;;  %v1899_v54 = vmul.f32 %v2385_v49, %v3012_v5  ;;  %2408 = vpow2.f32 %v2203_v59  ;;  %v3171_v7 = vpop.f32.mrb[20].mxu1  ;;  %v873_v48 = vmul.f32 %v2972_v39, %v3064_v22  ;;  %v3213_v22 = vadd.f32 %v2976_v43, %v809_v32 }
 0x164   :  { %v2389_v62 = vpop.eup %2388  ;;  %2025 = vst [vmem:[%s4441_s5 + $0x8] sm:$0xff] %v1835_v50  ;;  %v1836_v4 = vmul.f32 %v2387_v1, %v3023_v20  ;;  %2410 = vpow2.f32 %v2140_v0  ;;  %v3178_v52 = vpop.f32.mrb[21].mxu0 }
 0x165   :  { %v2391_v63 = vpop.eup %2390  ;;  %2057 = vst [vmem:[%s4441_s5 + $0x108] sm:$0xff] %v1899_v54  ;;  %v1900_v5 = vmul.f32 %v2389_v62, %v3026_v21  ;;  %2412 = vpow2.f32 %v2204_v55  ;;  %v3180_v21 = vpop.f32.mrb[21].mxu1  ;;  %v874_v55 = vmul.f32 %v2970_v38, %v3072_v31  ;;  %v3218_v30 = vadd.f32 %v2976_v43, %v873_v48 }
 0x166   :  { %v2393_v8 = vpop.eup %2392  ;;  %1962 = vst [vmem:[%s4440_s4 + $0x10] sm:$0xff] %v1836_v4  ;;  %v1837_v20 = vmul.f32 %v2391_v63, %v3030_v25  ;;  %2414 = vpow2.f32 %v2141_v57  ;;  %v3186_v16 = vpop.f32.mrb[22].mxu0  ;;  %v811_v57 = vmul.f32 %v2972_v39, %v3076_v36 }
 0x167   :  { %v2395_v56 = vpop.eup %2394  ;;  %1994 = vst [vmem:[%s4440_s4 + $0x110] sm:$0xff] %v1900_v5  ;;  %v1901_v12 = vmul.f32 %v2393_v8, %v3033_v26  ;;  %v3188_v23 = vpop.f32.mrb[22].mxu1  ;;  %2416 = vpow2.f32 %v2205_v60 }
 0x168   :  { %v2397_v25 = vpop.eup %2396  ;;  %2026 = vst [vmem:[%s4441_s5 + $0x10] sm:$0xff] %v1837_v20  ;;  %v1838_v58 = vmul.f32 %v2395_v56, %v3038_v29  ;;  %v3196_v33 = vpop.f32.mrb[23].mxu0  ;;  %2418 = vpow2.f32 %v2142_v2  ;;  %v3225_v2 = vadd.f32 %v2974_v40, %v810_v19  ;;  %v3232_v56 = vadd.f32 %v2974_v40, %v874_v55 }
 0x169   :  { %v3198_v59 = vpop.f32.mrb[23].mxu1  ;;  %v2399_v26 = vpop.eup %2398  ;;  %2058 = vst [vmem:[%s4441_s5 + $0x110] sm:$0xff] %v1901_v12  ;;  %v1518_v44 = vadd.f32 1.0, %v2397_v25  ;;  %2420 = vpow2.f32 %v2206_v10 }
 0x16a   :  { %v2401_v0 = vpop.eup %2400  ;;  %1963 = vst [vmem:[%s4440_s4 + $0x18] sm:$0xff] %v1838_v58  ;;  %v1455_v29 = vadd.f32 1.0, %v2399_v26  ;;  %v3220_v60 = vpop.f32.mrb[24].mxu0  ;;  %v2143_v26 = vmul.f32 -1.442695, %v3213_v22 }
 0x16b   :  { %v2403_v49 = vpop.eup %2402  ;;  %2422 = vrcp.f32 %v1518_v44  ;;  %v1519_v50 = vadd.f32 1.0, %v2401_v0  ;;  %v3222_v63 = vpop.f32.mrb[24].mxu1  ;;  %v3240_v44 = vadd.f32 %v2976_v43, %v811_v57  ;;  %v812_v57 = vmul.f32 %v2970_v38, %v3098_v11 }
 0x16c   :  { %v2405_v1 = vpop.eup %2404  ;;  %2424 = vrcp.f32 %v1455_v29  ;;  %v1456_v54 = vadd.f32 1.0, %v2403_v49  ;;  %v3227_v8 = vpop.f32.mrb[25].mxu0  ;;  %v2207_v49 = vmul.f32 -1.442695, %v3218_v30 }
 0x16d   :  { %v2407_v62 = vpop.eup %2406  ;;  %2426 = vrcp.f32 %v1519_v50  ;;  %v1520_v4 = vadd.f32 1.0, %v2405_v1  ;;  %v3229_v20 = vpop.f32.mrb[25].mxu1  ;;  %v875_v50 = vmul.f32 %v2972_v39, %v3078_v37  ;;  %v2145_v37 = vmul.f32 -1.442695, %v3240_v44 }
 0x16e   :  { %v2409_v31 = vpop.eup %2408  ;;  %2428 = vrcp.f32 %v1456_v54  ;;  %v1457_v5 = vadd.f32 1.0, %v2407_v62  ;;  %v3234_v12 = vpop.f32.mrb[26].mxu0  ;;  %v2144_v54 = vmul.f32 -1.442695, %v3225_v2 }
 0x16f   :  { %v2411_v36 = vpop.eup %2410  ;;  %2430 = vrcp.f32 %v1520_v4  ;;  %v1521_v10 = vadd.f32 1.0, %v2409_v31  ;;  %v3236_v25 = vpop.f32.mrb[26].mxu1  ;;  %v2208_v31 = vmul.f32 -1.442695, %v3232_v56  ;;  %v3259_v11 = vadd.f32 %v2976_v43, %v875_v50 }
 0x170   :  { %v2413_v58 = vpop.eup %2412  ;;  %2432 = vrcp.f32 %v1457_v5  ;;  %v1458_v32 = vadd.f32 1.0, %v2411_v36  ;;  %v3242_v48 = vpop.f32.mrb[27].mxu0  ;;  %v876_v5 = vmul.f32 %v2970_v38, %v3100_v51 }
 0x171   :  { %v3244_v0 = vpop.f32.mrb[27].mxu1  ;;  %v2415_v29 = vpop.eup %2414  ;;  %2434 = vrcp.f32 %v1521_v10  ;;  %v1522_v19 = vadd.f32 1.0, %v2413_v58  ;;  %v813_v58 = vmul.f32 %v2972_v39, %v3110_v15  ;;  %v814_v15 = vmul.f32 %v2970_v38, %v3122_v24 }
 0x172   :  { %4442 = vst [vmem:[#allocation8_spill] sm:$0xff] %v3244_v0  ;;  %v2417_v55 = vpop.eup %2416  ;;  %2436 = vrcp.f32 %v1458_v32  ;;  %v1459_v1 = vadd.f32 1.0, %v2415_v29  ;;  %v3265_v51 = vpop.f32.mrb[28].mxu1  ;;  %v3269_v0 = vadd.f32 %v2974_v40, %v812_v57 }
 0x173   :  { %v2419_v62 = vpop.eup %2418  ;;  %2438 = vrcp.f32 %v1522_v19  ;;  %v1523_v4 = vadd.f32 1.0, %v2417_v55  ;;  %v877_v19 = vmul.f32 %v2972_v39, %v3112_v13  ;;  %v3263_v55 = vpop.f32.mrb[28].mxu0  ;;  %4443 = vst [vmem:[#allocation9_spill] sm:$0xff] %v3265_v51  ;;  %v3279_v51 = vadd.f32 %v2974_v40, %v876_v5 }
 0x174   :  { %v2421_v36 = vpop.eup %2420  ;;  %2440 = vrcp.f32 %v1459_v1  ;;  %v1460_v10 = vadd.f32 1.0, %v2419_v62  ;;  %v3275_v50 = vpop.f32.mrb[29].mxu1  ;;  %v815_v5 = vmul.f32 %v2972_v39, %v3134_v35 }
 0x175   :  { %v2423_v32 = vpop.eup %2422  ;;  %2442 = vrcp.f32 %v1523_v4  ;;  %v1524_v29 = vadd.f32 1.0, %v2421_v36  ;;  %v3273_v4 = vpop.f32.mrb[29].mxu0 }
 0x176   :  { %v2425_v1 = vpop.eup %2424  ;;  %v1902_v62 = vmul.f32 %v2423_v32, %v3047_v61  ;;  %2444 = vrcp.f32 %v1460_v10  ;;  %v878_v61 = vmul.f32 %v2970_v38, %v3124_v14  ;;  %v3283_v10 = vpop.f32.mrb[30].mxu0 }
 0x177   :  { %v2427_v36 = vpop.eup %2426  ;;  %v1839_v13 = vmul.f32 %v2425_v1, %v3051_v3  ;;  %2446 = vrcp.f32 %v1524_v29  ;;  %v3285_v57 = vpop.f32.mrb[30].mxu1  ;;  %v3292_v3 = vadd.f32 %v2976_v43, %v813_v58 }
 0x178   :  { %v2429_v32 = vpop.eup %2428  ;;  %1995 = vst [vmem:[%s4440_s4 + $0x118] sm:$0xff] %v1902_v62  ;;  %v1903_v24 = vmul.f32 %v2427_v36, %v3055_v9  ;;  %2448 = vpow2.f32 %v2143_v26  ;;  %v3296_v29 = vpop.f32.mrb[31].mxu0  ;;  %v2209_v9 = vmul.f32 -1.442695, %v3259_v11  ;;  %v3306_v26 = vadd.f32 %v2976_v43, %v877_v19 }
 0x179   :  { %v3298_v14 = vpop.f32.mrb[31].mxu1  ;;  %v2431_v1 = vpop.eup %2430  ;;  %2027 = vst [vmem:[%s4441_s5 + $0x18] sm:$0xff] %v1839_v13  ;;  %v1840_v62 = vmul.f32 %v2429_v32, %v3060_v18  ;;  %2450 = vpow2.f32 %v2207_v49  ;;  %v2146_v36 = vmul.f32 -1.442695, %v3269_v0  ;;  %v3314_v13 = vadd.f32 %v2974_v40, %v814_v15 }
 0x17a   :  { %v2433_v58 = vpop.eup %2432  ;;  %2059 = vst [vmem:[%s4441_s5 + $0x118] sm:$0xff] %v1903_v24  ;;  %v1904_v35 = vmul.f32 %v2431_v1, %v3068_v28  ;;  %2452 = vpow2.f32 %v2144_v54  ;;  %v2210_v19 = vmul.f32 -1.442695, %v3279_v51  ;;  %v3322_v32 = vadd.f32 %v2974_v40, %v878_v61  ;;  %v3337_v1 = vpop.f32.mrb[32].mxu0 }
 0x17b   :  { %v2435_v18 = vpop.eup %2434  ;;  %1964 = vst [vmem:[%s4440_s4 + $0x20] sm:$0xff] %v1840_v62  ;;  %v1841_v49 = vmul.f32 %v2433_v58, %v3081_v45  ;;  %2454 = vpow2.f32 %v2208_v31  ;;  %v2147_v15 = vmul.f32 -1.442695, %v3292_v3  ;;  %v3330_v24 = vadd.f32 %v2976_v43, %v815_v5  ;;  %v3339_v62 = vpop.f32.mrb[32].mxu1 }
 0x17c   :  { %v2437_v28 = vpop.eup %2436  ;;  %1996 = vst [vmem:[%s4440_s4 + $0x120] sm:$0xff] %v1904_v35  ;;  %v1905_v54 = vmul.f32 %v2435_v18, %v3090_v46  ;;  %2456 = vpow2.f32 %v2145_v37  ;;  %v2211_v61 = vmul.f32 -1.442695, %v3306_v26  ;;  %v2148_v5 = vmul.f32 -1.442695, %v3314_v13  ;;  %v3346_v58 = vpop.f32.mrb[33].mxu0 }
 0x17d   :  { %v2439_v45 = vpop.eup %2438  ;;  %2028 = vst [vmem:[%s4441_s5 + $0x20] sm:$0xff] %v1841_v49  ;;  %v1842_v31 = vmul.f32 %v2437_v28, %v3095_v47  ;;  %2458 = vpow2.f32 %v2209_v9  ;;  %v3348_v47 = vpop.f32.mrb[33].mxu1  ;;  %v2212_v18 = vmul.f32 -1.442695, %v3322_v32 }
 0x17e   :  { %v2441_v46 = vpop.eup %2440  ;;  %2060 = vst [vmem:[%s4441_s5 + $0x120] sm:$0xff] %v1905_v54  ;;  %v1906_v37 = vmul.f32 %v2439_v45, %v3107_v53  ;;  %2460 = vpow2.f32 %v2146_v36  ;;  %v3355_v49 = vpop.f32.mrb[34].mxu0  ;;  %v2149_v54 = vmul.f32 -1.442695, %v3330_v24 }
 0x17f   :  { %v2443_v9 = vpop.eup %2442  ;;  %1965 = vst [vmem:[%s4440_s4 + $0x28] sm:$0xff] %v1842_v31  ;;  %v1843_v35 = vmul.f32 %v2441_v46, %v3120_v17  ;;  %2462 = vpow2.f32 %v2210_v19  ;;  %v3357_v53 = vpop.f32.mrb[34].mxu1 }
 0x180   :  { %v2445_v36 = vpop.eup %2444  ;;  %1997 = vst [vmem:[%s4440_s4 + $0x128] sm:$0xff] %v1906_v37  ;;  %v1907_v28 = vmul.f32 %v2443_v9, %v3132_v27  ;;  %2464 = vpow2.f32 %v2147_v15  ;;  %v3364_v45 = vpop.f32.mrb[35].mxu0  ;;  %v879_v15 = vmul.f32 %v2972_v39, %v3136_v42  ;;  %v880_v42 = vmul.f32 %v2970_v38, %v3171_v7 }
 0x181   :  { %4444 = vst [vmem:[#allocation10_spill] sm:$0xff] %v3364_v45  ;;  %v3366_v17 = vpop.f32.mrb[35].mxu1  ;;  %v2447_v19 = vpop.eup %2446  ;;  %2029 = vst [vmem:[%s4441_s5 + $0x28] sm:$0xff] %v1843_v35  ;;  %v1844_v31 = vmul.f32 %v2445_v36, %v3144_v34  ;;  %2466 = vpow2.f32 %v2211_v61  ;;  %v816_v34 = vmul.f32 %v2970_v38, %v3169_v6  ;;  %v817_v36 = vmul.f32 %v2972_v39, %v3178_v52 }
 0x182   :  { %4445 = vst [vmem:[#allocation11_spill] sm:$0xff] %v3366_v17  ;;  %v2449_v46 = vpop.eup %2448  ;;  %2061 = vst [vmem:[%s4441_s5 + $0x128] sm:$0xff] %v1907_v28  ;;  %v1908_v27 = vmul.f32 %v2447_v19, %v3152_v41  ;;  %2468 = vpow2.f32 %v2148_v5  ;;  %v3392_v28 = vpop.f32.mrb[36].mxu1 }
 0x183   :  { %v2451_v37 = vpop.eup %2450  ;;  %1966 = vst [vmem:[%s4440_s4 + $0x30] sm:$0xff] %v1844_v31  ;;  %v1461_v9 = vadd.f32 1.0, %v2449_v46  ;;  %2470 = vpow2.f32 %v2212_v18  ;;  %v3390_v18 = vpop.f32.mrb[36].mxu0  ;;  %4447 = vst [vmem:[#allocation13_spill] sm:$0xff] %v3392_v28  ;;  %v3395_v31 = vadd.f32 %v2976_v43, %v879_v15 }
 0x184   :  { %v2453_v61 = vpop.eup %2452  ;;  %1998 = vst [vmem:[%s4440_s4 + $0x130] sm:$0xff] %v1908_v27  ;;  %v1525_v41 = vadd.f32 1.0, %v2451_v37  ;;  %2472 = vpow2.f32 %v2149_v54  ;;  %4446 = vst [vmem:[#allocation12_spill] sm:$0xff] %v3390_v18  ;;  %v881_v54 = vmul.f32 %v2972_v39, %v3180_v21  ;;  %v3399_v7 = vpop.f32.mrb[37].mxu0  ;;  %v3404_v37 = vadd.f32 %v2974_v40, %v816_v34 }
 0x185   :  { %v2455_v5 = vpop.eup %2454  ;;  %2474 = vrcp.f32 %v1461_v9  ;;  %v1462_v35 = vadd.f32 1.0, %v2453_v61  ;;  %4448 = vst [vmem:[#allocation14_spill] sm:$0xff] %v3399_v7  ;;  %v3401_v46 = vpop.f32.mrb[37].mxu1  ;;  %v3418_v34 = vadd.f32 %v2976_v43, %v817_v36 }
 0x186   :  { %v2457_v6 = vpop.eup %2456  ;;  %2476 = vrcp.f32 %v1525_v41  ;;  %v1526_v19 = vadd.f32 1.0, %v2455_v5  ;;  %4449 = vst [vmem:[#allocation15_spill] sm:$0xff] %v3401_v46  ;;  %v3406_v9 = vpop.f32.mrb[38].mxu0  ;;  %v3411_v5 = vadd.f32 %v2974_v40, %v880_v42 }
 0x187   :  { %v2459_v27 = vpop.eup %2458  ;;  %2478 = vrcp.f32 %v1462_v35  ;;  %v1463_v52 = vadd.f32 1.0, %v2457_v6  ;;  %4450 = vst [vmem:[#allocation16_spill] sm:$0xff] %v3406_v9  ;;  %v3408_v61 = vpop.f32.mrb[38].mxu1  ;;  %v2151_v28 = vmul.f32 -1.442695, %v3418_v34 }
 0x188   :  { %4451 = vst [vmem:[#allocation17_spill] sm:$0xff] %v3408_v61  ;;  %v2461_v41 = vpop.eup %2460  ;;  %2480 = vrcp.f32 %v1526_v19  ;;  %v1527_v15 = vadd.f32 1.0, %v2459_v27  ;;  %v3413_v21 = vpop.f32.mrb[39].mxu0  ;;  %v2213_v61 = vmul.f32 -1.442695, %v3395_v31  ;;  %v3422_v19 = vadd.f32 %v2976_v43, %v881_v54 }
 0x189   :  { %4452 = vst [vmem:[#allocation18_spill] sm:$0xff] %v3413_v21  ;;  %v3415_v7 = vpop.f32.mrb[39].mxu1  ;;  %v2463_v46 = vpop.eup %2462  ;;  %2482 = vrcp.f32 %v1463_v52  ;;  %v1464_v35 = vadd.f32 1.0, %v2461_v41  ;;  %v2150_v21 = vmul.f32 -1.442695, %v3404_v37  ;;  %v818_v52 = vmul.f32 %v2970_v38, %v3186_v16 }
 0x18a   :  { %4453 = vst [vmem:[#allocation19_spill] sm:$0xff] %v3415_v7  ;;  %v2465_v6 = vpop.eup %2464  ;;  %2484 = vrcp.f32 %v1527_v15  ;;  %v1528_v9 = vadd.f32 1.0, %v2463_v46  ;;  %v2214_v7 = vmul.f32 -1.442695, %v3411_v5  ;;  %v882_v46 = vmul.f32 %v2970_v38, %v3188_v23  ;;  %v3435_v18 = vpop.f32.mrb[40].mxu1 }
 0x18b   :  { %v2467_v42 = vpop.eup %2466  ;;  %2486 = vrcp.f32 %v1464_v35  ;;  %v1465_v27 = vadd.f32 1.0, %v2465_v6  ;;  %v819_v35 = vmul.f32 %v2972_v39, %v3196_v33  ;;  %v3433_v6 = vpop.f32.mrb[40].mxu0  ;;  %4455 = vst [vmem:[#allocation21_spill] sm:$0xff] %v3435_v18  ;;  %v883_v23 = vmul.f32 %v2972_v39, %v3198_v59 }
 0x18c   :  { %v2469_v41 = vpop.eup %2468  ;;  %2488 = vrcp.f32 %v1528_v9  ;;  %v1529_v36 = vadd.f32 1.0, %v2467_v42  ;;  %4454 = vst [vmem:[#allocation20_spill] sm:$0xff] %v3433_v6  ;;  %v2215_v42 = vmul.f32 -1.442695, %v3422_v19  ;;  %v3440_v17 = vpop.f32.mrb[41].mxu0  ;;  %v3445_v33 = vadd.f32 %v2974_v40, %v818_v52 }
 0x18d   :  { %v2471_v15 = vpop.eup %2470  ;;  %2490 = vrcp.f32 %v1465_v27  ;;  %v1466_v54 = vadd.f32 1.0, %v2469_v41  ;;  %4456 = vst [vmem:[#allocation22_spill] sm:$0xff] %v3440_v17  ;;  %v3442_v27 = vpop.f32.mrb[41].mxu1  ;;  %v820_v18 = vmul.f32 %v2970_v38, %v3220_v60  ;;  %v3453_v59 = vadd.f32 %v2974_v40, %v882_v46 }
 0x18e   :  { %v2473_v16 = vpop.eup %2472  ;;  %2492 = vrcp.f32 %v1529_v36  ;;  %v1530_v9 = vadd.f32 1.0, %v2471_v15  ;;  %4457 = vst [vmem:[#allocation23_spill] sm:$0xff] %v3442_v27  ;;  %v3449_v36 = vpop.f32.mrb[42].mxu0  ;;  %v884_v27 = vmul.f32 %v2970_v38, %v3222_v63  ;;  %v3463_v60 = vadd.f32 %v2976_v43, %v819_v35 }
 0x18f   :  { %v2475_v41 = vpop.eup %2474  ;;  %2494 = vrcp.f32 %v1466_v54  ;;  %v1467_v45 = vadd.f32 1.0, %v2473_v16  ;;  %v3457_v54 = vpop.f32.mrb[42].mxu1  ;;  %v2152_v35 = vmul.f32 -1.442695, %v3445_v33 }
 0x190   :  { %v2477_v15 = vpop.eup %2476  ;;  %v1845_v6 = vmul.f32 %v2475_v41, %v3213_v22  ;;  %2496 = vrcp.f32 %v1530_v9  ;;  %v3459_v16 = vpop.f32.mrb[43].mxu0  ;;  %v821_v22 = vmul.f32 %v2972_v39, %v3227_v8  ;;  %v3474_v41 = vadd.f32 %v2976_v43, %v883_v23 }
 0x191   :  { %v2479_v52 = vpop.eup %2478  ;;  %v1909_v17 = vmul.f32 %v2477_v15, %v3218_v30  ;;  %2498 = vrcp.f32 %v1467_v45  ;;  %v3467_v9 = vpop.f32.mrb[43].mxu1  ;;  %v885_v30 = vmul.f32 %v2972_v39, %v3229_v20 }
 0x192   :  { %v2481_v46 = vpop.eup %2480  ;;  %2030 = vst [vmem:[%s4441_s5 + $0x30] sm:$0xff] %v1845_v6  ;;  %v1846_v63 = vmul.f32 %v2479_v52, %v3225_v2  ;;  %2500 = vpow2.f32 %v2213_v61  ;;  %v3484_v6 = vadd.f32 %v2974_v40, %v820_v18  ;;  %v2216_v61 = vmul.f32 -1.442695, %v3453_v59 }
 0x193   :  { %v2483_v45 = vpop.eup %2482  ;;  %2062 = vst [vmem:[%s4441_s5 + $0x130] sm:$0xff] %v1909_v17  ;;  %v1910_v8 = vmul.f32 %v2481_v46, %v3232_v56  ;;  %2502 = vpow2.f32 %v2150_v21  ;;  %v3492_v17 = vadd.f32 %v2974_v40, %v884_v27  ;;  %v2153_v21 = vmul.f32 -1.442695, %v3463_v60 }
 0x194   :  { %v2485_v2 = vpop.eup %2484  ;;  %1967 = vst [vmem:[%s4440_s4 + $0x38] sm:$0xff] %v1846_v63  ;;  %v1847_v20 = vmul.f32 %v2483_v45, %v3240_v44  ;;  %2504 = vpow2.f32 %v2214_v7  ;;  %v3500_v23 = vadd.f32 %v2976_v43, %v821_v22  ;;  %v3502_v44 = vpop.f32.mrb[44].mxu0 }
 0x195   :  { %v2487_v56 = vpop.eup %2486  ;;  %1999 = vst [vmem:[%s4440_s4 + $0x138] sm:$0xff] %v1910_v8  ;;  %v1911_v18 = vmul.f32 %v2485_v2, %v3259_v11  ;;  %2506 = vpow2.f32 %v2151_v28  ;;  %v3504_v7 = vpop.f32.mrb[44].mxu1  ;;  %v2217_v11 = vmul.f32 -1.442695, %v3474_v41  ;;  %v3512_v28 = vadd.f32 %v2976_v43, %v885_v30 }
 0x196   :  { %v2489_v15 = vpop.eup %2488  ;;  %2031 = vst [vmem:[%s4441_s5 + $0x38] sm:$0xff] %v1847_v20  ;;  %v1848_v27 = vmul.f32 %v2487_v56, %v3269_v0  ;;  %2508 = vpow2.f32 %v2215_v42  ;;  %v3514_v52 = vpop.f32.mrb[45].mxu0  ;;  %v2154_v0 = vmul.f32 -1.442695, %v3484_v6  ;;  %v2218_v2 = vmul.f32 -1.442695, %v3492_v17 }
 0x197   :  { %v3516_v22 = vpop.f32.mrb[45].mxu1  ;;  %v2491_v46 = vpop.eup %2490  ;;  %2063 = vst [vmem:[%s4441_s5 + $0x138] sm:$0xff] %v1911_v18  ;;  %v1912_v63 = vmul.f32 %v2489_v15, %v3279_v51  ;;  %2510 = vpow2.f32 %v2152_v35  ;;  %v2155_v18 = vmul.f32 -1.442695, %v3500_v23 }
 0x198   :  { %v3523_v42 = vpop.f32.mrb[46].mxu0  ;;  %v3525_v45 = vpop.f32.mrb[46].mxu1  ;;  %1968 = vst [vmem:[%s4440_s4 + $0x40] sm:$0xff] %v1848_v27  ;;  %v1849_v8 = vmul.f32 %v2491_v46, %v3292_v3  ;;  %2512 = vpow2.f32 %v2216_v61  ;;  %v2219_v61 = vmul.f32 -1.442695, %v3512_v28 }
 0x199   :  { %v2493_v30 = vpop.eup %2492  ;;  %v3532_v20 = vpop.f32.mrb[47].mxu0  ;;  %2000 = vst [vmem:[%s4440_s4 + $0x140] sm:$0xff] %v1912_v63  ;;  %2514 = vpow2.f32 %v2153_v21 }
 0x19a   :  { %v3534_v51 = vpop.f32.mrb[47].mxu1  ;;  %v2495_v35 = vpop.eup %2494  ;;  %v1913_v56 = vmul.f32 %v2493_v30, %v3306_v26  ;;  %2032 = vst [vmem:[%s4441_s5 + $0x40] sm:$0xff] %v1849_v8  ;;  %2516 = vpow2.f32 %v2217_v11 }
 0x19b   :  { %v2497_v15 = vpop.eup %2496  ;;  %v1850_v3 = vmul.f32 %v2495_v35, %v3314_v13  ;;  %2518 = vpow2.f32 %v2154_v0  ;;  %v822_v13 = vmul.f32 %v2970_v38, %v3234_v12  ;;  %v3561_v0 = vpop.f32.mrb[48].mxu0 }
 0x19c   :  { %v2499_v27 = vpop.eup %2498  ;;  %2064 = vst [vmem:[%s4441_s5 + $0x140] sm:$0xff] %v1913_v56  ;;  %v1914_v26 = vmul.f32 %v2497_v15, %v3322_v32  ;;  %2520 = vpow2.f32 %v2218_v2  ;;  %v886_v32 = vmul.f32 %v2970_v38, %v3236_v25  ;;  %4458 = vst [vmem:[#allocation24_spill] sm:$0xff] %v3561_v0  ;;  %v3563_v30 = vpop.f32.mrb[48].mxu1 }
 0x19d   :  { %v2501_v21 = vpop.eup %2500  ;;  %1969 = vst [vmem:[%s4440_s4 + $0x48] sm:$0xff] %v1850_v3  ;;  %v1851_v46 = vmul.f32 %v2499_v27, %v3330_v24  ;;  %2522 = vpow2.f32 %v2155_v18  ;;  %4459 = vst [vmem:[#allocation25_spill] sm:$0xff] %v3563_v30  ;;  %v823_v24 = vmul.f32 %v2972_v39, %v3242_v48  ;;  %v3570_v2 = vpop.f32.mrb[49].mxu0  ;;  %v4462_v18 = vld [vmem:[#allocation8_spill] sm:$0xff] }
 0x19e   :  { %v2503_v11 = vpop.eup %2502  ;;  %2001 = vst [vmem:[%s4440_s4 + $0x148] sm:$0xff] %v1914_v26  ;;  %v1531_v63 = vadd.f32 1.0, %v2501_v21  ;;  %2524 = vpow2.f32 %v2219_v61  ;;  %4460 = vst [vmem:[#allocation26_spill] sm:$0xff] %v3570_v2  ;;  %v3572_v35 = vpop.f32.mrb[49].mxu1  ;;  %v887_v15 = vmul.f32 %v2972_v39, %v4462_v18  ;;  %v3581_v21 = vadd.f32 %v2974_v40, %v822_v13 }
 0x19f   :  { %v2505_v8 = vpop.eup %2504  ;;  %2033 = vst [vmem:[%s4441_s5 + $0x48] sm:$0xff] %v1851_v46  ;;  %v1468_v12 = vadd.f32 1.0, %v2503_v11  ;;  %4461 = vst [vmem:[#allocation27_spill] sm:$0xff] %v3572_v35  ;;  %v3576_v3 = vpop.f32.mrb[50].mxu0  ;;  %v824_v13 = vmul.f32 %v2970_v38, %v3263_v55  ;;  %v825_v55 = vmul.f32 %v2972_v39, %v3273_v4 }
 0x1a0   :  { %v2507_v56 = vpop.eup %2506  ;;  %2526 = vrcp.f32 %v1531_v63  ;;  %v1532_v25 = vadd.f32 1.0, %v2505_v8  ;;  %4463 = vst [vmem:[#allocation8_spill] sm:$0xff] %v3576_v3  ;;  %v3578_v27 = vpop.f32.mrb[50].mxu1  ;;  %v3588_v8 = vadd.f32 %v2974_v40, %v886_v32  ;;  %v2156_v32 = vmul.f32 -1.442695, %v3581_v21 }
 0x1a1   :  { %4464 = vst [vmem:[#allocation28_spill] sm:$0xff] %v3578_v27  ;;  %v2509_v26 = vpop.eup %2508  ;;  %2528 = vrcp.f32 %v1468_v12  ;;  %v1469_v61 = vadd.f32 1.0, %v2507_v56  ;;  %v3583_v48 = vpop.f32.mrb[51].mxu0  ;;  %v3591_v27 = vadd.f32 %v2976_v43, %v823_v24  ;;  %v3610_v2 = vadd.f32 %v2974_v40, %v824_v13 }
 0x1a2   :  { %4465 = vst [vmem:[#allocation29_spill] sm:$0xff] %v3583_v48  ;;  %v3585_v46 = vpop.f32.mrb[51].mxu1  ;;  %v2511_v11 = vpop.eup %2510  ;;  %2530 = vrcp.f32 %v1532_v25  ;;  %v1533_v63 = vadd.f32 1.0, %v2509_v26  ;;  %v4467_v48 = vld [vmem:[#allocation9_spill] sm:$0xff]  ;;  %v2220_v35 = vmul.f32 -1.442695, %v3588_v8 }
 0x1a3   :  { %4466 = vst [vmem:[#allocation30_spill] sm:$0xff] %v3585_v46  ;;  %v2513_v18 = vpop.eup %2512  ;;  %2532 = vrcp.f32 %v1469_v61  ;;  %v1470_v3 = vadd.f32 1.0, %v2511_v11  ;;  %v3596_v46 = vadd.f32 %v2976_v43, %v887_v15  ;;  %v888_v61 = vmul.f32 %v2970_v38, %v4467_v48  ;;  %v3606_v15 = vpop.f32.mrb[52].mxu1 }
 0x1a4   :  { %v2515_v12 = vpop.eup %2514  ;;  %2534 = vrcp.f32 %v1533_v63  ;;  %v1534_v56 = vadd.f32 1.0, %v2513_v18  ;;  %v3604_v63 = vpop.f32.mrb[52].mxu0  ;;  %4469 = vst [vmem:[#allocation31_spill] sm:$0xff] %v3606_v15  ;;  %v889_v15 = vmul.f32 %v2972_v39, %v3275_v50  ;;  %v3631_v50 = vadd.f32 %v2976_v43, %v825_v55 }
 0x1a5   :  { %v2517_v25 = vpop.eup %2516  ;;  %2536 = vrcp.f32 %v1470_v3  ;;  %v1471_v26 = vadd.f32 1.0, %v2515_v12  ;;  %4468 = vst [vmem:[#allocation9_spill] sm:$0xff] %v3604_v63  ;;  %v2157_v12 = vmul.f32 -1.442695, %v3591_v27  ;;  %v3612_v48 = vpop.f32.mrb[53].mxu0  ;;  %v3622_v13 = vadd.f32 %v2974_v40, %v888_v61 }
 0x1a6   :  { %v2519_v11 = vpop.eup %2518  ;;  %2538 = vrcp.f32 %v1534_v56  ;;  %v1535_v24 = vadd.f32 1.0, %v2517_v25  ;;  %4470 = vst [vmem:[#allocation32_spill] sm:$0xff] %v3612_v48  ;;  %v3614_v56 = vpop.f32.mrb[53].mxu1  ;;  %v2221_v4 = vmul.f32 -1.442695, %v3596_v46  ;;  %v826_v48 = vmul.f32 %v2970_v38, %v3283_v10 }
 0x1a7   :  { %v2521_v18 = vpop.eup %2520  ;;  %2540 = vrcp.f32 %v1471_v26  ;;  %v1472_v3 = vadd.f32 1.0, %v2519_v11  ;;  %4471 = vst [vmem:[#allocation33_spill] sm:$0xff] %v3614_v56  ;;  %v3619_v63 = vpop.f32.mrb[54].mxu0  ;;  %v2158_v10 = vmul.f32 -1.442695, %v3610_v2  ;;  %v3643_v55 = vadd.f32 %v2976_v43, %v889_v15 }
 0x1a8   :  { %v2523_v25 = vpop.eup %2522  ;;  %2542 = vrcp.f32 %v1535_v24  ;;  %v1536_v30 = vadd.f32 1.0, %v2521_v18  ;;  %4472 = vst [vmem:[#allocation34_spill] sm:$0xff] %v3619_v63  ;;  %v3626_v56 = vpop.f32.mrb[54].mxu1  ;;  %v2222_v15 = vmul.f32 -1.442695, %v3622_v13 }
 0x1a9   :  { %v2525_v26 = vpop.eup %2524  ;;  %2544 = vrcp.f32 %v1472_v3  ;;  %v1473_v11 = vadd.f32 1.0, %v2523_v25  ;;  %4473 = vst [vmem:[#allocation35_spill] sm:$0xff] %v3626_v56  ;;  %v3628_v24 = vpop.f32.mrb[55].mxu0  ;;  %v890_v3 = vmul.f32 %v2970_v38, %v3285_v57  ;;  %v891_v57 = vmul.f32 %v2972_v39, %v3298_v14 }
 0x1aa   :  { %4474 = vst [vmem:[#allocation36_spill] sm:$0xff] %v3628_v24  ;;  %v2527_v18 = vpop.eup %2526  ;;  %2546 = vrcp.f32 %v1536_v30  ;;  %v1537_v0 = vadd.f32 1.0, %v2525_v26  ;;  %v3635_v25 = vpop.f32.mrb[55].mxu1  ;;  %v827_v24 = vmul.f32 %v2972_v39, %v3296_v29  ;;  %v3652_v29 = vadd.f32 %v2974_v40, %v826_v48 }
 0x1ab   :  { %v2529_v61 = vpop.eup %2528  ;;  %v1915_v63 = vmul.f32 %v2527_v18, %v3395_v31  ;;  %2548 = vrcp.f32 %v1473_v11 }
 0x1ac   :  { %v2531_v56 = vpop.eup %2530  ;;  %v1852_v30 = vmul.f32 %v2529_v61, %v3404_v37  ;;  %2550 = vrcp.f32 %v1537_v0  ;;  %v828_v37 = vmul.f32 %v2970_v38, %v3337_v1 }
 0x1ad   :  { %v2533_v26 = vpop.eup %2532  ;;  %2065 = vst [vmem:[%s4441_s5 + $0x148] sm:$0xff] %v1915_v63  ;;  %v1916_v31 = vmul.f32 %v2531_v56, %v3411_v5  ;;  %2552 = vpow2.f32 %v2156_v32  ;;  %v3662_v63 = vadd.f32 %v2974_v40, %v890_v3  ;;  %v3664_v5 = vpop.f32.mrb[56].mxu0 }
 0x1ae   :  { %v2535_v0 = vpop.eup %2534  ;;  %1970 = vst [vmem:[%s4440_s4 + $0x50] sm:$0xff] %v1852_v30  ;;  %v1853_v14 = vmul.f32 %v2533_v26, %v3418_v34  ;;  %2554 = vpow2.f32 %v2220_v35  ;;  %v3666_v32 = vpop.f32.mrb[56].mxu1  ;;  %v2159_v34 = vmul.f32 -1.442695, %v3631_v50  ;;  %v3674_v35 = vadd.f32 %v2976_v43, %v827_v24 }
 0x1af   :  { %v2537_v48 = vpop.eup %2536  ;;  %2002 = vst [vmem:[%s4440_s4 + $0x150] sm:$0xff] %v1916_v31  ;;  %v1917_v1 = vmul.f32 %v2535_v0, %v3422_v19  ;;  %2556 = vpow2.f32 %v2157_v12  ;;  %v3676_v56 = vpop.f32.mrb[57].mxu0  ;;  %v2223_v19 = vmul.f32 -1.442695, %v3643_v55  ;;  %v3686_v12 = vadd.f32 %v2976_v43, %v891_v57 }
 0x1b0   :  { %v3678_v11 = vpop.f32.mrb[57].mxu1  ;;  %v2539_v18 = vpop.eup %2538  ;;  %2034 = vst [vmem:[%s4441_s5 + $0x50] sm:$0xff] %v1853_v14  ;;  %v1854_v3 = vmul.f32 %v2537_v48, %v3445_v33  ;;  %2558 = vpow2.f32 %v2221_v4  ;;  %v2160_v33 = vmul.f32 -1.442695, %v3652_v29  ;;  %v3698_v4 = vadd.f32 %v2974_v40, %v828_v37 }
 0x1b1   :  { %v3688_v61 = vpop.f32.mrb[58].mxu0  ;;  %v3690_v24 = vpop.f32.mrb[58].mxu1  ;;  %2066 = vst [vmem:[%s4441_s5 + $0x150] sm:$0xff] %v1917_v1  ;;  %v1918_v26 = vmul.f32 %v2539_v18, %v3453_v59  ;;  %2560 = vpow2.f32 %v2158_v10  ;;  %v2224_v59 = vmul.f32 -1.442695, %v3662_v63 }
 0x1b2   :  { %4475 = vst [vmem:[#allocation37_spill] sm:$0xff] %v3690_v24  ;;  %v2541_v30 = vpop.eup %2540  ;;  %v3700_v31 = vpop.f32.mrb[59].mxu0  ;;  %1971 = vst [vmem:[%s4440_s4 + $0x58] sm:$0xff] %v1854_v3  ;;  %2562 = vpow2.f32 %v2222_v15  ;;  %v2161_v48 = vmul.f32 -1.442695, %v3674_v35 }
 0x1b3   :  { %4476 = vst [vmem:[#allocation38_spill] sm:$0xff] %v3700_v31  ;;  %v3702_v57 = vpop.f32.mrb[59].mxu1  ;;  %v2543_v0 = vpop.eup %2542  ;;  %v1855_v14 = vmul.f32 %v2541_v30, %v3463_v60  ;;  %2003 = vst [vmem:[%s4440_s4 + $0x158] sm:$0xff] %v1918_v26  ;;  %2564 = vpow2.f32 %v2159_v34  ;;  %v2225_v15 = vmul.f32 -1.442695, %v3686_v12 }
 0x1b4   :  { %4477 = vst [vmem:[#allocation39_spill] sm:$0xff] %v3702_v57  ;;  %v2545_v10 = vpop.eup %2544  ;;  %v1919_v37 = vmul.f32 %v2543_v0, %v3474_v41  ;;  %2566 = vpow2.f32 %v2223_v19  ;;  %v2162_v34 = vmul.f32 -1.442695, %v3698_v4  ;;  %v3728_v19 = vpop.f32.mrb[60].mxu0 }
 0x1b5   :  { %v2547_v1 = vpop.eup %2546  ;;  %2035 = vst [vmem:[%s4441_s5 + $0x58] sm:$0xff] %v1855_v14  ;;  %v1856_v60 = vmul.f32 %v2545_v10, %v3484_v6  ;;  %2568 = vpow2.f32 %v2160_v33  ;;  %4478 = vst [vmem:[#allocation40_spill] sm:$0xff] %v3728_v19  ;;  %v3730_v30 = vpop.f32.mrb[60].mxu1  ;;  %v892_v33 = vmul.f32 %v2970_v38, %v3339_v62  ;;  %v829_v10 = vmul.f32 %v2972_v39, %v3346_v58 }
 0x1b6   :  { %v2549_v18 = vpop.eup %2548  ;;  %2067 = vst [vmem:[%s4441_s5 + $0x158] sm:$0xff] %v1919_v37  ;;  %v1920_v41 = vmul.f32 %v2547_v1, %v3492_v17  ;;  %2570 = vpow2.f32 %v2224_v59  ;;  %4479 = vst [vmem:[#allocation41_spill] sm:$0xff] %v3730_v30  ;;  %v3738_v0 = vpop.f32.mrb[61].mxu0  ;;  %v893_v1 = vmul.f32 %v2972_v39, %v3348_v47 }
 0x1b7   :  { %v2551_v3 = vpop.eup %2550  ;;  %1972 = vst [vmem:[%s4440_s4 + $0x60] sm:$0xff] %v1856_v60  ;;  %v1857_v6 = vmul.f32 %v2549_v18, %v3500_v23  ;;  %2572 = vpow2.f32 %v2161_v48  ;;  %4480 = vst [vmem:[#allocation42_spill] sm:$0xff] %v3738_v0  ;;  %v3740_v14 = vpop.f32.mrb[61].mxu1  ;;  %v3766_v47 = vadd.f32 %v2976_v43, %v829_v10 }
 0x1b8   :  { %v2553_v26 = vpop.eup %2552  ;;  %2004 = vst [vmem:[%s4440_s4 + $0x160] sm:$0xff] %v1920_v41  ;;  %v1921_v17 = vmul.f32 %v2551_v3, %v3512_v28  ;;  %4481 = vst [vmem:[#allocation43_spill] sm:$0xff] %v3740_v14  ;;  %2574 = vpow2.f32 %v2225_v15  ;;  %v3747_v37 = vpop.f32.mrb[62].mxu0 }
 0x1b9   :  { %v2555_v23 = vpop.eup %2554  ;;  %2036 = vst [vmem:[%s4441_s5 + $0x60] sm:$0xff] %v1857_v6  ;;  %v1474_v59 = vadd.f32 1.0, %v2553_v26  ;;  %4482 = vst [vmem:[#allocation44_spill] sm:$0xff] %v3747_v37  ;;  %v3749_v28 = vpop.f32.mrb[62].mxu1  ;;  %2576 = vpow2.f32 %v2162_v34  ;;  %v3761_v6 = vadd.f32 %v2974_v40, %v892_v33  ;;  %v830_v26 = vmul.f32 %v2970_v38, %v3355_v49 }
 0x1ba   :  { %4483 = vst [vmem:[#allocation45_spill] sm:$0xff] %v3749_v28  ;;  %v2557_v48 = vpop.eup %2556  ;;  %2068 = vst [vmem:[%s4441_s5 + $0x160] sm:$0xff] %v1921_v17  ;;  %v1538_v62 = vadd.f32 1.0, %v2555_v23  ;;  %v3756_v60 = vpop.f32.mrb[63].mxu0  ;;  %v894_v23 = vmul.f32 %v2970_v38, %v3357_v53 }
 0x1bb   :  { %4484 = vst [vmem:[#allocation46_spill] sm:$0xff] %v3756_v60  ;;  %v3758_v15 = vpop.f32.mrb[63].mxu1  ;;  %v2559_v18 = vpop.eup %2558  ;;  %2578 = vrcp.f32 %v1474_v59  ;;  %v1475_v58 = vadd.f32 1.0, %v2557_v48  ;;  %v2226_v10 = vmul.f32 -1.442695, %v3761_v6  ;;  %v3777_v60 = vadd.f32 %v2974_v40, %v830_v26 }
 0x1bc   :  { %4485 = vst [vmem:[#allocation47_spill] sm:$0xff] %v3758_v15  ;;  %v2561_v41 = vpop.eup %2560  ;;  %2580 = vrcp.f32 %v1538_v62  ;;  %v1539_v3 = vadd.f32 1.0, %v2559_v18  ;;  %v3771_v62 = vadd.f32 %v2976_v43, %v893_v1  ;;  %v4486_v15 = vld [vmem:[#allocation10_spill] sm:$0xff]  ;;  %v2163_v1 = vmul.f32 -1.442695, %v3766_v47 }
 0x1bd   :  { %v2563_v34 = vpop.eup %2562  ;;  %2582 = vrcp.f32 %v1475_v58  ;;  %v1476_v17 = vadd.f32 1.0, %v2561_v41  ;;  %v831_v49 = vmul.f32 %v2972_v39, %v4486_v15 }
 0x1be   :  { %v2565_v59 = vpop.eup %2564  ;;  %2584 = vrcp.f32 %v1539_v3  ;;  %v1540_v48 = vadd.f32 1.0, %v2563_v34  ;;  %v3781_v34 = vadd.f32 %v2974_v40, %v894_v23  ;;  %v2227_v15 = vmul.f32 -1.442695, %v3771_v62 }
 0x1bf   :  { %v2567_v33 = vpop.eup %2566  ;;  %2586 = vrcp.f32 %v1476_v17  ;;  %v1477_v18 = vadd.f32 1.0, %v2565_v59  ;;  %v3787_v37 = vadd.f32 %v2976_v43, %v831_v49 }
 0x1c0   :  { %v2569_v58 = vpop.eup %2568  ;;  %2588 = vrcp.f32 %v1540_v48  ;;  %v1541_v41 = vadd.f32 1.0, %v2567_v33  ;;  %v4487_v48 = vld [vmem:[#allocation11_spill] sm:$0xff] }
 0x1c1   :  { %v2571_v53 = vpop.eup %2570  ;;  %2590 = vrcp.f32 %v1477_v18  ;;  %v1478_v3 = vadd.f32 1.0, %v2569_v58  ;;  %v895_v33 = vmul.f32 %v2972_v39, %v4487_v48  ;;  %v4488_v18 = vld [vmem:[#allocation12_spill] sm:$0xff] }
 0x1c2   :  { %v2573_v17 = vpop.eup %2572  ;;  %2592 = vrcp.f32 %v1541_v41  ;;  %v1542_v59 = vadd.f32 1.0, %v2571_v53  ;;  %v832_v58 = vmul.f32 %v2970_v38, %v4488_v18  ;;  %v2164_v41 = vmul.f32 -1.442695, %v3777_v60  ;;  %v4489_v53 = vld [vmem:[#allocation13_spill] sm:$0xff] }
 0x1c3   :  { %v2575_v28 = vpop.eup %2574  ;;  %2594 = vrcp.f32 %v1478_v3  ;;  %v1479_v26 = vadd.f32 1.0, %v2573_v17  ;;  %v896_v0 = vmul.f32 %v2970_v38, %v4489_v53  ;;  %v2228_v3 = vmul.f32 -1.442695, %v3781_v34  ;;  %v4490_v17 = vld [vmem:[#allocation14_spill] sm:$0xff] }
 0x1c4   :  { %v2577_v14 = vpop.eup %2576  ;;  %2596 = vrcp.f32 %v1542_v59  ;;  %v1543_v23 = vadd.f32 1.0, %v2575_v28  ;;  %v833_v49 = vmul.f32 %v2972_v39, %v4490_v17  ;;  %v3799_v59 = vadd.f32 %v2976_v43, %v895_v33  ;;  %v4491_v28 = vld [vmem:[#allocation15_spill] sm:$0xff]  ;;  %v4493_v33 = vld [vmem:[#allocation17_spill] sm:$0xff] }
 0x1c5   :  { %v2579_v30 = vpop.eup %2578  ;;  %2598 = vrcp.f32 %v1479_v26  ;;  %v1480_v48 = vadd.f32 1.0, %v2577_v14  ;;  %v897_v18 = vmul.f32 %v2972_v39, %v4491_v28  ;;  %v3805_v14 = vadd.f32 %v2974_v40, %v832_v58  ;;  %v4492_v26 = vld [vmem:[#allocation16_spill] sm:$0xff] }
 0x1c6   :  { %v2581_v19 = vpop.eup %2580  ;;  %v1858_v57 = vmul.f32 %v2579_v30, %v3581_v21  ;;  %2600 = vrcp.f32 %v1543_v23  ;;  %v834_v17 = vmul.f32 %v2970_v38, %v4492_v26  ;;  %v3814_v30 = vadd.f32 %v2974_v40, %v896_v0 }
 0x1c7   :  { %v2583_v31 = vpop.eup %2582  ;;  %v1922_v53 = vmul.f32 %v2581_v19, %v3588_v8  ;;  %2602 = vrcp.f32 %v1480_v48  ;;  %v898_v8 = vmul.f32 %v2970_v38, %v4493_v33  ;;  %v2165_v23 = vmul.f32 -1.442695, %v3787_v37 }
 0x1c8   :  { %v2585_v24 = vpop.eup %2584  ;;  %1973 = vst [vmem:[%s4440_s4 + $0x68] sm:$0xff] %v1858_v57  ;;  %v1859_v21 = vmul.f32 %v2583_v31, %v3591_v27  ;;  %2604 = vpow2.f32 %v2226_v10  ;;  %v3824_v57 = vadd.f32 %v2976_v43, %v833_v49  ;;  %v2229_v0 = vmul.f32 -1.442695, %v3799_v59 }
 0x1c9   :  { %v2587_v19 = vpop.eup %2586  ;;  %2005 = vst [vmem:[%s4440_s4 + $0x168] sm:$0xff] %v1922_v53  ;;  %v1923_v58 = vmul.f32 %v2585_v24, %v3596_v46  ;;  %2606 = vpow2.f32 %v2163_v1  ;;  %v3832_v10 = vadd.f32 %v2976_v43, %v897_v18  ;;  %v2166_v1 = vmul.f32 -1.442695, %v3805_v14 }
 0x1ca   :  { %v2589_v27 = vpop.eup %2588  ;;  %2037 = vst [vmem:[%s4441_s5 + $0x68] sm:$0xff] %v1859_v21  ;;  %v1860_v31 = vmul.f32 %v2587_v19, %v3610_v2  ;;  %2608 = vpow2.f32 %v2227_v15  ;;  %v3840_v48 = vadd.f32 %v2974_v40, %v834_v17  ;;  %v2230_v49 = vmul.f32 -1.442695, %v3814_v30 }
 0x1cb   :  { %v2591_v46 = vpop.eup %2590  ;;  %2069 = vst [vmem:[%s4441_s5 + $0x168] sm:$0xff] %v1923_v58  ;;  %v1924_v24 = vmul.f32 %v2589_v27, %v3622_v13  ;;  %2610 = vpow2.f32 %v2164_v41  ;;  %v3848_v28 = vadd.f32 %v2974_v40, %v898_v8  ;;  %v2167_v18 = vmul.f32 -1.442695, %v3824_v57 }
 0x1cc   :  { %v2593_v2 = vpop.eup %2592  ;;  %1974 = vst [vmem:[%s4440_s4 + $0x70] sm:$0xff] %v1860_v31  ;;  %v1861_v15 = vmul.f32 %v2591_v46, %v3631_v50  ;;  %2612 = vpow2.f32 %v2228_v3  ;;  %v2231_v3 = vmul.f32 -1.442695, %v3832_v10  ;;  %v2168_v17 = vmul.f32 -1.442695, %v3840_v48 }
 0x1cd   :  { %v2595_v13 = vpop.eup %2594  ;;  %2006 = vst [vmem:[%s4440_s4 + $0x170] sm:$0xff] %v1924_v24  ;;  %v1925_v41 = vmul.f32 %v2593_v2, %v3643_v55  ;;  %2614 = vpow2.f32 %v2165_v23  ;;  %v2232_v33 = vmul.f32 -1.442695, %v3848_v28  ;;  %v4496_v24 = vld [vmem:[#allocation20_spill] sm:$0xff] }
 0x1ce   :  { %v2597_v53 = vpop.eup %2596  ;;  %2038 = vst [vmem:[%s4441_s5 + $0x70] sm:$0xff] %v1861_v15  ;;  %v1862_v50 = vmul.f32 %v2595_v13, %v3652_v29  ;;  %2616 = vpow2.f32 %v2229_v0 }
 0x1cf   :  { %v2599_v26 = vpop.eup %2598  ;;  %2070 = vst [vmem:[%s4441_s5 + $0x170] sm:$0xff] %v1925_v41  ;;  %v1926_v55 = vmul.f32 %v2597_v53, %v3662_v63  ;;  %2618 = vpow2.f32 %v2166_v1  ;;  %v836_v1 = vmul.f32 %v2970_v38, %v4496_v24 }
 0x1d0   :  { %v2601_v21 = vpop.eup %2600  ;;  %1975 = vst [vmem:[%s4440_s4 + $0x78] sm:$0xff] %v1862_v50  ;;  %v1863_v29 = vmul.f32 %v2599_v26, %v3674_v35  ;;  %2620 = vpow2.f32 %v2230_v49  ;;  %v4494_v35 = vld [vmem:[#allocation18_spill] sm:$0xff]  ;;  %v4497_v49 = vld [vmem:[#allocation21_spill] sm:$0xff] }
 0x1d1   :  { %v2603_v8 = vpop.eup %2602  ;;  %2007 = vst [vmem:[%s4440_s4 + $0x178] sm:$0xff] %v1926_v55  ;;  %v1927_v63 = vmul.f32 %v2601_v21, %v3686_v12  ;;  %2622 = vpow2.f32 %v2167_v18  ;;  %v835_v23 = vmul.f32 %v2972_v39, %v4494_v35  ;;  %v4495_v12 = vld [vmem:[#allocation19_spill] sm:$0xff]  ;;  %v900_v13 = vmul.f32 %v2970_v38, %v4497_v49  ;;  %v4498_v50 = vld [vmem:[#allocation22_spill] sm:$0xff] }
 0x1d2   :  { %v2605_v19 = vpop.eup %2604  ;;  %2039 = vst [vmem:[%s4441_s5 + $0x78] sm:$0xff] %v1863_v29  ;;  %v1864_v58 = vmul.f32 %v2603_v8, %v3698_v4  ;;  %2624 = vpow2.f32 %v2231_v3  ;;  %v899_v0 = vmul.f32 %v2972_v39, %v4495_v12  ;;  %v837_v3 = vmul.f32 %v2972_v39, %v4498_v50 }
 0x1d3   :  { %v2607_v27 = vpop.eup %2606  ;;  %2071 = vst [vmem:[%s4441_s5 + $0x178] sm:$0xff] %v1927_v63  ;;  %v1544_v31 = vadd.f32 1.0, %v2605_v19  ;;  %2626 = vpow2.f32 %v2168_v17  ;;  %v3893_v53 = vadd.f32 %v2976_v43, %v835_v23  ;;  %v3904_v19 = vadd.f32 %v2974_v40, %v900_v13 }
 0x1d4   :  { %v2609_v46 = vpop.eup %2608  ;;  %1976 = vst [vmem:[%s4440_s4 + $0x80] sm:$0xff] %v1864_v58  ;;  %v1481_v4 = vadd.f32 1.0, %v2607_v27  ;;  %2628 = vpow2.f32 %v2232_v33  ;;  %v3898_v17 = vadd.f32 %v2976_v43, %v899_v0  ;;  %v3901_v33 = vadd.f32 %v2974_v40, %v836_v1 }
 0x1d5   :  { %v2611_v2 = vpop.eup %2610  ;;  %2630 = vrcp.f32 %v1544_v31  ;;  %v1545_v15 = vadd.f32 1.0, %v2609_v46  ;;  %v2169_v23 = vmul.f32 -1.442695, %v3893_v53  ;;  %v3908_v27 = vadd.f32 %v2976_v43, %v837_v3  ;;  %v4499_v46 = vld [vmem:[#allocation23_spill] sm:$0xff] }
 0x1d6   :  { %v2613_v41 = vpop.eup %2612  ;;  %2632 = vrcp.f32 %v1481_v4  ;;  %v1482_v18 = vadd.f32 1.0, %v2611_v2  ;;  %v2233_v0 = vmul.f32 -1.442695, %v3898_v17  ;;  %v901_v4 = vmul.f32 %v2972_v39, %v4499_v46 }
 0x1d7   :  { %v2615_v26 = vpop.eup %2614  ;;  %2634 = vrcp.f32 %v1545_v15  ;;  %v1546_v55 = vadd.f32 1.0, %v2613_v41  ;;  %v2170_v2 = vmul.f32 -1.442695, %v3901_v33  ;;  %v838_v15 = vmul.f32 %v2970_v38, %v3449_v36 }
 0x1d8   :  { %v2617_v21 = vpop.eup %2616  ;;  %2636 = vrcp.f32 %v1482_v18  ;;  %v1483_v29 = vadd.f32 1.0, %v2615_v26  ;;  %v2234_v41 = vmul.f32 -1.442695, %v3904_v19  ;;  %v902_v18 = vmul.f32 %v2970_v38, %v3457_v54 }
 0x1d9   :  { %v2619_v8 = vpop.eup %2618  ;;  %2638 = vrcp.f32 %v1546_v55  ;;  %v1547_v63 = vadd.f32 1.0, %v2617_v21  ;;  %v2171_v26 = vmul.f32 -1.442695, %v3908_v27  ;;  %v839_v55 = vmul.f32 %v2972_v39, %v3459_v16 }
 0x1da   :  { %v2621_v58 = vpop.eup %2620  ;;  %2640 = vrcp.f32 %v1483_v29  ;;  %v1484_v35 = vadd.f32 1.0, %v2619_v8  ;;  %v3923_v36 = vadd.f32 %v2976_v43, %v901_v4  ;;  %v903_v8 = vmul.f32 %v2972_v39, %v3467_v9 }
 0x1db   :  { %v2623_v31 = vpop.eup %2622  ;;  %2642 = vrcp.f32 %v1547_v63  ;;  %v1548_v12 = vadd.f32 1.0, %v2621_v58  ;;  %v3929_v58 = vadd.f32 %v2974_v40, %v838_v15  ;;  %v904_v9 = vmul.f32 %v2970_v38, %v3504_v7 }
 0x1dc   :  { %v2625_v24 = vpop.eup %2624  ;;  %2644 = vrcp.f32 %v1484_v35  ;;  %v1485_v1 = vadd.f32 1.0, %v2623_v31  ;;  %v840_v35 = vmul.f32 %v2970_v38, %v3502_v44  ;;  %v3944_v44 = vadd.f32 %v2976_v43, %v839_v55 }
 0x1dd   :  { %v2627_v49 = vpop.eup %2626  ;;  %2646 = vrcp.f32 %v1548_v12  ;;  %v1549_v13 = vadd.f32 1.0, %v2625_v24  ;;  %v3935_v12 = vadd.f32 %v2974_v40, %v902_v18  ;;  %v2235_v24 = vmul.f32 -1.442695, %v3923_v36 }
 0x1de   :  { %v2629_v50 = vpop.eup %2628  ;;  %2648 = vrcp.f32 %v1485_v1  ;;  %v1486_v3 = vadd.f32 1.0, %v2627_v49  ;;  %v3954_v1 = vadd.f32 %v2976_v43, %v903_v8  ;;  %v3962_v15 = vadd.f32 %v2974_v40, %v840_v35 }
 0x1df   :  { %v2631_v21 = vpop.eup %2630  ;;  %2650 = vrcp.f32 %v1549_v13  ;;  %v1550_v29 = vadd.f32 1.0, %v2629_v50  ;;  %v2236_v49 = vmul.f32 -1.442695, %v3935_v12  ;;  %v3970_v13 = vadd.f32 %v2974_v40, %v904_v9 }
 0x1e0   :  { %v2633_v63 = vpop.eup %2632  ;;  %v1928_v54 = vmul.f32 %v2631_v21, %v3761_v6  ;;  %2652 = vrcp.f32 %v1486_v3  ;;  %v2173_v18 = vmul.f32 -1.442695, %v3944_v44  ;;  %v2237_v3 = vmul.f32 -1.442695, %v3954_v1 }
 0x1e1   :  { %v2635_v16 = vpop.eup %2634  ;;  %v1865_v31 = vmul.f32 %v2633_v63, %v3766_v47  ;;  %2654 = vrcp.f32 %v1550_v29  ;;  %v841_v47 = vmul.f32 %v2972_v39, %v3514_v52  ;;  %v2238_v29 = vmul.f32 -1.442695, %v3970_v13 }
 0x1e2   :  { %v2637_v46 = vpop.eup %2636  ;;  %2008 = vst [vmem:[%s4440_s4 + $0x180] sm:$0xff] %v1928_v54  ;;  %v1929_v6 = vmul.f32 %v2635_v16, %v3771_v62  ;;  %2656 = vpow2.f32 %v2169_v23  ;;  %v2172_v23 = vmul.f32 -1.442695, %v3929_v58 }
 0x1e3   :  { %v2639_v4 = vpop.eup %2638  ;;  %2040 = vst [vmem:[%s4441_s5 + $0x80] sm:$0xff] %v1865_v31  ;;  %v1866_v7 = vmul.f32 %v2637_v46, %v3777_v60  ;;  %2658 = vpow2.f32 %v2233_v0  ;;  %v3978_v50 = vadd.f32 %v2976_v43, %v841_v47 }
 0x1e4   :  { %v2641_v62 = vpop.eup %2640  ;;  %2072 = vst [vmem:[%s4441_s5 + $0x180] sm:$0xff] %v1929_v6  ;;  %v1930_v52 = vmul.f32 %v2639_v4, %v3781_v34  ;;  %2660 = vpow2.f32 %v2170_v2  ;;  %v843_v4 = vmul.f32 %v2972_v39, %v3532_v20 }
 0x1e5   :  { %v2643_v60 = vpop.eup %2642  ;;  %1977 = vst [vmem:[%s4440_s4 + $0x88] sm:$0xff] %v1866_v7  ;;  %v1867_v0 = vmul.f32 %v2641_v62, %v3787_v37  ;;  %2662 = vpow2.f32 %v2234_v41  ;;  %v2175_v63 = vmul.f32 -1.442695, %v3978_v50  ;;  %v907_v62 = vmul.f32 %v2972_v39, %v3534_v51 }
 0x1e6   :  { %v2645_v34 = vpop.eup %2644  ;;  %2009 = vst [vmem:[%s4440_s4 + $0x188] sm:$0xff] %v1930_v52  ;;  %v1931_v2 = vmul.f32 %v2643_v60, %v3799_v59  ;;  %2664 = vpow2.f32 %v2171_v26  ;;  %v2174_v26 = vmul.f32 -1.442695, %v3962_v15 }
 0x1e7   :  { %v2647_v37 = vpop.eup %2646  ;;  %2041 = vst [vmem:[%s4441_s5 + $0x88] sm:$0xff] %v1867_v0  ;;  %v1868_v41 = vmul.f32 %v2645_v34, %v3805_v14  ;;  %2666 = vpow2.f32 %v2235_v24 }
 0x1e8   :  { %v2649_v55 = vpop.eup %2648  ;;  %2073 = vst [vmem:[%s4441_s5 + $0x188] sm:$0xff] %v1931_v2  ;;  %v1932_v59 = vmul.f32 %v2647_v37, %v3814_v30  ;;  %2668 = vpow2.f32 %v2172_v23  ;;  %v4034_v2 = vadd.f32 %v2976_v43, %v843_v4  ;;  %v4504_v4 = vld [vmem:[#allocation8_spill] sm:$0xff] }
 0x1e9   :  { %v2651_v21 = vpop.eup %2650  ;;  %1978 = vst [vmem:[%s4440_s4 + $0x90] sm:$0xff] %v1868_v41  ;;  %v1869_v14 = vmul.f32 %v2649_v55, %v3824_v57  ;;  %2670 = vpow2.f32 %v2236_v49  ;;  %v4038_v41 = vadd.f32 %v2976_v43, %v907_v62 }
 0x1ea   :  { %v2653_v8 = vpop.eup %2652  ;;  %2010 = vst [vmem:[%s4440_s4 + $0x190] sm:$0xff] %v1932_v59  ;;  %v1933_v30 = vmul.f32 %v2651_v21, %v3832_v10  ;;  %2672 = vpow2.f32 %v2173_v18  ;;  %v905_v10 = vmul.f32 %v2972_v39, %v3516_v22  ;;  %v906_v22 = vmul.f32 %v2970_v38, %v3525_v45 }
 0x1eb   :  { %v2655_v54 = vpop.eup %2654  ;;  %2042 = vst [vmem:[%s4441_s5 + $0x90] sm:$0xff] %v1869_v14  ;;  %v1870_v57 = vmul.f32 %v2653_v8, %v3840_v48  ;;  %2674 = vpow2.f32 %v2237_v3  ;;  %v842_v48 = vmul.f32 %v2970_v38, %v3523_v42 }
 0x1ec   :  { %v2657_v35 = vpop.eup %2656  ;;  %2074 = vst [vmem:[%s4441_s5 + $0x190] sm:$0xff] %v1933_v30  ;;  %v1934_v16 = vmul.f32 %v2655_v54, %v3848_v28  ;;  %2676 = vpow2.f32 %v2174_v26  ;;  %v4023_v42 = vadd.f32 %v2976_v43, %v905_v10  ;;  %v4031_v20 = vadd.f32 %v2974_v40, %v906_v22  ;;  %v4500_v26 = vld [vmem:[#allocation24_spill] sm:$0xff]  ;;  %v4501_v30 = vld [vmem:[#allocation25_spill] sm:$0xff] }
 0x1ed   :  { %v2659_v31 = vpop.eup %2658  ;;  %1979 = vst [vmem:[%s4440_s4 + $0x98] sm:$0xff] %v1870_v57  ;;  %v1487_v9 = vadd.f32 1.0, %v2657_v35  ;;  %2678 = vpow2.f32 %v2238_v29  ;;  %v4028_v45 = vadd.f32 %v2974_v40, %v842_v48  ;;  %v844_v21 = vmul.f32 %v2970_v38, %v4500_v26  ;;  %v4507_v26 = vld [vmem:[#allocation30_spill] sm:$0xff] }
 0x1ee   :  { %v2661_v46 = vpop.eup %2660  ;;  %2011 = vst [vmem:[%s4440_s4 + $0x198] sm:$0xff] %v1934_v16  ;;  %v1551_v28 = vadd.f32 1.0, %v2659_v31  ;;  %2680 = vpow2.f32 %v2175_v63  ;;  %v2239_v37 = vmul.f32 -1.442695, %v4023_v42  ;;  %v2240_v8 = vmul.f32 -1.442695, %v4031_v20 }
 0x1ef   :  { %v2663_v6 = vpop.eup %2662  ;;  %2682 = vrcp.f32 %v1487_v9  ;;  %v1488_v47 = vadd.f32 1.0, %v2661_v46  ;;  %v2176_v59 = vmul.f32 -1.442695, %v4028_v45  ;;  %v908_v63 = vmul.f32 %v2970_v38, %v4501_v30  ;;  %v4502_v16 = vld [vmem:[#allocation26_spill] sm:$0xff]  ;;  %v4503_v46 = vld [vmem:[#allocation27_spill] sm:$0xff] }
 0x1f0   :  { %v2665_v7 = vpop.eup %2664  ;;  %2684 = vrcp.f32 %v1551_v28  ;;  %v1552_v24 = vadd.f32 1.0, %v2663_v6  ;;  %v2177_v35 = vmul.f32 -1.442695, %v4034_v2  ;;  %v845_v10 = vmul.f32 %v2972_v39, %v4502_v16 }
 0x1f1   :  { %v2667_v52 = vpop.eup %2666  ;;  %2686 = vrcp.f32 %v1488_v47  ;;  %v1489_v23 = vadd.f32 1.0, %v2665_v7  ;;  %v2241_v48 = vmul.f32 -1.442695, %v4038_v41  ;;  %v909_v28 = vmul.f32 %v2972_v39, %v4503_v46 }
 0x1f2   :  { %v2669_v60 = vpop.eup %2668  ;;  %2688 = vrcp.f32 %v1552_v24  ;;  %v1553_v0 = vadd.f32 1.0, %v2667_v52  ;;  %v4053_v47 = vadd.f32 %v2974_v40, %v844_v21  ;;  %v846_v7 = vmul.f32 %v2970_v38, %v4504_v4 }
 0x1f3   :  { %v2671_v49 = vpop.eup %2670  ;;  %2690 = vrcp.f32 %v1489_v23  ;;  %v1490_v34 = vadd.f32 1.0, %v2669_v60  ;;  %v4059_v52 = vadd.f32 %v2974_v40, %v908_v63  ;;  %v4505_v23 = vld [vmem:[#allocation28_spill] sm:$0xff] }
 0x1f4   :  { %v2673_v18 = vpop.eup %2672  ;;  %2692 = vrcp.f32 %v1553_v0  ;;  %v1554_v51 = vadd.f32 1.0, %v2671_v49  ;;  %v910_v60 = vmul.f32 %v2970_v38, %v4505_v23  ;;  %v4084_v30 = vadd.f32 %v2974_v40, %v846_v7 }
 0x1f5   :  { %v2675_v3 = vpop.eup %2674  ;;  %2694 = vrcp.f32 %v1490_v34  ;;  %v1491_v55 = vadd.f32 1.0, %v2673_v18  ;;  %v4065_v34 = vadd.f32 %v2976_v43, %v845_v10  ;;  %v4506_v18 = vld [vmem:[#allocation29_spill] sm:$0xff]  ;;  %v2242_v63 = vmul.f32 -1.442695, %v4059_v52 }
 0x1f6   :  { %v2677_v14 = vpop.eup %2676  ;;  %2696 = vrcp.f32 %v1554_v51  ;;  %v1555_v29 = vadd.f32 1.0, %v2675_v3  ;;  %v847_v51 = vmul.f32 %v2972_v39, %v4506_v18 }
 0x1f7   :  { %v2679_v54 = vpop.eup %2678  ;;  %2698 = vrcp.f32 %v1491_v55  ;;  %v1492_v57 = vadd.f32 1.0, %v2677_v14  ;;  %v4074_v55 = vadd.f32 %v2976_v43, %v909_v28 }
 0x1f8   :  { %v2681_v31 = vpop.eup %2680  ;;  %2700 = vrcp.f32 %v1555_v29  ;;  %v1556_v9 = vadd.f32 1.0, %v2679_v54  ;;  %v2178_v29 = vmul.f32 -1.442695, %v4053_v47  ;;  %v4092_v54 = vadd.f32 %v2974_v40, %v910_v60 }
 0x1f9   :  { %v2683_v22 = vpop.eup %2682  ;;  %2702 = vrcp.f32 %v1492_v57  ;;  %v1493_v6 = vadd.f32 1.0, %v2681_v31  ;;  %v2179_v57 = vmul.f32 -1.442695, %v4065_v34  ;;  %v4100_v16 = vadd.f32 %v2976_v43, %v847_v51  ;;  %v4510_v51 = vld [vmem:[#allocation32_spill] sm:$0xff] }
 0x1fa   :  { %v2685_v24 = vpop.eup %2684  ;;  %v1871_v62 = vmul.f32 %v2683_v22, %v3893_v53  ;;  %2704 = vrcp.f32 %v1556_v9  ;;  %v2243_v10 = vmul.f32 -1.442695, %v4074_v55  ;;  %v2180_v9 = vmul.f32 -1.442695, %v4084_v30 }
 0x1fb   :  { %v2687_v0 = vpop.eup %2686  ;;  %v1935_v49 = vmul.f32 %v2685_v24, %v3898_v17  ;;  %2706 = vrcp.f32 %v1493_v6  ;;  %v911_v17 = vmul.f32 %v2972_v39, %v4507_v26  ;;  %v2181_v22 = vmul.f32 -1.442695, %v4100_v16 }
 0x1fc   :  { %v2689_v3 = vpop.eup %2688  ;;  %2043 = vst [vmem:[%s4441_s5 + $0x98] sm:$0xff] %v1871_v62  ;;  %v1872_v53 = vmul.f32 %v2687_v0, %v3901_v33  ;;  %2708 = vpow2.f32 %v2239_v37 }
 0x1fd   :  { %v2691_v21 = vpop.eup %2690  ;;  %2075 = vst [vmem:[%s4441_s5 + $0x198] sm:$0xff] %v1935_v49  ;;  %v1936_v14 = vmul.f32 %v2689_v3, %v3904_v19  ;;  %2710 = vpow2.f32 %v2176_v59  ;;  %v4108_v31 = vadd.f32 %v2976_v43, %v911_v17  ;;  %v849_v3 = vmul.f32 %v2972_v39, %v4510_v51  ;;  %v4511_v17 = vld [vmem:[#allocation33_spill] sm:$0xff] }
 0x1fe   :  { %v2693_v33 = vpop.eup %2692  ;;  %1980 = vst [vmem:[%s4440_s4 + $0xa0] sm:$0xff] %v1872_v53  ;;  %v1873_v37 = vmul.f32 %v2691_v21, %v3908_v27  ;;  %2712 = vpow2.f32 %v2240_v8  ;;  %v913_v21 = vmul.f32 %v2972_v39, %v4511_v17  ;;  %v852_v51 = vmul.f32 %v2970_v38, %v3664_v5 }
 0x1ff   :  { %v2695_v19 = vpop.eup %2694  ;;  %2012 = vst [vmem:[%s4440_s4 + $0x1a0] sm:$0xff] %v1936_v14  ;;  %v1937_v59 = vmul.f32 %v2693_v33, %v3923_v36  ;;  %2714 = vpow2.f32 %v2177_v35  ;;  %v2245_v4 = vmul.f32 -1.442695, %v4108_v31  ;;  %v916_v17 = vmul.f32 %v2970_v38, %v3666_v32 }
 0x200   :  { %v2697_v27 = vpop.eup %2696  ;;  %2044 = vst [vmem:[%s4441_s5 + $0xa0] sm:$0xff] %v1873_v37  ;;  %v1874_v8 = vmul.f32 %v2695_v19, %v3929_v58  ;;  %2716 = vpow2.f32 %v2241_v48  ;;  %v2244_v48 = vmul.f32 -1.442695, %v4092_v54 }
 0x201   :  { %v2699_v36 = vpop.eup %2698  ;;  %2076 = vst [vmem:[%s4441_s5 + $0x1a0] sm:$0xff] %v1937_v59  ;;  %v1938_v35 = vmul.f32 %v2697_v27, %v3935_v12  ;;  %2718 = vpow2.f32 %v2178_v29  ;;  %v4159_v27 = vadd.f32 %v2976_v43, %v849_v3 }
 0x202   :  { %v2701_v46 = vpop.eup %2700  ;;  %1981 = vst [vmem:[%s4440_s4 + $0xa8] sm:$0xff] %v1874_v8  ;;  %v1875_v58 = vmul.f32 %v2699_v36, %v3944_v44  ;;  %2720 = vpow2.f32 %v2242_v63  ;;  %v4512_v8 = vld [vmem:[#allocation34_spill] sm:$0xff] }
 0x203   :  { %v2703_v28 = vpop.eup %2702  ;;  %2013 = vst [vmem:[%s4440_s4 + $0x1a8] sm:$0xff] %v1938_v35  ;;  %v1939_v12 = vmul.f32 %v2701_v46, %v3954_v1  ;;  %2722 = vpow2.f32 %v2179_v57 }
 0x204   :  { %v2705_v6 = vpop.eup %2704  ;;  %2045 = vst [vmem:[%s4441_s5 + $0xa8] sm:$0xff] %v1875_v58  ;;  %v1876_v44 = vmul.f32 %v2703_v28, %v3962_v15  ;;  %2724 = vpow2.f32 %v2243_v10  ;;  %v4508_v15 = vld [vmem:[#allocation9_spill] sm:$0xff]  ;;  %v850_v10 = vmul.f32 %v2970_v38, %v4512_v8  ;;  %v4513_v28 = vld [vmem:[#allocation35_spill] sm:$0xff] }
 0x205   :  { %v2707_v7 = vpop.eup %2706  ;;  %2077 = vst [vmem:[%s4441_s5 + $0x1a8] sm:$0xff] %v1939_v12  ;;  %v1940_v1 = vmul.f32 %v2705_v6, %v3970_v13  ;;  %2726 = vpow2.f32 %v2180_v9  ;;  %v848_v23 = vmul.f32 %v2970_v38, %v4508_v15  ;;  %v4509_v13 = vld [vmem:[#allocation31_spill] sm:$0xff]  ;;  %v4164_v9 = vadd.f32 %v2976_v43, %v913_v21 }
 0x206   :  { %v2709_v24 = vpop.eup %2708  ;;  %1982 = vst [vmem:[%s4440_s4 + $0xb0] sm:$0xff] %v1876_v44  ;;  %v1877_v62 = vmul.f32 %v2707_v7, %v3978_v50  ;;  %2728 = vpow2.f32 %v2244_v48  ;;  %v912_v49 = vmul.f32 %v2970_v38, %v4509_v13  ;;  %v914_v12 = vmul.f32 %v2970_v38, %v4513_v28 }
 0x207   :  { %v2711_v60 = vpop.eup %2710  ;;  %2014 = vst [vmem:[%s4440_s4 + $0x1b0] sm:$0xff] %v1940_v1  ;;  %v1557_v0 = vadd.f32 1.0, %v2709_v24  ;;  %2730 = vpow2.f32 %v2181_v22  ;;  %v4153_v33 = vadd.f32 %v2974_v40, %v848_v23  ;;  %v4174_v15 = vadd.f32 %v2974_v40, %v850_v10 }
 0x208   :  { %v2713_v18 = vpop.eup %2712  ;;  %2046 = vst [vmem:[%s4441_s5 + $0xb0] sm:$0xff] %v1877_v62  ;;  %v1494_v50 = vadd.f32 1.0, %v2711_v60  ;;  %2732 = vpow2.f32 %v2245_v4  ;;  %v4156_v19 = vadd.f32 %v2974_v40, %v912_v49  ;;  %v4514_v4 = vld [vmem:[#allocation36_spill] sm:$0xff]  ;;  %v2183_v62 = vmul.f32 -1.442695, %v4159_v27 }
 0x209   :  { %v2715_v53 = vpop.eup %2714  ;;  %2734 = vrcp.f32 %v1557_v0  ;;  %v1558_v26 = vadd.f32 1.0, %v2713_v18  ;;  %v2182_v48 = vmul.f32 -1.442695, %v4153_v33  ;;  %v851_v7 = vmul.f32 %v2972_v39, %v4514_v4 }
 0x20a   :  { %v2717_v14 = vpop.eup %2716  ;;  %2736 = vrcp.f32 %v1494_v50  ;;  %v1495_v29 = vadd.f32 1.0, %v2715_v53  ;;  %v2246_v44 = vmul.f32 -1.442695, %v4156_v19  ;;  %v2247_v0 = vmul.f32 -1.442695, %v4164_v9 }
 0x20b   :  { %v2719_v37 = vpop.eup %2718  ;;  %2738 = vrcp.f32 %v1558_v26  ;;  %v1559_v63 = vadd.f32 1.0, %v2717_v14  ;;  %v915_v13 = vmul.f32 %v2972_v39, %v3635_v25  ;;  %v4180_v50 = vadd.f32 %v2974_v40, %v914_v12 }
 0x20c   :  { %v2721_v59 = vpop.eup %2720  ;;  %2740 = vrcp.f32 %v1495_v29  ;;  %v1496_v57 = vadd.f32 1.0, %v2719_v37  ;;  %v4185_v26 = vadd.f32 %v2976_v43, %v851_v7  ;;  %v2184_v14 = vmul.f32 -1.442695, %v4174_v15 }
 0x20d   :  { %v2723_v36 = vpop.eup %2722  ;;  %2742 = vrcp.f32 %v1559_v63  ;;  %v1560_v35 = vadd.f32 1.0, %v2721_v59  ;;  %v853_v29 = vmul.f32 %v2972_v39, %v3676_v56  ;;  %v4195_v63 = vadd.f32 %v2976_v43, %v915_v13 }
 0x20e   :  { %v2725_v46 = vpop.eup %2724  ;;  %2744 = vrcp.f32 %v1496_v57  ;;  %v1497_v58 = vadd.f32 1.0, %v2723_v36  ;;  %v917_v59 = vmul.f32 %v2972_v39, %v3678_v11  ;;  %v4204_v56 = vadd.f32 %v2974_v40, %v852_v51 }
 0x20f   :  { %v2727_v22 = vpop.eup %2726  ;;  %2746 = vrcp.f32 %v1560_v35  ;;  %v1561_v6 = vadd.f32 1.0, %v2725_v46  ;;  %v2248_v8 = vmul.f32 -1.442695, %v4180_v50  ;;  %v4214_v10 = vadd.f32 %v2974_v40, %v916_v17  ;;  %v4517_v17 = vld [vmem:[#allocation39_spill] sm:$0xff] }
 0x210   :  { %v2729_v1 = vpop.eup %2728  ;;  %2748 = vrcp.f32 %v1497_v58  ;;  %v1498_v24 = vadd.f32 1.0, %v2727_v22  ;;  %v2185_v36 = vmul.f32 -1.442695, %v4185_v26  ;;  %v4222_v35 = vadd.f32 %v2976_v43, %v853_v29 }
 0x211   :  { %v2731_v23 = vpop.eup %2730  ;;  %2750 = vrcp.f32 %v1561_v6  ;;  %v1562_v60 = vadd.f32 1.0, %v2729_v1  ;;  %v2249_v58 = vmul.f32 -1.442695, %v4195_v63  ;;  %v2186_v12 = vmul.f32 -1.442695, %v4204_v56 }
 0x212   :  { %v2733_v49 = vpop.eup %2732  ;;  %2752 = vrcp.f32 %v1498_v24  ;;  %v1499_v18 = vadd.f32 1.0, %v2731_v23  ;;  %v2187_v7 = vmul.f32 -1.442695, %v4222_v35 }
 0x213   :  { %v2735_v3 = vpop.eup %2734  ;;  %2754 = vrcp.f32 %v1562_v60  ;;  %v1563_v53 = vadd.f32 1.0, %v2733_v49 }
 0x214   :  { %v2737_v21 = vpop.eup %2736  ;;  %v1941_v25 = vmul.f32 %v2735_v3, %v4023_v42  ;;  %2756 = vrcp.f32 %v1499_v18 }
 0x215   :  { %v2739_v37 = vpop.eup %2738  ;;  %v1878_v5 = vmul.f32 %v2737_v21, %v4028_v45  ;;  %2758 = vrcp.f32 %v1563_v53  ;;  %v854_v45 = vmul.f32 %v2970_v38, %v3688_v61  ;;  %v919_v21 = vmul.f32 %v2972_v39, %v4517_v17 }
 0x216   :  { %v2741_v32 = vpop.eup %2740  ;;  %2078 = vst [vmem:[%s4441_s5 + $0x1b0] sm:$0xff] %v1941_v25  ;;  %v1942_v42 = vmul.f32 %v2739_v37, %v4031_v20  ;;  %2760 = vpow2.f32 %v2182_v48  ;;  %v4230_v48 = vadd.f32 %v2976_v43, %v917_v59 }
 0x217   :  { %v2743_v57 = vpop.eup %2742  ;;  %1983 = vst [vmem:[%s4440_s4 + $0xb8] sm:$0xff] %v1878_v5  ;;  %v1879_v11 = vmul.f32 %v2741_v32, %v4034_v2  ;;  %2762 = vpow2.f32 %v2246_v44  ;;  %v4238_v22 = vadd.f32 %v2974_v40, %v854_v45  ;;  %v2250_v44 = vmul.f32 -1.442695, %v4214_v10 }
 0x218   :  { %v2745_v20 = vpop.eup %2744  ;;  %2015 = vst [vmem:[%s4440_s4 + $0x1b8] sm:$0xff] %v1942_v42  ;;  %v1943_v61 = vmul.f32 %v2743_v57, %v4038_v41  ;;  %2764 = vpow2.f32 %v2183_v62  ;;  %v2251_v24 = vmul.f32 -1.442695, %v4230_v48 }
 0x219   :  { %v2747_v2 = vpop.eup %2746  ;;  %2047 = vst [vmem:[%s4441_s5 + $0xb8] sm:$0xff] %v1879_v11  ;;  %v1880_v46 = vmul.f32 %v2745_v20, %v4053_v47  ;;  %2766 = vpow2.f32 %v2247_v0  ;;  %v2188_v23 = vmul.f32 -1.442695, %v4238_v22  ;;  %v4287_v11 = vadd.f32 %v2976_v43, %v919_v21 }
 0x21a   :  { %v2749_v41 = vpop.eup %2748  ;;  %2079 = vst [vmem:[%s4441_s5 + $0x1b8] sm:$0xff] %v1943_v61  ;;  %v1944_v28 = vmul.f32 %v2747_v2, %v4059_v52  ;;  %2768 = vpow2.f32 %v2184_v14  ;;  %v4518_v61 = vld [vmem:[#allocation40_spill] sm:$0xff] }
 0x21b   :  { %v2751_v47 = vpop.eup %2750  ;;  %1984 = vst [vmem:[%s4440_s4 + $0xc0] sm:$0xff] %v1880_v46  ;;  %v1881_v6 = vmul.f32 %v2749_v41, %v4065_v34  ;;  %2770 = vpow2.f32 %v2248_v8  ;;  %v4519_v41 = vld [vmem:[#allocation41_spill] sm:$0xff] }
 0x21c   :  { %v2753_v4 = vpop.eup %2752  ;;  %2016 = vst [vmem:[%s4440_s4 + $0x1c0] sm:$0xff] %v1944_v28  ;;  %v1945_v52 = vmul.f32 %v2751_v47, %v4074_v55  ;;  %2772 = vpow2.f32 %v2185_v36  ;;  %v856_v36 = vmul.f32 %v2970_v38, %v4518_v61  ;;  %v920_v28 = vmul.f32 %v2970_v38, %v4519_v41 }
 0x21d   :  { %v2755_v1 = vpop.eup %2754  ;;  %2048 = vst [vmem:[%s4441_s5 + $0xc0] sm:$0xff] %v1881_v6  ;;  %v1882_v34 = vmul.f32 %v2753_v4, %v4084_v30  ;;  %2774 = vpow2.f32 %v2249_v58 }
 0x21e   :  { %v2757_v62 = vpop.eup %2756  ;;  %2080 = vst [vmem:[%s4441_s5 + $0x1c0] sm:$0xff] %v1945_v52  ;;  %v1946_v55 = vmul.f32 %v2755_v1, %v4092_v54  ;;  %2776 = vpow2.f32 %v2186_v12  ;;  %v4515_v54 = vld [vmem:[#allocation37_spill] sm:$0xff]  ;;  %v2253_v1 = vmul.f32 -1.442695, %v4287_v11 }
 0x21f   :  { %v2759_v60 = vpop.eup %2758  ;;  %1985 = vst [vmem:[%s4440_s4 + $0xc8] sm:$0xff] %v1882_v34  ;;  %v1883_v30 = vmul.f32 %v2757_v62, %v4100_v16  ;;  %2778 = vpow2.f32 %v2250_v44  ;;  %v918_v49 = vmul.f32 %v2970_v38, %v4515_v54  ;;  %v4516_v16 = vld [vmem:[#allocation38_spill] sm:$0xff]  ;;  %v4521_v34 = vld [vmem:[#allocation43_spill] sm:$0xff]  ;;  %v4306_v54 = vadd.f32 %v2974_v40, %v920_v28 }
 0x220   :  { %v2761_v0 = vpop.eup %2760  ;;  %2017 = vst [vmem:[%s4440_s4 + $0x1c8] sm:$0xff] %v1946_v55  ;;  %v1947_v13 = vmul.f32 %v2759_v60, %v4108_v31  ;;  %2780 = vpow2.f32 %v2187_v7  ;;  %v855_v3 = vmul.f32 %v2972_v39, %v4516_v16  ;;  %v4520_v44 = vld [vmem:[#allocation42_spill] sm:$0xff]  ;;  %v4522_v60 = vld [vmem:[#allocation44_spill] sm:$0xff] }
 0x221   :  { %v2763_v18 = vpop.eup %2762  ;;  %2049 = vst [vmem:[%s4441_s5 + $0xc8] sm:$0xff] %v1883_v30  ;;  %v1500_v51 = vadd.f32 1.0, %v2761_v0  ;;  %2782 = vpow2.f32 %v2251_v24  ;;  %v4281_v5 = vadd.f32 %v2974_v40, %v918_v49  ;;  %v857_v4 = vmul.f32 %v2972_v39, %v4520_v44  ;;  %v4523_v49 = vld [vmem:[#allocation45_spill] sm:$0xff] }
 0x222   :  { %v2765_v53 = vpop.eup %2764  ;;  %2081 = vst [vmem:[%s4441_s5 + $0x1c8] sm:$0xff] %v1947_v13  ;;  %v1564_v31 = vadd.f32 1.0, %v2763_v18  ;;  %2784 = vpow2.f32 %v2188_v23  ;;  %v4284_v42 = vadd.f32 %v2976_v43, %v855_v3  ;;  %v921_v24 = vmul.f32 %v2972_v39, %v4521_v34 }
 0x223   :  { %v2767_v25 = vpop.eup %2766  ;;  %2786 = vrcp.f32 %v1500_v51  ;;  %v1501_v14 = vadd.f32 1.0, %v2765_v53  ;;  %v2252_v58 = vmul.f32 -1.442695, %v4281_v5  ;;  %v4301_v23 = vadd.f32 %v2974_v40, %v856_v36  ;;  %v4524_v53 = vld [vmem:[#allocation46_spill] sm:$0xff] }
 0x224   :  { %v2769_v29 = vpop.eup %2768  ;;  %2788 = vrcp.f32 %v1564_v31  ;;  %v1565_v37 = vadd.f32 1.0, %v2767_v25  ;;  %v2189_v6 = vmul.f32 -1.442695, %v4284_v42  ;;  %v858_v30 = vmul.f32 %v2970_v38, %v4522_v60 }
 0x225   :  { %v2771_v59 = vpop.eup %2770  ;;  %2790 = vrcp.f32 %v1501_v14  ;;  %v1502_v32 = vadd.f32 1.0, %v2769_v29  ;;  %v922_v18 = vmul.f32 %v2970_v38, %v4523_v49  ;;  %v4311_v3 = vadd.f32 %v2976_v43, %v857_v4  ;;  %v4525_v14 = vld [vmem:[#allocation47_spill] sm:$0xff] }
 0x226   :  { %v2773_v45 = vpop.eup %2772  ;;  %2792 = vrcp.f32 %v1565_v37  ;;  %v1566_v57 = vadd.f32 1.0, %v2771_v59  ;;  %v859_v31 = vmul.f32 %v2972_v39, %v4524_v53  ;;  %v4317_v25 = vadd.f32 %v2976_v43, %v921_v24 }
 0x227   :  { %v2775_v8 = vpop.eup %2774  ;;  %2794 = vrcp.f32 %v1502_v32  ;;  %v1503_v20 = vadd.f32 1.0, %v2773_v45  ;;  %v923_v29 = vmul.f32 %v2972_v39, %v4525_v14  ;;  %v2190_v59 = vmul.f32 -1.442695, %v4301_v23 }
 0x228   :  { %v2777_v2 = vpop.eup %2776  ;;  %2796 = vrcp.f32 %v1566_v57  ;;  %v1567_v46 = vadd.f32 1.0, %v2775_v8  ;;  %v4324_v32 = vadd.f32 %v2974_v40, %v858_v30  ;;  %v2254_v57 = vmul.f32 -1.442695, %v4306_v54 }
 0x229   :  { %v2779_v12 = vpop.eup %2778  ;;  %2798 = vrcp.f32 %v1503_v20  ;;  %v1504_v47 = vadd.f32 1.0, %v2777_v2  ;;  %v4332_v39 = vadd.f32 %v2974_v40, %v922_v18  ;;  %v2191_v20 = vmul.f32 -1.442695, %v4311_v3 }
 0x22a   :  { %v2781_v52 = vpop.eup %2780  ;;  %2800 = vrcp.f32 %v1567_v46  ;;  %v1568_v7 = vadd.f32 1.0, %v2779_v12  ;;  %v4340_v61 = vadd.f32 %v2976_v43, %v859_v31  ;;  %v2255_v36 = vmul.f32 -1.442695, %v4317_v25 }
 0x22b   :  { %v2783_v62 = vpop.eup %2782  ;;  %2802 = vrcp.f32 %v1504_v47  ;;  %v1505_v55 = vadd.f32 1.0, %v2781_v52  ;;  %v4348_v2 = vadd.f32 %v2976_v43, %v923_v29  ;;  %v2256_v43 = vmul.f32 -1.442695, %v4332_v39 }
 0x22c   :  { %v2785_v0 = vpop.eup %2784  ;;  %2804 = vrcp.f32 %v1568_v7  ;;  %v1569_v13 = vadd.f32 1.0, %v2783_v62  ;;  %v2193_v12 = vmul.f32 -1.442695, %v4340_v61 }
 0x22d   :  { %v2787_v51 = vpop.eup %2786  ;;  %2806 = vrcp.f32 %v1505_v55  ;;  %v1506_v16 = vadd.f32 1.0, %v2785_v0 }
 0x22e   :  { %v2789_v17 = vpop.eup %2788  ;;  %v1884_v21 = vmul.f32 %v2787_v51, %v4153_v33  ;;  %2808 = vrcp.f32 %v1569_v13 }
 0x22f   :  { %v2791_v38 = vpop.eup %2790  ;;  %v1948_v37 = vmul.f32 %v2789_v17, %v4156_v19  ;;  %2810 = vrcp.f32 %v1506_v16 }
 0x230   :  { %v2793_v45 = vpop.eup %2792  ;;  %1986 = vst [vmem:[%s4440_s4 + $0xd0] sm:$0xff] %v1884_v21  ;;  %v1885_v33 = vmul.f32 %v2791_v38, %v4159_v27  ;;  %2812 = vpow2.f32 %v2252_v58  ;;  %v2192_v58 = vmul.f32 -1.442695, %v4324_v32 }
 0x231   :  { %v2795_v19 = vpop.eup %2794  ;;  %2018 = vst [vmem:[%s4440_s4 + $0x1d0] sm:$0xff] %v1948_v37  ;;  %v1949_v8 = vmul.f32 %v2793_v45, %v4164_v9  ;;  %2814 = vpow2.f32 %v2189_v6  ;;  %v2257_v6 = vmul.f32 -1.442695, %v4348_v2 }
 0x232   :  { %v2797_v27 = vpop.eup %2796  ;;  %2050 = vst [vmem:[%s4441_s5 + $0xd0] sm:$0xff] %v1885_v33  ;;  %v1886_v40 = vmul.f32 %v2795_v19, %v4174_v15  ;;  %2816 = vpow2.f32 %v2253_v1 }
 0x233   :  { %v2799_v9 = vpop.eup %2798  ;;  %2082 = vst [vmem:[%s4441_s5 + $0x1d0] sm:$0xff] %v1949_v8  ;;  %v1950_v46 = vmul.f32 %v2797_v27, %v4180_v50  ;;  %2818 = vpow2.f32 %v2190_v59 }
 0x234   :  { %v2801_v41 = vpop.eup %2800  ;;  %1987 = vst [vmem:[%s4440_s4 + $0xd8] sm:$0xff] %v1886_v40  ;;  %v1887_v15 = vmul.f32 %v2799_v9, %v4185_v26  ;;  %2820 = vpow2.f32 %v2254_v57 }
 0x235   :  { %v2803_v28 = vpop.eup %2802  ;;  %2019 = vst [vmem:[%s4440_s4 + $0x1d8] sm:$0xff] %v1950_v46  ;;  %v1951_v50 = vmul.f32 %v2801_v41, %v4195_v63  ;;  %2822 = vpow2.f32 %v2191_v20 }
 0x236   :  { %v2805_v47 = vpop.eup %2804  ;;  %2051 = vst [vmem:[%s4441_s5 + $0xd8] sm:$0xff] %v1887_v15  ;;  %v1888_v26 = vmul.f32 %v2803_v28, %v4204_v56  ;;  %2824 = vpow2.f32 %v2255_v36 }
 0x237   :  { %v2807_v44 = vpop.eup %2806  ;;  %2083 = vst [vmem:[%s4441_s5 + $0x1d8] sm:$0xff] %v1951_v50  ;;  %v1952_v63 = vmul.f32 %v2805_v47, %v4214_v10  ;;  %2826 = vpow2.f32 %v2192_v58 }
 0x238   :  { %v2809_v4 = vpop.eup %2808  ;;  %1988 = vst [vmem:[%s4440_s4 + $0xe0] sm:$0xff] %v1888_v26  ;;  %v1889_v52 = vmul.f32 %v2807_v44, %v4222_v35  ;;  %2828 = vpow2.f32 %v2256_v43 }
 0x239   :  { %v2811_v56 = vpop.eup %2810  ;;  %2020 = vst [vmem:[%s4440_s4 + $0x1e0] sm:$0xff] %v1952_v63  ;;  %v1953_v7 = vmul.f32 %v2809_v4, %v4230_v48  ;;  %2830 = vpow2.f32 %v2193_v12 }
 0x23a   :  { %v2813_v1 = vpop.eup %2812  ;;  %2052 = vst [vmem:[%s4441_s5 + $0xe0] sm:$0xff] %v1889_v52  ;;  %v1890_v10 = vmul.f32 %v2811_v56, %v4238_v22  ;;  %2832 = vpow2.f32 %v2257_v6 }
 0x23b   :  { %v2815_v34 = vpop.eup %2814  ;;  %2084 = vst [vmem:[%s4441_s5 + $0x1e0] sm:$0xff] %v1953_v7  ;;  %v1570_v35 = vadd.f32 1.0, %v2813_v1 }
 0x23c   :  { %v2817_v24 = vpop.eup %2816  ;;  %1989 = vst [vmem:[%s4440_s4 + $0xe8] sm:$0xff] %v1890_v10  ;;  %v1507_v48 = vadd.f32 1.0, %v2815_v34 }
 0x23d   :  { %v2819_v62 = vpop.eup %2818  ;;  %2834 = vrcp.f32 %v1570_v35  ;;  %v1571_v55 = vadd.f32 1.0, %v2817_v24 }
 0x23e   :  { %v2821_v60 = vpop.eup %2820  ;;  %2836 = vrcp.f32 %v1507_v48  ;;  %v1508_v30 = vadd.f32 1.0, %v2819_v62 }
 0x23f   :  { %v2823_v22 = vpop.eup %2822  ;;  %2838 = vrcp.f32 %v1571_v55  ;;  %v1572_v0 = vadd.f32 1.0, %v2821_v60 }
 0x240   :  { %v2825_v13 = vpop.eup %2824  ;;  %2840 = vrcp.f32 %v1508_v30  ;;  %v1509_v49 = vadd.f32 1.0, %v2823_v22 }
 0x241   :  { %v2827_v18 = vpop.eup %2826  ;;  %2842 = vrcp.f32 %v1572_v0  ;;  %v1573_v51 = vadd.f32 1.0, %v2825_v13 }
 0x242   :  { %v2829_v16 = vpop.eup %2828  ;;  %2844 = vrcp.f32 %v1509_v49  ;;  %v1510_v53 = vadd.f32 1.0, %v2827_v18 }
 0x243   :  { %v2831_v31 = vpop.eup %2830  ;;  %2846 = vrcp.f32 %v1573_v51  ;;  %v1574_v17 = vadd.f32 1.0, %v2829_v16 }
 0x244   :  { %v2833_v21 = vpop.eup %2832  ;;  %2848 = vrcp.f32 %v1510_v53  ;;  %v1511_v14 = vadd.f32 1.0, %v2831_v31 }
 0x245   :  { %2850 = vrcp.f32 %v1574_v17  ;;  %v1575_v29 = vadd.f32 1.0, %v2833_v21 }
 0x246   :  { %2852 = vrcp.f32 %v1511_v14 }
 0x247   :  { %v2835_v38 = vpop.eup %2834  ;;  %2854 = vrcp.f32 %v1575_v29 }
 0x248   :  { %v2837_v37 = vpop.eup %2836  ;;  %v1954_v59 = vmul.f32 %v2835_v38, %v4281_v5 }
 0x249   :  { %v2839_v45 = vpop.eup %2838  ;;  %v1891_v33 = vmul.f32 %v2837_v37, %v4284_v42 }
 0x24a   :  { %v2841_v57 = vpop.eup %2840  ;;  %2021 = vst [vmem:[%s4440_s4 + $0x1e8] sm:$0xff] %v1954_v59  ;;  %v1955_v19 = vmul.f32 %v2839_v45, %v4287_v11 }
 0x24b   :  { %v2843_v8 = vpop.eup %2842  ;;  %2053 = vst [vmem:[%s4441_s5 + $0xe8] sm:$0xff] %v1891_v33  ;;  %v1892_v20 = vmul.f32 %v2841_v57, %v4301_v23 }
 0x24c   :  { %v2845_v27 = vpop.eup %2844  ;;  %2085 = vst [vmem:[%s4441_s5 + $0x1e8] sm:$0xff] %v1955_v19  ;;  %v1956_v5 = vmul.f32 %v2843_v8, %v4306_v54 }
 0x24d   :  { %v2847_v42 = vpop.eup %2846  ;;  %1990 = vst [vmem:[%s4440_s4 + $0xf0] sm:$0xff] %v1892_v20  ;;  %v1893_v11 = vmul.f32 %v2845_v27, %v4311_v3 }
 0x24e   :  { %v2849_v40 = vpop.eup %2848  ;;  %2022 = vst [vmem:[%s4440_s4 + $0x1f0] sm:$0xff] %v1956_v5  ;;  %v1957_v23 = vmul.f32 %v2847_v42, %v4317_v25 }
 0x24f   :  { %v2851_v36 = vpop.eup %2850  ;;  %2054 = vst [vmem:[%s4441_s5 + $0xf0] sm:$0xff] %v1893_v11  ;;  %v1894_v54 = vmul.f32 %v2849_v40, %v4324_v32 }
 0x250   :  { %v2853_v9 = vpop.eup %2852  ;;  %2086 = vst [vmem:[%s4441_s5 + $0x1f0] sm:$0xff] %v1957_v23  ;;  %v1958_v3 = vmul.f32 %v2851_v36, %v4332_v39 }
 0x251   :  { %v2855_v46 = vpop.eup %2854  ;;  %1991 = vst [vmem:[%s4440_s4 + $0xf8] sm:$0xff] %v1894_v54  ;;  %v1895_v25 = vmul.f32 %v2853_v9, %v4340_v61 }
 0x252   :  { %2023 = vst [vmem:[%s4440_s4 + $0x1f8] sm:$0xff] %v1958_v3  ;;  %v1959_v32 = vmul.f32 %v2855_v46, %v4348_v2 }
 0x253   :  { %2055 = vst [vmem:[%s4441_s5 + $0xf8] sm:$0xff] %v1895_v25 }
 0x254   :  { %2087 = vst [vmem:[%s4441_s5 + $0x1f8] sm:$0xff] %v1959_v32 }
 0x255   :  { %2096 = vsyncpa [#allocation3], 1 }
 0x256   :  { %2097 = vsyncpa [#allocation5], 1 }

// kernel: c2psa_lca_forward.7
= control target key start
LH: loop header
LB: loop body
LE: loop exit
PB: predicated region body
PF: predicated region fallthrough
CT: control target
= control target key end

     0   :  { %v3311_v2 = vmov 0   ;;  %s4697_s0 = inlined_call_operand.vmem [shape: f32[512,128], index: 0, kind: input, shape index: {}]   ;;  %s4698_s1 = inlined_call_operand.vmem [shape: f32[512,128], index: 1, kind: input, shape index: {}]   ;;  %s4699_s2 = inlined_call_operand.vmem [shape: bf16[128,256], index: 2, kind: input, shape index: {}]   ;;  %s4700_s3 = inlined_call_operand.vmem [shape: bf16[128,256], index: 3, kind: input, shape index: {}]   ;;  %s4701_s4 = inlined_call_operand.vmem [shape: f32[1,256], index: 4, kind: input, shape index: {}]   ;;  %s4702_s5 = inlined_call_operand.vmem [shape: f32[1,256], index: 5, kind: input, shape index: {}]   ;;  %s4703_s6 = inlined_call_operand.hbm [shape: f32[512,256], index: 6, kind: output, shape index: {}]  }
   0x1   :  { %v2727_v0 = vld [vmem:[%s4700_s3 + $0x4] ss:$8 sps:$4 sm:$0xff]   ;;  %361 = vmatprep.mubr.bf16.mxu1 %v3311_v2  ;;  %794 = vmatprep.mubr.bf16.mxu0 %v3311_v2  ;;  %v2731_v3 = vld [vmem:[%s4700_s3] ss:$8 sps:$4 sm:$0xff]   ;;  %v2733_v5 = vld [vmem:[%s4700_s3 + $0x14] ss:$8 sps:$4 sm:$0xff]  }
   0x2   :  { %v2729_v1 = vld [vmem:[%s4699_s2 + $0x4] ss:$8 sps:$4 sm:$0xff]   ;;  %329 = vmatprep.subr.bf16.mxu1 %v2727_v0  ;;  %v2732_v4 = vld [vmem:[%s4699_s2] ss:$8 sps:$4 sm:$0xff]   ;;  %v2735_v6 = vld [vmem:[%s4699_s2 + $0x14] ss:$8 sps:$4 sm:$0xff]  }
   0x3   :  { %762 = vmatprep.subr.bf16.mxu0 %v2729_v1  ;;  %330 = vmatpush1.bf16.msra.mxu1 %v2731_v3  ;;  %v2737_v7 = vld [vmem:[%s4700_s3 + $0x10] ss:$8 sps:$4 sm:$0xff]   ;;  %v2739_v9 = vld [vmem:[%s4700_s3 + $0x24] ss:$8 sps:$4 sm:$0xff]   ;;  %v2743_v11 = vld [vmem:[%s4700_s3 + $0x20] ss:$8 sps:$4 sm:$0xff]  }
   0x4   :  { %763 = vmatpush1.bf16.msra.mxu0 %v2732_v4  ;;  %331 = vmatprep.subr.bf16.mxu1 %v2733_v5  ;;  %v2738_v8 = vld [vmem:[%s4699_s2 + $0x10] ss:$8 sps:$4 sm:$0xff]   ;;  %v2741_v10 = vld [vmem:[%s4699_s2 + $0x24] ss:$8 sps:$4 sm:$0xff]   ;;  %v2744_v12 = vld [vmem:[%s4699_s2 + $0x20] ss:$8 sps:$4 sm:$0xff]  }
   0x5   :  { %764 = vmatprep.subr.bf16.mxu0 %v2735_v6  ;;  %v2745_v13 = vld [vmem:[%s4700_s3 + $0x34] ss:$8 sps:$4 sm:$0xff]   ;;  %v2749_v15 = vld [vmem:[%s4700_s3 + $0x30] ss:$8 sps:$4 sm:$0xff]   ;;  %v2751_v17 = vld [vmem:[%s4700_s3 + $0x44] ss:$8 sps:$4 sm:$0xff]  }
   0x6   :  { %v2747_v14 = vld [vmem:[%s4699_s2 + $0x34] ss:$8 sps:$4 sm:$0xff]   ;;  %v2750_v16 = vld [vmem:[%s4699_s2 + $0x30] ss:$8 sps:$4 sm:$0xff]   ;;  %v2753_v18 = vld [vmem:[%s4699_s2 + $0x44] ss:$8 sps:$4 sm:$0xff]  }
   0x7   :  { %332 = vmatpush1.bf16.msra.mxu1 %v2737_v7  ;;  %v2755_v19 = vld [vmem:[%s4700_s3 + $0x40] ss:$8 sps:$4 sm:$0xff]   ;;  %v2757_v21 = vld [vmem:[%s4700_s3 + $0x54] ss:$8 sps:$4 sm:$0xff]   ;;  %v2761_v23 = vld [vmem:[%s4700_s3 + $0x50] ss:$8 sps:$4 sm:$0xff]  }
   0x8   :  { %765 = vmatpush1.bf16.msra.mxu0 %v2738_v8  ;;  %333 = vmatprep.subr.bf16.mxu1 %v2739_v9  ;;  %v2756_v20 = vld [vmem:[%s4699_s2 + $0x40] ss:$8 sps:$4 sm:$0xff]   ;;  %v2759_v22 = vld [vmem:[%s4699_s2 + $0x54] ss:$8 sps:$4 sm:$0xff]   ;;  %v2762_v24 = vld [vmem:[%s4699_s2 + $0x50] ss:$8 sps:$4 sm:$0xff]  }
   0x9   :  { %766 = vmatprep.subr.bf16.mxu0 %v2741_v10  ;;  %v2763_v25 = vld [vmem:[%s4700_s3 + $0x64] ss:$8 sps:$4 sm:$0xff]   ;;  %v2767_v27 = vld [vmem:[%s4700_s3 + $0x60] ss:$8 sps:$4 sm:$0xff]   ;;  %v2769_v29 = vld [vmem:[%s4700_s3 + $0x74] ss:$8 sps:$4 sm:$0xff]  }
   0xa   :  { %v2765_v26 = vld [vmem:[%s4699_s2 + $0x64] ss:$8 sps:$4 sm:$0xff]   ;;  %v2768_v28 = vld [vmem:[%s4699_s2 + $0x60] ss:$8 sps:$4 sm:$0xff]   ;;  %v2771_v30 = vld [vmem:[%s4699_s2 + $0x74] ss:$8 sps:$4 sm:$0xff]  }
   0xb   :  { %334 = vmatpush1.bf16.msra.mxu1 %v2743_v11  ;;  %v2773_v31 = vld [vmem:[%s4700_s3 + $0x70] ss:$8 sps:$4 sm:$0xff]   ;;  %v137_v33 = vld [vmem:[%s4698_s1] sm:$0xff]  ;;  %v138_v34 = vld [vmem:[%s4698_s1 + $0x8] sm:$0xff] }
   0xc   :  { %767 = vmatpush1.bf16.msra.mxu0 %v2744_v12  ;;  %335 = vmatprep.subr.bf16.mxu1 %v2745_v13  ;;  %v2774_v32 = vld [vmem:[%s4699_s2 + $0x70] ss:$8 sps:$4 sm:$0xff]   ;;  %v25_v35 = vld [vmem:[%s4697_s0] sm:$0xff]  ;;  %v26_v36 = vld [vmem:[%s4697_s0 + $0x8] sm:$0xff]  ;;  %v201_v37 = vpack.c.bf16 %v138_v34, %v137_v33 }
   0xd   :  { %768 = vmatprep.subr.bf16.mxu0 %v2747_v14  ;;  %v89_v38 = vpack.c.bf16 %v26_v36, %v25_v35  ;;  %v139_v39 = vld [vmem:[%s4698_s1 + $0x10] sm:$0xff]  ;;  %v140_v40 = vld [vmem:[%s4698_s1 + $0x18] sm:$0xff]  ;;  %v141_v45 = vld [vmem:[%s4698_s1 + $0x20] sm:$0xff] }
   0xe   :  { %v27_v41 = vld [vmem:[%s4697_s0 + $0x10] sm:$0xff]  ;;  %v28_v42 = vld [vmem:[%s4697_s0 + $0x18] sm:$0xff]  ;;  %v202_v43 = vpack.c.bf16 %v140_v40, %v139_v39  ;;  %v142_v46 = vld [vmem:[%s4698_s1 + $0x28] sm:$0xff] }
   0xf   :  { %336 = vmatpush1.bf16.msra.mxu1 %v2749_v15  ;;  %v90_v44 = vpack.c.bf16 %v28_v42, %v27_v41  ;;  %v29_v47 = vld [vmem:[%s4697_s0 + $0x20] sm:$0xff]  ;;  %v30_v48 = vld [vmem:[%s4697_s0 + $0x28] sm:$0xff] }
  0x10   :  { %769 = vmatpush1.bf16.msra.mxu0 %v2750_v16  ;;  %337 = vmatprep.subr.bf16.mxu1 %v2751_v17 }
  0x11   :  { %770 = vmatprep.subr.bf16.mxu0 %v2753_v18 }
  0x13   :  { %338 = vmatpush1.bf16.msra.mxu1 %v2755_v19 }
  0x14   :  { %771 = vmatpush1.bf16.msra.mxu0 %v2756_v20  ;;  %339 = vmatprep.subr.bf16.mxu1 %v2757_v21 }
  0x15   :  { %772 = vmatprep.subr.bf16.mxu0 %v2759_v22 }
  0x17   :  { %340 = vmatpush1.bf16.msra.mxu1 %v2761_v23 }
  0x18   :  { %773 = vmatpush1.bf16.msra.mxu0 %v2762_v24  ;;  %341 = vmatprep.subr.bf16.mxu1 %v2763_v25 }
  0x19   :  { %774 = vmatprep.subr.bf16.mxu0 %v2765_v26 }
  0x1b   :  { %342 = vmatpush1.bf16.msra.mxu1 %v2767_v27 }
  0x1c   :  { %775 = vmatpush1.bf16.msra.mxu0 %v2768_v28  ;;  %343 = vmatprep.subr.bf16.mxu1 %v2769_v29 }
  0x1d   :  { %776 = vmatprep.subr.bf16.mxu0 %v2771_v30 }
  0x1f   :  { %344 = vmatpush1.bf16.msra.mxu1 %v2773_v31 }
  0x20   :  { %777 = vmatpush1.bf16.msra.mxu0 %v2774_v32 }
  0x22   :  { %362 = vmatmul.mubr.bf16.vlgmr.msra.gmra.mrb[0].mxu1 %v201_v37 }
  0x23   :  { %795 = vmatmul.mubr.bf16.vlgmr.msra.gmra.mrb[0].mxu0 %v89_v38  ;;  %371 = vmatprep.mubr.bf16.mxu1 %v3311_v2 }
  0x24   :  { %804 = vmatprep.mubr.bf16.mxu0 %v3311_v2 }
  0x2a   :  { %372 = vmatmul.mubr.bf16.gmra.mrb[4].mxu1 %v202_v43 }
  0x2b   :  { %805 = vmatmul.mubr.bf16.gmra.mrb[4].mxu0 %v90_v44  ;;  %381 = vmatprep.mubr.bf16.mxu1 %v3311_v2 }
  0x2c   :  { %814 = vmatprep.mubr.bf16.mxu0 %v3311_v2 }
  0x2d   :  { %11 = vsyncpa [#allocation3], 0  ;;  %v203_v49 = vpack.c.bf16 %v142_v46, %v141_v45  ;;  %v91_v50 = vpack.c.bf16 %v30_v48, %v29_v47  ;;  %v143_v51 = vld [vmem:[%s4698_s1 + $0x30] sm:$0xff]  ;;  %v144_v52 = vld [vmem:[%s4698_s1 + $0x38] sm:$0xff] }
  0x2e   :  { %v31_v53 = vld [vmem:[%s4697_s0 + $0x30] sm:$0xff]  ;;  %v32_v54 = vld [vmem:[%s4697_s0 + $0x38] sm:$0xff]  ;;  %v204_v55 = vpack.c.bf16 %v144_v52, %v143_v51  ;;  %v145_v57 = vld [vmem:[%s4698_s1 + $0x40] sm:$0xff] }
  0x2f   :  { %v92_v56 = vpack.c.bf16 %v32_v54, %v31_v53  ;;  %v146_v58 = vld [vmem:[%s4698_s1 + $0x48] sm:$0xff]  ;;  %v33_v59 = vld [vmem:[%s4697_s0 + $0x40] sm:$0xff]  ;;  %v147_v63 = vld [vmem:[%s4698_s1 + $0x50] sm:$0xff] }
  0x30   :  { %v34_v60 = vld [vmem:[%s4697_s0 + $0x48] sm:$0xff]  ;;  %v205_v61 = vpack.c.bf16 %v146_v58, %v145_v57  ;;  %v148_v0 = vld [vmem:[%s4698_s1 + $0x58] sm:$0xff]  ;;  %v35_v1 = vld [vmem:[%s4697_s0 + $0x50] sm:$0xff] }
  0x31   :  { %v93_v62 = vpack.c.bf16 %v34_v60, %v33_v59  ;;  %v36_v3 = vld [vmem:[%s4697_s0 + $0x58] sm:$0xff]  ;;  %v206_v4 = vpack.c.bf16 %v148_v0, %v147_v63  ;;  %v149_v6 = vld [vmem:[%s4698_s1 + $0x60] sm:$0xff]  ;;  %v150_v7 = vld [vmem:[%s4698_s1 + $0x68] sm:$0xff] }
  0x32   :  { %382 = vmatmul.mubr.bf16.gmra.mrb[8].mxu1 %v203_v49  ;;  %v94_v5 = vpack.c.bf16 %v36_v3, %v35_v1  ;;  %v37_v8 = vld [vmem:[%s4697_s0 + $0x60] sm:$0xff]  ;;  %v38_v9 = vld [vmem:[%s4697_s0 + $0x68] sm:$0xff]  ;;  %v207_v10 = vpack.c.bf16 %v150_v7, %v149_v6  ;;  %v151_v12 = vld [vmem:[%s4698_s1 + $0x70] sm:$0xff] }
  0x33   :  { %815 = vmatmul.mubr.bf16.gmra.mrb[8].mxu0 %v91_v50  ;;  %391 = vmatprep.mubr.bf16.mxu1 %v3311_v2  ;;  %v95_v11 = vpack.c.bf16 %v38_v9, %v37_v8  ;;  %v152_v13 = vld [vmem:[%s4698_s1 + $0x78] sm:$0xff]  ;;  %v39_v14 = vld [vmem:[%s4697_s0 + $0x70] sm:$0xff]  ;;  %v153_v18 = vld [vmem:[%s4698_s1 + $0x80] sm:$0xff] }
  0x34   :  { %824 = vmatprep.mubr.bf16.mxu0 %v3311_v2  ;;  %v40_v15 = vld [vmem:[%s4697_s0 + $0x78] sm:$0xff]  ;;  %v208_v16 = vpack.c.bf16 %v152_v13, %v151_v12  ;;  %v154_v19 = vld [vmem:[%s4698_s1 + $0x88] sm:$0xff]  ;;  %v41_v20 = vld [vmem:[%s4697_s0 + $0x80] sm:$0xff] }
  0x35   :  { %v96_v17 = vpack.c.bf16 %v40_v15, %v39_v14  ;;  %v42_v21 = vld [vmem:[%s4697_s0 + $0x88] sm:$0xff]  ;;  %v209_v22 = vpack.c.bf16 %v154_v19, %v153_v18  ;;  %v155_v24 = vld [vmem:[%s4698_s1 + $0x90] sm:$0xff]  ;;  %v156_v25 = vld [vmem:[%s4698_s1 + $0x98] sm:$0xff] }
  0x36   :  { %v97_v23 = vpack.c.bf16 %v42_v21, %v41_v20  ;;  %v43_v26 = vld [vmem:[%s4697_s0 + $0x90] sm:$0xff]  ;;  %v44_v27 = vld [vmem:[%s4697_s0 + $0x98] sm:$0xff]  ;;  %v210_v28 = vpack.c.bf16 %v156_v25, %v155_v24  ;;  %v157_v30 = vld [vmem:[%s4698_s1 + $0xa0] sm:$0xff] }
  0x37   :  { %v98_v29 = vpack.c.bf16 %v44_v27, %v43_v26  ;;  %v158_v31 = vld [vmem:[%s4698_s1 + $0xa8] sm:$0xff]  ;;  %v45_v32 = vld [vmem:[%s4697_s0 + $0xa0] sm:$0xff]  ;;  %v159_v36 = vld [vmem:[%s4698_s1 + $0xb0] sm:$0xff] }
  0x38   :  { %v46_v33 = vld [vmem:[%s4697_s0 + $0xa8] sm:$0xff]  ;;  %v211_v34 = vpack.c.bf16 %v158_v31, %v157_v30  ;;  %v160_v37 = vld [vmem:[%s4698_s1 + $0xb8] sm:$0xff]  ;;  %v47_v38 = vld [vmem:[%s4697_s0 + $0xb0] sm:$0xff] }
  0x39   :  { %v99_v35 = vpack.c.bf16 %v46_v33, %v45_v32  ;;  %v48_v39 = vld [vmem:[%s4697_s0 + $0xb8] sm:$0xff]  ;;  %v212_v40 = vpack.c.bf16 %v160_v37, %v159_v36  ;;  %v161_v42 = vld [vmem:[%s4698_s1 + $0xc0] sm:$0xff]  ;;  %v162_v43 = vld [vmem:[%s4698_s1 + $0xc8] sm:$0xff] }
  0x3a   :  { %392 = vmatmul.mubr.bf16.gmra.mrb[12].mxu1 %v204_v55  ;;  %v100_v41 = vpack.c.bf16 %v48_v39, %v47_v38  ;;  %v49_v44 = vld [vmem:[%s4697_s0 + $0xc0] sm:$0xff]  ;;  %v50_v45 = vld [vmem:[%s4697_s0 + $0xc8] sm:$0xff]  ;;  %v213_v46 = vpack.c.bf16 %v162_v43, %v161_v42  ;;  %v163_v48 = vld [vmem:[%s4698_s1 + $0xd0] sm:$0xff] }
  0x3b   :  { %825 = vmatmul.mubr.bf16.gmra.mrb[12].mxu0 %v92_v56  ;;  %401 = vmatprep.mubr.bf16.mxu1 %v3311_v2  ;;  %v101_v47 = vpack.c.bf16 %v50_v45, %v49_v44  ;;  %v164_v49 = vld [vmem:[%s4698_s1 + $0xd8] sm:$0xff]  ;;  %v51_v50 = vld [vmem:[%s4697_s0 + $0xd0] sm:$0xff]  ;;  %v165_v54 = vld [vmem:[%s4698_s1 + $0xe0] sm:$0xff] }
  0x3c   :  { %834 = vmatprep.mubr.bf16.mxu0 %v3311_v2  ;;  %v52_v51 = vld [vmem:[%s4697_s0 + $0xd8] sm:$0xff]  ;;  %v214_v52 = vpack.c.bf16 %v164_v49, %v163_v48  ;;  %v166_v55 = vld [vmem:[%s4698_s1 + $0xe8] sm:$0xff]  ;;  %v53_v56 = vld [vmem:[%s4697_s0 + $0xe0] sm:$0xff] }
  0x3d   :  { %v102_v53 = vpack.c.bf16 %v52_v51, %v51_v50  ;;  %v54_v57 = vld [vmem:[%s4697_s0 + $0xe8] sm:$0xff]  ;;  %v215_v58 = vpack.c.bf16 %v166_v55, %v165_v54  ;;  %v167_v60 = vld [vmem:[%s4698_s1 + $0xf0] sm:$0xff]  ;;  %v56_v63 = vld [vmem:[%s4697_s0 + $0xf8] sm:$0xff] }
  0x3e   :  { %v103_v59 = vpack.c.bf16 %v54_v57, %v53_v56  ;;  %v169_v3 = vld [vmem:[%s4698_s1 + $0x100] sm:$0xff]  ;;  %v58_v6 = vld [vmem:[%s4697_s0 + $0x108] sm:$0xff]  ;;  %v171_v9 = vld [vmem:[%s4698_s1 + $0x110] sm:$0xff] }
  0x3f   :  { %v60_v12 = vld [vmem:[%s4697_s0 + $0x118] sm:$0xff]  ;;  %v173_v15 = vld [vmem:[%s4698_s1 + $0x120] sm:$0xff]  ;;  %v62_v18 = vld [vmem:[%s4697_s0 + $0x128] sm:$0xff] }
  0x40   :  { %v175_v21 = vld [vmem:[%s4698_s1 + $0x130] sm:$0xff]  ;;  %v64_v24 = vld [vmem:[%s4697_s0 + $0x138] sm:$0xff]  ;;  %v177_v27 = vld [vmem:[%s4698_s1 + $0x140] sm:$0xff] }
  0x41   :  { %v66_v30 = vld [vmem:[%s4697_s0 + $0x148] sm:$0xff]  ;;  %v179_v33 = vld [vmem:[%s4698_s1 + $0x150] sm:$0xff]  ;;  %v68_v36 = vld [vmem:[%s4697_s0 + $0x158] sm:$0xff] }
  0x42   :  { %402 = vmatmul.mubr.bf16.gmra.mrb[16].mxu1 %v205_v61  ;;  %v168_v61 = vld [vmem:[%s4698_s1 + $0xf8] sm:$0xff]  ;;  %v181_v39 = vld [vmem:[%s4698_s1 + $0x160] sm:$0xff]  ;;  %v70_v42 = vld [vmem:[%s4697_s0 + $0x168] sm:$0xff] }
  0x43   :  { %835 = vmatmul.mubr.bf16.gmra.mrb[16].mxu0 %v93_v62  ;;  %411 = vmatprep.mubr.bf16.mxu1 %v3311_v2  ;;  %v55_v62 = vld [vmem:[%s4697_s0 + $0xf0] sm:$0xff]  ;;  %v216_v0 = vpack.c.bf16 %v168_v61, %v167_v60  ;;  %v72_v48 = vld [vmem:[%s4697_s0 + $0x178] sm:$0xff]  ;;  %v185_v51 = vld [vmem:[%s4698_s1 + $0x180] sm:$0xff] }
  0x44   :  { %844 = vmatprep.mubr.bf16.mxu0 %v3311_v2  ;;  %v104_v1 = vpack.c.bf16 %v56_v63, %v55_v62  ;;  %v183_v45 = vld [vmem:[%s4698_s1 + $0x170] sm:$0xff]  ;;  %v74_v54 = vld [vmem:[%s4697_s0 + $0x188] sm:$0xff]  ;;  %v76_v60 = vld [vmem:[%s4697_s0 + $0x198] sm:$0xff]  ;;  %v1117_v63 = vlaneseq }
  0x45   :  { %v187_v57 = vld [vmem:[%s4698_s1 + $0x190] sm:$0xff] }
  0x4a   :  { %412 = vmatmul.mubr.bf16.gmra.mrb[20].mxu1 %v206_v4  ;;  %v170_v4 = vld [vmem:[%s4698_s1 + $0x108] sm:$0xff] }
  0x4b   :  { %845 = vmatmul.mubr.bf16.gmra.mrb[20].mxu0 %v94_v5  ;;  %421 = vmatprep.mubr.bf16.mxu1 %v3311_v2  ;;  %v57_v5 = vld [vmem:[%s4697_s0 + $0x100] sm:$0xff]  ;;  %v217_v7 = vpack.c.bf16 %v170_v4, %v169_v3  ;;  %v78_v4 = vld [vmem:[%s4697_s0 + $0x1a8] sm:$0xff] }
  0x4c   :  { %854 = vmatprep.mubr.bf16.mxu0 %v3311_v2  ;;  %v105_v8 = vpack.c.bf16 %v58_v6, %v57_v5  ;;  %v77_v3 = vld [vmem:[%s4697_s0 + $0x1a0] sm:$0xff]  ;;  %v1118_v5 = vshrl.u32 %v1117_v63, 7 }
  0x52   :  { %422 = vmatmul.mubr.bf16.gmra.mrb[24].mxu1 %v207_v10  ;;  %v172_v10 = vld [vmem:[%s4698_s1 + $0x118] sm:$0xff] }
  0x53   :  { %855 = vmatmul.mubr.bf16.gmra.mrb[24].mxu0 %v95_v11  ;;  %431 = vmatprep.mubr.bf16.mxu1 %v3311_v2  ;;  %v59_v11 = vld [vmem:[%s4697_s0 + $0x110] sm:$0xff]  ;;  %v218_v13 = vpack.c.bf16 %v172_v10, %v171_v9  ;;  %v1115_v9 = vld [vmem:[%s4701_s4] sm:$0x3]  ;;  %v1123_v10 = vsub.s32 1, %v1118_v5 }
  0x54   :  { %864 = vmatprep.mubr.bf16.mxu0 %v3311_v2  ;;  %v106_v14 = vpack.c.bf16 %v60_v12, %v59_v11  ;;  %v1255_v11 = vld [vmem:[%s4702_s5] sm:$0x3]  ;;  %v191_v12 = vld [vmem:[%s4698_s1 + $0x1b0] sm:$0xff] }
  0x5a   :  { %432 = vmatmul.mubr.bf16.gmra.mrb[28].mxu1 %v208_v16  ;;  %v174_v16 = vld [vmem:[%s4698_s1 + $0x128] sm:$0xff] }
  0x5b   :  { %865 = vmatmul.mubr.bf16.gmra.mrb[28].mxu0 %v96_v17  ;;  %441 = vmatprep.mubr.bf16.mxu1 %v3311_v2  ;;  %v61_v17 = vld [vmem:[%s4697_s0 + $0x120] sm:$0xff]  ;;  %v219_v19 = vpack.c.bf16 %v174_v16, %v173_v15  ;;  %v80_v15 = vld [vmem:[%s4697_s0 + $0x1b8] sm:$0xff] }
  0x5c   :  { %874 = vmatprep.mubr.bf16.mxu0 %v3311_v2  ;;  %v107_v20 = vpack.c.bf16 %v62_v18, %v61_v17 }
  0x62   :  { %442 = vmatmul.mubr.bf16.gmra.mrb[32].mxu1 %v209_v22  ;;  %v176_v22 = vld [vmem:[%s4698_s1 + $0x138] sm:$0xff] }
  0x63   :  { %875 = vmatmul.mubr.bf16.gmra.mrb[32].mxu0 %v97_v23  ;;  %451 = vmatprep.mubr.bf16.mxu1 %v3311_v2  ;;  %v63_v23 = vld [vmem:[%s4697_s0 + $0x130] sm:$0xff]  ;;  %v220_v25 = vpack.c.bf16 %v176_v22, %v175_v21 }
  0x64   :  { %884 = vmatprep.mubr.bf16.mxu0 %v3311_v2  ;;  %v108_v26 = vpack.c.bf16 %v64_v24, %v63_v23 }
  0x6a   :  { %452 = vmatmul.mubr.bf16.gmra.mrb[36].mxu1 %v210_v28  ;;  %v178_v28 = vld [vmem:[%s4698_s1 + $0x148] sm:$0xff] }
  0x6b   :  { %885 = vmatmul.mubr.bf16.gmra.mrb[36].mxu0 %v98_v29  ;;  %461 = vmatprep.mubr.bf16.mxu1 %v3311_v2  ;;  %v65_v29 = vld [vmem:[%s4697_s0 + $0x140] sm:$0xff]  ;;  %v221_v31 = vpack.c.bf16 %v178_v28, %v177_v27  ;;  %v3850_v27 = vrot.slane %v1255_v11, %v1123_v10 }
  0x6c   :  { %894 = vmatprep.mubr.bf16.mxu0 %v3311_v2  ;;  %v109_v32 = vpack.c.bf16 %v66_v30, %v65_v29 }
  0x72   :  { %462 = vmatmul.mubr.bf16.gmra.mrb[40].mxu1 %v211_v34  ;;  %v180_v34 = vld [vmem:[%s4698_s1 + $0x158] sm:$0xff] }
  0x73   :  { %895 = vmatmul.mubr.bf16.gmra.mrb[40].mxu0 %v99_v35  ;;  %471 = vmatprep.mubr.bf16.mxu1 %v3311_v2  ;;  %v67_v35 = vld [vmem:[%s4697_s0 + $0x150] sm:$0xff]  ;;  %v222_v37 = vpack.c.bf16 %v180_v34, %v179_v33 }
  0x74   :  { %904 = vmatprep.mubr.bf16.mxu0 %v3311_v2  ;;  %v110_v38 = vpack.c.bf16 %v68_v36, %v67_v35 }
  0x7a   :  { %472 = vmatmul.mubr.bf16.gmra.mrb[44].mxu1 %v212_v40  ;;  %v182_v40 = vld [vmem:[%s4698_s1 + $0x168] sm:$0xff] }
  0x7b   :  { %905 = vmatmul.mubr.bf16.gmra.mrb[44].mxu0 %v100_v41  ;;  %481 = vmatprep.mubr.bf16.mxu1 %v3311_v2  ;;  %v69_v41 = vld [vmem:[%s4697_s0 + $0x160] sm:$0xff]  ;;  %v223_v43 = vpack.c.bf16 %v182_v40, %v181_v39  ;;  %v194_v39 = vld [vmem:[%s4698_s1 + $0x1c8] sm:$0xff] }
  0x7c   :  { %914 = vmatprep.mubr.bf16.mxu0 %v3311_v2  ;;  %v111_v44 = vpack.c.bf16 %v70_v42, %v69_v41  ;;  %v81_v42 = vld [vmem:[%s4697_s0 + $0x1c0] sm:$0xff] }
  0x82   :  { %482 = vmatmul.mubr.bf16.gmra.mrb[48].mxu1 %v213_v46  ;;  %v184_v46 = vld [vmem:[%s4698_s1 + $0x178] sm:$0xff] }
  0x83   :  { %915 = vmatmul.mubr.bf16.gmra.mrb[48].mxu0 %v101_v47  ;;  %491 = vmatprep.mubr.bf16.mxu1 %v3311_v2  ;;  %v71_v47 = vld [vmem:[%s4697_s0 + $0x170] sm:$0xff]  ;;  %v224_v49 = vpack.c.bf16 %v184_v46, %v183_v45 }
  0x84   :  { %924 = vmatprep.mubr.bf16.mxu0 %v3311_v2  ;;  %v112_v50 = vpack.c.bf16 %v72_v48, %v71_v47 }
  0x8a   :  { %492 = vmatmul.mubr.bf16.gmra.mrb[52].mxu1 %v214_v52  ;;  %v186_v52 = vld [vmem:[%s4698_s1 + $0x188] sm:$0xff] }
  0x8b   :  { %925 = vmatmul.mubr.bf16.gmra.mrb[52].mxu0 %v102_v53  ;;  %501 = vmatprep.mubr.bf16.mxu1 %v3311_v2  ;;  %v73_v53 = vld [vmem:[%s4697_s0 + $0x180] sm:$0xff]  ;;  %v225_v55 = vpack.c.bf16 %v186_v52, %v185_v51 }
  0x8c   :  { %934 = vmatprep.mubr.bf16.mxu0 %v3311_v2  ;;  %v113_v56 = vpack.c.bf16 %v74_v54, %v73_v53 }
  0x92   :  { %502 = vmatmul.mubr.bf16.gmra.mrb[56].mxu1 %v215_v58  ;;  %v188_v58 = vld [vmem:[%s4698_s1 + $0x198] sm:$0xff] }
  0x93   :  { %935 = vmatmul.mubr.bf16.gmra.mrb[56].mxu0 %v103_v59  ;;  %511 = vmatprep.mubr.bf16.mxu1 %v3311_v2  ;;  %v75_v59 = vld [vmem:[%s4697_s0 + $0x190] sm:$0xff]  ;;  %v226_v61 = vpack.c.bf16 %v188_v58, %v187_v57 }
  0x94   :  { %944 = vmatprep.mubr.bf16.mxu0 %v3311_v2  ;;  %v114_v62 = vpack.c.bf16 %v76_v60, %v75_v59 }
  0x9a   :  { %512 = vmatmul.mubr.bf16.gmra.mrb[60].mxu1 %v216_v0  ;;  %v189_v0 = vld [vmem:[%s4698_s1 + $0x1a0] sm:$0xff] }
  0x9b   :  { %945 = vmatmul.mubr.bf16.gmra.mrb[60].mxu0 %v104_v1  ;;  %521 = vmatprep.mubr.bf16.mxu1 %v3311_v2  ;;  %v190_v1 = vld [vmem:[%s4698_s1 + $0x1a8] sm:$0xff] }
  0x9c   :  { %954 = vmatprep.mubr.bf16.mxu0 %v3311_v2  ;;  %v227_v6 = vpack.c.bf16 %v190_v1, %v189_v0 }
  0xa2   :  { %522 = vmatmul.mubr.bf16.gmra.mrb[64].mxu1 %v217_v7  ;;  %v115_v7 = vpack.c.bf16 %v78_v4, %v77_v3 }
  0xa3   :  { %955 = vmatmul.mubr.bf16.gmra.mrb[64].mxu0 %v105_v8  ;;  %531 = vmatprep.mubr.bf16.mxu1 %v3311_v2  ;;  %v1119_v8 = vsub.s32 0, %v1118_v5  ;;  %v195_v5 = vld [vmem:[%s4698_s1 + $0x1d0] sm:$0xff] }
  0xa4   :  { %964 = vmatprep.mubr.bf16.mxu0 %v3311_v2 }
  0xa5   :  { %v3844_v16 = vrot.slane %v1115_v9, %v1119_v8  ;;  %v3848_v21 = vrot.slane %v1255_v11, %v1119_v8 }
  0xaa   :  { %532 = vmatmul.mubr.bf16.gmra.mrb[68].mxu1 %v218_v13  ;;  %v192_v13 = vld [vmem:[%s4698_s1 + $0x1b8] sm:$0xff] }
  0xab   :  { %965 = vmatmul.mubr.bf16.gmra.mrb[68].mxu0 %v106_v14  ;;  %541 = vmatprep.mubr.bf16.mxu1 %v3311_v2  ;;  %v79_v14 = vld [vmem:[%s4697_s0 + $0x1b0] sm:$0xff]  ;;  %v228_v24 = vpack.c.bf16 %v192_v13, %v191_v12 }
  0xac   :  { %974 = vmatprep.mubr.bf16.mxu0 %v3311_v2 }
  0xb2   :  { %542 = vmatmul.mubr.bf16.gmra.mrb[72].mxu1 %v219_v19  ;;  %v3846_v19 = vrot.slane %v1115_v9, %v1123_v10  ;;  %v83_v9 = vld [vmem:[%s4697_s0 + $0x1d0] sm:$0xff]  ;;  %v84_v10 = vld [vmem:[%s4697_s0 + $0x1d8] sm:$0xff] }
  0xb3   :  { %975 = vmatmul.mubr.bf16.gmra.mrb[72].mxu0 %v107_v20  ;;  %551 = vmatprep.mubr.bf16.mxu1 %v3311_v2 }
  0xb4   :  { %984 = vmatprep.mubr.bf16.mxu0 %v3311_v2 }
  0xba   :  { %552 = vmatmul.mubr.bf16.gmra.mrb[76].mxu1 %v220_v25  ;;  %v116_v25 = vpack.c.bf16 %v80_v15, %v79_v14 }
  0xbb   :  { %985 = vmatmul.mubr.bf16.gmra.mrb[76].mxu0 %v108_v26  ;;  %561 = vmatprep.mubr.bf16.mxu1 %v3311_v2 }
  0xbc   :  { %994 = vmatprep.mubr.bf16.mxu0 %v3311_v2 }
  0xc2   :  { %562 = vmatmul.mubr.bf16.gmra.mrb[80].mxu1 %v221_v31 }
  0xc3   :  { %995 = vmatmul.mubr.bf16.gmra.mrb[80].mxu0 %v109_v32  ;;  %571 = vmatprep.mubr.bf16.mxu1 %v3311_v2 }
  0xc4   :  { %1004 = vmatprep.mubr.bf16.mxu0 %v3311_v2 }
  0xca   :  { %572 = vmatmul.mubr.bf16.gmra.mrb[84].mxu1 %v222_v37 }
  0xcb   :  { %1005 = vmatmul.mubr.bf16.gmra.mrb[84].mxu0 %v110_v38  ;;  %581 = vmatprep.mubr.bf16.mxu1 %v3311_v2  ;;  %v193_v38 = vld [vmem:[%s4698_s1 + $0x1c0] sm:$0xff] }
  0xcc   :  { %1014 = vmatprep.mubr.bf16.mxu0 %v3311_v2 }
  0xd2   :  { %582 = vmatmul.mubr.bf16.gmra.mrb[88].mxu1 %v223_v43  ;;  %v82_v43 = vld [vmem:[%s4697_s0 + $0x1c8] sm:$0xff] }
  0xd3   :  { %1015 = vmatmul.mubr.bf16.gmra.mrb[88].mxu0 %v111_v44  ;;  %591 = vmatprep.mubr.bf16.mxu1 %v3311_v2 }
  0xd4   :  { %1024 = vmatprep.mubr.bf16.mxu0 %v3311_v2 }
  0xda   :  { %592 = vmatmul.mubr.bf16.gmra.mrb[92].mxu1 %v224_v49 }
  0xdb   :  { %1025 = vmatmul.mubr.bf16.gmra.mrb[92].mxu0 %v112_v50  ;;  %601 = vmatprep.mubr.bf16.mxu1 %v3311_v2  ;;  %v229_v50 = vpack.c.bf16 %v194_v39, %v193_v38 }
  0xdc   :  { %1034 = vmatprep.mubr.bf16.mxu0 %v3311_v2 }
  0xe2   :  { %602 = vmatmul.mubr.bf16.gmra.mrb[96].mxu1 %v225_v55  ;;  %v117_v55 = vpack.c.bf16 %v82_v43, %v81_v42 }
  0xe3   :  { %1035 = vmatmul.mubr.bf16.gmra.mrb[96].mxu0 %v113_v56  ;;  %611 = vmatprep.mubr.bf16.mxu1 %v3311_v2 }
  0xe4   :  { %1044 = vmatprep.mubr.bf16.mxu0 %v3311_v2 }
  0xea   :  { %612 = vmatmul.mubr.bf16.gmra.mrb[100].mxu1 %v226_v61 }
  0xeb   :  { %1045 = vmatmul.mubr.bf16.gmra.mrb[100].mxu0 %v114_v62  ;;  %621 = vmatprep.mubr.bf16.mxu1 %v3311_v2 }
  0xec   :  { %1054 = vmatprep.mubr.bf16.mxu0 %v3311_v2 }
  0xf2   :  { %622 = vmatmul.mubr.bf16.gmra.mrb[104].mxu1 %v227_v6  ;;  %v196_v6 = vld [vmem:[%s4698_s1 + $0x1d8] sm:$0xff] }
  0xf3   :  { %1055 = vmatmul.mubr.bf16.gmra.mrb[104].mxu0 %v115_v7  ;;  %631 = vmatprep.mubr.bf16.mxu1 %v3311_v2 }
  0xf4   :  { %1064 = vmatprep.mubr.bf16.mxu0 %v3311_v2 }
  0xf5   :  { %v363_v17 = vpop.f32.mrb[0].mxu1 }
  0xf6   :  { %v796_v18 = vpop.f32.mrb[0].mxu0  ;;  %v365_v22 = vpop.f32.mrb[1].mxu1 }
  0xf7   :  { %v797_v20 = vadd.f32 %v796_v18, %v363_v17  ;;  %v798_v23 = vpop.f32.mrb[1].mxu0  ;;  %v367_v28 = vpop.f32.mrb[2].mxu1  ;;  %v230_v18 = vpack.c.bf16 %v196_v6, %v195_v5 }
  0xf8   :  { %v799_v26 = vadd.f32 %v798_v23, %v365_v22  ;;  %v800_v29 = vpop.f32.mrb[2].mxu0  ;;  %v369_v32 = vpop.f32.mrb[3].mxu1 }
  0xf9   :  { %v1127_v30 = vmul.f32 %v3844_v16, %v797_v20  ;;  %v801_v31 = vadd.f32 %v800_v29, %v367_v28  ;;  %v802_v33 = vpop.f32.mrb[3].mxu0 }
  0xfa   :  { %v1128_v34 = vmul.f32 %v3846_v19, %v799_v26  ;;  %v803_v35 = vadd.f32 %v802_v33, %v369_v32  ;;  %632 = vmatmul.mubr.bf16.gmra.mrb[108].mxu1 %v228_v24 }
  0xfb   :  { %v3855_v36 = vadd.f32 %v3848_v21, %v1127_v30  ;;  %v1129_v37 = vmul.f32 %v3844_v16, %v801_v31  ;;  %1065 = vmatmul.mubr.bf16.gmra.mrb[108].mxu0 %v116_v25  ;;  %641 = vmatprep.mubr.bf16.mxu1 %v3311_v2  ;;  %v118_v25 = vpack.c.bf16 %v84_v10, %v83_v9 }
  0xfc   :  { %v3865_v40 = vadd.f32 %v3850_v27, %v1128_v34  ;;  %v1130_v41 = vmul.f32 %v3846_v19, %v803_v35  ;;  %1074 = vmatprep.mubr.bf16.mxu0 %v3311_v2 }
  0xfd   :  { %v2467_v44 = vmul.f32 -1.442695, %v3855_v36  ;;  %v3878_v45 = vadd.f32 %v3848_v21, %v1129_v37  ;;  %v373_v48 = vpop.f32.mrb[4].mxu1 }
  0xfe   :  { %v2468_v46 = vmul.f32 -1.442695, %v3865_v40  ;;  %v3882_v47 = vadd.f32 %v3850_v27, %v1130_v41  ;;  %v806_v49 = vpop.f32.mrb[4].mxu0  ;;  %v375_v53 = vpop.f32.mrb[5].mxu1 }
  0xff   :  { %2775 = vpow2.f32 %v2467_v44  ;;  %v2469_v51 = vmul.f32 -1.442695, %v3878_v45  ;;  %v807_v52 = vadd.f32 %v806_v49, %v373_v48  ;;  %v808_v54 = vpop.f32.mrb[5].mxu0  ;;  %v377_v58 = vpop.f32.mrb[6].mxu1  ;;  %v197_v48 = vld [vmem:[%s4698_s1 + $0x1e0] sm:$0xff]  ;;  %v198_v49 = vld [vmem:[%s4698_s1 + $0x1e8] sm:$0xff] }
 0x100   :  { %2777 = vpow2.f32 %v2468_v46  ;;  %v2470_v56 = vmul.f32 -1.442695, %v3882_v47  ;;  %v809_v57 = vadd.f32 %v808_v54, %v375_v53  ;;  %v810_v59 = vpop.f32.mrb[6].mxu0  ;;  %v379_v62 = vpop.f32.mrb[7].mxu1  ;;  %v85_v54 = vld [vmem:[%s4697_s0 + $0x1e0] sm:$0xff] }
 0x101   :  { %2779 = vpow2.f32 %v2469_v51  ;;  %v1131_v60 = vmul.f32 %v3844_v16, %v807_v52  ;;  %v811_v61 = vadd.f32 %v810_v59, %v377_v58  ;;  %v812_v63 = vpop.f32.mrb[7].mxu0 }
 0x102   :  { %2781 = vpow2.f32 %v2470_v56  ;;  %v1132_v0 = vmul.f32 %v3846_v19, %v809_v57  ;;  %v813_v1 = vadd.f32 %v812_v63, %v379_v62  ;;  %642 = vmatmul.mubr.bf16.gmra.mrb[112].mxu1 %v229_v50  ;;  %v231_v63 = vpack.c.bf16 %v198_v49, %v197_v48 }
 0x103   :  { %v3889_v3 = vadd.f32 %v3848_v21, %v1131_v60  ;;  %v1133_v4 = vmul.f32 %v3844_v16, %v811_v61  ;;  %1075 = vmatmul.mubr.bf16.gmra.mrb[112].mxu0 %v117_v55  ;;  %651 = vmatprep.mubr.bf16.mxu1 %v3311_v2  ;;  %v86_v55 = vld [vmem:[%s4697_s0 + $0x1e8] sm:$0xff] }
 0x104   :  { %v3899_v7 = vadd.f32 %v3850_v27, %v1132_v0  ;;  %v1134_v8 = vmul.f32 %v3846_v19, %v813_v1  ;;  %1084 = vmatprep.mubr.bf16.mxu0 %v3311_v2  ;;  %v3955_v0 = vld [vmem:[%s4698_s1 + $0x1f0] sm:$0xff]  ;;  %v3960_v1 = vld [vmem:[%s4698_s1 + $0x1f8] sm:$0xff]  ;;  %v119_v9 = vpack.c.bf16 %v86_v55, %v85_v54 }
 0x105   :  { %v2471_v11 = vmul.f32 -1.442695, %v3889_v3  ;;  %v3912_v12 = vadd.f32 %v3848_v21, %v1133_v4  ;;  %v383_v15 = vpop.f32.mrb[8].mxu1 }
 0x106   :  { %v2472_v13 = vmul.f32 -1.442695, %v3899_v7  ;;  %v3916_v14 = vadd.f32 %v3850_v27, %v1134_v8  ;;  %v816_v17 = vpop.f32.mrb[8].mxu0  ;;  %v385_v23 = vpop.f32.mrb[9].mxu1 }
 0x107   :  { %2783 = vpow2.f32 %v2471_v11  ;;  %v2473_v20 = vmul.f32 -1.442695, %v3912_v12  ;;  %v817_v22 = vadd.f32 %v816_v17, %v383_v15  ;;  %v818_v24 = vpop.f32.mrb[9].mxu0  ;;  %v387_v29 = vpop.f32.mrb[10].mxu1 }
 0x108   :  { %2785 = vpow2.f32 %v2472_v13  ;;  %v2474_v26 = vmul.f32 -1.442695, %v3916_v14  ;;  %v819_v28 = vadd.f32 %v818_v24, %v385_v23  ;;  %v820_v30 = vpop.f32.mrb[10].mxu0  ;;  %v389_v34 = vpop.f32.mrb[11].mxu1  ;;  %v232_v24 = vpack.c.bf16 %v3960_v1, %v3955_v0 }
 0x109   :  { %v2776_v31 = vpop.eup %2775  ;;  %2787 = vpow2.f32 %v2473_v20  ;;  %v1135_v32 = vmul.f32 %v3844_v16, %v817_v22  ;;  %v821_v33 = vadd.f32 %v820_v30, %v387_v29  ;;  %v822_v35 = vpop.f32.mrb[11].mxu0 }
 0x10a   :  { %v2778_v37 = vpop.eup %2777  ;;  %v1779_v38 = vadd.f32 1.0, %v2776_v31  ;;  %2789 = vpow2.f32 %v2474_v26  ;;  %v1136_v39 = vmul.f32 %v3846_v19, %v819_v28  ;;  %v823_v41 = vadd.f32 %v822_v35, %v389_v34  ;;  %652 = vmatmul.mubr.bf16.gmra.mrb[116].mxu1 %v230_v18  ;;  %v87_v34 = vld [vmem:[%s4697_s0 + $0x1f0] sm:$0xff]  ;;  %v88_v35 = vld [vmem:[%s4697_s0 + $0x1f8] sm:$0xff]  ;;  %s3312_s0 = smov [#allocation2]  }
 0x10b   :  { %v2780_v42 = vpop.eup %2779  ;;  %v1780_v43 = vadd.f32 1.0, %v2778_v37  ;;  %v3923_v44 = vadd.f32 %v3848_v21, %v1135_v32  ;;  %v1137_v46 = vmul.f32 %v3844_v16, %v821_v33  ;;  %1085 = vmatmul.mubr.bf16.gmra.mrb[116].mxu0 %v118_v25  ;;  %661 = vmatprep.mubr.bf16.mxu1 %v3311_v2  ;;  %v120_v54 = vpack.c.bf16 %v88_v35, %v87_v34  ;;  %s2424_s8 = sshll.u32 %s3312_s0, 4  ;;  %s2425_s8 = int_to_ptr.vmem [resolvable:$true] %s2424_s8 }
 0x10c   :  { %v2782_v50 = vpop.eup %2781  ;;  %2791 = vrcp.f32 %v1779_v38  ;;  %v1781_v51 = vadd.f32 1.0, %v2780_v42  ;;  %v3933_v52 = vadd.f32 %v3850_v27, %v1136_v39  ;;  %v1138_v53 = vmul.f32 %v3846_v19, %v823_v41  ;;  %1094 = vmatprep.mubr.bf16.mxu0 %v3311_v2  ;;  %s3287_s9 = scalar_lea.vmem %s2425_s8, 16384  ;;  %p3292_p1 = scmp.lt.s32.totalorder %s2425_s8, %s2425_s8 }
 0x10d   :  { %2793 = vrcp.f32 %v1780_v43  ;;  %v1782_v56 = vadd.f32 1.0, %v2782_v50  ;;  %v2475_v57 = vmul.f32 -1.442695, %v3923_v44  ;;  %v3946_v58 = vadd.f32 %v3848_v21, %v1137_v46  ;;  %v393_v61 = vpop.f32.mrb[12].mxu1  ;;  %p3288_p0 = scmp.ne.s32.totalorder %s2425_s8, %s3287_s9  ;;  %p3293_p2 = scmp.lt.s32.totalorder %s3287_s9, %s3287_s9 }
 0x10e   :  { %2795 = vrcp.f32 %v1781_v51  ;;  %v2476_v59 = vmul.f32 -1.442695, %v3933_v52  ;;  %v3950_v60 = vadd.f32 %v3850_v27, %v1138_v53  ;;  %v826_v62 = vpop.f32.mrb[12].mxu0  ;;  %v395_v6 = vpop.f32.mrb[13].mxu1 }
 0x10f   :  { %2797 = vrcp.f32 %v1782_v56  ;;  %v2477_v4 = vmul.f32 -1.442695, %v3946_v58  ;;  %v827_v5 = vadd.f32 %v826_v62, %v393_v61  ;;  %v828_v8 = vpop.f32.mrb[13].mxu0  ;;  %v397_v13 = vpop.f32.mrb[14].mxu1  ;;  %p3294_p3 = por %p3293_p2, %p3292_p1 }
 0x110   :  { %2799 = vpow2.f32 %v2475_v57  ;;  %v2478_v10 = vmul.f32 -1.442695, %v3950_v60  ;;  %v829_v11 = vadd.f32 %v828_v8, %v395_v6  ;;  %v830_v15 = vpop.f32.mrb[14].mxu0  ;;  %v399_v22 = vpop.f32.mrb[15].mxu1 }
 0x111   :  { %v2784_v17 = vpop.eup %2783  ;;  %2801 = vpow2.f32 %v2476_v59  ;;  %v1139_v18 = vmul.f32 %v3844_v16, %v827_v5  ;;  %v831_v20 = vadd.f32 %v830_v15, %v397_v13  ;;  %v832_v23 = vpop.f32.mrb[15].mxu0  ;;  %p3295_p4 = pnand %p3294_p3, %p3288_p0 }
 0x112   :  { %v2786_v25 = vpop.eup %2785  ;;  %v1783_v26 = vadd.f32 1.0, %v2784_v17  ;;  %2803 = vpow2.f32 %v2477_v4  ;;  %v1140_v28 = vmul.f32 %v3846_v19, %v829_v11  ;;  %v833_v29 = vadd.f32 %v832_v23, %v399_v22  ;;  %662 = vmatmul.mubr.bf16.gmra.mrb[120].mxu1 %v231_v63 }
 0x113   :  { %v2788_v30 = vpop.eup %2787  ;;  %v1784_v31 = vadd.f32 1.0, %v2786_v25  ;;  %2805 = vpow2.f32 %v2478_v10  ;;  %v3969_v32 = vadd.f32 %v3848_v21, %v1139_v18  ;;  %v1141_v33 = vmul.f32 %v3844_v16, %v831_v20  ;;  %1095 = vmatmul.mubr.bf16.gmra.mrb[120].mxu0 %v119_v9  ;;  %671 = vmatprep.mubr.bf16.mxu1 %v3311_v2 }
 0x114   :  { %v2790_v37 = vpop.eup %2789  ;;  %2807 = vrcp.f32 %v1783_v26  ;;  %v1785_v38 = vadd.f32 1.0, %v2788_v30  ;;  %v3979_v39 = vadd.f32 %v3850_v27, %v1140_v28  ;;  %v1142_v41 = vmul.f32 %v3846_v19, %v833_v29  ;;  %1104 = vmatprep.mubr.bf16.mxu0 %v3311_v2 }
 0x115   :  { %2809 = vrcp.f32 %v1784_v31  ;;  %v1786_v42 = vadd.f32 1.0, %v2790_v37  ;;  %v2479_v43 = vmul.f32 -1.442695, %v3969_v32  ;;  %v3986_v46 = vadd.f32 %v3848_v21, %v1141_v33  ;;  %v403_v51 = vpop.f32.mrb[16].mxu1 }
 0x116   :  { %v2792_v48 = vpop.eup %2791  ;;  %2811 = vrcp.f32 %v1785_v38  ;;  %v2480_v49 = vmul.f32 -1.442695, %v3979_v39  ;;  %v3990_v50 = vadd.f32 %v3850_v27, %v1142_v41  ;;  %v836_v53 = vpop.f32.mrb[16].mxu0 }
 0x117   :  { %v2794_v55 = vpop.eup %2793  ;;  %v2163_v2 = vmul.f32 %v2792_v48, %v3855_v36  ;;  %2813 = vrcp.f32 %v1786_v42  ;;  %v2481_v56 = vmul.f32 -1.442695, %v3986_v46  ;;  %v837_v57 = vadd.f32 %v836_v53, %v403_v51  ;;  %v405_v59 = vpop.f32.mrb[17].mxu1 }
 0x118   :  { %v838_v61 = vpop.f32.mrb[17].mxu0  ;;  %v2796_v62 = vpop.eup %2795  ;;  %v2164_v63 = vmul.f32 %v2794_v55, %v3865_v40  ;;  %2815 = vpow2.f32 %v2479_v43  ;;  %v2482_v4 = vmul.f32 -1.442695, %v3990_v50 }
 0x119   :  { %v839_v5 = vadd.f32 %v838_v61, %v405_v59  ;;  %v407_v6 = vpop.f32.mrb[18].mxu1  ;;  %v840_v8 = vpop.f32.mrb[18].mxu0  ;;  %2291 = vst [vmem:[#allocation2] sm:$0xff] %v2163_v2  ;;  %v2165_v10 = vmul.f32 %v2796_v62, %v3878_v45  ;;  %2817 = vpow2.f32 %v2480_v49  ;;  %v1143_v36 = vmul.f32 %v3844_v16, %v837_v57 }
 0x11a   :  { %v2798_v9 = vpop.eup %2797  ;;  %v841_v11 = vadd.f32 %v840_v8, %v407_v6  ;;  %v409_v13 = vpop.f32.mrb[19].mxu1  ;;  %2292 = vst [vmem:[#allocation2 + $0x8] sm:$0xff] %v2164_v63  ;;  %2819 = vpow2.f32 %v2481_v56  ;;  %672 = vmatmul.mubr.bf16.gmra.mrb[124].mxu1 %v232_v24 }
 0x11b   :  { %v842_v15 = vpop.f32.mrb[19].mxu0  ;;  %v2800_v17 = vpop.eup %2799  ;;  %v2166_v40 = vmul.f32 %v2798_v9, %v3882_v47  ;;  %v1144_v18 = vmul.f32 %v3846_v19, %v839_v5  ;;  %2293 = vst [vmem:[#allocation2 + $0x10] sm:$0xff] %v2165_v10  ;;  %2821 = vpow2.f32 %v2482_v4  ;;  %v4001_v45 = vadd.f32 %v3848_v21, %v1143_v36  ;;  %1105 = vmatmul.mubr.bf16.gmra.mrb[124].mxu0 %v120_v54 }
 0x11c   :  { %v843_v20 = vadd.f32 %v842_v15, %v409_v13  ;;  %v2802_v22 = vpop.eup %2801  ;;  %v1787_v23 = vadd.f32 1.0, %v2800_v17  ;;  %v1145_v25 = vmul.f32 %v3844_v16, %v841_v11 }
 0x11d   :  { %v2804_v26 = vpop.eup %2803  ;;  %2294 = vst [vmem:[#allocation2 + $0x18] sm:$0xff] %v2166_v40  ;;  %v1788_v47 = vadd.f32 1.0, %v2802_v22  ;;  %v4008_v28 = vadd.f32 %v3850_v27, %v1144_v18  ;;  %v2483_v33 = vmul.f32 -1.442695, %v4001_v45  ;;  %v413_v37 = vpop.f32.mrb[20].mxu1 }
 0x11e   :  { %v1146_v29 = vmul.f32 %v3846_v19, %v843_v20  ;;  %v2806_v30 = vpop.eup %2805  ;;  %2823 = vrcp.f32 %v1787_v23  ;;  %v1789_v31 = vadd.f32 1.0, %v2804_v26  ;;  %v4013_v34 = vadd.f32 %v3848_v21, %v1145_v25  ;;  %v846_v38 = vpop.f32.mrb[20].mxu0 }
 0x11f   :  { %v2808_v35 = vpop.eup %2807  ;;  %2825 = vrcp.f32 %v1788_v47  ;;  %v1790_v0 = vadd.f32 1.0, %v2806_v30  ;;  %v2484_v1 = vmul.f32 -1.442695, %v4008_v28  ;;  %v847_v48 = vadd.f32 %v846_v38, %v413_v37  ;;  %v415_v49 = vpop.f32.mrb[21].mxu1 }
 0x120   :  { %v4017_v24 = vadd.f32 %v3850_v27, %v1146_v29  ;;  %v2810_v41 = vpop.eup %2809  ;;  %v2167_v42 = vmul.f32 %v2808_v35, %v3889_v3  ;;  %2827 = vrcp.f32 %v1789_v31  ;;  %v2485_v43 = vmul.f32 -1.442695, %v4013_v34  ;;  %v848_v51 = vpop.f32.mrb[21].mxu0 }
 0x121   :  { %v2812_v53 = vpop.eup %2811  ;;  %v2168_v54 = vmul.f32 %v2810_v41, %v3899_v7  ;;  %2829 = vrcp.f32 %v1790_v0  ;;  %v849_v2 = vadd.f32 %v848_v51, %v415_v49  ;;  %v417_v56 = vpop.f32.mrb[22].mxu1  ;;  %v1147_v3 = vmul.f32 %v3844_v16, %v847_v48 }
 0x122   :  { %v2486_v55 = vmul.f32 -1.442695, %v4017_v24  ;;  %v850_v57 = vpop.f32.mrb[22].mxu0  ;;  %v2814_v59 = vpop.eup %2813  ;;  %2295 = vst [vmem:[#allocation2 + $0x20] sm:$0xff] %v2167_v42  ;;  %v2169_v61 = vmul.f32 %v2812_v53, %v3912_v12  ;;  %2831 = vpow2.f32 %v2483_v33 }
 0x123   :  { %v851_v62 = vadd.f32 %v850_v57, %v417_v56  ;;  %v419_v63 = vpop.f32.mrb[23].mxu1  ;;  %v852_v4 = vpop.f32.mrb[23].mxu0  ;;  %2296 = vst [vmem:[#allocation2 + $0x28] sm:$0xff] %v2168_v54  ;;  %v2170_v7 = vmul.f32 %v2814_v59, %v3916_v14  ;;  %2833 = vpow2.f32 %v2484_v1  ;;  %v1148_v6 = vmul.f32 %v3846_v19, %v849_v2 }
 0x124   :  { %v2816_v5 = vpop.eup %2815  ;;  %v853_v8 = vadd.f32 %v852_v4, %v419_v63  ;;  %2297 = vst [vmem:[#allocation2 + $0x30] sm:$0xff] %v2169_v61  ;;  %2835 = vpow2.f32 %v2485_v43  ;;  %v4028_v12 = vadd.f32 %v3848_v21, %v1147_v3 }
 0x125   :  { %v2818_v9 = vpop.eup %2817  ;;  %v1791_v10 = vadd.f32 1.0, %v2816_v5  ;;  %v1149_v36 = vmul.f32 %v3844_v16, %v851_v62  ;;  %2298 = vst [vmem:[#allocation2 + $0x38] sm:$0xff] %v2170_v7  ;;  %2837 = vpow2.f32 %v2486_v55  ;;  %v4032_v15 = vadd.f32 %v3850_v27, %v1148_v6  ;;  %v423_v26 = vpop.f32.mrb[24].mxu1 }
 0x126   :  { %v2820_v11 = vpop.eup %2819  ;;  %v1792_v13 = vadd.f32 1.0, %v2818_v9  ;;  %v1150_v14 = vmul.f32 %v3846_v19, %v853_v8  ;;  %v2487_v18 = vmul.f32 -1.442695, %v4028_v12  ;;  %v856_v47 = vpop.f32.mrb[24].mxu0 }
 0x127   :  { %v2822_v17 = vpop.eup %2821  ;;  %2839 = vrcp.f32 %v1791_v10  ;;  %v1793_v40 = vadd.f32 1.0, %v2820_v11  ;;  %v4037_v20 = vadd.f32 %v3848_v21, %v1149_v36  ;;  %v2488_v23 = vmul.f32 -1.442695, %v4032_v15  ;;  %v425_v33 = vpop.f32.mrb[25].mxu1 }
 0x128   :  { %2841 = vrcp.f32 %v1792_v13  ;;  %v1794_v22 = vadd.f32 1.0, %v2822_v17  ;;  %v4041_v25 = vadd.f32 %v3850_v27, %v1150_v14  ;;  %v2824_v29 = vpop.eup %2823  ;;  %v857_v31 = vadd.f32 %v856_v47, %v423_v26  ;;  %v858_v35 = vpop.f32.mrb[25].mxu0 }
 0x129   :  { %2843 = vrcp.f32 %v1793_v40  ;;  %v2489_v30 = vmul.f32 -1.442695, %v4037_v20  ;;  %v2826_v0 = vpop.eup %2825  ;;  %v2171_v1 = vmul.f32 %v2824_v29, %v3923_v44  ;;  %v859_v38 = vadd.f32 %v858_v35, %v425_v33  ;;  %v427_v41 = vpop.f32.mrb[26].mxu1 }
 0x12a   :  { %2845 = vrcp.f32 %v1794_v22  ;;  %v2490_v37 = vmul.f32 -1.442695, %v4041_v25  ;;  %v860_v42 = vpop.f32.mrb[26].mxu0  ;;  %v2828_v43 = vpop.eup %2827  ;;  %v2172_v48 = vmul.f32 %v2826_v0, %v3933_v52  ;;  %v1151_v49 = vmul.f32 %v3844_v16, %v857_v31 }
 0x12b   :  { %2847 = vpow2.f32 %v2487_v18  ;;  %v861_v51 = vadd.f32 %v860_v42, %v427_v41  ;;  %v429_v53 = vpop.f32.mrb[27].mxu1  ;;  %v862_v54 = vpop.f32.mrb[27].mxu0  ;;  %2299 = vst [vmem:[#allocation2 + $0x40] sm:$0xff] %v2171_v1  ;;  %v2173_v2 = vmul.f32 %v2828_v43, %v3946_v58  ;;  %v1152_v44 = vmul.f32 %v3846_v19, %v859_v38 }
 0x12c   :  { %v2830_v55 = vpop.eup %2829  ;;  %2849 = vpow2.f32 %v2488_v23  ;;  %v863_v56 = vadd.f32 %v862_v54, %v429_v53  ;;  %2300 = vst [vmem:[#allocation2 + $0x48] sm:$0xff] %v2172_v48  ;;  %v4052_v52 = vadd.f32 %v3848_v21, %v1151_v49 }
 0x12d   :  { %v2832_v57 = vpop.eup %2831  ;;  %v2174_v59 = vmul.f32 %v2830_v55, %v3950_v60  ;;  %2851 = vpow2.f32 %v2489_v30  ;;  %v1153_v61 = vmul.f32 %v3844_v16, %v861_v51  ;;  %2301 = vst [vmem:[#allocation2 + $0x50] sm:$0xff] %v2173_v2  ;;  %v4056_v58 = vadd.f32 %v3850_v27, %v1152_v44  ;;  %v433_v36 = vpop.f32.mrb[28].mxu1 }
 0x12e   :  { %v2834_v3 = vpop.eup %2833  ;;  %v1795_v62 = vadd.f32 1.0, %v2832_v57  ;;  %2853 = vpow2.f32 %v2490_v37  ;;  %v1154_v63 = vmul.f32 %v3846_v19, %v863_v56  ;;  %v2491_v60 = vmul.f32 -1.442695, %v4052_v52  ;;  %v866_v11 = vpop.f32.mrb[28].mxu0 }
 0x12f   :  { %v2836_v4 = vpop.eup %2835  ;;  %2302 = vst [vmem:[#allocation2 + $0x58] sm:$0xff] %v2174_v59  ;;  %v1796_v5 = vadd.f32 1.0, %v2834_v3  ;;  %v4061_v7 = vadd.f32 %v3848_v21, %v1153_v61  ;;  %v2492_v9 = vmul.f32 -1.442695, %v4056_v58  ;;  %v867_v40 = vadd.f32 %v866_v11, %v433_v36  ;;  %v435_v18 = vpop.f32.mrb[29].mxu1 }
 0x130   :  { %v2838_v6 = vpop.eup %2837  ;;  %2855 = vrcp.f32 %v1795_v62  ;;  %v1797_v8 = vadd.f32 1.0, %v2836_v4  ;;  %v4065_v10 = vadd.f32 %v3850_v27, %v1154_v63  ;;  %v868_v22 = vpop.f32.mrb[29].mxu0 }
 0x131   :  { %v2840_v13 = vpop.eup %2839  ;;  %2857 = vrcp.f32 %v1796_v5  ;;  %v1798_v14 = vadd.f32 1.0, %v2838_v6  ;;  %v2493_v17 = vmul.f32 -1.442695, %v4061_v7  ;;  %v869_v29 = vadd.f32 %v868_v22, %v435_v18  ;;  %v437_v30 = vpop.f32.mrb[30].mxu1 }
 0x132   :  { %v2842_v23 = vpop.eup %2841  ;;  %v2175_v26 = vmul.f32 %v2840_v13, %v3969_v32  ;;  %2859 = vrcp.f32 %v1797_v8  ;;  %v2494_v47 = vmul.f32 -1.442695, %v4065_v10  ;;  %v870_v31 = vpop.f32.mrb[30].mxu0  ;;  %v1155_v0 = vmul.f32 %v3844_v16, %v867_v40 }
 0x133   :  { %v2844_v33 = vpop.eup %2843  ;;  %v2176_v35 = vmul.f32 %v2842_v23, %v3979_v39  ;;  %2861 = vrcp.f32 %v1798_v14  ;;  %v871_v1 = vadd.f32 %v870_v31, %v437_v30  ;;  %v439_v37 = vpop.f32.mrb[31].mxu1  ;;  %v1156_v32 = vmul.f32 %v3846_v19, %v869_v29 }
 0x134   :  { %v872_v38 = vpop.f32.mrb[31].mxu0  ;;  %v2846_v41 = vpop.eup %2845  ;;  %2303 = vst [vmem:[#allocation2 + $0x60] sm:$0xff] %v2175_v26  ;;  %v2177_v42 = vmul.f32 %v2844_v33, %v3986_v46  ;;  %2863 = vpow2.f32 %v2491_v60  ;;  %v4076_v39 = vadd.f32 %v3848_v21, %v1155_v0 }
 0x135   :  { %v873_v43 = vadd.f32 %v872_v38, %v439_v37  ;;  %v2848_v48 = vpop.eup %2847  ;;  %2304 = vst [vmem:[#allocation2 + $0x68] sm:$0xff] %v2176_v35  ;;  %v2178_v49 = vmul.f32 %v2846_v41, %v3990_v50  ;;  %2865 = vpow2.f32 %v2492_v9  ;;  %v1157_v51 = vmul.f32 %v3844_v16, %v871_v1  ;;  %v443_v3 = vpop.f32.mrb[32].mxu1 }
 0x136   :  { %v2850_v53 = vpop.eup %2849  ;;  %2305 = vst [vmem:[#allocation2 + $0x70] sm:$0xff] %v2177_v42  ;;  %v1799_v54 = vadd.f32 1.0, %v2848_v48  ;;  %2867 = vpow2.f32 %v2493_v17  ;;  %v4080_v46 = vadd.f32 %v3850_v27, %v1156_v32  ;;  %v2495_v59 = vmul.f32 -1.442695, %v4076_v39  ;;  %v876_v62 = vpop.f32.mrb[32].mxu0 }
 0x137   :  { %v1158_v55 = vmul.f32 %v3846_v19, %v873_v43  ;;  %v2852_v2 = vpop.eup %2851  ;;  %2306 = vst [vmem:[#allocation2 + $0x78] sm:$0xff] %v2178_v49  ;;  %v1800_v44 = vadd.f32 1.0, %v2850_v53  ;;  %2869 = vpow2.f32 %v2494_v47  ;;  %v4084_v50 = vadd.f32 %v3848_v21, %v1157_v51  ;;  %v445_v60 = vpop.f32.mrb[33].mxu1 }
 0x138   :  { %v2854_v56 = vpop.eup %2853  ;;  %2871 = vrcp.f32 %v1799_v54  ;;  %v1801_v57 = vadd.f32 1.0, %v2852_v2  ;;  %v2496_v4 = vmul.f32 -1.442695, %v4080_v46  ;;  %v877_v5 = vadd.f32 %v876_v62, %v443_v3  ;;  %v878_v6 = vpop.f32.mrb[33].mxu0 }
 0x139   :  { %v4088_v61 = vadd.f32 %v3850_v27, %v1158_v55  ;;  %2873 = vrcp.f32 %v1800_v44  ;;  %v1802_v63 = vadd.f32 1.0, %v2854_v56  ;;  %v2497_v9 = vmul.f32 -1.442695, %v4084_v50  ;;  %v447_v13 = vpop.f32.mrb[34].mxu1  ;;  %v880_v14 = vpop.f32.mrb[34].mxu0 }
 0x13a   :  { %v2856_v8 = vpop.eup %2855  ;;  %2875 = vrcp.f32 %v1801_v57  ;;  %v879_v11 = vadd.f32 %v878_v6, %v445_v60  ;;  %v1159_v18 = vmul.f32 %v3844_v16, %v877_v5  ;;  %v881_v22 = vadd.f32 %v880_v14, %v447_v13  ;;  %v449_v23 = vpop.f32.mrb[35].mxu1 }
 0x13b   :  { %v2498_v36 = vmul.f32 -1.442695, %v4088_v61  ;;  %v2858_v17 = vpop.eup %2857  ;;  %v2179_v40 = vmul.f32 %v2856_v8, %v4001_v45  ;;  %2877 = vrcp.f32 %v1802_v63  ;;  %v882_v26 = vpop.f32.mrb[35].mxu0 }
 0x13c   :  { %v2860_v47 = vpop.eup %2859  ;;  %v2180_v29 = vmul.f32 %v2858_v17, %v4008_v28  ;;  %2879 = vpow2.f32 %v2495_v59  ;;  %v1160_v30 = vmul.f32 %v3846_v19, %v879_v11  ;;  %v883_v31 = vadd.f32 %v882_v26, %v449_v23 }
 0x13d   :  { %v2862_v33 = vpop.eup %2861  ;;  %2307 = vst [vmem:[#allocation2 + $0x80] sm:$0xff] %v2179_v40  ;;  %v2181_v35 = vmul.f32 %v2860_v47, %v4013_v34  ;;  %2881 = vpow2.f32 %v2496_v4  ;;  %v4099_v45 = vadd.f32 %v3848_v21, %v1159_v18  ;;  %v1161_v0 = vmul.f32 %v3844_v16, %v881_v22  ;;  %v453_v51 = vpop.f32.mrb[36].mxu1 }
 0x13e   :  { %v2864_v1 = vpop.eup %2863  ;;  %2308 = vst [vmem:[#allocation2 + $0x88] sm:$0xff] %v2180_v29  ;;  %v2182_v37 = vmul.f32 %v2862_v33, %v4017_v24  ;;  %2883 = vpow2.f32 %v2497_v9  ;;  %v4104_v28 = vadd.f32 %v3850_v27, %v1160_v30  ;;  %v1162_v38 = vmul.f32 %v3846_v19, %v883_v31  ;;  %v886_v53 = vpop.f32.mrb[36].mxu0 }
 0x13f   :  { %v2866_v41 = vpop.eup %2865  ;;  %2309 = vst [vmem:[#allocation2 + $0x90] sm:$0xff] %v2181_v35  ;;  %v1803_v42 = vadd.f32 1.0, %v2864_v1  ;;  %2885 = vpow2.f32 %v2498_v36  ;;  %v2499_v34 = vmul.f32 -1.442695, %v4099_v45  ;;  %v4109_v32 = vadd.f32 %v3848_v21, %v1161_v0  ;;  %v455_v56 = vpop.f32.mrb[37].mxu1 }
 0x140   :  { %v2868_v43 = vpop.eup %2867  ;;  %2310 = vst [vmem:[#allocation2 + $0x98] sm:$0xff] %v2182_v37  ;;  %v1804_v48 = vadd.f32 1.0, %v2866_v41  ;;  %v2500_v24 = vmul.f32 -1.442695, %v4104_v28  ;;  %v4113_v49 = vadd.f32 %v3850_v27, %v1162_v38  ;;  %v887_v44 = vadd.f32 %v886_v53, %v453_v51  ;;  %v888_v57 = vpop.f32.mrb[37].mxu0 }
 0x141   :  { %v2870_v54 = vpop.eup %2869  ;;  %2887 = vrcp.f32 %v1803_v42  ;;  %v1805_v55 = vadd.f32 1.0, %v2868_v43  ;;  %v2501_v2 = vmul.f32 -1.442695, %v4109_v32  ;;  %v889_v63 = vadd.f32 %v888_v57, %v455_v56  ;;  %v457_v4 = vpop.f32.mrb[38].mxu1 }
 0x142   :  { %v2872_v59 = vpop.eup %2871  ;;  %2889 = vrcp.f32 %v1804_v48  ;;  %v1806_v3 = vadd.f32 1.0, %v2870_v54  ;;  %v2502_v62 = vmul.f32 -1.442695, %v4113_v49  ;;  %v890_v5 = vpop.f32.mrb[38].mxu0  ;;  %v1163_v8 = vmul.f32 %v3844_v16, %v887_v44 }
 0x143   :  { %v2874_v60 = vpop.eup %2873  ;;  %v2183_v6 = vmul.f32 %v2872_v59, %v4028_v12  ;;  %2891 = vrcp.f32 %v1805_v55  ;;  %v891_v9 = vadd.f32 %v890_v5, %v457_v4  ;;  %v459_v36 = vpop.f32.mrb[39].mxu1  ;;  %v1164_v17 = vmul.f32 %v3846_v19, %v889_v63 }
 0x144   :  { %v892_v11 = vpop.f32.mrb[39].mxu0  ;;  %v2876_v13 = vpop.eup %2875  ;;  %v2184_v14 = vmul.f32 %v2874_v60, %v4032_v15  ;;  %2893 = vrcp.f32 %v1806_v3  ;;  %v4123_v12 = vadd.f32 %v3848_v21, %v1163_v8 }
 0x145   :  { %v893_v40 = vadd.f32 %v892_v11, %v459_v36  ;;  %v2878_v18 = vpop.eup %2877  ;;  %2311 = vst [vmem:[#allocation2 + $0xa0] sm:$0xff] %v2183_v6  ;;  %v2185_v22 = vmul.f32 %v2876_v13, %v4037_v20  ;;  %2895 = vpow2.f32 %v2499_v34  ;;  %v1165_v23 = vmul.f32 %v3844_v16, %v891_v9  ;;  %v463_v1 = vpop.f32.mrb[40].mxu1 }
 0x146   :  { %v2880_v26 = vpop.eup %2879  ;;  %2312 = vst [vmem:[#allocation2 + $0xa8] sm:$0xff] %v2184_v14  ;;  %v2186_v47 = vmul.f32 %v2878_v18, %v4041_v25  ;;  %2897 = vpow2.f32 %v2500_v24  ;;  %v4128_v15 = vadd.f32 %v3850_v27, %v1164_v17  ;;  %v2503_v0 = vmul.f32 -1.442695, %v4123_v12  ;;  %v896_v37 = vpop.f32.mrb[40].mxu0 }
 0x147   :  { %v1166_v29 = vmul.f32 %v3846_v19, %v893_v40  ;;  %v2882_v30 = vpop.eup %2881  ;;  %2313 = vst [vmem:[#allocation2 + $0xb0] sm:$0xff] %v2185_v22  ;;  %v1807_v31 = vadd.f32 1.0, %v2880_v26  ;;  %2899 = vpow2.f32 %v2501_v2  ;;  %v4132_v20 = vadd.f32 %v3848_v21, %v1165_v23  ;;  %v465_v43 = vpop.f32.mrb[41].mxu1 }
 0x148   :  { %v2884_v33 = vpop.eup %2883  ;;  %2314 = vst [vmem:[#allocation2 + $0xb8] sm:$0xff] %v2186_v47  ;;  %v1808_v35 = vadd.f32 1.0, %v2882_v30  ;;  %2901 = vpow2.f32 %v2502_v62  ;;  %v2504_v42 = vmul.f32 -1.442695, %v4128_v15  ;;  %v897_v34 = vadd.f32 %v896_v37, %v463_v1  ;;  %v898_v48 = vpop.f32.mrb[41].mxu0 }
 0x149   :  { %v4136_v25 = vadd.f32 %v3850_v27, %v1166_v29  ;;  %v2886_v38 = vpop.eup %2885  ;;  %2903 = vrcp.f32 %v1807_v31  ;;  %v1809_v41 = vadd.f32 1.0, %v2884_v33  ;;  %v2505_v51 = vmul.f32 -1.442695, %v4132_v20  ;;  %v467_v54 = vpop.f32.mrb[42].mxu1 }
 0x14a   :  { %2905 = vrcp.f32 %v1808_v35  ;;  %v1810_v24 = vadd.f32 1.0, %v2886_v38  ;;  %v899_v53 = vadd.f32 %v898_v48, %v465_v43  ;;  %v900_v55 = vpop.f32.mrb[42].mxu0  ;;  %v1167_v56 = vmul.f32 %v3844_v16, %v897_v34  ;;  %v469_v59 = vpop.f32.mrb[43].mxu1 }
 0x14b   :  { %v2888_v2 = vpop.eup %2887  ;;  %2907 = vrcp.f32 %v1809_v41  ;;  %v2506_v44 = vmul.f32 -1.442695, %v4136_v25  ;;  %v901_v57 = vadd.f32 %v900_v55, %v467_v54  ;;  %v902_v3 = vpop.f32.mrb[43].mxu0 }
 0x14c   :  { %v2890_v62 = vpop.eup %2889  ;;  %v2187_v63 = vmul.f32 %v2888_v2, %v4052_v52  ;;  %2909 = vrcp.f32 %v1810_v24  ;;  %v1168_v4 = vmul.f32 %v3846_v19, %v899_v53  ;;  %v903_v5 = vadd.f32 %v902_v3, %v469_v59 }
 0x14d   :  { %v2892_v60 = vpop.eup %2891  ;;  %v2188_v6 = vmul.f32 %v2890_v62, %v4056_v58  ;;  %2911 = vpow2.f32 %v2503_v0  ;;  %v4146_v8 = vadd.f32 %v3848_v21, %v1167_v56  ;;  %v1169_v9 = vmul.f32 %v3844_v16, %v901_v57  ;;  %v473_v26 = vpop.f32.mrb[44].mxu1 }
 0x14e   :  { %v2894_v36 = vpop.eup %2893  ;;  %2315 = vst [vmem:[#allocation2 + $0xc0] sm:$0xff] %v2187_v63  ;;  %v2189_v11 = vmul.f32 %v2892_v60, %v4061_v7  ;;  %2913 = vpow2.f32 %v2504_v42  ;;  %v4151_v52 = vadd.f32 %v3850_v27, %v1168_v4  ;;  %v1170_v13 = vmul.f32 %v3846_v19, %v903_v5  ;;  %v906_v47 = vpop.f32.mrb[44].mxu0 }
 0x14f   :  { %v2896_v14 = vpop.eup %2895  ;;  %2316 = vst [vmem:[#allocation2 + $0xc8] sm:$0xff] %v2188_v6  ;;  %v2190_v58 = vmul.f32 %v2894_v36, %v4065_v10  ;;  %2915 = vpow2.f32 %v2505_v51  ;;  %v2507_v17 = vmul.f32 -1.442695, %v4146_v8  ;;  %v4157_v40 = vadd.f32 %v3848_v21, %v1169_v9  ;;  %v475_v33 = vpop.f32.mrb[45].mxu1 }
 0x150   :  { %v2898_v18 = vpop.eup %2897  ;;  %2317 = vst [vmem:[#allocation2 + $0xd0] sm:$0xff] %v2189_v11  ;;  %v1811_v22 = vadd.f32 1.0, %v2896_v14  ;;  %2917 = vpow2.f32 %v2506_v44  ;;  %v2508_v7 = vmul.f32 -1.442695, %v4151_v52  ;;  %v4161_v23 = vadd.f32 %v3850_v27, %v1170_v13  ;;  %v908_v35 = vpop.f32.mrb[45].mxu0 }
 0x151   :  { %v2900_v29 = vpop.eup %2899  ;;  %2318 = vst [vmem:[#allocation2 + $0xd8] sm:$0xff] %v2190_v58  ;;  %v1812_v10 = vadd.f32 1.0, %v2898_v18  ;;  %2919 = vpow2.f32 %v2507_v17  ;;  %v2509_v30 = vmul.f32 -1.442695, %v4157_v40  ;;  %v907_v31 = vadd.f32 %v906_v47, %v473_v26  ;;  %v477_v41 = vpop.f32.mrb[46].mxu1 }
 0x152   :  { %v2902_v0 = vpop.eup %2901  ;;  %2921 = vrcp.f32 %v1811_v22  ;;  %v1813_v1 = vadd.f32 1.0, %v2900_v29  ;;  %v2510_v37 = vmul.f32 -1.442695, %v4161_v23  ;;  %v909_v38 = vadd.f32 %v908_v35, %v475_v33  ;;  %v910_v42 = vpop.f32.mrb[46].mxu0 }
 0x153   :  { %v2904_v34 = vpop.eup %2903  ;;  %2923 = vrcp.f32 %v1812_v10  ;;  %v1814_v43 = vadd.f32 1.0, %v2902_v0  ;;  %v1171_v48 = vmul.f32 %v3844_v16, %v907_v31  ;;  %v911_v24 = vadd.f32 %v910_v42, %v477_v41  ;;  %v479_v51 = vpop.f32.mrb[47].mxu1 }
 0x154   :  { %v912_v53 = vpop.f32.mrb[47].mxu0  ;;  %v2906_v54 = vpop.eup %2905  ;;  %v2191_v55 = vmul.f32 %v2904_v34, %v4076_v39  ;;  %2925 = vrcp.f32 %v1813_v1  ;;  %v1172_v2 = vmul.f32 %v3846_v19, %v909_v38 }
 0x155   :  { %v913_v44 = vadd.f32 %v912_v53, %v479_v51  ;;  %v2908_v56 = vpop.eup %2907  ;;  %v2192_v57 = vmul.f32 %v2906_v54, %v4080_v46  ;;  %2927 = vrcp.f32 %v1814_v43  ;;  %v4170_v59 = vadd.f32 %v3848_v21, %v1171_v48  ;;  %v483_v13 = vpop.f32.mrb[48].mxu1 }
 0x156   :  { %v1173_v3 = vmul.f32 %v3844_v16, %v911_v24  ;;  %v2910_v62 = vpop.eup %2909  ;;  %2319 = vst [vmem:[#allocation2 + $0xe0] sm:$0xff] %v2191_v55  ;;  %v2193_v63 = vmul.f32 %v2908_v56, %v4084_v50  ;;  %2929 = vpow2.f32 %v2508_v7  ;;  %v4175_v39 = vadd.f32 %v3850_v27, %v1172_v2  ;;  %v916_v14 = vpop.f32.mrb[48].mxu0 }
 0x157   :  { %v1174_v4 = vmul.f32 %v3846_v19, %v913_v44  ;;  %v2912_v5 = vpop.eup %2911  ;;  %2320 = vst [vmem:[#allocation2 + $0xe8] sm:$0xff] %v2192_v57  ;;  %v2194_v46 = vmul.f32 %v2910_v62, %v4088_v61  ;;  %2931 = vpow2.f32 %v2509_v30  ;;  %v2511_v60 = vmul.f32 -1.442695, %v4170_v59  ;;  %v485_v22 = vpop.f32.mrb[49].mxu1 }
 0x158   :  { %v4181_v6 = vadd.f32 %v3848_v21, %v1173_v3  ;;  %v2914_v9 = vpop.eup %2913  ;;  %2321 = vst [vmem:[#allocation2 + $0xf0] sm:$0xff] %v2193_v63  ;;  %v1815_v36 = vadd.f32 1.0, %v2912_v5  ;;  %2933 = vpow2.f32 %v2510_v37  ;;  %v2512_v50 = vmul.f32 -1.442695, %v4175_v39  ;;  %v918_v7 = vpop.f32.mrb[49].mxu0 }
 0x159   :  { %v4185_v11 = vadd.f32 %v3850_v27, %v1174_v4  ;;  %v2916_v58 = vpop.eup %2915  ;;  %2322 = vst [vmem:[#allocation2 + $0xf8] sm:$0xff] %v2194_v46  ;;  %v1816_v61 = vadd.f32 1.0, %v2914_v9  ;;  %2935 = vpow2.f32 %v2511_v60  ;;  %v917_v18 = vadd.f32 %v916_v14, %v483_v13  ;;  %v487_v30 = vpop.f32.mrb[50].mxu1 }
 0x15a   :  { %v2513_v17 = vmul.f32 -1.442695, %v4181_v6  ;;  %v2918_v26 = vpop.eup %2917  ;;  %2937 = vrcp.f32 %v1815_v36  ;;  %v1817_v47 = vadd.f32 1.0, %v2916_v58  ;;  %v919_v10 = vadd.f32 %v918_v7, %v485_v22  ;;  %v920_v31 = vpop.f32.mrb[50].mxu0 }
 0x15b   :  { %v2514_v29 = vmul.f32 -1.442695, %v4185_v11  ;;  %v2920_v33 = vpop.eup %2919  ;;  %2939 = vrcp.f32 %v1816_v61  ;;  %v1818_v35 = vadd.f32 1.0, %v2918_v26  ;;  %v1175_v0 = vmul.f32 %v3844_v16, %v917_v18  ;;  %v489_v37 = vpop.f32.mrb[51].mxu1 }
 0x15c   :  { %v921_v1 = vadd.f32 %v920_v31, %v487_v30  ;;  %v922_v38 = vpop.f32.mrb[51].mxu0  ;;  %v2922_v41 = vpop.eup %2921  ;;  %2941 = vrcp.f32 %v1817_v47  ;;  %v1819_v42 = vadd.f32 1.0, %v2920_v33  ;;  %v1176_v34 = vmul.f32 %v3846_v19, %v919_v10 }
 0x15d   :  { %v923_v43 = vadd.f32 %v922_v38, %v489_v37  ;;  %v2924_v48 = vpop.eup %2923  ;;  %v2195_v24 = vmul.f32 %v2922_v41, %v4099_v45  ;;  %2943 = vrcp.f32 %v1818_v35  ;;  %v4193_v51 = vadd.f32 %v3848_v21, %v1175_v0  ;;  %v493_v5 = vpop.f32.mrb[52].mxu1 }
 0x15e   :  { %v1177_v53 = vmul.f32 %v3844_v16, %v921_v1  ;;  %v2926_v54 = vpop.eup %2925  ;;  %v2196_v55 = vmul.f32 %v2924_v48, %v4104_v28  ;;  %2945 = vrcp.f32 %v1819_v42  ;;  %v4198_v2 = vadd.f32 %v3850_v27, %v1176_v34  ;;  %v926_v46 = vpop.f32.mrb[52].mxu0 }
 0x15f   :  { %v1178_v44 = vmul.f32 %v3846_v19, %v923_v43  ;;  %v2928_v56 = vpop.eup %2927  ;;  %2323 = vst [vmem:[#allocation2 + $0x100] sm:$0xff] %v2195_v24  ;;  %v2197_v57 = vmul.f32 %v2926_v54, %v4109_v32  ;;  %2947 = vpow2.f32 %v2512_v50  ;;  %v2515_v45 = vmul.f32 -1.442695, %v4193_v51  ;;  %v495_v50 = vpop.f32.mrb[53].mxu1 }
 0x160   :  { %v4204_v3 = vadd.f32 %v3848_v21, %v1177_v53  ;;  %v2930_v62 = vpop.eup %2929  ;;  %2324 = vst [vmem:[#allocation2 + $0x108] sm:$0xff] %v2196_v55  ;;  %v2198_v28 = vmul.f32 %v2928_v56, %v4113_v49  ;;  %2949 = vpow2.f32 %v2513_v17  ;;  %v2516_v63 = vmul.f32 -1.442695, %v4198_v2  ;;  %v928_v13 = vpop.f32.mrb[53].mxu0 }
 0x161   :  { %v4209_v4 = vadd.f32 %v3850_v27, %v1178_v44  ;;  %v2932_v60 = vpop.eup %2931  ;;  %2325 = vst [vmem:[#allocation2 + $0x110] sm:$0xff] %v2197_v57  ;;  %v1820_v32 = vadd.f32 1.0, %v2930_v62  ;;  %2951 = vpow2.f32 %v2514_v29  ;;  %v927_v36 = vadd.f32 %v926_v46, %v493_v5  ;;  %v497_v17 = vpop.f32.mrb[54].mxu1 }
 0x162   :  { %v2517_v9 = vmul.f32 -1.442695, %v4204_v3  ;;  %v2934_v14 = vpop.eup %2933  ;;  %2326 = vst [vmem:[#allocation2 + $0x118] sm:$0xff] %v2198_v28  ;;  %v1821_v49 = vadd.f32 1.0, %v2932_v60  ;;  %2953 = vpow2.f32 %v2515_v45  ;;  %v929_v61 = vadd.f32 %v928_v13, %v495_v50  ;;  %v930_v18 = vpop.f32.mrb[54].mxu0 }
 0x163   :  { %v2518_v58 = vmul.f32 -1.442695, %v4209_v4  ;;  %v2936_v22 = vpop.eup %2935  ;;  %2955 = vrcp.f32 %v1820_v32  ;;  %v1822_v7 = vadd.f32 1.0, %v2934_v14  ;;  %v1179_v26 = vmul.f32 %v3844_v16, %v927_v36  ;;  %v499_v29 = vpop.f32.mrb[55].mxu1 }
 0x164   :  { %v931_v47 = vadd.f32 %v930_v18, %v497_v17  ;;  %v932_v10 = vpop.f32.mrb[55].mxu0  ;;  %v2938_v30 = vpop.eup %2937  ;;  %2957 = vrcp.f32 %v1821_v49  ;;  %v1823_v31 = vadd.f32 1.0, %v2936_v22  ;;  %v1180_v33 = vmul.f32 %v3846_v19, %v929_v61 }
 0x165   :  { %v933_v35 = vadd.f32 %v932_v10, %v499_v29  ;;  %v2940_v0 = vpop.eup %2939  ;;  %v2199_v1 = vmul.f32 %v2938_v30, %v4123_v12  ;;  %2959 = vrcp.f32 %v1822_v7  ;;  %v4217_v37 = vadd.f32 %v3848_v21, %v1179_v26  ;;  %v503_v56 = vpop.f32.mrb[56].mxu1 }
 0x166   :  { %v1181_v38 = vmul.f32 %v3844_v16, %v931_v47  ;;  %v2942_v41 = vpop.eup %2941  ;;  %v2200_v42 = vmul.f32 %v2940_v0, %v4128_v15  ;;  %2961 = vrcp.f32 %v1823_v31  ;;  %v4222_v34 = vadd.f32 %v3850_v27, %v1180_v33  ;;  %v936_v57 = vpop.f32.mrb[56].mxu0 }
 0x167   :  { %v1182_v43 = vmul.f32 %v3846_v19, %v933_v35  ;;  %v2944_v48 = vpop.eup %2943  ;;  %2327 = vst [vmem:[#allocation2 + $0x120] sm:$0xff] %v2199_v1  ;;  %v2201_v24 = vmul.f32 %v2942_v41, %v4132_v20  ;;  %2963 = vpow2.f32 %v2516_v63  ;;  %v2519_v12 = vmul.f32 -1.442695, %v4217_v37  ;;  %v505_v63 = vpop.f32.mrb[57].mxu1 }
 0x168   :  { %v4228_v53 = vadd.f32 %v3848_v21, %v1181_v38  ;;  %v2946_v54 = vpop.eup %2945  ;;  %2328 = vst [vmem:[#allocation2 + $0x128] sm:$0xff] %v2200_v42  ;;  %v2202_v15 = vmul.f32 %v2944_v48, %v4136_v25  ;;  %2965 = vpow2.f32 %v2517_v9  ;;  %v2520_v55 = vmul.f32 -1.442695, %v4222_v34  ;;  %v938_v5 = vpop.f32.mrb[57].mxu0 }
 0x169   :  { %v4233_v44 = vadd.f32 %v3850_v27, %v1182_v43  ;;  %v2948_v45 = vpop.eup %2947  ;;  %2329 = vst [vmem:[#allocation2 + $0x130] sm:$0xff] %v2201_v24  ;;  %v2203_v20 = vmul.f32 %v2946_v54, %v4146_v8  ;;  %2967 = vpow2.f32 %v2518_v58  ;;  %v937_v28 = vadd.f32 %v936_v57, %v503_v56  ;;  %v507_v9 = vpop.f32.mrb[58].mxu1 }
 0x16a   :  { %v2521_v62 = vmul.f32 -1.442695, %v4228_v53  ;;  %v2950_v46 = vpop.eup %2949  ;;  %2330 = vst [vmem:[#allocation2 + $0x138] sm:$0xff] %v2202_v15  ;;  %v1824_v25 = vadd.f32 1.0, %v2948_v45  ;;  %2969 = vpow2.f32 %v2519_v12  ;;  %v939_v32 = vadd.f32 %v938_v5, %v505_v63  ;;  %v940_v36 = vpop.f32.mrb[58].mxu0 }
 0x16b   :  { %v2522_v60 = vmul.f32 -1.442695, %v4233_v44  ;;  %v2952_v50 = vpop.eup %2951  ;;  %2331 = vst [vmem:[#allocation2 + $0x140] sm:$0xff] %v2203_v20  ;;  %v1825_v13 = vadd.f32 1.0, %v2950_v46  ;;  %2971 = vpow2.f32 %v2520_v55  ;;  %v1183_v8 = vmul.f32 %v3844_v16, %v937_v28  ;;  %v509_v49 = vpop.f32.mrb[59].mxu1 }
 0x16c   :  { %v941_v14 = vadd.f32 %v940_v36, %v507_v9  ;;  %v942_v58 = vpop.f32.mrb[59].mxu0  ;;  %v2954_v61 = vpop.eup %2953  ;;  %2973 = vrcp.f32 %v1824_v25  ;;  %v1826_v17 = vadd.f32 1.0, %v2952_v50  ;;  %v1184_v18 = vmul.f32 %v3846_v19, %v939_v32 }
 0x16d   :  { %v943_v22 = vadd.f32 %v942_v58, %v509_v49  ;;  %v2956_v7 = vpop.eup %2955  ;;  %2975 = vrcp.f32 %v1825_v13  ;;  %v1827_v26 = vadd.f32 1.0, %v2954_v61  ;;  %v4241_v47 = vadd.f32 %v3848_v21, %v1183_v8  ;;  %v513_v48 = vpop.f32.mrb[60].mxu1 }
 0x16e   :  { %v1185_v29 = vmul.f32 %v3844_v16, %v941_v14  ;;  %v2958_v10 = vpop.eup %2957  ;;  %v2204_v30 = vmul.f32 %v2956_v7, %v4151_v52  ;;  %2977 = vrcp.f32 %v1826_v17  ;;  %v4246_v31 = vadd.f32 %v3850_v27, %v1184_v18  ;;  %v946_v24 = vpop.f32.mrb[60].mxu0 }
 0x16f   :  { %v1186_v33 = vmul.f32 %v3846_v19, %v943_v22  ;;  %v2960_v35 = vpop.eup %2959  ;;  %v2205_v0 = vmul.f32 %v2958_v10, %v4157_v40  ;;  %2979 = vrcp.f32 %v1827_v26  ;;  %v2523_v1 = vmul.f32 -1.442695, %v4241_v47  ;;  %v515_v55 = vpop.f32.mrb[61].mxu1 }
 0x170   :  { %v4252_v38 = vadd.f32 %v3848_v21, %v1185_v29  ;;  %v2962_v41 = vpop.eup %2961  ;;  %2332 = vst [vmem:[#allocation2 + $0x148] sm:$0xff] %v2204_v30  ;;  %v2206_v42 = vmul.f32 %v2960_v35, %v4161_v23  ;;  %2981 = vpow2.f32 %v2521_v62  ;;  %v2524_v52 = vmul.f32 -1.442695, %v4246_v31  ;;  %v948_v56 = vpop.f32.mrb[61].mxu0 }
 0x171   :  { %v4257_v43 = vadd.f32 %v3850_v27, %v1186_v33  ;;  %v2964_v12 = vpop.eup %2963  ;;  %2333 = vst [vmem:[#allocation2 + $0x150] sm:$0xff] %v2205_v0  ;;  %v2207_v40 = vmul.f32 %v2962_v41, %v4170_v59  ;;  %2983 = vpow2.f32 %v2522_v60  ;;  %v947_v15 = vadd.f32 %v946_v24, %v513_v48  ;;  %v517_v62 = vpop.f32.mrb[62].mxu1 }
 0x172   :  { %v2525_v54 = vmul.f32 -1.442695, %v4252_v38  ;;  %v2966_v57 = vpop.eup %2965  ;;  %2334 = vst [vmem:[#allocation2 + $0x158] sm:$0xff] %v2206_v42  ;;  %v1828_v23 = vadd.f32 1.0, %v2964_v12  ;;  %2985 = vpow2.f32 %v2523_v1  ;;  %v949_v20 = vadd.f32 %v948_v56, %v515_v55  ;;  %v950_v28 = vpop.f32.mrb[62].mxu0 }
 0x173   :  { %v2526_v45 = vmul.f32 -1.442695, %v4257_v43  ;;  %v2968_v63 = vpop.eup %2967  ;;  %2335 = vst [vmem:[#allocation2 + $0x160] sm:$0xff] %v2207_v40  ;;  %v1829_v5 = vadd.f32 1.0, %v2966_v57  ;;  %2987 = vpow2.f32 %v2524_v52  ;;  %v1187_v59 = vmul.f32 %v3844_v16, %v947_v15  ;;  %v519_v25 = vpop.f32.mrb[63].mxu1 }
 0x174   :  { %v951_v46 = vadd.f32 %v950_v28, %v517_v62  ;;  %v952_v60 = vpop.f32.mrb[63].mxu0  ;;  %v2970_v32 = vpop.eup %2969  ;;  %2989 = vrcp.f32 %v1828_v23  ;;  %v1830_v9 = vadd.f32 1.0, %v2968_v63  ;;  %v1188_v36 = vmul.f32 %v3846_v19, %v949_v20 }
 0x175   :  { %v953_v50 = vadd.f32 %v952_v60, %v519_v25  ;;  %v2972_v13 = vpop.eup %2971  ;;  %2991 = vrcp.f32 %v1829_v5  ;;  %v1831_v8 = vadd.f32 1.0, %v2970_v32  ;;  %v4265_v14 = vadd.f32 %v3848_v21, %v1187_v59  ;;  %v523_v0 = vpop.f32.mrb[64].mxu1 }
 0x176   :  { %v1189_v49 = vmul.f32 %v3844_v16, %v951_v46  ;;  %v2974_v58 = vpop.eup %2973  ;;  %2993 = vrcp.f32 %v1830_v9  ;;  %v1832_v61 = vadd.f32 1.0, %v2972_v13  ;;  %v4269_v17 = vadd.f32 %v3850_v27, %v1188_v36  ;;  %v956_v1 = vpop.f32.mrb[64].mxu0 }
 0x177   :  { %v1190_v18 = vmul.f32 %v3846_v19, %v953_v50  ;;  %v2976_v22 = vpop.eup %2975  ;;  %v2208_v7 = vmul.f32 %v2974_v58, %v4175_v39  ;;  %2995 = vrcp.f32 %v1831_v8  ;;  %v2527_v26 = vmul.f32 -1.442695, %v4265_v14  ;;  %v525_v48 = vpop.f32.mrb[65].mxu1 }
 0x178   :  { %v4275_v29 = vadd.f32 %v3848_v21, %v1189_v49  ;;  %v2978_v10 = vpop.eup %2977  ;;  %v2209_v30 = vmul.f32 %v2976_v22, %v4181_v6  ;;  %2997 = vrcp.f32 %v1832_v61  ;;  %v2528_v33 = vmul.f32 -1.442695, %v4269_v17  ;;  %v958_v24 = vpop.f32.mrb[65].mxu0 }
 0x179   :  { %v4280_v35 = vadd.f32 %v3850_v27, %v1190_v18  ;;  %v2980_v41 = vpop.eup %2979  ;;  %2336 = vst [vmem:[#allocation2 + $0x168] sm:$0xff] %v2208_v7  ;;  %v2210_v39 = vmul.f32 %v2978_v10, %v4185_v11  ;;  %2999 = vpow2.f32 %v2525_v54  ;;  %v957_v52 = vadd.f32 %v956_v1, %v523_v0  ;;  %v527_v55 = vpop.f32.mrb[66].mxu1 }
 0x17a   :  { %v2529_v42 = vmul.f32 -1.442695, %v4275_v29  ;;  %v2982_v12 = vpop.eup %2981  ;;  %2337 = vst [vmem:[#allocation2 + $0x170] sm:$0xff] %v2209_v30  ;;  %v2211_v6 = vmul.f32 %v2980_v41, %v4193_v51  ;;  %3001 = vpow2.f32 %v2526_v45  ;;  %v959_v15 = vadd.f32 %v958_v24, %v525_v48  ;;  %v960_v56 = vpop.f32.mrb[66].mxu0 }
 0x17b   :  { %v2530_v40 = vmul.f32 -1.442695, %v4280_v35  ;;  %v2984_v57 = vpop.eup %2983  ;;  %2338 = vst [vmem:[#allocation2 + $0x178] sm:$0xff] %v2210_v39  ;;  %v1833_v23 = vadd.f32 1.0, %v2982_v12  ;;  %3003 = vpow2.f32 %v2527_v26  ;;  %v1191_v11 = vmul.f32 %v3844_v16, %v957_v52  ;;  %v529_v20 = vpop.f32.mrb[67].mxu1 }
 0x17c   :  { %v961_v54 = vadd.f32 %v960_v56, %v527_v55  ;;  %v962_v62 = vpop.f32.mrb[67].mxu0  ;;  %v2986_v28 = vpop.eup %2985  ;;  %2339 = vst [vmem:[#allocation2 + $0x180] sm:$0xff] %v2211_v6  ;;  %v1834_v63 = vadd.f32 1.0, %v2984_v57  ;;  %3005 = vpow2.f32 %v2528_v33  ;;  %v1192_v51 = vmul.f32 %v3846_v19, %v959_v15 }
 0x17d   :  { %v963_v45 = vadd.f32 %v962_v62, %v529_v20  ;;  %v2988_v5 = vpop.eup %2987  ;;  %3007 = vrcp.f32 %v1833_v23  ;;  %v1835_v59 = vadd.f32 1.0, %v2986_v28  ;;  %v4289_v46 = vadd.f32 %v3848_v21, %v1191_v11  ;;  %v533_v7 = vpop.f32.mrb[68].mxu1 }
 0x17e   :  { %v1193_v25 = vmul.f32 %v3844_v16, %v961_v54  ;;  %v2990_v60 = vpop.eup %2989  ;;  %3009 = vrcp.f32 %v1834_v63  ;;  %v1836_v32 = vadd.f32 1.0, %v2988_v5  ;;  %v4293_v9 = vadd.f32 %v3850_v27, %v1192_v51  ;;  %v966_v26 = vpop.f32.mrb[68].mxu0 }
 0x17f   :  { %v1194_v36 = vmul.f32 %v3846_v19, %v963_v45  ;;  %v2992_v50 = vpop.eup %2991  ;;  %v2212_v13 = vmul.f32 %v2990_v60, %v4198_v2  ;;  %3011 = vrcp.f32 %v1835_v59  ;;  %v2531_v8 = vmul.f32 -1.442695, %v4289_v46  ;;  %v535_v0 = vpop.f32.mrb[69].mxu1 }
 0x180   :  { %v4299_v49 = vadd.f32 %v3848_v21, %v1193_v25  ;;  %v2994_v58 = vpop.eup %2993  ;;  %v2213_v61 = vmul.f32 %v2992_v50, %v4204_v3  ;;  %3013 = vrcp.f32 %v1836_v32  ;;  %v2532_v18 = vmul.f32 -1.442695, %v4293_v9  ;;  %v968_v1 = vpop.f32.mrb[69].mxu0 }
 0x181   :  { %v4304_v22 = vadd.f32 %v3850_v27, %v1194_v36  ;;  %v2996_v10 = vpop.eup %2995  ;;  %2340 = vst [vmem:[#allocation2 + $0x188] sm:$0xff] %v2212_v13  ;;  %v2214_v2 = vmul.f32 %v2994_v58, %v4209_v4  ;;  %3015 = vpow2.f32 %v2529_v42  ;;  %v967_v33 = vadd.f32 %v966_v26, %v533_v7  ;;  %v537_v48 = vpop.f32.mrb[70].mxu1 }
 0x182   :  { %v2533_v30 = vmul.f32 -1.442695, %v4299_v49  ;;  %v2998_v41 = vpop.eup %2997  ;;  %2341 = vst [vmem:[#allocation2 + $0x190] sm:$0xff] %v2213_v61  ;;  %v2215_v3 = vmul.f32 %v2996_v10, %v4217_v37  ;;  %3017 = vpow2.f32 %v2530_v40  ;;  %v969_v52 = vadd.f32 %v968_v1, %v535_v0  ;;  %v970_v24 = vpop.f32.mrb[70].mxu0 }
 0x183   :  { %v2534_v39 = vmul.f32 -1.442695, %v4304_v22  ;;  %v3000_v12 = vpop.eup %2999  ;;  %2342 = vst [vmem:[#allocation2 + $0x198] sm:$0xff] %v2214_v2  ;;  %v2216_v4 = vmul.f32 %v2998_v41, %v4222_v34  ;;  %3019 = vpow2.f32 %v2531_v8  ;;  %v1195_v42 = vmul.f32 %v3844_v16, %v967_v33  ;;  %v539_v15 = vpop.f32.mrb[71].mxu1 }
 0x184   :  { %v971_v6 = vadd.f32 %v970_v24, %v537_v48  ;;  %v972_v55 = vpop.f32.mrb[71].mxu0  ;;  %v3002_v56 = vpop.eup %3001  ;;  %2343 = vst [vmem:[#allocation2 + $0x1a0] sm:$0xff] %v2215_v3  ;;  %v1837_v57 = vadd.f32 1.0, %v3000_v12  ;;  %3021 = vpow2.f32 %v2532_v18  ;;  %v1196_v37 = vmul.f32 %v3846_v19, %v969_v52 }
 0x185   :  { %v973_v40 = vadd.f32 %v972_v55, %v539_v15  ;;  %v3004_v23 = vpop.eup %3003  ;;  %2344 = vst [vmem:[#allocation2 + $0x1a8] sm:$0xff] %v2216_v4  ;;  %v1838_v11 = vadd.f32 1.0, %v3002_v56  ;;  %3023 = vpow2.f32 %v2533_v30  ;;  %v4314_v54 = vadd.f32 %v3848_v21, %v1195_v42  ;;  %v543_v50 = vpop.f32.mrb[72].mxu1 }
 0x186   :  { %v1197_v34 = vmul.f32 %v3844_v16, %v971_v6  ;;  %v3006_v20 = vpop.eup %3005  ;;  %3025 = vrcp.f32 %v1837_v57  ;;  %v1839_v62 = vadd.f32 1.0, %v3004_v23  ;;  %v4318_v28 = vadd.f32 %v3850_v27, %v1196_v37  ;;  %v976_v13 = vpop.f32.mrb[72].mxu0 }
 0x187   :  { %v1198_v63 = vmul.f32 %v3846_v19, %v973_v40  ;;  %v3008_v51 = vpop.eup %3007  ;;  %3027 = vrcp.f32 %v1838_v11  ;;  %v1840_v45 = vadd.f32 1.0, %v3006_v20  ;;  %v2535_v5 = vmul.f32 -1.442695, %v4314_v54  ;;  %v545_v7 = vpop.f32.mrb[73].mxu1 }
 0x188   :  { %v4323_v59 = vadd.f32 %v3848_v21, %v1197_v34  ;;  %v3010_v25 = vpop.eup %3009  ;;  %v2217_v60 = vmul.f32 %v3008_v51, %v4228_v53  ;;  %3029 = vrcp.f32 %v1839_v62  ;;  %v2536_v32 = vmul.f32 -1.442695, %v4318_v28  ;;  %v978_v26 = vpop.f32.mrb[73].mxu0 }
 0x189   :  { %v4328_v36 = vadd.f32 %v3850_v27, %v1198_v63  ;;  %v3012_v8 = vpop.eup %3011  ;;  %v2218_v58 = vmul.f32 %v3010_v25, %v4233_v44  ;;  %3031 = vrcp.f32 %v1840_v45  ;;  %v977_v18 = vadd.f32 %v976_v13, %v543_v50  ;;  %v547_v33 = vpop.f32.mrb[74].mxu1 }
 0x18a   :  { %v2537_v61 = vmul.f32 -1.442695, %v4323_v59  ;;  %v3014_v10 = vpop.eup %3013  ;;  %2345 = vst [vmem:[#allocation2 + $0x1b0] sm:$0xff] %v2217_v60  ;;  %v2219_v53 = vmul.f32 %v3012_v8, %v4241_v47  ;;  %3033 = vpow2.f32 %v2534_v39  ;;  %v979_v30 = vadd.f32 %v978_v26, %v545_v7  ;;  %v980_v0 = vpop.f32.mrb[74].mxu0 }
 0x18b   :  { %v2538_v2 = vmul.f32 -1.442695, %v4328_v36  ;;  %v3016_v1 = vpop.eup %3015  ;;  %2346 = vst [vmem:[#allocation2 + $0x1b8] sm:$0xff] %v2218_v58  ;;  %v2220_v44 = vmul.f32 %v3014_v10, %v4246_v31  ;;  %3035 = vpow2.f32 %v2535_v5  ;;  %v1199_v41 = vmul.f32 %v3844_v16, %v977_v18  ;;  %v549_v52 = vpop.f32.mrb[75].mxu1 }
 0x18c   :  { %v981_v3 = vadd.f32 %v980_v0, %v547_v33  ;;  %v982_v48 = vpop.f32.mrb[75].mxu0  ;;  %v3018_v24 = vpop.eup %3017  ;;  %2347 = vst [vmem:[#allocation2 + $0x1c0] sm:$0xff] %v2219_v53  ;;  %v1841_v12 = vadd.f32 1.0, %v3016_v1  ;;  %3037 = vpow2.f32 %v2536_v32  ;;  %v1200_v47 = vmul.f32 %v3846_v19, %v979_v30 }
 0x18d   :  { %v983_v39 = vadd.f32 %v982_v48, %v549_v52  ;;  %v3020_v4 = vpop.eup %3019  ;;  %2348 = vst [vmem:[#allocation2 + $0x1c8] sm:$0xff] %v2220_v44  ;;  %v1842_v42 = vadd.f32 1.0, %v3018_v24  ;;  %3039 = vpow2.f32 %v2537_v61  ;;  %v4338_v6 = vadd.f32 %v3848_v21, %v1199_v41  ;;  %v553_v51 = vpop.f32.mrb[76].mxu1 }
 0x18e   :  { %v1201_v31 = vmul.f32 %v3844_v16, %v981_v3  ;;  %v3022_v15 = vpop.eup %3021  ;;  %3041 = vrcp.f32 %v1841_v12  ;;  %v1843_v55 = vadd.f32 1.0, %v3020_v4  ;;  %v4342_v56 = vadd.f32 %v3850_v27, %v1200_v47  ;;  %v986_v45 = vpop.f32.mrb[76].mxu0 }
 0x18f   :  { %v1202_v57 = vmul.f32 %v3846_v19, %v983_v39  ;;  %v3024_v37 = vpop.eup %3023  ;;  %3043 = vrcp.f32 %v1842_v42  ;;  %v1844_v40 = vadd.f32 1.0, %v3022_v15  ;;  %v2539_v23 = vmul.f32 -1.442695, %v4338_v6  ;;  %v555_v50 = vpop.f32.mrb[77].mxu1 }
 0x190   :  { %v4347_v11 = vadd.f32 %v3848_v21, %v1201_v31  ;;  %v3026_v34 = vpop.eup %3025  ;;  %3045 = vrcp.f32 %v1843_v55  ;;  %v1845_v20 = vadd.f32 1.0, %v3024_v37  ;;  %v2540_v62 = vmul.f32 -1.442695, %v4342_v56  ;;  %v988_v13 = vpop.f32.mrb[77].mxu0 }
 0x191   :  { %v4351_v63 = vadd.f32 %v3850_v27, %v1202_v57  ;;  %v3028_v5 = vpop.eup %3027  ;;  %v2221_v25 = vmul.f32 %v3026_v34, %v4252_v38  ;;  %3047 = vrcp.f32 %v1844_v40  ;;  %v987_v32 = vadd.f32 %v986_v45, %v553_v51  ;;  %v557_v7 = vpop.f32.mrb[78].mxu1 }
 0x192   :  { %v2541_v60 = vmul.f32 -1.442695, %v4347_v11  ;;  %v3030_v8 = vpop.eup %3029  ;;  %v2222_v58 = vmul.f32 %v3028_v5, %v4257_v43  ;;  %3049 = vrcp.f32 %v1845_v20  ;;  %v989_v18 = vadd.f32 %v988_v13, %v555_v50  ;;  %v990_v26 = vpop.f32.mrb[78].mxu0 }
 0x193   :  { %v2542_v61 = vmul.f32 -1.442695, %v4351_v63  ;;  %v3032_v10 = vpop.eup %3031  ;;  %2349 = vst [vmem:[#allocation2 + $0x1d0] sm:$0xff] %v2221_v25  ;;  %v2223_v53 = vmul.f32 %v3030_v8, %v4265_v14  ;;  %3051 = vpow2.f32 %v2538_v2  ;;  %v1203_v38 = vmul.f32 %v3844_v16, %v987_v32  ;;  %v559_v33 = vpop.f32.mrb[79].mxu1 }
 0x194   :  { %v991_v30 = vadd.f32 %v990_v26, %v557_v7  ;;  %v992_v0 = vpop.f32.mrb[79].mxu0  ;;  %v3034_v1 = vpop.eup %3033  ;;  %2350 = vst [vmem:[#allocation2 + $0x1d8] sm:$0xff] %v2222_v58  ;;  %v2224_v43 = vmul.f32 %v3032_v10, %v4269_v17  ;;  %3053 = vpow2.f32 %v2539_v23  ;;  %v1204_v44 = vmul.f32 %v3846_v19, %v989_v18 }
 0x195   :  { %v993_v41 = vadd.f32 %v992_v0, %v559_v33  ;;  %v3036_v3 = vpop.eup %3035  ;;  %2351 = vst [vmem:[#allocation2 + $0x1e0] sm:$0xff] %v2223_v53  ;;  %v1846_v52 = vadd.f32 1.0, %v3034_v1  ;;  %3055 = vpow2.f32 %v2540_v62  ;;  %v4362_v14 = vadd.f32 %v3848_v21, %v1203_v38  ;;  %v563_v37 = vpop.f32.mrb[80].mxu1 }
 0x196   :  { %v1205_v2 = vmul.f32 %v3844_v16, %v991_v30  ;;  %v3038_v48 = vpop.eup %3037  ;;  %2352 = vst [vmem:[#allocation2 + $0x1e8] sm:$0xff] %v2224_v43  ;;  %v1847_v24 = vadd.f32 1.0, %v3036_v3  ;;  %3057 = vpow2.f32 %v2541_v60  ;;  %v4366_v12 = vadd.f32 %v3850_v27, %v1204_v44  ;;  %v996_v40 = vpop.f32.mrb[80].mxu0 }
 0x197   :  { %v1206_v17 = vmul.f32 %v3846_v19, %v993_v41  ;;  %v3040_v47 = vpop.eup %3039  ;;  %3059 = vrcp.f32 %v1846_v52  ;;  %v1848_v39 = vadd.f32 1.0, %v3038_v48  ;;  %v2543_v4 = vmul.f32 -1.442695, %v4362_v14  ;;  %v565_v51 = vpop.f32.mrb[81].mxu1 }
 0x198   :  { %v4371_v42 = vadd.f32 %v3848_v21, %v1205_v2  ;;  %v3042_v31 = vpop.eup %3041  ;;  %3061 = vrcp.f32 %v1847_v24  ;;  %v1849_v15 = vadd.f32 1.0, %v3040_v47  ;;  %v2544_v55 = vmul.f32 -1.442695, %v4366_v12  ;;  %v998_v45 = vpop.f32.mrb[81].mxu0 }
 0x199   :  { %v4375_v57 = vadd.f32 %v3850_v27, %v1206_v17  ;;  %v3044_v23 = vpop.eup %3043  ;;  %v2225_v34 = vmul.f32 %v3042_v31, %v4275_v29  ;;  %3063 = vrcp.f32 %v1848_v39  ;;  %v997_v62 = vadd.f32 %v996_v40, %v563_v37  ;;  %v567_v50 = vpop.f32.mrb[82].mxu1 }
 0x19a   :  { %v2545_v20 = vmul.f32 -1.442695, %v4371_v42  ;;  %v3046_v5 = vpop.eup %3045  ;;  %v2226_v25 = vmul.f32 %v3044_v23, %v4280_v35  ;;  %3065 = vrcp.f32 %v1849_v15  ;;  %v999_v32 = vadd.f32 %v998_v45, %v565_v51  ;;  %v1000_v13 = vpop.f32.mrb[82].mxu0 }
 0x19b   :  { %v2546_v60 = vmul.f32 -1.442695, %v4375_v57  ;;  %v3048_v8 = vpop.eup %3047  ;;  %2353 = vst [vmem:[#allocation2 + $0x1f0] sm:$0xff] %v2225_v34  ;;  %v2227_v58 = vmul.f32 %v3046_v5, %v4289_v46  ;;  %3067 = vpow2.f32 %v2542_v61  ;;  %v1207_v29 = vmul.f32 %v3844_v16, %v997_v62  ;;  %v569_v7 = vpop.f32.mrb[83].mxu1 }
 0x19c   :  { %v1001_v18 = vadd.f32 %v1000_v13, %v567_v50  ;;  %v1002_v26 = vpop.f32.mrb[83].mxu0  ;;  %v3050_v10 = vpop.eup %3049  ;;  %2354 = vst [vmem:[#allocation2 + $0x1f8] sm:$0xff] %v2226_v25  ;;  %v2228_v35 = vmul.f32 %v3048_v8, %v4293_v9  ;;  %3069 = vpow2.f32 %v2543_v4  ;;  %v1208_v53 = vmul.f32 %v3846_v19, %v999_v32 }
 0x19d   :  { %v1003_v38 = vadd.f32 %v1002_v26, %v569_v7  ;;  %v3052_v30 = vpop.eup %3051  ;;  %2355 = vst [vmem:[#allocation2 + $0x200] sm:$0xff] %v2227_v58  ;;  %v2229_v33 = vmul.f32 %v3050_v10, %v4299_v49  ;;  %3071 = vpow2.f32 %v2544_v55  ;;  %v4387_v46 = vadd.f32 %v3848_v21, %v1207_v29  ;;  %v573_v17 = vpop.f32.mrb[84].mxu1 }
 0x19e   :  { %v1209_v61 = vmul.f32 %v3844_v16, %v1001_v18  ;;  %v3054_v0 = vpop.eup %3053  ;;  %2356 = vst [vmem:[#allocation2 + $0x208] sm:$0xff] %v2228_v35  ;;  %v1850_v1 = vadd.f32 1.0, %v3052_v30  ;;  %3073 = vpow2.f32 %v2545_v20  ;;  %v4391_v9 = vadd.f32 %v3850_v27, %v1208_v53  ;;  %v1006_v47 = vpop.f32.mrb[84].mxu0 }
 0x19f   :  { %v1210_v43 = vmul.f32 %v3846_v19, %v1003_v38  ;;  %v3056_v44 = vpop.eup %3055  ;;  %2357 = vst [vmem:[#allocation2 + $0x210] sm:$0xff] %v2229_v33  ;;  %v1851_v41 = vadd.f32 1.0, %v3054_v0  ;;  %3075 = vpow2.f32 %v2546_v60  ;;  %v2547_v49 = vmul.f32 -1.442695, %v4387_v46  ;;  %v575_v55 = vpop.f32.mrb[85].mxu1 }
 0x1a0   :  { %v4396_v3 = vadd.f32 %v3848_v21, %v1209_v61  ;;  %v3058_v52 = vpop.eup %3057  ;;  %3077 = vrcp.f32 %v1850_v1  ;;  %v1852_v2 = vadd.f32 1.0, %v3056_v44  ;;  %v2548_v48 = vmul.f32 -1.442695, %v4391_v9  ;;  %v1008_v37 = vpop.f32.mrb[85].mxu0 }
 0x1a1   :  { %v4400_v24 = vadd.f32 %v3850_v27, %v1210_v43  ;;  %v3060_v39 = vpop.eup %3059  ;;  %3079 = vrcp.f32 %v1851_v41  ;;  %v1853_v4 = vadd.f32 1.0, %v3058_v52  ;;  %v1007_v15 = vadd.f32 %v1006_v47, %v573_v17  ;;  %v577_v62 = vpop.f32.mrb[86].mxu1 }
 0x1a2   :  { %v2549_v31 = vmul.f32 -1.442695, %v4396_v3  ;;  %v3062_v40 = vpop.eup %3061  ;;  %v2230_v23 = vmul.f32 %v3060_v39, %v4304_v22  ;;  %3081 = vrcp.f32 %v1852_v2  ;;  %v1009_v20 = vadd.f32 %v1008_v37, %v575_v55  ;;  %v1010_v51 = vpop.f32.mrb[86].mxu0 }
 0x1a3   :  { %v2550_v34 = vmul.f32 -1.442695, %v4400_v24  ;;  %v3064_v45 = vpop.eup %3063  ;;  %v2231_v5 = vmul.f32 %v3062_v40, %v4314_v54  ;;  %3083 = vrcp.f32 %v1853_v4  ;;  %v1211_v25 = vmul.f32 %v3844_v16, %v1007_v15  ;;  %v579_v32 = vpop.f32.mrb[87].mxu1 }
 0x1a4   :  { %v1011_v60 = vadd.f32 %v1010_v51, %v577_v62  ;;  %v1012_v50 = vpop.f32.mrb[87].mxu0  ;;  %v3066_v13 = vpop.eup %3065  ;;  %2358 = vst [vmem:[#allocation2 + $0x218] sm:$0xff] %v2230_v23  ;;  %v2232_v8 = vmul.f32 %v3064_v45, %v4318_v28  ;;  %3085 = vpow2.f32 %v2547_v49  ;;  %v1212_v22 = vmul.f32 %v3846_v19, %v1009_v20 }
 0x1a5   :  { %v1013_v58 = vadd.f32 %v1012_v50, %v579_v32  ;;  %v3068_v29 = vpop.eup %3067  ;;  %2359 = vst [vmem:[#allocation2 + $0x220] sm:$0xff] %v2231_v5  ;;  %v2233_v18 = vmul.f32 %v3066_v13, %v4323_v59  ;;  %3087 = vpow2.f32 %v2548_v48  ;;  %v4411_v54 = vadd.f32 %v3848_v21, %v1211_v25  ;;  %v583_v43 = vpop.f32.mrb[88].mxu1 }
 0x1a6   :  { %v1213_v7 = vmul.f32 %v3844_v16, %v1011_v60  ;;  %v3070_v26 = vpop.eup %3069  ;;  %2360 = vst [vmem:[#allocation2 + $0x228] sm:$0xff] %v2232_v8  ;;  %v1854_v10 = vadd.f32 1.0, %v3068_v29  ;;  %3089 = vpow2.f32 %v2549_v31  ;;  %v4415_v28 = vadd.f32 %v3850_v27, %v1212_v22  ;;  %v1016_v44 = vpop.f32.mrb[88].mxu0 }
 0x1a7   :  { %v1214_v35 = vmul.f32 %v3846_v19, %v1013_v58  ;;  %v3072_v53 = vpop.eup %3071  ;;  %2361 = vst [vmem:[#allocation2 + $0x230] sm:$0xff] %v2233_v18  ;;  %v1855_v38 = vadd.f32 1.0, %v3070_v26  ;;  %3091 = vpow2.f32 %v2550_v34  ;;  %v2551_v59 = vmul.f32 -1.442695, %v4411_v54  ;;  %v585_v48 = vpop.f32.mrb[89].mxu1 }
 0x1a8   :  { %v4420_v30 = vadd.f32 %v3848_v21, %v1213_v7  ;;  %v3074_v33 = vpop.eup %3073  ;;  %3093 = vrcp.f32 %v1854_v10  ;;  %v1856_v61 = vadd.f32 1.0, %v3072_v53  ;;  %v2552_v0 = vmul.f32 -1.442695, %v4415_v28  ;;  %v1018_v17 = vpop.f32.mrb[89].mxu0 }
 0x1a9   :  { %v4424_v1 = vadd.f32 %v3850_v27, %v1214_v35  ;;  %v3076_v41 = vpop.eup %3075  ;;  %3095 = vrcp.f32 %v1855_v38  ;;  %v1857_v49 = vadd.f32 1.0, %v3074_v33  ;;  %v1017_v2 = vadd.f32 %v1016_v44, %v583_v43  ;;  %v587_v15 = vpop.f32.mrb[90].mxu1 }
 0x1aa   :  { %v2553_v52 = vmul.f32 -1.442695, %v4420_v30  ;;  %v3078_v47 = vpop.eup %3077  ;;  %3097 = vrcp.f32 %v1856_v61  ;;  %v1858_v39 = vadd.f32 1.0, %v3076_v41  ;;  %v1019_v31 = vadd.f32 %v1018_v17, %v585_v48  ;;  %v1020_v55 = vpop.f32.mrb[90].mxu0 }
 0x1ab   :  { %v2554_v4 = vmul.f32 -1.442695, %v4424_v1  ;;  %v3080_v37 = vpop.eup %3079  ;;  %v2234_v40 = vmul.f32 %v3078_v47, %v4328_v36  ;;  %3099 = vrcp.f32 %v1857_v49  ;;  %v1215_v23 = vmul.f32 %v3844_v16, %v1017_v2  ;;  %v589_v20 = vpop.f32.mrb[91].mxu1 }
 0x1ac   :  { %v1021_v34 = vadd.f32 %v1020_v55, %v587_v15  ;;  %v1022_v62 = vpop.f32.mrb[91].mxu0  ;;  %v3082_v51 = vpop.eup %3081  ;;  %v2235_v45 = vmul.f32 %v3080_v37, %v4338_v6  ;;  %3101 = vrcp.f32 %v1858_v39  ;;  %v1216_v5 = vmul.f32 %v3846_v19, %v1019_v31 }
 0x1ad   :  { %v1023_v25 = vadd.f32 %v1022_v62, %v589_v20  ;;  %v3084_v60 = vpop.eup %3083  ;;  %2362 = vst [vmem:[#allocation2 + $0x238] sm:$0xff] %v2234_v40  ;;  %v2236_v32 = vmul.f32 %v3082_v51, %v4342_v56  ;;  %3103 = vpow2.f32 %v2551_v59  ;;  %v4434_v36 = vadd.f32 %v3848_v21, %v1215_v23  ;;  %v593_v35 = vpop.f32.mrb[92].mxu1 }
 0x1ae   :  { %v1217_v50 = vmul.f32 %v3844_v16, %v1021_v34  ;;  %v3086_v13 = vpop.eup %3085  ;;  %2363 = vst [vmem:[#allocation2 + $0x240] sm:$0xff] %v2235_v45  ;;  %v2237_v8 = vmul.f32 %v3084_v60, %v4347_v11  ;;  %3105 = vpow2.f32 %v2552_v0  ;;  %v4439_v6 = vadd.f32 %v3850_v27, %v1216_v5  ;;  %v1026_v53 = vpop.f32.mrb[92].mxu0 }
 0x1af   :  { %v1218_v22 = vmul.f32 %v3846_v19, %v1023_v25  ;;  %v3088_v58 = vpop.eup %3087  ;;  %2364 = vst [vmem:[#allocation2 + $0x248] sm:$0xff] %v2236_v32  ;;  %v1859_v29 = vadd.f32 1.0, %v3086_v13  ;;  %3107 = vpow2.f32 %v2553_v52  ;;  %v2555_v56 = vmul.f32 -1.442695, %v4434_v36  ;;  %v595_v0 = vpop.f32.mrb[93].mxu1 }
 0x1b0   :  { %v4444_v18 = vadd.f32 %v3848_v21, %v1217_v50  ;;  %v3090_v7 = vpop.eup %3089  ;;  %2365 = vst [vmem:[#allocation2 + $0x250] sm:$0xff] %v2237_v8  ;;  %v1860_v26 = vadd.f32 1.0, %v3088_v58  ;;  %3109 = vpow2.f32 %v2554_v4  ;;  %v2556_v11 = vmul.f32 -1.442695, %v4439_v6  ;;  %v1028_v43 = vpop.f32.mrb[93].mxu0 }
 0x1b1   :  { %v4448_v10 = vadd.f32 %v3850_v27, %v1218_v22  ;;  %v3092_v38 = vpop.eup %3091  ;;  %3111 = vrcp.f32 %v1859_v29  ;;  %v1861_v59 = vadd.f32 1.0, %v3090_v7  ;;  %v1027_v61 = vadd.f32 %v1026_v53, %v593_v35  ;;  %v597_v2 = vpop.f32.mrb[94].mxu1 }
 0x1b2   :  { %v2557_v33 = vmul.f32 -1.442695, %v4444_v18  ;;  %v3094_v44 = vpop.eup %3093  ;;  %3113 = vrcp.f32 %v1860_v26  ;;  %v1862_v41 = vadd.f32 1.0, %v3092_v38  ;;  %v1029_v52 = vadd.f32 %v1028_v43, %v595_v0  ;;  %v1030_v48 = vpop.f32.mrb[94].mxu0 }
 0x1b3   :  { %v2558_v49 = vmul.f32 -1.442695, %v4448_v10  ;;  %v3096_v17 = vpop.eup %3095  ;;  %v2238_v47 = vmul.f32 %v3094_v44, %v4351_v63  ;;  %3115 = vrcp.f32 %v1861_v59  ;;  %v1219_v39 = vmul.f32 %v3844_v16, %v1027_v61  ;;  %v599_v31 = vpop.f32.mrb[95].mxu1 }
 0x1b4   :  { %v1031_v4 = vadd.f32 %v1030_v48, %v597_v2  ;;  %v1032_v15 = vpop.f32.mrb[95].mxu0  ;;  %v3098_v55 = vpop.eup %3097  ;;  %v2239_v37 = vmul.f32 %v3096_v17, %v4362_v14  ;;  %3117 = vrcp.f32 %v1862_v41  ;;  %v1220_v40 = vmul.f32 %v3846_v19, %v1029_v52 }
 0x1b5   :  { %v1033_v23 = vadd.f32 %v1032_v15, %v599_v31  ;;  %v3100_v34 = vpop.eup %3099  ;;  %2366 = vst [vmem:[#allocation2 + $0x258] sm:$0xff] %v2238_v47  ;;  %v2240_v20 = vmul.f32 %v3098_v55, %v4366_v12  ;;  %3119 = vpow2.f32 %v2555_v56  ;;  %v4458_v63 = vadd.f32 %v3848_v21, %v1219_v39  ;;  %v603_v22 = vpop.f32.mrb[96].mxu1 }
 0x1b6   :  { %v1221_v62 = vmul.f32 %v3844_v16, %v1031_v4  ;;  %v3102_v51 = vpop.eup %3101  ;;  %2367 = vst [vmem:[#allocation2 + $0x260] sm:$0xff] %v2239_v37  ;;  %v2241_v45 = vmul.f32 %v3100_v34, %v4371_v42  ;;  %3121 = vpow2.f32 %v2556_v11  ;;  %v4463_v14 = vadd.f32 %v3850_v27, %v1220_v40  ;;  %v1036_v58 = vpop.f32.mrb[96].mxu0 }
 0x1b7   :  { %v1222_v5 = vmul.f32 %v3846_v19, %v1033_v23  ;;  %v3104_v25 = vpop.eup %3103  ;;  %2368 = vst [vmem:[#allocation2 + $0x268] sm:$0xff] %v2240_v20  ;;  %v2242_v12 = vmul.f32 %v3102_v51, %v4375_v57  ;;  %3123 = vpow2.f32 %v2557_v33  ;;  %v2559_v60 = vmul.f32 -1.442695, %v4458_v63  ;;  %v605_v26 = vpop.f32.mrb[97].mxu1 }
 0x1b8   :  { %v4469_v32 = vadd.f32 %v3848_v21, %v1221_v62  ;;  %v3106_v50 = vpop.eup %3105  ;;  %2369 = vst [vmem:[#allocation2 + $0x270] sm:$0xff] %v2241_v45  ;;  %v1863_v13 = vadd.f32 1.0, %v3104_v25  ;;  %3125 = vpow2.f32 %v2558_v49  ;;  %v2560_v42 = vmul.f32 -1.442695, %v4463_v14  ;;  %v1038_v11 = vpop.f32.mrb[97].mxu0 }
 0x1b9   :  { %v4473_v8 = vadd.f32 %v3850_v27, %v1222_v5  ;;  %v3108_v29 = vpop.eup %3107  ;;  %2370 = vst [vmem:[#allocation2 + $0x278] sm:$0xff] %v2242_v12  ;;  %v1864_v57 = vadd.f32 1.0, %v3106_v50  ;;  %3127 = vpow2.f32 %v2559_v60  ;;  %v1037_v7 = vadd.f32 %v1036_v58, %v603_v22  ;;  %v607_v33 = vpop.f32.mrb[98].mxu1 }
 0x1ba   :  { %v2561_v56 = vmul.f32 -1.442695, %v4469_v32  ;;  %v3110_v35 = vpop.eup %3109  ;;  %3129 = vrcp.f32 %v1863_v13  ;;  %v1865_v53 = vadd.f32 1.0, %v3108_v29  ;;  %v1039_v59 = vadd.f32 %v1038_v11, %v605_v26  ;;  %v1040_v61 = vpop.f32.mrb[98].mxu0 }
 0x1bb   :  { %v2562_v38 = vmul.f32 -1.442695, %v4473_v8  ;;  %v3112_v0 = vpop.eup %3111  ;;  %3131 = vrcp.f32 %v1864_v57  ;;  %v1866_v43 = vadd.f32 1.0, %v3110_v35  ;;  %v1223_v44 = vmul.f32 %v3844_v16, %v1037_v7  ;;  %v609_v49 = vpop.f32.mrb[99].mxu1 }
 0x1bc   :  { %v1041_v41 = vadd.f32 %v1040_v61, %v607_v33  ;;  %v1042_v52 = vpop.f32.mrb[99].mxu0  ;;  %v3114_v2 = vpop.eup %3113  ;;  %v2243_v48 = vmul.f32 %v3112_v0, %v4387_v46  ;;  %3133 = vrcp.f32 %v1865_v53  ;;  %v1224_v17 = vmul.f32 %v3846_v19, %v1039_v59 }
 0x1bd   :  { %v1043_v47 = vadd.f32 %v1042_v52, %v609_v49  ;;  %v3116_v39 = vpop.eup %3115  ;;  %v2244_v4 = vmul.f32 %v3114_v2, %v4391_v9  ;;  %3135 = vrcp.f32 %v1866_v43  ;;  %v4482_v31 = vadd.f32 %v3848_v21, %v1223_v44  ;;  %v613_v5 = vpop.f32.mrb[100].mxu1 }
 0x1be   :  { %v1225_v15 = vmul.f32 %v3844_v16, %v1041_v41  ;;  %v3118_v55 = vpop.eup %3117  ;;  %2371 = vst [vmem:[#allocation2 + $0x280] sm:$0xff] %v2243_v48  ;;  %v2245_v37 = vmul.f32 %v3116_v39, %v4396_v3  ;;  %3137 = vpow2.f32 %v2560_v42  ;;  %v4487_v46 = vadd.f32 %v3850_v27, %v1224_v17  ;;  %v1046_v25 = vpop.f32.mrb[100].mxu0 }
 0x1bf   :  { %v1226_v40 = vmul.f32 %v3846_v19, %v1043_v47  ;;  %v3120_v23 = vpop.eup %3119  ;;  %2372 = vst [vmem:[#allocation2 + $0x288] sm:$0xff] %v2244_v4  ;;  %v2246_v9 = vmul.f32 %v3118_v55, %v4400_v24  ;;  %3139 = vpow2.f32 %v2561_v56  ;;  %v2563_v34 = vmul.f32 -1.442695, %v4482_v31  ;;  %v615_v13 = vpop.f32.mrb[101].mxu1 }
 0x1c0   :  { %v4493_v20 = vadd.f32 %v3848_v21, %v1225_v15  ;;  %v3122_v62 = vpop.eup %3121  ;;  %2373 = vst [vmem:[#allocation2 + $0x290] sm:$0xff] %v2245_v37  ;;  %v1867_v51 = vadd.f32 1.0, %v3120_v23  ;;  %3141 = vpow2.f32 %v2562_v38  ;;  %v2564_v3 = vmul.f32 -1.442695, %v4487_v46  ;;  %v1048_v42 = vpop.f32.mrb[101].mxu0 }
 0x1c1   :  { %v4497_v45 = vadd.f32 %v3850_v27, %v1226_v40  ;;  %v3124_v12 = vpop.eup %3123  ;;  %2374 = vst [vmem:[#allocation2 + $0x298] sm:$0xff] %v2246_v9  ;;  %v1868_v24 = vadd.f32 1.0, %v3122_v62  ;;  %3143 = vpow2.f32 %v2563_v34  ;;  %v1047_v50 = vadd.f32 %v1046_v25, %v613_v5  ;;  %v617_v56 = vpop.f32.mrb[102].mxu1 }
 0x1c2   :  { %v2565_v60 = vmul.f32 -1.442695, %v4493_v20  ;;  %v3126_v22 = vpop.eup %3125  ;;  %3145 = vrcp.f32 %v1867_v51  ;;  %v1869_v58 = vadd.f32 1.0, %v3124_v12  ;;  %v1049_v57 = vadd.f32 %v1048_v42, %v615_v13  ;;  %v1050_v7 = vpop.f32.mrb[102].mxu0 }
 0x1c3   :  { %v2566_v29 = vmul.f32 -1.442695, %v4497_v45  ;;  %v3128_v26 = vpop.eup %3127  ;;  %3147 = vrcp.f32 %v1868_v24  ;;  %v1870_v11 = vadd.f32 1.0, %v3126_v22  ;;  %v1227_v35 = vmul.f32 %v3844_v16, %v1047_v50  ;;  %v619_v38 = vpop.f32.mrb[103].mxu1 }
 0x1c4   :  { %v1051_v53 = vadd.f32 %v1050_v7, %v617_v56  ;;  %v1052_v59 = vpop.f32.mrb[103].mxu0  ;;  %v3130_v33 = vpop.eup %3129  ;;  %3149 = vrcp.f32 %v1869_v58  ;;  %v1871_v61 = vadd.f32 1.0, %v3128_v26  ;;  %v1228_v0 = vmul.f32 %v3846_v19, %v1049_v57 }
 0x1c5   :  { %v1053_v43 = vadd.f32 %v1052_v59, %v619_v38  ;;  %v3132_v44 = vpop.eup %3131  ;;  %v2247_v41 = vmul.f32 %v3130_v33, %v4411_v54  ;;  %3151 = vrcp.f32 %v1870_v11  ;;  %v4505_v49 = vadd.f32 %v3848_v21, %v1227_v35  ;;  %v623_v23 = vpop.f32.mrb[104].mxu1 }
 0x1c6   :  { %v1229_v52 = vmul.f32 %v3844_v16, %v1051_v53  ;;  %v3134_v2 = vpop.eup %3133  ;;  %v2248_v48 = vmul.f32 %v3132_v44, %v4415_v28  ;;  %3153 = vrcp.f32 %v1871_v61  ;;  %v4510_v17 = vadd.f32 %v3850_v27, %v1228_v0  ;;  %v1056_v9 = vpop.f32.mrb[104].mxu0 }
 0x1c7   :  { %v1230_v47 = vmul.f32 %v3846_v19, %v1053_v43  ;;  %v3136_v39 = vpop.eup %3135  ;;  %2375 = vst [vmem:[#allocation2 + $0x2a0] sm:$0xff] %v2247_v41  ;;  %v2249_v4 = vmul.f32 %v3134_v2, %v4420_v30  ;;  %3155 = vpow2.f32 %v2564_v3  ;;  %v2567_v54 = vmul.f32 -1.442695, %v4505_v49  ;;  %v625_v3 = vpop.f32.mrb[105].mxu1 }
 0x1c8   :  { %v4516_v15 = vadd.f32 %v3848_v21, %v1229_v52  ;;  %v3138_v55 = vpop.eup %3137  ;;  %2376 = vst [vmem:[#allocation2 + $0x2a8] sm:$0xff] %v2248_v48  ;;  %v2250_v28 = vmul.f32 %v3136_v39, %v4424_v1  ;;  %3157 = vpow2.f32 %v2565_v60  ;;  %v2568_v37 = vmul.f32 -1.442695, %v4510_v17  ;;  %v1058_v5 = vpop.f32.mrb[105].mxu0 }
 0x1c9   :  { %v4521_v40 = vadd.f32 %v3850_v27, %v1230_v47  ;;  %v3140_v34 = vpop.eup %3139  ;;  %2377 = vst [vmem:[#allocation2 + $0x2b0] sm:$0xff] %v2249_v4  ;;  %v1872_v30 = vadd.f32 1.0, %v3138_v55  ;;  %3159 = vpow2.f32 %v2566_v29  ;;  %v1057_v51 = vadd.f32 %v1056_v9, %v623_v23  ;;  %v627_v60 = vpop.f32.mrb[106].mxu1 }
 0x1ca   :  { %v2569_v62 = vmul.f32 -1.442695, %v4516_v15  ;;  %v3142_v25 = vpop.eup %3141  ;;  %2378 = vst [vmem:[#allocation2 + $0x2b8] sm:$0xff] %v2250_v28  ;;  %v1873_v1 = vadd.f32 1.0, %v3140_v34  ;;  %3161 = vpow2.f32 %v2567_v54  ;;  %v1059_v24 = vadd.f32 %v1058_v5, %v625_v3  ;;  %v1060_v50 = vpop.f32.mrb[106].mxu0 }
 0x1cb   :  { %v2570_v12 = vmul.f32 -1.442695, %v4521_v40  ;;  %v3144_v13 = vpop.eup %3143  ;;  %3163 = vrcp.f32 %v1872_v30  ;;  %v1874_v42 = vadd.f32 1.0, %v3142_v25  ;;  %v1231_v22 = vmul.f32 %v3844_v16, %v1057_v51  ;;  %v629_v29 = vpop.f32.mrb[107].mxu1 }
 0x1cc   :  { %v1061_v58 = vadd.f32 %v1060_v50, %v627_v60  ;;  %v1062_v57 = vpop.f32.mrb[107].mxu0  ;;  %v3146_v56 = vpop.eup %3145  ;;  %3165 = vrcp.f32 %v1873_v1  ;;  %v1875_v7 = vadd.f32 1.0, %v3144_v13  ;;  %v1232_v26 = vmul.f32 %v3846_v19, %v1059_v24 }
 0x1cd   :  { %v1063_v11 = vadd.f32 %v1062_v57, %v629_v29  ;;  %v3148_v35 = vpop.eup %3147  ;;  %v2251_v53 = vmul.f32 %v3146_v56, %v4434_v36  ;;  %3167 = vrcp.f32 %v1874_v42  ;;  %v4529_v38 = vadd.f32 %v3848_v21, %v1231_v22  ;;  %v633_v39 = vpop.f32.mrb[108].mxu1 }
 0x1ce   :  { %v1233_v59 = vmul.f32 %v3844_v16, %v1061_v58  ;;  %v3150_v33 = vpop.eup %3149  ;;  %v2252_v61 = vmul.f32 %v3148_v35, %v4439_v6  ;;  %3169 = vrcp.f32 %v1875_v7  ;;  %v4534_v0 = vadd.f32 %v3850_v27, %v1232_v26  ;;  %v1066_v4 = vpop.f32.mrb[108].mxu0 }
 0x1cf   :  { %v1234_v43 = vmul.f32 %v3846_v19, %v1063_v11  ;;  %v3152_v44 = vpop.eup %3151  ;;  %2379 = vst [vmem:[#allocation2 + $0x2c0] sm:$0xff] %v2251_v53  ;;  %v2253_v41 = vmul.f32 %v3150_v33, %v4444_v18  ;;  %3171 = vpow2.f32 %v2568_v37  ;;  %v2571_v36 = vmul.f32 -1.442695, %v4529_v38  ;;  %v635_v37 = vpop.f32.mrb[109].mxu1 }
 0x1d0   :  { %v4540_v52 = vadd.f32 %v3848_v21, %v1233_v59  ;;  %v3154_v2 = vpop.eup %3153  ;;  %2380 = vst [vmem:[#allocation2 + $0x2c8] sm:$0xff] %v2252_v61  ;;  %v2254_v6 = vmul.f32 %v3152_v44, %v4448_v10  ;;  %3173 = vpow2.f32 %v2569_v62  ;;  %v2572_v48 = vmul.f32 -1.442695, %v4534_v0  ;;  %v1068_v23 = vpop.f32.mrb[109].mxu0 }
 0x1d1   :  { %v4545_v47 = vadd.f32 %v3850_v27, %v1234_v43  ;;  %v3156_v54 = vpop.eup %3155  ;;  %2381 = vst [vmem:[#allocation2 + $0x2d0] sm:$0xff] %v2253_v41  ;;  %v2255_v18 = vmul.f32 %v3154_v2, %v4458_v63  ;;  %3175 = vpow2.f32 %v2570_v12  ;;  %v1067_v28 = vadd.f32 %v1066_v4, %v633_v39  ;;  %v637_v62 = vpop.f32.mrb[110].mxu1 }
 0x1d2   :  { %v2573_v55 = vmul.f32 -1.442695, %v4540_v52  ;;  %v3158_v9 = vpop.eup %3157  ;;  %2382 = vst [vmem:[#allocation2 + $0x2d8] sm:$0xff] %v2254_v6  ;;  %v1876_v10 = vadd.f32 1.0, %v3156_v54  ;;  %3177 = vpow2.f32 %v2571_v36  ;;  %v1069_v30 = vadd.f32 %v1068_v23, %v635_v37  ;;  %v1070_v51 = vpop.f32.mrb[110].mxu0 }
 0x1d3   :  { %v2574_v34 = vmul.f32 -1.442695, %v4545_v47  ;;  %v3160_v3 = vpop.eup %3159  ;;  %2383 = vst [vmem:[#allocation2 + $0x2e0] sm:$0xff] %v2255_v18  ;;  %v1877_v5 = vadd.f32 1.0, %v3158_v9  ;;  %3179 = vpow2.f32 %v2572_v48  ;;  %v1235_v63 = vmul.f32 %v3844_v16, %v1067_v28  ;;  %v639_v1 = vpop.f32.mrb[111].mxu1 }
 0x1d4   :  { %v1071_v25 = vadd.f32 %v1070_v51, %v637_v62  ;;  %v1072_v12 = vpop.f32.mrb[111].mxu0  ;;  %v3162_v24 = vpop.eup %3161  ;;  %3181 = vrcp.f32 %v1876_v10  ;;  %v1878_v60 = vadd.f32 1.0, %v3160_v3  ;;  %v1236_v50 = vmul.f32 %v3846_v19, %v1069_v30 }
 0x1d5   :  { %v1073_v13 = vadd.f32 %v1072_v12, %v639_v1  ;;  %v3164_v42 = vpop.eup %3163  ;;  %3183 = vrcp.f32 %v1877_v5  ;;  %v1879_v22 = vadd.f32 1.0, %v3162_v24  ;;  %v4553_v58 = vadd.f32 %v3848_v21, %v1235_v63  ;;  %v643_v44 = vpop.f32.mrb[112].mxu1 }
 0x1d6   :  { %v1237_v29 = vmul.f32 %v3844_v16, %v1071_v25  ;;  %v3166_v57 = vpop.eup %3165  ;;  %v2256_v56 = vmul.f32 %v3164_v42, %v4463_v14  ;;  %3185 = vrcp.f32 %v1878_v60  ;;  %v4558_v7 = vadd.f32 %v3850_v27, %v1236_v50  ;;  %v1076_v41 = vpop.f32.mrb[112].mxu0 }
 0x1d7   :  { %v1238_v26 = vmul.f32 %v3846_v19, %v1073_v13  ;;  %v3168_v11 = vpop.eup %3167  ;;  %v2257_v35 = vmul.f32 %v3166_v57, %v4469_v32  ;;  %3187 = vrcp.f32 %v1879_v22  ;;  %v2575_v53 = vmul.f32 -1.442695, %v4553_v58  ;;  %v645_v48 = vpop.f32.mrb[113].mxu1 }
 0x1d8   :  { %v4564_v59 = vadd.f32 %v3848_v21, %v1237_v29  ;;  %v3170_v33 = vpop.eup %3169  ;;  %2384 = vst [vmem:[#allocation2 + $0x2e8] sm:$0xff] %v2256_v56  ;;  %v2258_v61 = vmul.f32 %v3168_v11, %v4473_v8  ;;  %3189 = vpow2.f32 %v2573_v55  ;;  %v2576_v14 = vmul.f32 -1.442695, %v4558_v7  ;;  %v1078_v39 = vpop.f32.mrb[113].mxu0 }
 0x1d9   :  { %v4569_v43 = vadd.f32 %v3850_v27, %v1238_v26  ;;  %v3172_v36 = vpop.eup %3171  ;;  %2385 = vst [vmem:[#allocation2 + $0x2f0] sm:$0xff] %v2257_v35  ;;  %v2259_v32 = vmul.f32 %v3170_v33, %v4482_v31  ;;  %3191 = vpow2.f32 %v2574_v34  ;;  %v1077_v6 = vadd.f32 %v1076_v41, %v643_v44  ;;  %v647_v55 = vpop.f32.mrb[114].mxu1 }
 0x1da   :  { %v2577_v2 = vmul.f32 -1.442695, %v4564_v59  ;;  %v3174_v4 = vpop.eup %3173  ;;  %2386 = vst [vmem:[#allocation2 + $0x2f8] sm:$0xff] %v2258_v61  ;;  %v1880_v8 = vadd.f32 1.0, %v3172_v36  ;;  %3193 = vpow2.f32 %v2575_v53  ;;  %v1079_v18 = vadd.f32 %v1078_v39, %v645_v48  ;;  %v1080_v28 = vpop.f32.mrb[114].mxu0 }
 0x1db   :  { %v2578_v54 = vmul.f32 -1.442695, %v4569_v43  ;;  %v3176_v37 = vpop.eup %3175  ;;  %2387 = vst [vmem:[#allocation2 + $0x300] sm:$0xff] %v2259_v32  ;;  %v1881_v23 = vadd.f32 1.0, %v3174_v4  ;;  %3195 = vpow2.f32 %v2576_v14  ;;  %v1239_v31 = vmul.f32 %v3844_v16, %v1077_v6  ;;  %v649_v10 = vpop.f32.mrb[115].mxu1 }
 0x1dc   :  { %v1081_v9 = vadd.f32 %v1080_v28, %v647_v55  ;;  %v1082_v34 = vpop.f32.mrb[115].mxu0  ;;  %v3178_v30 = vpop.eup %3177  ;;  %3197 = vrcp.f32 %v1880_v8  ;;  %v1882_v62 = vadd.f32 1.0, %v3176_v37  ;;  %v1240_v51 = vmul.f32 %v3846_v19, %v1079_v18 }
 0x1dd   :  { %v1083_v3 = vadd.f32 %v1082_v34, %v649_v10  ;;  %v3180_v5 = vpop.eup %3179  ;;  %3199 = vrcp.f32 %v1881_v23  ;;  %v1883_v63 = vadd.f32 1.0, %v3178_v30  ;;  %v4577_v25 = vadd.f32 %v3848_v21, %v1239_v31  ;;  %v653_v35 = vpop.f32.mrb[116].mxu1 }
 0x1de   :  { %v1241_v1 = vmul.f32 %v3844_v16, %v1081_v9  ;;  %v3182_v12 = vpop.eup %3181  ;;  %3201 = vrcp.f32 %v1882_v62  ;;  %v1884_v24 = vadd.f32 1.0, %v3180_v5  ;;  %v4581_v60 = vadd.f32 %v3850_v27, %v1240_v51  ;;  %v1086_v53 = vpop.f32.mrb[116].mxu0 }
 0x1df   :  { %v1242_v50 = vmul.f32 %v3846_v19, %v1083_v3  ;;  %v3184_v13 = vpop.eup %3183  ;;  %v2260_v42 = vmul.f32 %v3182_v12, %v4487_v46  ;;  %3203 = vrcp.f32 %v1883_v63  ;;  %v2579_v22 = vmul.f32 -1.442695, %v4577_v25  ;;  %v655_v44 = vpop.f32.mrb[117].mxu1 }
 0x1e0   :  { %v4587_v29 = vadd.f32 %v3848_v21, %v1241_v1  ;;  %v3186_v57 = vpop.eup %3185  ;;  %v2261_v56 = vmul.f32 %v3184_v13, %v4493_v20  ;;  %3205 = vrcp.f32 %v1884_v24  ;;  %v2580_v26 = vmul.f32 -1.442695, %v4581_v60  ;;  %v1088_v41 = vpop.f32.mrb[117].mxu0 }
 0x1e1   :  { %v4592_v11 = vadd.f32 %v3850_v27, %v1242_v50  ;;  %v3188_v33 = vpop.eup %3187  ;;  %2388 = vst [vmem:[#allocation2 + $0x308] sm:$0xff] %v2260_v42  ;;  %v2262_v46 = vmul.f32 %v3186_v57, %v4497_v45  ;;  %3207 = vpow2.f32 %v2577_v2  ;;  %v1087_v14 = vadd.f32 %v1086_v53, %v653_v35  ;;  %v657_v48 = vpop.f32.mrb[118].mxu1 }
 0x1e2   :  { %v2581_v61 = vmul.f32 -1.442695, %v4587_v29  ;;  %v3190_v36 = vpop.eup %3189  ;;  %2389 = vst [vmem:[#allocation2 + $0x310] sm:$0xff] %v2261_v56  ;;  %v2263_v20 = vmul.f32 %v3188_v33, %v4505_v49  ;;  %3209 = vpow2.f32 %v2578_v54  ;;  %v1089_v6 = vadd.f32 %v1088_v41, %v655_v44  ;;  %v1090_v39 = vpop.f32.mrb[118].mxu0 }
 0x1e3   :  { %v2582_v32 = vmul.f32 -1.442695, %v4592_v11  ;;  %v3192_v4 = vpop.eup %3191  ;;  %2390 = vst [vmem:[#allocation2 + $0x318] sm:$0xff] %v2262_v46  ;;  %v1885_v8 = vadd.f32 1.0, %v3190_v36  ;;  %3211 = vpow2.f32 %v2579_v22  ;;  %v1243_v45 = vmul.f32 %v3844_v16, %v1087_v14  ;;  %v659_v18 = vpop.f32.mrb[119].mxu1 }
 0x1e4   :  { %v1091_v2 = vadd.f32 %v1090_v39, %v657_v48  ;;  %v1092_v55 = vpop.f32.mrb[119].mxu0  ;;  %v3194_v28 = vpop.eup %3193  ;;  %2391 = vst [vmem:[#allocation2 + $0x320] sm:$0xff] %v2263_v20  ;;  %v1886_v37 = vadd.f32 1.0, %v3192_v4  ;;  %3213 = vpow2.f32 %v2580_v26  ;;  %v1244_v49 = vmul.f32 %v3846_v19, %v1089_v6 }
 0x1e5   :  { %v1093_v54 = vadd.f32 %v1092_v55, %v659_v18  ;;  %v3196_v23 = vpop.eup %3195  ;;  %3215 = vrcp.f32 %v1885_v8  ;;  %v1887_v31 = vadd.f32 1.0, %v3194_v28  ;;  %v4601_v9 = vadd.f32 %v3848_v21, %v1243_v45  ;;  %v663_v42 = vpop.f32.mrb[120].mxu1 }
 0x1e6   :  { %v1245_v10 = vmul.f32 %v3844_v16, %v1091_v2  ;;  %v3198_v34 = vpop.eup %3197  ;;  %3217 = vrcp.f32 %v1886_v37  ;;  %v1888_v30 = vadd.f32 1.0, %v3196_v23  ;;  %v4605_v62 = vadd.f32 %v3850_v27, %v1244_v49  ;;  %v1096_v22 = vpop.f32.mrb[120].mxu0 }
 0x1e7   :  { %v1246_v51 = vmul.f32 %v3846_v19, %v1093_v54  ;;  %v3200_v3 = vpop.eup %3199  ;;  %v2264_v5 = vmul.f32 %v3198_v34, %v4510_v17  ;;  %3219 = vrcp.f32 %v1887_v31  ;;  %v2583_v63 = vmul.f32 -1.442695, %v4601_v9  ;;  %v665_v35 = vpop.f32.mrb[121].mxu1 }
 0x1e8   :  { %v4611_v1 = vadd.f32 %v3848_v21, %v1245_v10  ;;  %v3202_v12 = vpop.eup %3201  ;;  %v2265_v24 = vmul.f32 %v3200_v3, %v4516_v15  ;;  %3221 = vrcp.f32 %v1888_v30  ;;  %v2584_v50 = vmul.f32 -1.442695, %v4605_v62  ;;  %v1098_v53 = vpop.f32.mrb[121].mxu0 }
 0x1e9   :  { %v4616_v13 = vadd.f32 %v3850_v27, %v1246_v51  ;;  %v3204_v57 = vpop.eup %3203  ;;  %2392 = vst [vmem:[#allocation2 + $0x328] sm:$0xff] %v2264_v5  ;;  %v2266_v17 = vmul.f32 %v3202_v12, %v4521_v40  ;;  %3223 = vpow2.f32 %v2581_v61  ;;  %v1097_v26 = vadd.f32 %v1096_v22, %v663_v42  ;;  %v667_v44 = vpop.f32.mrb[122].mxu1 }
 0x1ea   :  { %v2585_v56 = vmul.f32 -1.442695, %v4611_v1  ;;  %v3206_v33 = vpop.eup %3205  ;;  %2393 = vst [vmem:[#allocation2 + $0x330] sm:$0xff] %v2265_v24  ;;  %v2267_v15 = vmul.f32 %v3204_v57, %v4529_v38  ;;  %3225 = vpow2.f32 %v2582_v32  ;;  %v1099_v14 = vadd.f32 %v1098_v53, %v665_v35  ;;  %v1100_v41 = vpop.f32.mrb[122].mxu0 }
 0x1eb   :  { %v2586_v46 = vmul.f32 -1.442695, %v4616_v13  ;;  %v3208_v36 = vpop.eup %3207  ;;  %2394 = vst [vmem:[#allocation2 + $0x338] sm:$0xff] %v2266_v17  ;;  %v2268_v40 = vmul.f32 %v3206_v33, %v4534_v0  ;;  %3227 = vpow2.f32 %v2583_v63  ;;  %v1247_v61 = vmul.f32 %v3844_v16, %v1097_v26  ;;  %v669_v6 = vpop.f32.mrb[123].mxu1 }
 0x1ec   :  { %v1101_v20 = vadd.f32 %v1100_v41, %v667_v44  ;;  %v1102_v48 = vpop.f32.mrb[123].mxu0  ;;  %v3210_v39 = vpop.eup %3209  ;;  %2395 = vst [vmem:[#allocation2 + $0x340] sm:$0xff] %v2267_v15  ;;  %v1889_v4 = vadd.f32 1.0, %v3208_v36  ;;  %3229 = vpow2.f32 %v2584_v50  ;;  %v1248_v38 = vmul.f32 %v3846_v19, %v1099_v14 }
 0x1ed   :  { %v1103_v32 = vadd.f32 %v1102_v48, %v669_v6  ;;  %v3212_v8 = vpop.eup %3211  ;;  %2396 = vst [vmem:[#allocation2 + $0x348] sm:$0xff] %v2268_v40  ;;  %v1890_v45 = vadd.f32 1.0, %v3210_v39  ;;  %3231 = vpow2.f32 %v2585_v56  ;;  %v4626_v2 = vadd.f32 %v3848_v21, %v1247_v61  ;;  %v673_v51 = vpop.f32.mrb[124].mxu1 }
 0x1ee   :  { %v1249_v0 = vmul.f32 %v3844_v16, %v1101_v20  ;;  %v3214_v18 = vpop.eup %3213  ;;  %3233 = vrcp.f32 %v1889_v4  ;;  %v1891_v55 = vadd.f32 1.0, %v3212_v8  ;;  %v4630_v28 = vadd.f32 %v3850_v27, %v1248_v38  ;;  %v1106_v3 = vpop.f32.mrb[124].mxu0 }
 0x1ef   :  { %v1250_v37 = vmul.f32 %v3846_v19, %v1103_v32  ;;  %v3216_v49 = vpop.eup %3215  ;;  %3235 = vrcp.f32 %v1890_v45  ;;  %v1892_v54 = vadd.f32 1.0, %v3214_v18  ;;  %v2587_v23 = vmul.f32 -1.442695, %v4626_v2  ;;  %v675_v50 = vpop.f32.mrb[125].mxu1 }
 0x1f0   :  { %v4635_v31 = vadd.f32 %v3848_v21, %v1249_v0  ;;  %v3218_v10 = vpop.eup %3217  ;;  %v2269_v34 = vmul.f32 %v3216_v49, %v4540_v52  ;;  %3237 = vrcp.f32 %v1891_v55  ;;  %v2588_v30 = vmul.f32 -1.442695, %v4630_v28  ;;  %v1108_v42 = vpop.f32.mrb[125].mxu0 }
 0x1f1   :  { %v3220_v5 = vpop.eup %3219  ;;  %v2270_v63 = vmul.f32 %v3218_v10, %v4545_v47  ;;  %3239 = vrcp.f32 %v1892_v54  ;;  %v1107_v24 = vadd.f32 %v1106_v3, %v673_v51  ;;  %v4643_v52 = vadd.f32 %v3850_v27, %v1250_v37  ;;  %v677_v56 = vpop.f32.mrb[126].mxu1 }
 0x1f2   :  { %v2589_v12 = vmul.f32 -1.442695, %v4635_v31  ;;  %v3222_v22 = vpop.eup %3221  ;;  %2397 = vst [vmem:[#allocation2 + $0x350] sm:$0xff] %v2269_v34  ;;  %v2271_v57 = vmul.f32 %v3220_v5, %v4553_v58  ;;  %3241 = vpow2.f32 %v2586_v46  ;;  %v1109_v17 = vadd.f32 %v1108_v42, %v675_v50  ;;  %v1110_v26 = vpop.f32.mrb[126].mxu0 }
 0x1f3   :  { %v3224_v35 = vpop.eup %3223  ;;  %2398 = vst [vmem:[#allocation2 + $0x358] sm:$0xff] %v2270_v63  ;;  %v2272_v47 = vmul.f32 %v3222_v22, %v4558_v7  ;;  %3243 = vpow2.f32 %v2587_v23  ;;  %v1251_v53 = vmul.f32 %v3844_v16, %v1107_v24  ;;  %v1111_v33 = vadd.f32 %v1110_v26, %v677_v56  ;;  %v679_v15 = vpop.f32.mrb[127].mxu1 }
 0x1f4   :  { %v1112_v14 = vpop.f32.mrb[127].mxu0  ;;  %v3226_v44 = vpop.eup %3225  ;;  %2399 = vst [vmem:[#allocation2 + $0x360] sm:$0xff] %v2271_v57  ;;  %v1893_v58 = vadd.f32 1.0, %v3224_v35  ;;  %3245 = vpow2.f32 %v2588_v30  ;;  %v1252_v46 = vmul.f32 %v3846_v19, %v1109_v17  ;;  %v2590_v48 = vmul.f32 -1.442695, %v4643_v52 }
 0x1f5   :  { %v1113_v41 = vadd.f32 %v1112_v14, %v679_v15  ;;  %v3228_v36 = vpop.eup %3227  ;;  %2400 = vst [vmem:[#allocation2 + $0x368] sm:$0xff] %v2272_v47  ;;  %v1894_v40 = vadd.f32 1.0, %v3226_v44  ;;  %3247 = vpow2.f32 %v2589_v12  ;;  %v4649_v61 = vadd.f32 %v3848_v21, %v1251_v53 }
 0x1f6   :  { %v1253_v7 = vmul.f32 %v3844_v16, %v1111_v33  ;;  %v3230_v20 = vpop.eup %3229  ;;  %3249 = vrcp.f32 %v1893_v58  ;;  %v1895_v6 = vadd.f32 1.0, %v3228_v36  ;;  %v4654_v39 = vadd.f32 %v3850_v27, %v1252_v46 }
 0x1f7   :  { %v3232_v4 = vpop.eup %3231  ;;  %3251 = vrcp.f32 %v1894_v40  ;;  %v1896_v38 = vadd.f32 1.0, %v3230_v20  ;;  %v1254_v8 = vmul.f32 %v3846_v19, %v1113_v41  ;;  %v2591_v16 = vmul.f32 -1.442695, %v4649_v61 }
 0x1f8   :  { %v4657_v32 = vadd.f32 %v3848_v21, %v1253_v7  ;;  %v3234_v45 = vpop.eup %3233  ;;  %3253 = vrcp.f32 %v1895_v6  ;;  %v1897_v0 = vadd.f32 1.0, %v3232_v4  ;;  %v2592_v37 = vmul.f32 -1.442695, %v4654_v39 }
 0x1f9   :  { %v3236_v18 = vpop.eup %3235  ;;  %v2273_v55 = vmul.f32 %v3234_v45, %v4564_v59  ;;  %3255 = vrcp.f32 %v1896_v38  ;;  %v4667_v10 = vadd.f32 %v3850_v27, %v1254_v8 }
 0x1fa   :  { %v3238_v49 = vpop.eup %3237  ;;  %v2274_v54 = vmul.f32 %v3236_v18, %v4569_v43  ;;  %3257 = vrcp.f32 %v1897_v0  ;;  %v2593_v21 = vmul.f32 -1.442695, %v4657_v32 }
 0x1fb   :  { %v3240_v23 = vpop.eup %3239  ;;  %2401 = vst [vmem:[#allocation2 + $0x370] sm:$0xff] %v2273_v55  ;;  %v2275_v19 = vmul.f32 %v3238_v49, %v4577_v25  ;;  %3259 = vpow2.f32 %v2590_v48  ;;  %v2594_v63 = vmul.f32 -1.442695, %v4667_v10 }
 0x1fc   :  { %v3242_v34 = vpop.eup %3241  ;;  %2402 = vst [vmem:[#allocation2 + $0x378] sm:$0xff] %v2274_v54  ;;  %v2276_v59 = vmul.f32 %v3240_v23, %v4581_v60  ;;  %3261 = vpow2.f32 %v2591_v16 }
 0x1fd   :  { %v3244_v30 = vpop.eup %3243  ;;  %2403 = vst [vmem:[#allocation2 + $0x380] sm:$0xff] %v2275_v19  ;;  %v1898_v51 = vadd.f32 1.0, %v3242_v34  ;;  %3263 = vpow2.f32 %v2592_v37 }
 0x1fe   :  { %v3246_v43 = vpop.eup %3245  ;;  %2404 = vst [vmem:[#allocation2 + $0x388] sm:$0xff] %v2276_v59  ;;  %v1899_v3 = vadd.f32 1.0, %v3244_v30  ;;  %3265 = vpow2.f32 %v2593_v21 }
 0x1ff   :  { %v3248_v5 = vpop.eup %3247  ;;  %3267 = vrcp.f32 %v1898_v51  ;;  %v1900_v25 = vadd.f32 1.0, %v3246_v43 }
 0x200   :  { %v3250_v27 = vpop.eup %3249  ;;  %3269 = vrcp.f32 %v1899_v3  ;;  %v1901_v12 = vadd.f32 1.0, %v3248_v5 }
 0x201   :  { %v3252_v24 = vpop.eup %3251  ;;  %v2277_v60 = vmul.f32 %v3250_v27, %v4587_v29  ;;  %3271 = vrcp.f32 %v1900_v25 }
 0x202   :  { %v3254_v50 = vpop.eup %3253  ;;  %v2278_v42 = vmul.f32 %v3252_v24, %v4592_v11  ;;  %3273 = vrcp.f32 %v1901_v12 }
 0x203   :  { %v3256_v22 = vpop.eup %3255  ;;  %2405 = vst [vmem:[#allocation2 + $0x390] sm:$0xff] %v2277_v60  ;;  %v2279_v57 = vmul.f32 %v3254_v50, %v4601_v9  ;;  %3275 = vpow2.f32 %v2594_v63 }
 0x204   :  { %v3258_v17 = vpop.eup %3257  ;;  %2406 = vst [vmem:[#allocation2 + $0x398] sm:$0xff] %v2278_v42  ;;  %v2280_v56 = vmul.f32 %v3256_v22, %v4605_v62 }
 0x205   :  { %v3260_v26 = vpop.eup %3259  ;;  %2407 = vst [vmem:[#allocation2 + $0x3a0] sm:$0xff] %v2279_v57  ;;  %v2281_v35 = vmul.f32 %v3258_v17, %v4611_v1 }
 0x206   :  { %v3262_v47 = vpop.eup %3261  ;;  %2408 = vst [vmem:[#allocation2 + $0x3a8] sm:$0xff] %v2280_v56  ;;  %v1902_v29 = vadd.f32 1.0, %v3260_v26 }
 0x207   :  { %v3264_v53 = vpop.eup %3263  ;;  %2409 = vst [vmem:[#allocation2 + $0x3b0] sm:$0xff] %v2281_v35  ;;  %v1903_v11 = vadd.f32 1.0, %v3262_v47 }
 0x208   :  { %v3266_v33 = vpop.eup %3265  ;;  %3277 = vrcp.f32 %v1902_v29  ;;  %v1904_v15 = vadd.f32 1.0, %v3264_v53 }
 0x209   :  { %v3268_v14 = vpop.eup %3267  ;;  %3279 = vrcp.f32 %v1903_v11  ;;  %v1905_v9 = vadd.f32 1.0, %v3266_v33 }
 0x20a   :  { %v3270_v44 = vpop.eup %3269  ;;  %v2282_v58 = vmul.f32 %v3268_v14, %v4616_v13  ;;  %3281 = vrcp.f32 %v1904_v15 }
 0x20b   :  { %v3272_v62 = vpop.eup %3271  ;;  %v2283_v46 = vmul.f32 %v3270_v44, %v4626_v2  ;;  %3283 = vrcp.f32 %v1905_v9 }
 0x20c   :  { %v3274_v1 = vpop.eup %3273  ;;  %2410 = vst [vmem:[#allocation2 + $0x3b8] sm:$0xff] %v2282_v58  ;;  %v2284_v41 = vmul.f32 %v3272_v62, %v4630_v28 }
 0x20d   :  { %v3276_v36 = vpop.eup %3275  ;;  %2411 = vst [vmem:[#allocation2 + $0x3c0] sm:$0xff] %v2283_v46  ;;  %v2285_v40 = vmul.f32 %v3274_v1, %v4635_v31 }
 0x20e   :  { %2412 = vst [vmem:[#allocation2 + $0x3c8] sm:$0xff] %v2284_v41  ;;  %v1906_v7 = vadd.f32 1.0, %v3276_v36 }
 0x20f   :  { %2413 = vst [vmem:[#allocation2 + $0x3d0] sm:$0xff] %v2285_v40 }
 0x210   :  { %3285 = vrcp.f32 %v1906_v7 }
 0x212   :  { %v3278_v20 = vpop.eup %3277 }
 0x213   :  { %v3280_v6 = vpop.eup %3279  ;;  %v2286_v13 = vmul.f32 %v3278_v20, %v4643_v52 }
 0x214   :  { %v3282_v48 = vpop.eup %3281  ;;  %v2287_v2 = vmul.f32 %v3280_v6, %v4649_v61 }
 0x215   :  { %v3284_v4 = vpop.eup %3283  ;;  %2414 = vst [vmem:[#allocation2 + $0x3d8] sm:$0xff] %v2286_v13  ;;  %v2288_v38 = vmul.f32 %v3282_v48, %v4654_v39 }
 0x216   :  { %2415 = vst [vmem:[#allocation2 + $0x3e0] sm:$0xff] %v2287_v2  ;;  %v2289_v28 = vmul.f32 %v3284_v4, %v4657_v32 }
 0x217   :  { %2416 = vst [vmem:[#allocation2 + $0x3e8] sm:$0xff] %v2288_v38 }
 0x218   :  { %2417 = vst [vmem:[#allocation2 + $0x3f0] sm:$0xff] %v2289_v28 }
 0x21a   :  { %v3286_v31 = vpop.eup %3285 }
 0x21b   :  { %v2290_v8 = vmul.f32 %v3286_v31, %v4667_v10 }
 0x21d   :  { %2418 = vst [vmem:[#allocation2 + $0x3f8] sm:$0xff] %v2290_v8 }
 0x21e   :  { %3298 = shalt.err (!%p3295_p4)
}
 0x21f   :  { %s3299_s12 = scalar_lea.hbm %s4703_s6, 16384 }
 0x220   :  { %p3300_p5 = scmp.ne.s32.totalorder %s4703_s6, %s3299_s12  ;;  %p3303_p6 = scmp.lt.u32.totalorder %s3299_s12, %s4703_s6 }
 0x222   :  { %p3305_p7 = pnand %p3303_p6, %p3300_p5 }
 0x224   :  { %3308 = shalt.err (!%p3305_p7)
}
 0x225   :  { %s3313_s17 = smov 256   ;;  %s3314_s18 = smov 16  }
 0x226   :  { %2430 = dma.vmem_to_hbm [thread:$0]  %s2425_s8, 16384, %s4703_s6, [#allocation3], %s3313_s17, %s3313_s17, %s3314_s18  }
 0x227   :  { %3309 = dma.done.wait [#allocation3], 16384  }
 0x228   :  { %3310 = vsyncadd [#allocation3], 4294950912 }
 0x229   :  { %2434 = vsyncpa [#allocation3], 1 }

</bundles_post_ra>
